<compile_context>
chip_gen: v7x
topology: tpu7x:2x2x1
jax: 0.10.0
libtpu: 0.0.40
codegen_flags: <defaults>
</compile_context>

<pallas_src>
import functools

import numpy as np

import jax
import jax.numpy as jnp
from jax.experimental import pallas as pl
from jax.experimental.pallas import tpu as pltpu

_NEG_BIG = 1e30  # finite mask bias (representable in bf16)


def _device_kind():
    try:
        return jax.devices()[0].device_kind.lower()
    except Exception:
        return ""


def _target_params():
    """Generation-aware budgets: (is_v7x, has_bf16_eup, ws_budget, vmem_limit)."""
    kind = _device_kind()
    is_v7x = "7" in kind                      # v7x: 64 MiB VMEM, 2 TensorCores
    has_bf16_eup = is_v7x or ("v6" in kind)   # bf16 EUP/VPU on v6e / v7x only
    if is_v7x:
        return True, has_bf16_eup, 20 << 20, 48 << 20
    return False, has_bf16_eup, 32 << 20, 64 << 20


def _per_row_bytes(S, E, D, e_pad, cs):
    """Rough per-batch-row VMEM footprint of one grid step (double-buffered I/O
    plus f32 intermediates)."""
    io = S * E * cs + D * cs + S * cs + S * 4 + e_pad * 4
    interm = 4 * S * D * 4
    return 2 * io + interm


def _choose_block_b(b_padded, per_row_bytes, mult, budget_bytes, allow_split):
    """Largest batch block that (a) divides the padded batch, (b) is a multiple
    of the sublane pack (8 f32 / 16 bf16) and (c) keeps the per-step working set
    under budget.  On v7x only, split a single-step grid in two so both
    TensorCores get work (never below the sublane multiple)."""
    cap = (budget_bytes // max(per_row_bytes, 1)) // mult * mult
    cap = max(cap, mult)
    bb = min(b_padded, cap)
    while b_padded % bb:
        bb -= mult
    if allow_split and bb == b_padded and (b_padded // 2) % mult == 0:
        bb = b_padded // 2
    return bb


def _bahdanau_kernel(dec_ref, enc_ref, bias_ref, wenc_ref, wdec_ref, v_ref,
                     ctx_ref, attn_ref, *, d, e, packed, tanh_dtype):
    # Block views per grid step (BB batch rows).  packed=True layouts in [..]:
    #   dec_ref  : (BB, D)                       compute dtype
    #   enc_ref  : (BB, S, E)   [(BB, S/2, 2E)]  compute dtype
    #   bias_ref : (BB, S)                       compute dtype, 0 or -1e30
    #   wenc_ref : (E, D)       [(2E, 2D) block-diag]  resident across grid
    #   wdec_ref : (D, D)       [(D, 2D) tiled]        resident across grid
    #   v_ref    : (1, D)       [(1, 2D) tiled]  f32,  resident across grid
    #   ctx_ref  : (BB, E_pad)                   f32 (lane-dense, zero padded)
    #   attn_ref : (BB, S)                       f32 (grouped [even|odd] if packed)
    bb, s_eff = enc_ref.shape[0], enc_ref.shape[1]

    enc = enc_ref[...]

    # Projections on the MXU with f32 accumulation; M = BB*S_eff fills MXU rows,
    # N = 2D (=128 when packed) fills the output lane width.
    h_enc = jnp.dot(enc.reshape(bb * s_eff, enc.shape[-1]), wenc_ref[...],
                    preferred_element_type=jnp.float32).reshape(bb, s_eff, -1)
    h_dec = jnp.dot(dec_ref[...], wdec_ref[...],
                    preferred_element_type=jnp.float32)              # (BB, d_eff)

    # tanh on full-lane vregs; bf16 EUP (~2x rate) on v6e/v7x, f32 elsewhere.
    t = jnp.tanh((h_enc + h_dec[:, None, :]).astype(tanh_dtype)).astype(jnp.float32)

    # v projection -> per-position score (sequence stays on the lane axis).
    tv = t * v_ref[...]                                              # (BB, s_eff, d_eff)
    if packed:
        score = jnp.concatenate(
            [jnp.sum(tv[..., :d], axis=-1),                          # even positions
             jnp.sum(tv[..., d:], axis=-1)],                         # odd positions
            axis=-1)                                                 # (BB, S) grouped
    else:
        score = jnp.sum(tv, axis=-1)                                 # (BB, S)

    # Additive finite mask bias; softmax over the (lane) sequence axis in f32.
    score = score + bias_ref[...].astype(jnp.float32)
    m = jnp.max(score, axis=-1, keepdims=True)
    ex = jnp.exp(score - m)
    attn = ex / jnp.sum(ex, axis=-1, keepdims=True)                  # (BB, S) f32
    attn_ref[...] = attn

    # Context vector on the MXU; attn kept f32 (MXU has slack at these sizes).
    enc_f = enc.astype(jnp.float32)
    if packed:
        ctx = (jnp.einsum("bqs,bse->bqe", attn[:, None, :s_eff], enc_f[..., :e],
                          preferred_element_type=jnp.float32)
               + jnp.einsum("bqs,bse->bqe", attn[:, None, s_eff:], enc_f[..., e:],
                            preferred_element_type=jnp.float32))[:, 0, :]
    else:
        ctx = jnp.einsum("bqs,bse->bqe", attn[:, None, :], enc_f,
                         preferred_element_type=jnp.float32)[:, 0, :]

    e_pad = ctx_ref.shape[-1]
    if e_pad > e:  # lane-dense store (zero pad); wrapper slices the pad off
        ctx = jnp.concatenate([ctx, jnp.zeros((bb, e_pad - e), jnp.float32)],
                              axis=-1)
    ctx_ref[...] = ctx


def bahdanau_attention(dec_h, enc_outs, mask, w_enc, w_dec, v_w, *,
                       compute_dtype=jnp.bfloat16, block_b=None, pack=None):
    """dec_h: (B, D), enc_outs: (B, S, E), mask: (B, S) (0 = masked position),
    w_enc: (D, E), w_dec: (D, D), v_w: (1, D)  (PyTorch Linear [out, in] layout).
    Returns (ctx: (B, E) f32, attn: (B, S) f32)."""
    B, S, E = enc_outs.shape
    D = dec_h.shape[-1]
    cs = np.dtype(compute_dtype).itemsize

    is_v7x, has_bf16_eup, budget, vmem_limit = _target_params()

    if pack is None:
        # Pack two sequence positions per vreg row when D would otherwise leave
        # the 128-lane axis half empty (binding EUP/VPU stream).
        pack = (S % 2 == 0) and (S >= 2) and (D < 128)
    tanh_dtype = (jnp.bfloat16
                  if has_bf16_eup and np.dtype(compute_dtype) == np.dtype(jnp.bfloat16)
                  else jnp.float32)

    # ---- Parameter / layout prep (tiny, done once per call in XLA) ----
    wenc_t = jnp.asarray(w_enc).astype(compute_dtype).T            # (E, D)
    wdec_t = jnp.asarray(w_dec).astype(compute_dtype).T            # (D, D)
    v_row = jnp.asarray(v_w, jnp.float32).reshape(1, D)            # score math in f32

    dec_c = jnp.asarray(dec_h).astype(compute_dtype)               # (B, D)
    enc_c = jnp.asarray(enc_outs).astype(compute_dtype)            # (B, S, E)
    # Additive mask bias in the compute dtype (halves mask HBM traffic vs f32 {0,1}).
    bias = jnp.where(jnp.asarray(mask) == 0, -_NEG_BIG, 0.0).astype(compute_dtype)

    if pack:
        s_eff, e_eff, d_eff = S // 2, 2 * E, 2 * D
        enc_in = enc_c.reshape(B, s_eff, e_eff)                    # [pos 2p | pos 2p+1]
        wenc_in = jnp.zeros((e_eff, d_eff), compute_dtype)
        wenc_in = wenc_in.at[:E, :D].set(wenc_t).at[E:, D:].set(wenc_t)
        wdec_in = jnp.concatenate([wdec_t, wdec_t], axis=1)        # (D, 2D)
        v_in = jnp.concatenate([v_row, v_row], axis=1)             # (1, 2D)
        bias_in = jnp.concatenate([bias[:, 0::2], bias[:, 1::2]], axis=1)  # grouped
    else:
        s_eff, e_eff, d_eff = S, E, D
        enc_in, wenc_in, wdec_in, v_in, bias_in = enc_c, wenc_t, wdec_t, v_row, bias

    # ---- Batch padding: keep sublane-packed tiles and batch blocking even for
    # ragged B (no single full-extent block that can blow v7x's 64 MiB VMEM). ----
    mult = 8 if cs >= 4 else 16
    b_pad = -(-B // mult) * mult
    if b_pad > B:
        padn = b_pad - B
        dec_c = jnp.pad(dec_c, ((0, padn), (0, 0)))
        enc_in = jnp.pad(enc_in, ((0, padn), (0, 0), (0, 0)))
        bias_in = jnp.pad(bias_in, ((0, padn), (0, 0)))   # bias 0 -> benign rows

    e_pad = -(-E // 128) * 128            # lane-dense ctx output slab

    per_row = _per_row_bytes(S, E, D, e_pad, cs)
    if block_b is None:
        block_b = _choose_block_b(b_pad, per_row, mult, budget, allow_split=is_v7x)
    assert b_pad % block_b == 0 and block_b % mult == 0, (B, b_pad, block_b, mult)

    kernel = functools.partial(_bahdanau_kernel, d=D, e=E, packed=pack,
                               tanh_dtype=tanh_dtype)

    cost = pl.CostEstimate(
        flops=2 * B * s_eff * e_eff * d_eff + 2 * B * D * d_eff
              + 2 * B * S * D + 2 * B * S * E,
        transcendentals=B * S * D + B * S,
        bytes_accessed=(B * S * E + B * D + e_eff * d_eff + D * d_eff + B * S) * cs
                       + d_eff * 4 + (B * e_pad + B * S) * 4,
    )

    ctx_p, attn_p = pl.pallas_call(
        kernel,
        out_shape=(
            jax.ShapeDtypeStruct((b_pad, e_pad), jnp.float32),
            jax.ShapeDtypeStruct((b_pad, S), jnp.float32),
        ),
        grid_spec=pltpu.PrefetchScalarGridSpec(
            num_scalar_prefetch=0,
            grid=(b_pad // block_b,),
            in_specs=[
                pl.BlockSpec((block_b, D), lambda b: (b, 0)),               # dec_h
                # If a profile shows exposed enc DMA at large S*E, add
                # pipeline_mode=pl.Buffered(3) to this spec only.
                pl.BlockSpec((block_b, s_eff, e_eff), lambda b: (b, 0, 0)), # enc
                pl.BlockSpec((block_b, S), lambda b: (b, 0)),               # mask bias
                pl.BlockSpec((e_eff, d_eff), lambda b: (0, 0)),             # W_enc^T (resident)
                pl.BlockSpec((D, d_eff), lambda b: (0, 0)),                 # W_dec^T (resident)
                pl.BlockSpec((1, d_eff), lambda b: (0, 0)),                 # v (resident)
            ],
            out_specs=[
                pl.BlockSpec((block_b, e_pad), lambda b: (b, 0)),           # ctx (lane-dense)
                pl.BlockSpec((block_b, S), lambda b: (b, 0)),               # attn (lane-dense)
            ],
        ),
        compiler_params=pltpu.CompilerParams(
            dimension_semantics=("parallel",),
            vmem_limit_bytes=vmem_limit),
        cost_estimate=cost,
    )(dec_c, enc_in, bias_in, wenc_in, wdec_in, v_in)

    ctx = ctx_p[:B, :E]
    attn = attn_p[:B]
    if pack:
        # De-interleave grouped [even | odd] -> original sequence order (tiny op).
        attn = jnp.stack([attn[:, :S // 2], attn[:, S // 2:]], axis=-1).reshape(B, S)
    return ctx, attn


def _reference(dec_h, enc_outs, mask, w_enc, w_dec, v_w):
    # Pure-JAX mirror of the PyTorch forward (for correctness checks).
    h = enc_outs @ w_enc.T + (dec_h @ w_dec.T)[:, None, :]
    score = jnp.squeeze(jnp.tanh(h) @ v_w.T, -1)
    score = jnp.where(mask == 0, -jnp.inf, score)
    attn = jax.nn.softmax(score, axis=1)
    ctx = jnp.einsum("bs,bse->be", attn, enc_outs)
    return ctx, attn


if __name__ == "__main__":
    key = jax.random.PRNGKey(0)
    B, S, E, D = 16, 128, 32, 64   # batch, seq, enc_dim, dec_dim

    k1, k2, k3, k4, k5, k6 = jax.random.split(key, 6)
    dec_h = jax.random.normal(k1, (B, D), jnp.float32)
    enc_outs = jax.random.normal(k2, (B, S, E), jnp.float32)
    mask = (jax.random.uniform(k3, (B, S)) > 0.3).astype(jnp.float32)
    mask = mask.at[:, 0].set(1.0)  # at least one valid position per row

    # Deterministic parameters (PyTorch Linear weight layout: [out, in]).
    w_enc = jax.random.normal(k4, (D, E), jnp.float32) * 0.1
    w_dec = jax.random.normal(k5, (D, D), jnp.float32) * 0.1
    v_w = jax.random.normal(k6, (1, D), jnp.float32) * 0.1

    ctx_ref, attn_ref = _reference(dec_h, enc_outs, mask, w_enc, w_dec, v_w)

    # Full-precision, lane-packed path: tight check.
    ctx32, attn32 = bahdanau_attention(dec_h, enc_outs, mask, w_enc, w_dec, v_w,
                                       compute_dtype=jnp.float32)
    jax.block_until_ready((ctx32, attn32))
    assert jnp.allclose(ctx32, ctx_ref, atol=1e-4, rtol=1e-4), "ctx mismatch (f32)"
    assert jnp.allclose(attn32, attn_ref, atol=1e-4, rtol=1e-4), "attn mismatch (f32)"

    # Full-precision, unpacked fallback path: tight check.
    ctx_u, attn_u = bahdanau_attention(dec_h, enc_outs, mask, w_enc, w_dec, v_w,
                                       compute_dtype=jnp.float32, pack=False)
    jax.block_until_ready((ctx_u, attn_u))
    assert jnp.allclose(ctx_u, ctx_ref, atol=1e-4, rtol=1e-4), "ctx mismatch (f32/unpacked)"
    assert jnp.allclose(attn_u, attn_ref, atol=1e-4, rtol=1e-4), "attn mismatch (f32/unpacked)"

    # Default bf16-traffic path (bf16 tanh on v6e/v7x): loose check.
    ctx, attn = bahdanau_attention(dec_h, enc_outs, mask, w_enc, w_dec, v_w)
    jax.block_until_ready((ctx, attn))
    assert jnp.allclose(ctx, ctx_ref, atol=2e-2, rtol=2e-2), "ctx mismatch (bf16)"
    assert jnp.allclose(attn, attn_ref, atol=2e-2, rtol=2e-2), "attn mismatch (bf16)"

    # Ragged batch (exercises the padded-batch path instead of one giant block).
    Bo = 10
    ctx_o_ref, attn_o_ref = _reference(dec_h[:Bo], enc_outs[:Bo], mask[:Bo],
                                       w_enc, w_dec, v_w)
    ctx_o, attn_o = bahdanau_attention(dec_h[:Bo], enc_outs[:Bo], mask[:Bo],
                                       w_enc, w_dec, v_w)
    jax.block_until_ready((ctx_o, attn_o))
    assert ctx_o.shape == (Bo, E) and attn_o.shape == (Bo, S)
    assert jnp.allclose(ctx_o, ctx_o_ref, atol=2e-2, rtol=2e-2), "ctx mismatch (ragged)"
    assert jnp.allclose(attn_o, attn_o_ref, atol=2e-2, rtol=2e-2), "attn mismatch (ragged)"

    print("KERNEL_OK")
</pallas_src>

<mosaic_0001>
module attributes {stable_mosaic.version = 11 : i64} {
  func.func @_bahdanau_kernel(%arg0: i32, %arg1: memref<16x64xf32, #tpu.memory_space<vmem>>, %arg2: memref<16x64x64xf32, #tpu.memory_space<vmem>>, %arg3: memref<16x128xf32, #tpu.memory_space<vmem>>, %arg4: memref<64x128xf32, #tpu.memory_space<vmem>>, %arg5: memref<64x128xf32, #tpu.memory_space<vmem>>, %arg6: memref<1x128xf32, #tpu.memory_space<vmem>>, %arg7: memref<16x128xf32, #tpu.memory_space<vmem>>, %arg8: memref<16x128xf32, #tpu.memory_space<vmem>>) attributes {dimension_semantics = [#tpu.dimension_semantics<parallel>], iteration_bounds = array<i64: 1>, scalar_prefetch = 0 : i64, scratch_operands = 0 : i64, tpu.core_type = #tpu.core_type<tc>, window_params = [{transform_indices = @transform_0, window_bounds = array<i64: 16, 64>}, {transform_indices = @transform_1, window_bounds = array<i64: 16, 64, 64>}, {transform_indices = @transform_2, window_bounds = array<i64: 16, 128>}, {pipeline_mode = #tpu.pipeline_mode<synchronous>, transform_indices = @transform_3, window_bounds = array<i64: 64, 128>}, {pipeline_mode = #tpu.pipeline_mode<synchronous>, transform_indices = @transform_4, window_bounds = array<i64: 64, 128>}, {pipeline_mode = #tpu.pipeline_mode<synchronous>, transform_indices = @transform_5, window_bounds = array<i64: 1, 128>}, {transform_indices = @transform_6, window_bounds = array<i64: 16, 128>}, {transform_indices = @transform_7, window_bounds = array<i64: 16, 128>}]} {
    %c0 = arith.constant 0 : index
    %c0_0 = arith.constant 0 : index
    %c0_1 = arith.constant 0 : index
    %0 = vector.load %arg2[%c0, %c0_0, %c0_1] : memref<16x64x64xf32, #tpu.memory_space<vmem>>, vector<16x64x64xf32>
    %1 = vector.shape_cast %0 : vector<16x64x64xf32> to vector<1024x64xf32>
    %c0_2 = arith.constant 0 : index
    %c0_3 = arith.constant 0 : index
    %2 = vector.load %arg4[%c0_2, %c0_3] : memref<64x128xf32, #tpu.memory_space<vmem>>, vector<64x128xf32>
    %cst = arith.constant dense<0.000000e+00> : vector<1024x128xf32>
    %3 = tpu.matmul %1, %2, %cst {dimension_numbers = #tpu.dot_dimension_numbers<[1], [0], [0], [1], [0, 0, 1, 1], [], []>} : vector<1024x64xf32>, vector<64x128xf32>, vector<1024x128xf32> -> vector<1024x128xf32>
    %4 = vector.shape_cast %3 : vector<1024x128xf32> to vector<16x64x128xf32>
    %c0_4 = arith.constant 0 : index
    %c0_5 = arith.constant 0 : index
    %5 = vector.load %arg1[%c0_4, %c0_5] : memref<16x64xf32, #tpu.memory_space<vmem>>, vector<16x64xf32>
    %c0_6 = arith.constant 0 : index
    %c0_7 = arith.constant 0 : index
    %6 = vector.load %arg5[%c0_6, %c0_7] : memref<64x128xf32, #tpu.memory_space<vmem>>, vector<64x128xf32>
    %cst_8 = arith.constant dense<0.000000e+00> : vector<16x128xf32>
    %7 = tpu.matmul %5, %6, %cst_8 {dimension_numbers = #tpu.dot_dimension_numbers<[1], [0], [0], [1], [0, 0, 1, 1], [], []>} : vector<16x64xf32>, vector<64x128xf32>, vector<16x128xf32> -> vector<16x128xf32>
    %8 = vector.shape_cast %7 : vector<16x128xf32> to vector<16x1x128xf32>
    %9 = vector.broadcast %8 : vector<16x1x128xf32> to vector<16x64x128xf32>
    %10 = arith.addf %4, %9 : vector<16x64x128xf32>
    %11 = math.tanh %10 : vector<16x64x128xf32>
    %c0_9 = arith.constant 0 : index
    %c0_10 = arith.constant 0 : index
    %12 = vector.load %arg6[%c0_9, %c0_10] : memref<1x128xf32, #tpu.memory_space<vmem>>, vector<1x128xf32>
    %13 = vector.shape_cast %12 : vector<1x128xf32> to vector<1x1x128xf32>
    %14 = vector.broadcast %13 : vector<1x1x128xf32> to vector<16x64x128xf32>
    %15 = arith.mulf %11, %14 : vector<16x64x128xf32>
    %16 = vector.extract_strided_slice %15 {offsets = [0, 0, 0], sizes = [16, 64, 64], strides = [1, 1, 1]} : vector<16x64x128xf32> to vector<16x64x64xf32>
    %cst_11 = arith.constant dense<0.000000e+00> : vector<16x64xf32>
    %17 = vector.multi_reduction <add>, %16, %cst_11 [2] : vector<16x64x64xf32> to vector<16x64xf32>
    %18 = vector.extract_strided_slice %15 {offsets = [0, 0, 64], sizes = [16, 64, 64], strides = [1, 1, 1]} : vector<16x64x128xf32> to vector<16x64x64xf32>
    %cst_12 = arith.constant dense<0.000000e+00> : vector<16x64xf32>
    %19 = vector.multi_reduction <add>, %18, %cst_12 [2] : vector<16x64x64xf32> to vector<16x64xf32>
    %20 = tpu.concatenate %17, %19 in 1 : vector<16x64xf32>, vector<16x64xf32> -> vector<16x128xf32>
    %c0_13 = arith.constant 0 : index
    %c0_14 = arith.constant 0 : index
    %21 = vector.load %arg3[%c0_13, %c0_14] : memref<16x128xf32, #tpu.memory_space<vmem>>, vector<16x128xf32>
    %22 = arith.addf %20, %21 : vector<16x128xf32>
    %cst_15 = arith.constant dense<0xFF800000> : vector<16xf32>
    %23 = vector.multi_reduction <maximumf>, %22, %cst_15 [1] : vector<16x128xf32> to vector<16xf32>
    %24 = vector.shape_cast %23 : vector<16xf32> to vector<16x1xf32>
    %25 = vector.broadcast %24 : vector<16x1xf32> to vector<16x128xf32>
    %26 = arith.subf %22, %25 : vector<16x128xf32>
    %27 = math.exp %26 : vector<16x128xf32>
    %cst_16 = arith.constant dense<0.000000e+00> : vector<16xf32>
    %28 = vector.multi_reduction <add>, %27, %cst_16 [1] : vector<16x128xf32> to vector<16xf32>
    %29 = vector.shape_cast %28 : vector<16xf32> to vector<16x1xf32>
    %30 = vector.broadcast %29 : vector<16x1xf32> to vector<16x128xf32>
    %31 = arith.divf %27, %30 : vector<16x128xf32>
    %c0_17 = arith.constant 0 : index
    %c0_18 = arith.constant 0 : index
    %32 = vector.load %arg8[%c0_17, %c0_18] : memref<16x128xf32, #tpu.memory_space<vmem>>, vector<16x128xf32>
    tpu.vector_store %arg8[%c0_17, %c0_18], %31 {strides = array<i32>} : memref<16x128xf32, #tpu.memory_space<vmem>>, vector<16x128xf32>,
    %33 = vector.extract_strided_slice %31 {offsets = [0, 0], sizes = [16, 64], strides = [1, 1]} : vector<16x128xf32> to vector<16x64xf32>
    %34 = vector.shape_cast %33 : vector<16x64xf32> to vector<16x1x64xf32>
    %35 = vector.extract_strided_slice %0 {offsets = [0, 0, 0], sizes = [16, 64, 32], strides = [1, 1, 1]} : vector<16x64x64xf32> to vector<16x64x32xf32>
    "tpu.trace_start"() <{level = 10 : i32, message = "bqs,bse->bqe"}> : () -> ()
    %cst_19 = arith.constant dense<0.000000e+00> : vector<16x1x32xf32>
    %36 = tpu.matmul %34, %35, %cst_19 {dimension_numbers = #tpu.dot_dimension_numbers<[2], [1], [1], [2], [0, 0, 0, 1, 1, 2], [0], [0]>} : vector<16x1x64xf32>, vector<16x64x32xf32>, vector<16x1x32xf32> -> vector<16x1x32xf32>
    "tpu.trace_stop"() : () -> ()
    %37 = vector.extract_strided_slice %31 {offsets = [0, 64], sizes = [16, 64], strides = [1, 1]} : vector<16x128xf32> to vector<16x64xf32>
    %38 = vector.shape_cast %37 : vector<16x64xf32> to vector<16x1x64xf32>
    %39 = vector.extract_strided_slice %0 {offsets = [0, 0, 32], sizes = [16, 64, 32], strides = [1, 1, 1]} : vector<16x64x64xf32> to vector<16x64x32xf32>
    "tpu.trace_start"() <{level = 10 : i32, message = "bqs,bse->bqe"}> : () -> ()
    %cst_20 = arith.constant dense<0.000000e+00> : vector<16x1x32xf32>
    %40 = tpu.matmul %38, %39, %cst_20 {dimension_numbers = #tpu.dot_dimension_numbers<[2], [1], [1], [2], [0, 0, 0, 1, 1, 2], [0], [0]>} : vector<16x1x64xf32>, vector<16x64x32xf32>, vector<16x1x32xf32> -> vector<16x1x32xf32>
    "tpu.trace_stop"() : () -> ()
    %41 = arith.addf %36, %40 : vector<16x1x32xf32>
    %42 = vector.shape_cast %41 : vector<16x1x32xf32> to vector<16x32xf32>
    %cst_21 = arith.constant 0.000000e+00 : f32
    %43 = vector.broadcast %cst_21 : f32 to vector<16x96xf32>
    %44 = tpu.concatenate %42, %43 in 1 : vector<16x32xf32>, vector<16x96xf32> -> vector<16x128xf32>
    %c0_22 = arith.constant 0 : index
    %c0_23 = arith.constant 0 : index
    %45 = vector.load %arg7[%c0_22, %c0_23] : memref<16x128xf32, #tpu.memory_space<vmem>>, vector<16x128xf32>
    tpu.vector_store %arg7[%c0_22, %c0_23], %44 {strides = array<i32>} : memref<16x128xf32, #tpu.memory_space<vmem>>, vector<16x128xf32>,
    return
  }
  func.func @transform_0(%arg0: i32) -> (i32, i32) {
    %c0_i32 = arith.constant 0 : i32
    %c0_i32_0 = arith.constant 0 : i32
    return %arg0, %c0_i32 : i32, i32
  }
  func.func @transform_1(%arg0: i32) -> (i32, i32, i32) {
    %c0_i32 = arith.constant 0 : i32
    %c0_i32_0 = arith.constant 0 : i32
    %c0_i32_1 = arith.constant 0 : i32
    return %arg0, %c0_i32, %c0_i32_0 : i32, i32, i32
  }
  func.func @transform_2(%arg0: i32) -> (i32, i32) {
    %c0_i32 = arith.constant 0 : i32
    %c0_i32_0 = arith.constant 0 : i32
    return %arg0, %c0_i32 : i32, i32
  }
  func.func @transform_3(%arg0: i32) -> (i32, i32) {
    %c0_i32 = arith.constant 0 : i32
    %c0_i32_0 = arith.constant 0 : i32
    %c0_i32_1 = arith.constant 0 : i32
    return %c0_i32, %c0_i32_0 : i32, i32
  }
  func.func @transform_4(%arg0: i32) -> (i32, i32) {
    %c0_i32 = arith.constant 0 : i32
    %c0_i32_0 = arith.constant 0 : i32
    %c0_i32_1 = arith.constant 0 : i32
    return %c0_i32, %c0_i32_0 : i32, i32
  }
  func.func @transform_5(%arg0: i32) -> (i32, i32) {
    %c0_i32 = arith.constant 0 : i32
    %c0_i32_0 = arith.constant 0 : i32
    %c0_i32_1 = arith.constant 0 : i32
    return %c0_i32, %c0_i32_0 : i32, i32
  }
  func.func @transform_6(%arg0: i32) -> (i32, i32) {
    %c0_i32 = arith.constant 0 : i32
    %c0_i32_0 = arith.constant 0 : i32
    return %arg0, %c0_i32 : i32, i32
  }
  func.func @transform_7(%arg0: i32) -> (i32, i32) {
    %c0_i32 = arith.constant 0 : i32
    %c0_i32_0 = arith.constant 0 : i32
    return %arg0, %c0_i32 : i32, i32
  }
}

</mosaic_0001>

<bundles_post_ra>
// kernel: tpu_custom_call.1
= control target key start
LH: loop header
LB: loop body
LE: loop exit
PB: predicated region body
PF: predicated region fallthrough
CT: control target
= control target key end

     0   :  { %13 = vsyncpa [#allocation3], 0  ;;  %s15125_s0 = inlined_call_operand.hbm [shape: f32[16,64], index: 0, kind: input, shape index: {}]   ;;  %s15126_s1 = inlined_call_operand.hbm [shape: f32[16,64,64], index: 1, kind: input, shape index: {}]   ;;  %s15127_s2 = inlined_call_operand.hbm [shape: f32[16,128], index: 2, kind: input, shape index: {}]   ;;  %s15128_s3 = inlined_call_operand.hbm [shape: f32[64,128], index: 3, kind: input, shape index: {}]   ;;  %s15129_s4 = inlined_call_operand.hbm [shape: f32[64,128], index: 4, kind: input, shape index: {}]   ;;  %s15130_s5 = inlined_call_operand.hbm [shape: f32[1,128], index: 5, kind: input, shape index: {}]   ;;  %s15131_s6 = inlined_call_operand.hbm [shape: f32[16,128], index: 6, kind: output, shape index: {0}]   ;;  %s15132_s7 = inlined_call_operand.hbm [shape: f32[16,128], index: 7, kind: output, shape index: {1}]  }
   0x1   :  { %14 = vsyncpa [#allocation6], 0 }
   0x2   :  { %15 = vsyncpa [#allocation9], 0 }
   0x3   :  { %16 = vsyncpa [#allocation12], 0 }
   0x4   :  { %17 = vsyncpa [#allocation4], 0 }
   0x5   :  { %18 = vsyncpa [#allocation15], 0  ;;  %s10688_s24 = smov [#allocation5]   ;;  %s10689_s26 = smov [#allocation8]  }
   0x6   :  { %s36_s25 = sshll.u32 %s10688_s24, 4  ;;  %s60_s27 = sshll.u32 %s10689_s26, 4  ;;  %s37_s25 = int_to_ptr.vmem [resolvable:$true] %s36_s25  ;;  %s10744_s27 = int_to_ptr.vmem [resolvable:$true] %s60_s27 }
   0x7   :  { %s10500_s30 = scalar_lea.hbm %s15126_s1, 16384 }
   0x8   :  { %p10501_p0 = scmp.ne.s32.totalorder %s15126_s1, %s10500_s30  ;;  %p10504_p1 = scmp.lt.u32.totalorder %s10500_s30, %s15126_s1 }
   0xa   :  { %p10506_p2 = pnand %p10504_p1, %p10501_p0 }
   0xc   :  { %10509 = shalt.err (!%p10506_p2)
}
   0xd   :  { %s10510_s12 = scalar_lea.vmem %s37_s25, 16384  ;;  %p10515_p4 = scmp.lt.s32.totalorder %s37_s25, %s37_s25 }
   0xe   :  { %p10511_p3 = scmp.ne.s32.totalorder %s37_s25, %s10510_s12  ;;  %p10516_p5 = scmp.lt.s32.totalorder %s10510_s12, %s10510_s12 }
  0x10   :  { %p10517_p6 = por %p10516_p5, %p10515_p4 }
  0x12   :  { %p10518_p7 = pnand %p10517_p6, %p10511_p3 }
  0x14   :  { %10521 = shalt.err (!%p10518_p7)
}
  0x15   :  { %s10690_s13 = smov 128   ;;  %s10691_s14 = smov 8  }
  0x16   :  { %42 = dma.hbm_to_vmem [thread:$0]  %s15126_s1, 16384, %s37_s25, [#allocation6], %s10690_s13, %s10690_s13, %s10691_s14  }
  0x17   :  { %s10522_s19 = scalar_lea.hbm %s15128_s3, 1024 }
  0x18   :  { %p10523_p8 = scmp.ne.s32.totalorder %s15128_s3, %s10522_s19  ;;  %p10526_p9 = scmp.lt.u32.totalorder %s10522_s19, %s15128_s3 }
  0x1a   :  { %p10528_p10 = pnand %p10526_p9, %p10523_p8 }
  0x1c   :  { %10531 = shalt.err (!%p10528_p10)
}
  0x1d   :  { %s10532_s24 = scalar_lea.vmem %s10744_s27, 1024  ;;  %p10537_p12 = scmp.lt.s32.totalorder %s10744_s27, %s10744_s27 }
  0x1e   :  { %p10533_p11 = scmp.ne.s32.totalorder %s10744_s27, %s10532_s24  ;;  %p10538_p13 = scmp.lt.s32.totalorder %s10532_s24, %s10532_s24 }
  0x20   :  { %p10539_p0 = por %p10538_p13, %p10537_p12 }
  0x22   :  { %p10540_p1 = pnand %p10539_p0, %p10533_p11 }
  0x24   :  { %10543 = shalt.err (!%p10540_p1)
}
  0x25   :  { %66 = dma.hbm_to_vmem [thread:$0]  %s15128_s3, 1024, %s10744_s27, [#allocation9], %s10690_s13, %s10690_s13, %s10691_s14  }
  0x26   :  { %s10692_s26 = smov [#allocation2]   ;;  %s10693_s29 = smov [#allocation7]  }
  0x27   :  { %s24_s28 = sshll.u32 %s10692_s26, 4  ;;  %s48_s30 = sshll.u32 %s10693_s29, 4  ;;  %s25_s28 = int_to_ptr.vmem [resolvable:$true] %s24_s28  ;;  %s10781_s30 = int_to_ptr.vmem [resolvable:$true] %s48_s30 }
  0x28   :  { %s10544_s10 = scalar_lea.hbm %s15125_s0, 256 }
  0x29   :  { %p10545_p2 = scmp.ne.s32.totalorder %s15125_s0, %s10544_s10  ;;  %p10548_p3 = scmp.lt.u32.totalorder %s10544_s10, %s15125_s0 }
  0x2b   :  { %p10550_p4 = pnand %p10548_p3, %p10545_p2 }
  0x2d   :  { %10553 = shalt.err (!%p10550_p4)
}
  0x2e   :  { %s10554_s3 = scalar_lea.vmem %s25_s28, 256  ;;  %p10559_p6 = scmp.lt.s32.totalorder %s25_s28, %s25_s28 }
  0x2f   :  { %p10555_p5 = scmp.ne.s32.totalorder %s25_s28, %s10554_s3  ;;  %p10560_p7 = scmp.lt.s32.totalorder %s10554_s3, %s10554_s3 }
  0x31   :  { %p10561_p8 = por %p10560_p7, %p10559_p6 }
  0x33   :  { %p10562_p9 = pnand %p10561_p8, %p10555_p5 }
  0x35   :  { %10565 = shalt.err (!%p10562_p9)
}
  0x36   :  { %30 = dma.hbm_to_vmem [thread:$0]  %s15125_s0, 256, %s25_s28, [#allocation3], %s10690_s13, %s10690_s13, %s10691_s14  }
  0x37   :  { %s10566_s20 = scalar_lea.hbm %s15127_s2, 256 }
  0x38   :  { %p10567_p10 = scmp.ne.s32.totalorder %s15127_s2, %s10566_s20  ;;  %p10570_p11 = scmp.lt.u32.totalorder %s10566_s20, %s15127_s2 }
  0x3a   :  { %p10572_p12 = pnand %p10570_p11, %p10567_p10 }
  0x3c   :  { %10575 = shalt.err (!%p10572_p12)
}
  0x3d   :  { %s10576_s1 = scalar_lea.vmem %s10781_s30, 256  ;;  %p10581_p0 = scmp.lt.s32.totalorder %s10781_s30, %s10781_s30 }
  0x3e   :  { %p10577_p13 = scmp.ne.s32.totalorder %s10781_s30, %s10576_s1  ;;  %p10582_p1 = scmp.lt.s32.totalorder %s10576_s1, %s10576_s1 }
  0x40   :  { %p10583_p2 = por %p10582_p1, %p10581_p0 }
  0x42   :  { %p10584_p3 = pnand %p10583_p2, %p10577_p13 }
  0x44   :  { %10587 = shalt.err (!%p10584_p3)
}
  0x45   :  { %54 = dma.hbm_to_vmem [thread:$0]  %s15127_s2, 256, %s10781_s30, [#allocation6], %s10690_s13, %s10690_s13, %s10691_s14  }
  0x46   :  { %s10694_s26 = smov [#allocation10]   ;;  %s10695_s29 = smov [#allocation11]  }
  0x47   :  { %s72_s28 = sshll.u32 %s10694_s26, 4  ;;  %s85_s8 = sshll.u32 %s10695_s29, 4  ;;  %s73_s28 = int_to_ptr.vmem [resolvable:$true] %s72_s28  ;;  %s86_s8 = int_to_ptr.vmem [resolvable:$true] %s85_s8 }
  0x48   :  { %s10588_s11 = scalar_lea.hbm %s15129_s4, 1024 }
  0x49   :  { %p10589_p4 = scmp.ne.s32.totalorder %s15129_s4, %s10588_s11  ;;  %p10592_p5 = scmp.lt.u32.totalorder %s10588_s11, %s15129_s4 }
  0x4b   :  { %p10594_p6 = pnand %p10592_p5, %p10589_p4 }
  0x4d   :  { %10597 = shalt.err (!%p10594_p6)
}
  0x4e   :  { %s10598_s2 = scalar_lea.vmem %s73_s28, 1024  ;;  %p10603_p8 = scmp.lt.s32.totalorder %s73_s28, %s73_s28 }
  0x4f   :  { %p10599_p7 = scmp.ne.s32.totalorder %s73_s28, %s10598_s2  ;;  %p10604_p9 = scmp.lt.s32.totalorder %s10598_s2, %s10598_s2 }
  0x51   :  { %p10605_p10 = por %p10604_p9, %p10603_p8 }
  0x53   :  { %p10606_p11 = pnand %p10605_p10, %p10599_p7 }
  0x55   :  { %10609 = shalt.err (!%p10606_p11)
}
  0x56   :  { %78 = dma.hbm_to_vmem [thread:$0]  %s15129_s4, 1024, %s73_s28, [#allocation9], %s10690_s13, %s10690_s13, %s10691_s14  }
  0x57   :  { %s10610_s19 = scalar_lea.hbm %s15130_s5, 16 }
  0x58   :  { %p10611_p12 = scmp.ne.s32.totalorder %s15130_s5, %s10610_s19  ;;  %p10614_p13 = scmp.lt.u32.totalorder %s10610_s19, %s15130_s5 }
  0x5a   :  { %p10616_p0 = pnand %p10614_p13, %p10611_p12 }
  0x5c   :  { %10619 = shalt.err (!%p10616_p0)
}
  0x5d   :  { %s10620_s24 = scalar_lea.vmem %s86_s8, 16  ;;  %s10624_s1 = scalar_lea.vmem %s86_s8, 32 }
  0x5e   :  { %p10621_p1 = scmp.ne.s32.totalorder %s86_s8, %s10620_s24  ;;  %p10625_p2 = scmp.lt.s32.totalorder %s86_s8, %s86_s8 }
  0x5f   :  { %p10626_p3 = scmp.lt.s32.totalorder %s10624_s1, %s10620_s24 }
  0x61   :  { %p10627_p4 = por %p10626_p3, %p10625_p2 }
  0x63   :  { %p10628_p5 = pnand %p10627_p4, %p10621_p1 }
  0x65   :  { %10631 = shalt.err (!%p10628_p5)
}
  0x66   :  { %88 = dma.hbm_to_vmem [thread:$0]  %s15130_s5, 16, %s86_s8, [#allocation12]  }
  0x67   :  { %10676 = dma.done.wait [#allocation3], 256  }
  0x68   :  { %10677 = vsyncadd [#allocation3], 4294967040 }
  0x69   :  { %10678 = dma.done.wait [#allocation6], 16640  }
  0x6a   :  { %10679 = vsyncadd [#allocation6], 4294950656 }
  0x6b   :  { %10680 = dma.done.wait [#allocation9], 2048  }
  0x6c   :  { %10681 = vsyncadd [#allocation9], 4294965248 }
  0x6d   :  { %10682 = dma.done.wait [#allocation12], 16  }
  0x6e   :  { %10683 = vsyncadd [#allocation12], 4294967280  ;;  %v235_v0 = vld [vmem:[#allocation8] sm:$0xff]  ;;  %v236_v1 = vld [vmem:[#allocation8 + $0x8] sm:$0xff]  ;;  %vm15294_vm0 = vcmask 523264   ;;  %s10697_s5 = smov 64  }
  0x6f   :  { %v237_v2 = vld [vmem:[#allocation8 + $0x10] sm:$0xff]  ;;  %v9278_v3 = vpack.c.bf16 %v236_v1, %v235_v0  ;;  %v238_v4 = vld [vmem:[#allocation8 + $0x18] sm:$0xff]  ;;  %v239_v6 = vld [vmem:[#allocation8 + $0x20] sm:$0xff]  ;;  %vm15282_vm1 = vcmask 654912   ;;  %vm15281_vm2 = vcmask 720512   ;;  %vm4218_vm3 = vcmask 786112  }
  0x70   :  { %v9282_v5 = vpack.c.bf16 %v238_v4, %v237_v2  ;;  %v240_v7 = vld [vmem:[#allocation8 + $0x28] sm:$0xff]  ;;  %v10845_v8 = vld [vmem:[#allocation5] sm:$0xff]  ;;  %v10849_v9 = vld [vmem:[#allocation5 + $0x8] sm:$0xff]  ;;  %vm15284_vm4 = vcmask 851712   ;;  %vm4232_vm5 = vcmask 917312   ;;  %vm4239_vm6 = vcmask 982912  }
  0x71   :  { %15328 = vst [vmem:[#allocation22_spill] sm:$0xff] %v10845_v8  ;;  %9279 = vmatprep.subr.bf16.mxu0 %v9278_v3  ;;  %8459 = vmatprep.mubr.msk.f32.mxu0 %vm15294_vm0, %v10845_v8  ;;  %15329 = vst [vmem:[#allocation23_spill] sm:$0xff] %v10849_v9  ;;  %v241_v10 = vld [vmem:[#allocation8 + $0x30] sm:$0xff]  ;;  %v242_v11 = vld [vmem:[#allocation8 + $0x38] sm:$0xff]  ;;  %v9286_v17 = vpack.c.bf16 %v240_v7, %v239_v6  ;;  %vm3414_vm7 = vcmask 130112   ;;  %vm4246_vm8 = vcmask 1048512  }
  0x72   :  { %9281 = vmatpush3.bf16.msra.mxu0 %v9278_v3  ;;  %v10855_v14 = vld [vmem:[#allocation5 + $0x10] sm:$0xff]  ;;  %v10857_v15 = vld [vmem:[#allocation5 + $0x18] sm:$0xff]  ;;  %v10859_v16 = vld [vmem:[#allocation5 + $0x20] sm:$0xff]  ;;  %v9290_v44 = vpack.c.bf16 %v242_v11, %v241_v10  ;;  %vm15283_vm9 = vcmask 1041409   ;;  %vm3421_vm10 = vcmask 195712   ;;  %vm15291_vm11 = vcmask 1042434  }
  0x73   :  { %15330 = vst [vmem:[#allocation24_spill] sm:$0xff] %v10855_v14  ;;  %15331 = vst [vmem:[#allocation25_spill] sm:$0xff] %v10857_v15  ;;  %9283 = vmatprep.subr.bf16.mxu0 %v9282_v5  ;;  %v10865_v20 = vld [vmem:[#allocation5 + $0x28] sm:$0xff]  ;;  %v10867_v21 = vld [vmem:[#allocation5 + $0x30] sm:$0xff]  ;;  %vm3428_vm12 = vcmask 261312   ;;  %vm15285_vm13 = vcmask 326912  }
  0x74   :  { %15332 = vst [vmem:[#allocation26_spill] sm:$0xff] %v10859_v16  ;;  %15333 = vst [vmem:[#allocation27_spill] sm:$0xff] %v10865_v20  ;;  %v10869_v22 = vld [vmem:[#allocation5 + $0x38] sm:$0xff]  ;;  %v10879_v27 = vld [vmem:[#allocation5 + $0x40] sm:$0xff]  ;;  %vm3442_vm14 = vcmask 392512   ;;  %vm15286_vm15 = vcmask 1043459  }
  0x75   :  { %15334 = vst [vmem:[#allocation28_spill] sm:$0xff] %v10867_v21  ;;  %15335 = vst [vmem:[#allocation29_spill] sm:$0xff] %v10869_v22  ;;  %v10881_v28 = vld [vmem:[#allocation5 + $0x48] sm:$0xff]  ;;  %v10883_v29 = vld [vmem:[#allocation5 + $0x50] sm:$0xff]  ;;  %s10698_s25 = smov 96   ;;  %s10702_s26 = smov [#allocation14]  }
  0x76   :  { %15336 = vst [vmem:[#allocation30_spill] sm:$0xff] %v10879_v27  ;;  %15337 = vst [vmem:[#allocation31_spill] sm:$0xff] %v10881_v28  ;;  %v10889_v32 = vld [vmem:[#allocation5 + $0x58] sm:$0xff]  ;;  %v10891_v33 = vld [vmem:[#allocation5 + $0x60] sm:$0xff]  ;;  %9285 = vmatpush3.bf16.msra.mxu0 %v9282_v5  ;;  %s7827_s28 = sshll.u32 %s10702_s26, 4  ;;  %s7828_s28 = int_to_ptr.vmem [resolvable:$true] %s7827_s28 }
  0x77   :  { %15338 = vst [vmem:[#allocation32_spill] sm:$0xff] %v10883_v29  ;;  %15339 = vst [vmem:[#allocation33_spill] sm:$0xff] %v10889_v32  ;;  %v10893_v34 = vld [vmem:[#allocation5 + $0x68] sm:$0xff]  ;;  %v1335_v35 = vld [vmem:[#allocation10] sm:$0xff]  ;;  %9287 = vmatprep.subr.bf16.mxu0 %v9286_v17  ;;  %s10632_s29 = scalar_lea.vmem %s7828_s28, 256  ;;  %p10637_p7 = scmp.lt.s32.totalorder %s7828_s28, %s7828_s28 }
  0x78   :  { %15340 = vst [vmem:[#allocation34_spill] sm:$0xff] %v10891_v33  ;;  %15341 = vst [vmem:[#allocation35_spill] sm:$0xff] %v10893_v34  ;;  %v1336_v36 = vld [vmem:[#allocation10 + $0x8] sm:$0xff]  ;;  %v10903_v41 = vld [vmem:[#allocation5 + $0x70] sm:$0xff]  ;;  %p10633_p6 = scmp.ne.s32.totalorder %s7828_s28, %s10632_s29  ;;  %p10638_p8 = scmp.lt.s32.totalorder %s10632_s29, %s10632_s29 }
  0x79   :  { %15342 = vst [vmem:[#allocation36_spill] sm:$0xff] %v10903_v41  ;;  %v10905_v42 = vld [vmem:[#allocation5 + $0x78] sm:$0xff]  ;;  %v10907_v43 = vld [vmem:[#allocation5 + $0x80] sm:$0xff]  ;;  %v10913_v47 = vld [vmem:[#allocation5 + $0x88] sm:$0xff]  ;;  %v9294_v4 = vpack.c.bf16 %v1336_v36, %v1335_v35 }
  0x7a   :  { %15343 = vst [vmem:[#allocation37_spill] sm:$0xff] %v10905_v42  ;;  %15344 = vst [vmem:[#allocation38_spill] sm:$0xff] %v10907_v43  ;;  %v10915_v48 = vld [vmem:[#allocation5 + $0x90] sm:$0xff]  ;;  %v10917_v49 = vld [vmem:[#allocation5 + $0x98] sm:$0xff]  ;;  %9289 = vmatpush3.bf16.msra.mxu0 %v9286_v17  ;;  %p10639_p9 = por %p10638_p8, %p10637_p7 }
  0x7b   :  { %15345 = vst [vmem:[#allocation39_spill] sm:$0xff] %v10913_v47  ;;  %15346 = vst [vmem:[#allocation40_spill] sm:$0xff] %v10915_v48  ;;  %v10927_v54 = vld [vmem:[#allocation5 + $0xa0] sm:$0xff]  ;;  %v10929_v55 = vld [vmem:[#allocation5 + $0xa8] sm:$0xff]  ;;  %9291 = vmatprep.subr.bf16.mxu0 %v9290_v44 }
  0x7c   :  { %15347 = vst [vmem:[#allocation41_spill] sm:$0xff] %v10917_v49  ;;  %15348 = vst [vmem:[#allocation42_spill] sm:$0xff] %v10927_v54  ;;  %v10931_v56 = vld [vmem:[#allocation5 + $0xb0] sm:$0xff]  ;;  %v10937_v59 = vld [vmem:[#allocation5 + $0xb8] sm:$0xff]  ;;  %p10640_p10 = pnand %p10639_p9, %p10633_p6 }
  0x7d   :  { %15349 = vst [vmem:[#allocation43_spill] sm:$0xff] %v10929_v55  ;;  %15350 = vst [vmem:[#allocation44_spill] sm:$0xff] %v10931_v56  ;;  %v10939_v60 = vld [vmem:[#allocation5 + $0xc0] sm:$0xff]  ;;  %v10941_v61 = vld [vmem:[#allocation5 + $0xc8] sm:$0xff] }
  0x7e   :  { %15351 = vst [vmem:[#allocation45_spill] sm:$0xff] %v10937_v59  ;;  %15352 = vst [vmem:[#allocation46_spill] sm:$0xff] %v10939_v60  ;;  %v10951_v2 = vld [vmem:[#allocation5 + $0xd0] sm:$0xff]  ;;  %v10953_v3 = vld [vmem:[#allocation5 + $0xd8] sm:$0xff]  ;;  %9293 = vmatpush3.bf16.msra.mxu0 %v9290_v44 }
  0x7f   :  { %15353 = vst [vmem:[#allocation47_spill] sm:$0xff] %v10941_v61  ;;  %15354 = vst [vmem:[#allocation48_spill] sm:$0xff] %v10951_v2  ;;  %v10959_v7 = vld [vmem:[#allocation5 + $0xe0] sm:$0xff]  ;;  %v10961_v10 = vld [vmem:[#allocation5 + $0xe8] sm:$0xff]  ;;  %9295 = vmatprep.subr.bf16.mxu0 %v9294_v4 }
  0x80   :  { %15355 = vst [vmem:[#allocation49_spill] sm:$0xff] %v10953_v3  ;;  %15356 = vst [vmem:[#allocation50_spill] sm:$0xff] %v10959_v7  ;;  %v1337_v1 = vld [vmem:[#allocation10 + $0x10] sm:$0xff]  ;;  %v1338_v63 = vld [vmem:[#allocation10 + $0x18] sm:$0xff] }
  0x81   :  { %15357 = vst [vmem:[#allocation51_spill] sm:$0xff] %v10961_v10  ;;  %v9298_v35 = vpack.c.bf16 %v1338_v63, %v1337_v1  ;;  %8460 = vmatmul.mubr.msk.f32.vlgmr.msra.gmra.mrb[0].mxu0 %vm15294_vm0, %v10849_v9  ;;  %v1339_v36 = vld [vmem:[#allocation10 + $0x20] sm:$0xff]  ;;  %v1340_v17 = vld [vmem:[#allocation10 + $0x28] sm:$0xff]  ;;  %v143_v53 = vld [vmem:[#allocation5 + $0x120] sm:$0xff] }
  0x82   :  { %9297 = vmatpush3.bf16.msra.mxu0 %v9294_v4  ;;  %8462 = vmatprep.mubr.msk.f32.mxu0 %vm15294_vm0, %v10855_v14  ;;  %v9302_v44 = vpack.c.bf16 %v1340_v17, %v1339_v36  ;;  %v137_v63 = vld [vmem:[#allocation5 + $0xf0] sm:$0xff]  ;;  %v138_v1 = vld [vmem:[#allocation5 + $0xf8] sm:$0xff]  ;;  %v139_v4 = vld [vmem:[#allocation5 + $0x100] sm:$0xff] }
  0x83   :  { %9299 = vmatprep.subr.bf16.mxu0 %v9298_v35  ;;  %v140_v17 = vld [vmem:[#allocation5 + $0x108] sm:$0xff]  ;;  %v1341_v36 = vld [vmem:[#allocation10 + $0x30] sm:$0xff]  ;;  %v142_v6 = vld [vmem:[#allocation5 + $0x118] sm:$0xff] }
  0x85   :  { %8463 = vmatmul.mubr.msk.f32.gmra.mrb[2].mxu0 %vm15294_vm0, %v10857_v15 }
  0x86   :  { %8465 = vmatprep.mubr.msk.f32.mxu0 %vm15294_vm0, %v10859_v16  ;;  %9301 = vmatpush3.bf16.msra.mxu0 %v9298_v35  ;;  %v141_v35 = vld [vmem:[#allocation5 + $0x110] sm:$0xff] }
  0x87   :  { %9303 = vmatprep.subr.bf16.mxu0 %v9302_v44 }
  0x89   :  { %8466 = vmatmul.mubr.msk.f32.gmra.mrb[4].mxu0 %vm15294_vm0, %v10865_v20 }
  0x8a   :  { %8468 = vmatprep.mubr.msk.f32.mxu0 %vm15294_vm0, %v10867_v21  ;;  %9305 = vmatpush3.bf16.msra.mxu0 %v9302_v44  ;;  %v1342_v44 = vld [vmem:[#allocation10 + $0x38] sm:$0xff] }
  0x8b   :  { %v9306_v58 = vpack.c.bf16 %v1342_v44, %v1341_v36  ;;  %v149_v36 = vld [vmem:[#allocation5 + $0x150] sm:$0xff] }
  0x8c   :  { %v153_v44 = vld [vmem:[#allocation5 + $0x170] sm:$0xff] }
  0x8d   :  { %8469 = vmatmul.mubr.msk.f32.gmra.mrb[6].mxu0 %vm15294_vm0, %v10869_v22  ;;  %9307 = vmatprep.subr.bf16.mxu0 %v9306_v58 }
  0x8e   :  { %8471 = vmatprep.mubr.msk.f32.mxu0 %vm15294_vm0, %v10879_v27  ;;  %9309 = vmatpush3.bf16.msra.mxu0 %v9306_v58  ;;  %v152_v58 = vld [vmem:[#allocation5 + $0x168] sm:$0xff] }
  0x91   :  { %8472 = vmatmul.mubr.msk.f32.gmra.mrb[8].mxu0 %vm15294_vm0, %v10881_v28 }
  0x92   :  { %8474 = vmatprep.mubr.msk.f32.mxu0 %vm15294_vm0, %v10883_v29 }
  0x95   :  { %8475 = vmatmul.mubr.msk.f32.gmra.mrb[10].mxu0 %vm15294_vm0, %v10889_v32 }
  0x96   :  { %8477 = vmatprep.mubr.msk.f32.mxu0 %vm15294_vm0, %v10891_v33 }
  0x99   :  { %8478 = vmatmul.mubr.msk.f32.gmra.mrb[12].mxu0 %vm15294_vm0, %v10893_v34 }
  0x9a   :  { %8480 = vmatprep.mubr.msk.f32.mxu0 %vm15294_vm0, %v10903_v41 }
  0x9d   :  { %8481 = vmatmul.mubr.msk.f32.gmra.mrb[14].mxu0 %vm15294_vm0, %v10905_v42 }
  0x9e   :  { %8483 = vmatprep.mubr.msk.f32.mxu0 %vm15294_vm0, %v10907_v43 }
  0xa1   :  { %8484 = vmatmul.mubr.msk.f32.gmra.mrb[16].mxu0 %vm15294_vm0, %v10913_v47 }
  0xa2   :  { %8486 = vmatprep.mubr.msk.f32.mxu0 %vm15294_vm0, %v10915_v48 }
  0xa5   :  { %8487 = vmatmul.mubr.msk.f32.gmra.mrb[18].mxu0 %vm15294_vm0, %v10917_v49 }
  0xa6   :  { %8489 = vmatprep.mubr.msk.f32.mxu0 %vm15294_vm0, %v10927_v54 }
  0xa9   :  { %8490 = vmatmul.mubr.msk.f32.gmra.mrb[20].mxu0 %vm15294_vm0, %v10929_v55 }
  0xaa   :  { %8492 = vmatprep.mubr.msk.f32.mxu0 %vm15294_vm0, %v10931_v56 }
  0xad   :  { %8493 = vmatmul.mubr.msk.f32.gmra.mrb[22].mxu0 %vm15294_vm0, %v10937_v59 }
  0xae   :  { %8495 = vmatprep.mubr.msk.f32.mxu0 %vm15294_vm0, %v10939_v60 }
  0xb1   :  { %8496 = vmatmul.mubr.msk.f32.gmra.mrb[24].mxu0 %vm15294_vm0, %v10941_v61 }
  0xb2   :  { %8498 = vmatprep.mubr.msk.f32.mxu0 %vm15294_vm0, %v10951_v2 }
  0xb5   :  { %8499 = vmatmul.mubr.msk.f32.gmra.mrb[26].mxu0 %vm15294_vm0, %v10953_v3 }
  0xb6   :  { %8501 = vmatprep.mubr.msk.f32.mxu0 %vm15294_vm0, %v10959_v7 }
  0xb9   :  { %8502 = vmatmul.mubr.msk.f32.gmra.mrb[28].mxu0 %vm15294_vm0, %v10961_v10 }
  0xba   :  { %8504 = vmatprep.mubr.msk.f32.mxu0 %vm15294_vm0, %v137_v63  ;;  %v144_v63 = vld [vmem:[#allocation5 + $0x128] sm:$0xff] }
  0xbd   :  { %8505 = vmatmul.mubr.msk.f32.gmra.mrb[30].mxu0 %vm15294_vm0, %v138_v1  ;;  %v145_v1 = vld [vmem:[#allocation5 + $0x130] sm:$0xff] }
  0xbe   :  { %8507 = vmatprep.mubr.msk.f32.mxu0 %vm15294_vm0, %v139_v4  ;;  %v146_v4 = vld [vmem:[#allocation5 + $0x138] sm:$0xff] }
  0xc1   :  { %8508 = vmatmul.mubr.msk.f32.gmra.mrb[32].mxu0 %vm15294_vm0, %v140_v17  ;;  %v147_v17 = vld [vmem:[#allocation5 + $0x140] sm:$0xff] }
  0xc2   :  { %8510 = vmatprep.mubr.msk.f32.mxu0 %vm15294_vm0, %v141_v35  ;;  %v148_v35 = vld [vmem:[#allocation5 + $0x148] sm:$0xff] }
  0xc5   :  { %8511 = vmatmul.mubr.msk.f32.gmra.mrb[34].mxu0 %vm15294_vm0, %v142_v6  ;;  %v151_v6 = vld [vmem:[#allocation5 + $0x160] sm:$0xff] }
  0xc6   :  { %8513 = vmatprep.mubr.msk.f32.mxu0 %vm15294_vm0, %v143_v53  ;;  %v150_v53 = vld [vmem:[#allocation5 + $0x158] sm:$0xff] }
  0xc9   :  { %8514 = vmatmul.mubr.msk.f32.gmra.mrb[36].mxu0 %vm15294_vm0, %v144_v63  ;;  %v154_v63 = vld [vmem:[#allocation5 + $0x178] sm:$0xff] }
  0xca   :  { %8516 = vmatprep.mubr.msk.f32.mxu0 %vm15294_vm0, %v145_v1  ;;  %v155_v1 = vld [vmem:[#allocation5 + $0x180] sm:$0xff] }
  0xcd   :  { %8517 = vmatmul.mubr.msk.f32.gmra.mrb[38].mxu0 %vm15294_vm0, %v146_v4  ;;  %v156_v4 = vld [vmem:[#allocation5 + $0x188] sm:$0xff] }
  0xce   :  { %8519 = vmatprep.mubr.msk.f32.mxu0 %vm15294_vm0, %v147_v17  ;;  %v157_v17 = vld [vmem:[#allocation5 + $0x190] sm:$0xff] }
  0xd1   :  { %8520 = vmatmul.mubr.msk.f32.gmra.mrb[40].mxu0 %vm15294_vm0, %v148_v35  ;;  %v158_v35 = vld [vmem:[#allocation5 + $0x198] sm:$0xff] }
  0xd2   :  { %8522 = vmatprep.mubr.msk.f32.mxu0 %vm15294_vm0, %v149_v36  ;;  %v159_v36 = vld [vmem:[#allocation5 + $0x1a0] sm:$0xff] }
  0xd5   :  { %8523 = vmatmul.mubr.msk.f32.gmra.mrb[42].mxu0 %vm15294_vm0, %v150_v53  ;;  %v160_v53 = vld [vmem:[#allocation5 + $0x1a8] sm:$0xff] }
  0xd6   :  { %8525 = vmatprep.mubr.msk.f32.mxu0 %vm15294_vm0, %v151_v6  ;;  %v161_v6 = vld [vmem:[#allocation5 + $0x1b0] sm:$0xff] }
  0xd9   :  { %8526 = vmatmul.mubr.msk.f32.gmra.mrb[44].mxu0 %vm15294_vm0, %v152_v58  ;;  %v162_v58 = vld [vmem:[#allocation5 + $0x1b8] sm:$0xff] }
  0xda   :  { %8528 = vmatprep.mubr.msk.f32.mxu0 %vm15294_vm0, %v153_v44  ;;  %v163_v44 = vld [vmem:[#allocation5 + $0x1c0] sm:$0xff] }
  0xdd   :  { %8529 = vmatmul.mubr.msk.f32.gmra.mrb[46].mxu0 %vm15294_vm0, %v154_v63  ;;  %v164_v63 = vld [vmem:[#allocation5 + $0x1c8] sm:$0xff] }
  0xde   :  { %8531 = vmatprep.mubr.msk.f32.mxu0 %vm15294_vm0, %v155_v1  ;;  %v165_v1 = vld [vmem:[#allocation5 + $0x1d0] sm:$0xff] }
  0xe1   :  { %8532 = vmatmul.mubr.msk.f32.gmra.mrb[48].mxu0 %vm15294_vm0, %v156_v4  ;;  %v166_v4 = vld [vmem:[#allocation5 + $0x1d8] sm:$0xff] }
  0xe2   :  { %8534 = vmatprep.mubr.msk.f32.mxu0 %vm15294_vm0, %v157_v17  ;;  %v167_v17 = vld [vmem:[#allocation5 + $0x1e0] sm:$0xff] }
  0xe5   :  { %8535 = vmatmul.mubr.msk.f32.gmra.mrb[50].mxu0 %vm15294_vm0, %v158_v35  ;;  %v168_v35 = vld [vmem:[#allocation5 + $0x1e8] sm:$0xff] }
  0xe6   :  { %8537 = vmatprep.mubr.msk.f32.mxu0 %vm15294_vm0, %v159_v36  ;;  %v169_v36 = vld [vmem:[#allocation5 + $0x1f0] sm:$0xff] }
  0xe9   :  { %8538 = vmatmul.mubr.msk.f32.gmra.mrb[52].mxu0 %vm15294_vm0, %v160_v53  ;;  %v170_v53 = vld [vmem:[#allocation5 + $0x1f8] sm:$0xff] }
  0xea   :  { %8540 = vmatprep.mubr.msk.f32.mxu0 %vm15294_vm0, %v161_v6  ;;  %v171_v6 = vld [vmem:[#allocation5 + $0x200] sm:$0xff] }
  0xed   :  { %8541 = vmatmul.mubr.msk.f32.gmra.mrb[54].mxu0 %vm15294_vm0, %v162_v58  ;;  %v172_v58 = vld [vmem:[#allocation5 + $0x208] sm:$0xff] }
  0xee   :  { %8543 = vmatprep.mubr.msk.f32.mxu0 %vm15294_vm0, %v163_v44  ;;  %v173_v44 = vld [vmem:[#allocation5 + $0x210] sm:$0xff] }
  0xf1   :  { %8544 = vmatmul.mubr.msk.f32.gmra.mrb[56].mxu0 %vm15294_vm0, %v164_v63  ;;  %v174_v63 = vld [vmem:[#allocation5 + $0x218] sm:$0xff] }
  0xf2   :  { %8546 = vmatprep.mubr.msk.f32.mxu0 %vm15294_vm0, %v165_v1  ;;  %v175_v1 = vld [vmem:[#allocation5 + $0x220] sm:$0xff] }
  0xf5   :  { %8547 = vmatmul.mubr.msk.f32.gmra.mrb[58].mxu0 %vm15294_vm0, %v166_v4  ;;  %v176_v4 = vld [vmem:[#allocation5 + $0x228] sm:$0xff] }
  0xf6   :  { %8549 = vmatprep.mubr.msk.f32.mxu0 %vm15294_vm0, %v167_v17  ;;  %v177_v17 = vld [vmem:[#allocation5 + $0x230] sm:$0xff] }
  0xf9   :  { %8550 = vmatmul.mubr.msk.f32.gmra.mrb[60].mxu0 %vm15294_vm0, %v168_v35  ;;  %v178_v35 = vld [vmem:[#allocation5 + $0x238] sm:$0xff] }
  0xfa   :  { %8552 = vmatprep.mubr.msk.f32.mxu0 %vm15294_vm0, %v169_v36  ;;  %v179_v36 = vld [vmem:[#allocation5 + $0x240] sm:$0xff] }
  0xfd   :  { %8553 = vmatmul.mubr.msk.f32.gmra.mrb[62].mxu0 %vm15294_vm0, %v170_v53  ;;  %v180_v53 = vld [vmem:[#allocation5 + $0x248] sm:$0xff] }
  0xfe   :  { %8555 = vmatprep.mubr.msk.f32.mxu0 %vm15294_vm0, %v171_v6  ;;  %v181_v6 = vld [vmem:[#allocation5 + $0x250] sm:$0xff] }
 0x101   :  { %8556 = vmatmul.mubr.msk.f32.gmra.mrb[64].mxu0 %vm15294_vm0, %v172_v58  ;;  %v182_v58 = vld [vmem:[#allocation5 + $0x258] sm:$0xff] }
 0x102   :  { %8558 = vmatprep.mubr.msk.f32.mxu0 %vm15294_vm0, %v173_v44  ;;  %v183_v44 = vld [vmem:[#allocation5 + $0x260] sm:$0xff] }
 0x105   :  { %8559 = vmatmul.mubr.msk.f32.gmra.mrb[66].mxu0 %vm15294_vm0, %v174_v63  ;;  %v184_v63 = vld [vmem:[#allocation5 + $0x268] sm:$0xff] }
 0x106   :  { %8561 = vmatprep.mubr.msk.f32.mxu0 %vm15294_vm0, %v175_v1  ;;  %v185_v1 = vld [vmem:[#allocation5 + $0x270] sm:$0xff] }
 0x109   :  { %8562 = vmatmul.mubr.msk.f32.gmra.mrb[68].mxu0 %vm15294_vm0, %v176_v4  ;;  %v186_v4 = vld [vmem:[#allocation5 + $0x278] sm:$0xff] }
 0x10a   :  { %8564 = vmatprep.mubr.msk.f32.mxu0 %vm15294_vm0, %v177_v17  ;;  %v187_v17 = vld [vmem:[#allocation5 + $0x280] sm:$0xff] }
 0x10d   :  { %8565 = vmatmul.mubr.msk.f32.gmra.mrb[70].mxu0 %vm15294_vm0, %v178_v35  ;;  %v188_v35 = vld [vmem:[#allocation5 + $0x288] sm:$0xff] }
 0x10e   :  { %8567 = vmatprep.mubr.msk.f32.mxu0 %vm15294_vm0, %v179_v36  ;;  %v189_v36 = vld [vmem:[#allocation5 + $0x290] sm:$0xff] }
 0x111   :  { %8568 = vmatmul.mubr.msk.f32.gmra.mrb[72].mxu0 %vm15294_vm0, %v180_v53  ;;  %v190_v53 = vld [vmem:[#allocation5 + $0x298] sm:$0xff] }
 0x112   :  { %8570 = vmatprep.mubr.msk.f32.mxu0 %vm15294_vm0, %v181_v6  ;;  %v191_v6 = vld [vmem:[#allocation5 + $0x2a0] sm:$0xff] }
 0x115   :  { %8571 = vmatmul.mubr.msk.f32.gmra.mrb[74].mxu0 %vm15294_vm0, %v182_v58  ;;  %v192_v58 = vld [vmem:[#allocation5 + $0x2a8] sm:$0xff] }
 0x116   :  { %8573 = vmatprep.mubr.msk.f32.mxu0 %vm15294_vm0, %v183_v44  ;;  %v193_v44 = vld [vmem:[#allocation5 + $0x2b0] sm:$0xff] }
 0x119   :  { %8574 = vmatmul.mubr.msk.f32.gmra.mrb[76].mxu0 %vm15294_vm0, %v184_v63  ;;  %v194_v63 = vld [vmem:[#allocation5 + $0x2b8] sm:$0xff] }
 0x11a   :  { %8576 = vmatprep.mubr.msk.f32.mxu0 %vm15294_vm0, %v185_v1  ;;  %v195_v1 = vld [vmem:[#allocation5 + $0x2c0] sm:$0xff] }
 0x11d   :  { %8577 = vmatmul.mubr.msk.f32.gmra.mrb[78].mxu0 %vm15294_vm0, %v186_v4  ;;  %v196_v4 = vld [vmem:[#allocation5 + $0x2c8] sm:$0xff] }
 0x11e   :  { %8579 = vmatprep.mubr.msk.f32.mxu0 %vm15294_vm0, %v187_v17  ;;  %v197_v17 = vld [vmem:[#allocation5 + $0x2d0] sm:$0xff] }
 0x121   :  { %8580 = vmatmul.mubr.msk.f32.gmra.mrb[80].mxu0 %vm15294_vm0, %v188_v35  ;;  %v198_v35 = vld [vmem:[#allocation5 + $0x2d8] sm:$0xff] }
 0x122   :  { %8582 = vmatprep.mubr.msk.f32.mxu0 %vm15294_vm0, %v189_v36  ;;  %v199_v36 = vld [vmem:[#allocation5 + $0x2e0] sm:$0xff] }
 0x125   :  { %8583 = vmatmul.mubr.msk.f32.gmra.mrb[82].mxu0 %vm15294_vm0, %v190_v53  ;;  %v200_v53 = vld [vmem:[#allocation5 + $0x2e8] sm:$0xff] }
 0x126   :  { %8585 = vmatprep.mubr.msk.f32.mxu0 %vm15294_vm0, %v191_v6  ;;  %v201_v6 = vld [vmem:[#allocation5 + $0x2f0] sm:$0xff] }
 0x129   :  { %8586 = vmatmul.mubr.msk.f32.gmra.mrb[84].mxu0 %vm15294_vm0, %v192_v58  ;;  %v202_v58 = vld [vmem:[#allocation5 + $0x2f8] sm:$0xff] }
 0x12a   :  { %8588 = vmatprep.mubr.msk.f32.mxu0 %vm15294_vm0, %v193_v44  ;;  %v203_v44 = vld [vmem:[#allocation5 + $0x300] sm:$0xff] }
 0x12d   :  { %8589 = vmatmul.mubr.msk.f32.gmra.mrb[86].mxu0 %vm15294_vm0, %v194_v63  ;;  %v204_v63 = vld [vmem:[#allocation5 + $0x308] sm:$0xff] }
 0x12e   :  { %8591 = vmatprep.mubr.msk.f32.mxu0 %vm15294_vm0, %v195_v1  ;;  %v205_v1 = vld [vmem:[#allocation5 + $0x310] sm:$0xff] }
 0x131   :  { %8592 = vmatmul.mubr.msk.f32.gmra.mrb[88].mxu0 %vm15294_vm0, %v196_v4  ;;  %v206_v4 = vld [vmem:[#allocation5 + $0x318] sm:$0xff] }
 0x132   :  { %8594 = vmatprep.mubr.msk.f32.mxu0 %vm15294_vm0, %v197_v17  ;;  %v207_v17 = vld [vmem:[#allocation5 + $0x320] sm:$0xff] }
 0x135   :  { %8595 = vmatmul.mubr.msk.f32.gmra.mrb[90].mxu0 %vm15294_vm0, %v198_v35  ;;  %v208_v35 = vld [vmem:[#allocation5 + $0x328] sm:$0xff] }
 0x136   :  { %8597 = vmatprep.mubr.msk.f32.mxu0 %vm15294_vm0, %v199_v36  ;;  %v209_v36 = vld [vmem:[#allocation5 + $0x330] sm:$0xff] }
 0x139   :  { %8598 = vmatmul.mubr.msk.f32.gmra.mrb[92].mxu0 %vm15294_vm0, %v200_v53  ;;  %v210_v53 = vld [vmem:[#allocation5 + $0x338] sm:$0xff] }
 0x13a   :  { %8600 = vmatprep.mubr.msk.f32.mxu0 %vm15294_vm0, %v201_v6  ;;  %v211_v6 = vld [vmem:[#allocation5 + $0x340] sm:$0xff] }
 0x13d   :  { %8601 = vmatmul.mubr.msk.f32.gmra.mrb[94].mxu0 %vm15294_vm0, %v202_v58  ;;  %v212_v58 = vld [vmem:[#allocation5 + $0x348] sm:$0xff] }
 0x13e   :  { %8603 = vmatprep.mubr.msk.f32.mxu0 %vm15294_vm0, %v203_v44  ;;  %v213_v44 = vld [vmem:[#allocation5 + $0x350] sm:$0xff] }
 0x141   :  { %8604 = vmatmul.mubr.msk.f32.gmra.mrb[96].mxu0 %vm15294_vm0, %v204_v63  ;;  %v214_v63 = vld [vmem:[#allocation5 + $0x358] sm:$0xff] }
 0x142   :  { %8606 = vmatprep.mubr.msk.f32.mxu0 %vm15294_vm0, %v205_v1  ;;  %v215_v1 = vld [vmem:[#allocation5 + $0x360] sm:$0xff] }
 0x145   :  { %8607 = vmatmul.mubr.msk.f32.gmra.mrb[98].mxu0 %vm15294_vm0, %v206_v4 }
 0x146   :  { %8609 = vmatprep.mubr.msk.f32.mxu0 %vm15294_vm0, %v207_v17 }
 0x149   :  { %8610 = vmatmul.mubr.msk.f32.gmra.mrb[100].mxu0 %vm15294_vm0, %v208_v35  ;;  %v216_v35 = vld [vmem:[#allocation5 + $0x368] sm:$0xff] }
 0x14a   :  { %8612 = vmatprep.mubr.msk.f32.mxu0 %vm15294_vm0, %v209_v36  ;;  %v217_v36 = vld [vmem:[#allocation5 + $0x370] sm:$0xff] }
 0x14d   :  { %8613 = vmatmul.mubr.msk.f32.gmra.mrb[102].mxu0 %vm15294_vm0, %v210_v53 }
 0x14e   :  { %8615 = vmatprep.mubr.msk.f32.mxu0 %vm15294_vm0, %v211_v6 }
 0x151   :  { %8616 = vmatmul.mubr.msk.f32.gmra.mrb[104].mxu0 %vm15294_vm0, %v212_v58  ;;  %v218_v58 = vld [vmem:[#allocation5 + $0x378] sm:$0xff] }
 0x152   :  { %8618 = vmatprep.mubr.msk.f32.mxu0 %vm15294_vm0, %v213_v44  ;;  %v219_v44 = vld [vmem:[#allocation5 + $0x380] sm:$0xff] }
 0x154   :  { %v11102_v4 = vpop.f32.mrb[0].mxu0 }
 0x155   :  { %v11104_v17 = vpop.f32.mrb[1].mxu0  ;;  %8619 = vmatmul.mubr.msk.f32.gmra.mrb[106].mxu0 %vm15294_vm0, %v214_v63  ;;  %v220_v63 = vld [vmem:[#allocation5 + $0x388] sm:$0xff] }
 0x156   :  { %8621 = vmatprep.mubr.msk.f32.mxu0 %vm15294_vm0, %v215_v1  ;;  %v221_v1 = vld [vmem:[#allocation5 + $0x390] sm:$0xff] }
 0x158   :  { %v11108_v53 = vpop.f32.mrb[2].mxu0 }
 0x159   :  { %v11110_v6 = vpop.f32.mrb[3].mxu0  ;;  %8622 = vmatmul.mubr.msk.f32.gmra.mrb[108].mxu0 %vm15294_vm0, %v216_v35  ;;  %v222_v35 = vld [vmem:[#allocation5 + $0x398] sm:$0xff] }
 0x15a   :  { %8624 = vmatprep.mubr.msk.f32.mxu0 %vm15294_vm0, %v217_v36  ;;  %v223_v36 = vld [vmem:[#allocation5 + $0x3a0] sm:$0xff] }
 0x15c   :  { %v11114_v51 = vpop.f32.mrb[4].mxu0 }
 0x15d   :  { %v11116_v46 = vpop.f32.mrb[5].mxu0  ;;  %8625 = vmatmul.mubr.msk.f32.gmra.mrb[110].mxu0 %vm15294_vm0, %v218_v58  ;;  %v224_v58 = vld [vmem:[#allocation5 + $0x3a8] sm:$0xff] }
 0x15e   :  { %8627 = vmatprep.mubr.msk.f32.mxu0 %vm15294_vm0, %v219_v44  ;;  %v225_v44 = vld [vmem:[#allocation5 + $0x3b0] sm:$0xff] }
 0x160   :  { %v11120_v40 = vpop.f32.mrb[6].mxu0 }
 0x161   :  { %v11122_v38 = vpop.f32.mrb[7].mxu0  ;;  %8628 = vmatmul.mubr.msk.f32.gmra.mrb[112].mxu0 %vm15294_vm0, %v220_v63  ;;  %v226_v63 = vld [vmem:[#allocation5 + $0x3b8] sm:$0xff] }
 0x162   :  { %8630 = vmatprep.mubr.msk.f32.mxu0 %vm15294_vm0, %v221_v1  ;;  %v227_v1 = vld [vmem:[#allocation5 + $0x3c0] sm:$0xff] }
 0x164   :  { %v11126_v31 = vpop.f32.mrb[8].mxu0 }
 0x165   :  { %15358 = vst [vmem:[#allocation52_spill] sm:$0xff] %v11126_v31  ;;  %v11128_v26 = vpop.f32.mrb[9].mxu0  ;;  %8631 = vmatmul.mubr.msk.f32.gmra.mrb[114].mxu0 %vm15294_vm0, %v222_v35  ;;  %v228_v35 = vld [vmem:[#allocation5 + $0x3c8] sm:$0xff] }
 0x166   :  { %8633 = vmatprep.mubr.msk.f32.mxu0 %vm15294_vm0, %v223_v36  ;;  %v229_v36 = vld [vmem:[#allocation5 + $0x3d0] sm:$0xff] }
 0x168   :  { %v11132_v24 = vpop.f32.mrb[10].mxu0 }
 0x169   :  { %v11134_v19 = vpop.f32.mrb[11].mxu0  ;;  %8634 = vmatmul.mubr.msk.f32.gmra.mrb[116].mxu0 %vm15294_vm0, %v224_v58  ;;  %v230_v58 = vld [vmem:[#allocation5 + $0x3d8] sm:$0xff] }
 0x16a   :  { %8636 = vmatprep.mubr.msk.f32.mxu0 %vm15294_vm0, %v225_v44  ;;  %v231_v44 = vld [vmem:[#allocation5 + $0x3e0] sm:$0xff] }
 0x16c   :  { %v11138_v13 = vpop.f32.mrb[12].mxu0 }
 0x16d   :  { %15359 = vst [vmem:[#allocation53_spill] sm:$0xff] %v11138_v13  ;;  %v11140_v5 = vpop.f32.mrb[13].mxu0  ;;  %8637 = vmatmul.mubr.msk.f32.gmra.mrb[118].mxu0 %vm15294_vm0, %v226_v63  ;;  %v232_v63 = vld [vmem:[#allocation5 + $0x3e8] sm:$0xff] }
 0x16e   :  { %15360 = vst [vmem:[#allocation54_spill] sm:$0xff] %v11140_v5  ;;  %8639 = vmatprep.mubr.msk.f32.mxu0 %vm15294_vm0, %v227_v1  ;;  %v233_v1 = vld [vmem:[#allocation5 + $0x3f0] sm:$0xff]  ;;  %v15193_v5 = vlaneseq }
 0x170   :  { %v11144_v0 = vpop.f32.mrb[14].mxu0 }
 0x171   :  { %15361 = vst [vmem:[#allocation55_spill] sm:$0xff] %v11144_v0  ;;  %v11146_v11 = vpop.f32.mrb[15].mxu0  ;;  %8640 = vmatmul.mubr.msk.f32.gmra.mrb[120].mxu0 %vm15294_vm0, %v228_v35  ;;  %v234_v35 = vld [vmem:[#allocation5 + $0x3f8] sm:$0xff] }
 0x172   :  { %15362 = vst [vmem:[#allocation56_spill] sm:$0xff] %v11146_v11  ;;  %8642 = vmatprep.mubr.msk.f32.mxu0 %vm15294_vm0, %v229_v36  ;;  %v1333_v36 = vld [vmem:[#allocation2] sm:$0xff] }
 0x174   :  { %v11150_v57 = vpop.f32.mrb[16].mxu0 }
 0x175   :  { %v11152_v62 = vpop.f32.mrb[17].mxu0  ;;  %8643 = vmatmul.mubr.msk.f32.gmra.mrb[122].mxu0 %vm15294_vm0, %v230_v58  ;;  %v1334_v58 = vld [vmem:[#allocation2 + $0x8] sm:$0xff] }
 0x176   :  { %15363 = vst [vmem:[#allocation57_spill] sm:$0xff] %v11152_v62  ;;  %8645 = vmatprep.mubr.msk.f32.mxu0 %vm15294_vm0, %v231_v44 }
 0x178   :  { %v11156_v45 = vpop.f32.mrb[18].mxu0 }
 0x179   :  { %v11158_v52 = vpop.f32.mrb[19].mxu0  ;;  %8646 = vmatmul.mubr.msk.f32.gmra.mrb[124].mxu0 %vm15294_vm0, %v232_v63 }
 0x17a   :  { %15364 = vst [vmem:[#allocation58_spill] sm:$0xff] %v11158_v52  ;;  %8648 = vmatprep.mubr.msk.f32.mxu0 %vm15294_vm0, %v233_v1 }
 0x17c   :  { %v11162_v37 = vpop.f32.mrb[20].mxu0 }
 0x17d   :  { %15365 = vst [vmem:[#allocation59_spill] sm:$0xff] %v11162_v37  ;;  %v11164_v50 = vpop.f32.mrb[21].mxu0  ;;  %8649 = vmatmul.mubr.msk.f32.gmra.mrb[126].mxu0 %vm15294_vm0, %v234_v35 }
 0x17e   :  { %15366 = vst [vmem:[#allocation60_spill] sm:$0xff] %v11164_v50  ;;  %8667 = vmatprep.mubr.msk.f32.mxu0 %vm15294_vm0, %v1333_v36 }
 0x180   :  { %v11168_v44 = vpop.f32.mrb[22].mxu0 }
 0x181   :  { %15367 = vst [vmem:[#allocation61_spill] sm:$0xff] %v11168_v44  ;;  %v11170_v30 = vpop.f32.mrb[23].mxu0  ;;  %8668 = vmatmul.mubr.msk.f32.vlgmr.msra.gmra.mrb[128].mxu0 %vm15294_vm0, %v1334_v58 }
 0x182   :  { %15368 = vst [vmem:[#allocation62_spill] sm:$0xff] %v11170_v30 }
 0x184   :  { %v11173_v63 = vpop.f32.mrb[24].mxu0 }
 0x185   :  { %15369 = vst [vmem:[#allocation63_spill] sm:$0xff] %v11173_v63  ;;  %v11175_v1 = vpop.f32.mrb[25].mxu0 }
 0x186   :  { %15370 = vst [vmem:[#allocation64_spill] sm:$0xff] %v11175_v1 }
 0x188   :  { %v11177_v39 = vpop.f32.mrb[26].mxu0 }
 0x189   :  { %15371 = vst [vmem:[#allocation65_spill] sm:$0xff] %v11177_v39  ;;  %v11179_v23 = vpop.f32.mrb[27].mxu0 }
 0x18a   :  { %15372 = vst [vmem:[#allocation66_spill] sm:$0xff] %v11179_v23 }
 0x18c   :  { %v11181_v12 = vpop.f32.mrb[28].mxu0 }
 0x18d   :  { %15373 = vst [vmem:[#allocation67_spill] sm:$0xff] %v11181_v12  ;;  %v11183_v35 = vpop.f32.mrb[29].mxu0 }
 0x18e   :  { %15374 = vst [vmem:[#allocation68_spill] sm:$0xff] %v11183_v35 }
 0x190   :  { %v11185_v36 = vpop.f32.mrb[30].mxu0 }
 0x191   :  { %15375 = vst [vmem:[#allocation69_spill] sm:$0xff] %v11185_v36  ;;  %v11187_v25 = vpop.f32.mrb[31].mxu0 }
 0x192   :  { %15376 = vst [vmem:[#allocation70_spill] sm:$0xff] %v11187_v25 }
 0x194   :  { %v11189_v18 = vpop.f32.mrb[32].mxu0 }
 0x195   :  { %15377 = vst [vmem:[#allocation71_spill] sm:$0xff] %v11189_v18  ;;  %v11191_v2 = vpop.f32.mrb[33].mxu0 }
 0x196   :  { %15378 = vst [vmem:[#allocation72_spill] sm:$0xff] %v11191_v2 }
 0x198   :  { %v11193_v58 = vpop.f32.mrb[34].mxu0 }
 0x199   :  { %15379 = vst [vmem:[#allocation73_spill] sm:$0xff] %v11193_v58  ;;  %v11195_v3 = vpop.f32.mrb[35].mxu0 }
 0x19a   :  { %15380 = vst [vmem:[#allocation74_spill] sm:$0xff] %v11195_v3 }
 0x19c   :  { %v11197_v60 = vpop.f32.mrb[36].mxu0 }
 0x19d   :  { %15381 = vst [vmem:[#allocation75_spill] sm:$0xff] %v11197_v60  ;;  %v11199_v61 = vpop.f32.mrb[37].mxu0 }
 0x19e   :  { %15382 = vst [vmem:[#allocation76_spill] sm:$0xff] %v11199_v61 }
 0x1a0   :  { %v11201_v7 = vpop.f32.mrb[38].mxu0 }
 0x1a1   :  { %15383 = vst [vmem:[#allocation77_spill] sm:$0xff] %v11201_v7  ;;  %v11203_v10 = vpop.f32.mrb[39].mxu0 }
 0x1a2   :  { %15384 = vst [vmem:[#allocation78_spill] sm:$0xff] %v11203_v10 }
 0x1a4   :  { %v11205_v54 = vpop.f32.mrb[40].mxu0 }
 0x1a5   :  { %15385 = vst [vmem:[#allocation79_spill] sm:$0xff] %v11205_v54  ;;  %v11207_v55 = vpop.f32.mrb[41].mxu0 }
 0x1a6   :  { %15386 = vst [vmem:[#allocation80_spill] sm:$0xff] %v11207_v55 }
 0x1a8   :  { %v11209_v56 = vpop.f32.mrb[42].mxu0 }
 0x1a9   :  { %15387 = vst [vmem:[#allocation81_spill] sm:$0xff] %v11209_v56  ;;  %v11211_v59 = vpop.f32.mrb[43].mxu0 }
 0x1aa   :  { %15388 = vst [vmem:[#allocation82_spill] sm:$0xff] %v11211_v59 }
 0x1ac   :  { %v11213_v41 = vpop.f32.mrb[44].mxu0 }
 0x1ad   :  { %15389 = vst [vmem:[#allocation83_spill] sm:$0xff] %v11213_v41  ;;  %v11215_v42 = vpop.f32.mrb[45].mxu0 }
 0x1ae   :  { %15390 = vst [vmem:[#allocation84_spill] sm:$0xff] %v11215_v42 }
 0x1b0   :  { %v11217_v48 = vpop.f32.mrb[46].mxu0 }
 0x1b1   :  { %15391 = vst [vmem:[#allocation85_spill] sm:$0xff] %v11217_v48  ;;  %v11219_v49 = vpop.f32.mrb[47].mxu0 }
 0x1b2   :  { %15392 = vst [vmem:[#allocation86_spill] sm:$0xff] %v11219_v49 }
 0x1b4   :  { %v11221_v29 = vpop.f32.mrb[48].mxu0 }
 0x1b5   :  { %15393 = vst [vmem:[#allocation87_spill] sm:$0xff] %v11221_v29  ;;  %v11223_v32 = vpop.f32.mrb[49].mxu0 }
 0x1b6   :  { %15394 = vst [vmem:[#allocation88_spill] sm:$0xff] %v11223_v32 }
 0x1b8   :  { %v11225_v43 = vpop.f32.mrb[50].mxu0 }
 0x1b9   :  { %15395 = vst [vmem:[#allocation89_spill] sm:$0xff] %v11225_v43  ;;  %v11227_v47 = vpop.f32.mrb[51].mxu0 }
 0x1ba   :  { %15396 = vst [vmem:[#allocation90_spill] sm:$0xff] %v11227_v47 }
 0x1bc   :  { %v11229_v27 = vpop.f32.mrb[52].mxu0 }
 0x1bd   :  { %15397 = vst [vmem:[#allocation91_spill] sm:$0xff] %v11229_v27  ;;  %v11231_v28 = vpop.f32.mrb[53].mxu0 }
 0x1be   :  { %15398 = vst [vmem:[#allocation92_spill] sm:$0xff] %v11231_v28 }
 0x1c0   :  { %v11233_v33 = vpop.f32.mrb[54].mxu0 }
 0x1c1   :  { %15399 = vst [vmem:[#allocation93_spill] sm:$0xff] %v11233_v33  ;;  %v11235_v34 = vpop.f32.mrb[55].mxu0 }
 0x1c2   :  { %15400 = vst [vmem:[#allocation94_spill] sm:$0xff] %v11235_v34 }
 0x1c4   :  { %v11237_v16 = vpop.f32.mrb[56].mxu0 }
 0x1c5   :  { %15401 = vst [vmem:[#allocation95_spill] sm:$0xff] %v11237_v16  ;;  %v11239_v20 = vpop.f32.mrb[57].mxu0 }
 0x1c6   :  { %15402 = vst [vmem:[#allocation96_spill] sm:$0xff] %v11239_v20 }
 0x1c8   :  { %v11241_v8 = vpop.f32.mrb[58].mxu0 }
 0x1c9   :  { %15403 = vst [vmem:[#allocation97_spill] sm:$0xff] %v11241_v8  ;;  %v11243_v9 = vpop.f32.mrb[59].mxu0 }
 0x1ca   :  { %15404 = vst [vmem:[#allocation98_spill] sm:$0xff] %v11243_v9 }
 0x1cc   :  { %v11245_v21 = vpop.f32.mrb[60].mxu0 }
 0x1cd   :  { %15405 = vst [vmem:[#allocation99_spill] sm:$0xff] %v11245_v21  ;;  %v11247_v22 = vpop.f32.mrb[61].mxu0 }
 0x1ce   :  { %15406 = vst [vmem:[#allocation100_spill] sm:$0xff] %v11247_v22 }
 0x1d0   :  { %v11249_v14 = vpop.f32.mrb[62].mxu0 }
 0x1d1   :  { %15407 = vst [vmem:[#allocation101_spill] sm:$0xff] %v11249_v14  ;;  %v11251_v15 = vpop.f32.mrb[63].mxu0 }
 0x1d2   :  { %15408 = vst [vmem:[#allocation102_spill] sm:$0xff] %v11251_v15 }
 0x1d4   :  { %v11253_v48 = vpop.f32.mrb[64].mxu0 }
 0x1d5   :  { %v11255_v27 = vpop.f32.mrb[65].mxu0 }
 0x1d8   :  { %v11257_v28 = vpop.f32.mrb[66].mxu0 }
 0x1d9   :  { %v11259_v16 = vpop.f32.mrb[67].mxu0 }
 0x1dc   :  { %v11261_v20 = vpop.f32.mrb[68].mxu0 }
 0x1dd   :  { %v11263_v8 = vpop.f32.mrb[69].mxu0 }
 0x1e0   :  { %v11265_v9 = vpop.f32.mrb[70].mxu0 }
 0x1e1   :  { %v11267_v21 = vpop.f32.mrb[71].mxu0 }
 0x1e4   :  { %v11269_v22 = vpop.f32.mrb[72].mxu0 }
 0x1e5   :  { %v11271_v14 = vpop.f32.mrb[73].mxu0 }
 0x1e8   :  { %v11273_v15 = vpop.f32.mrb[74].mxu0 }
 0x1e9   :  { %v11275_v42 = vpop.f32.mrb[75].mxu0 }
 0x1ec   :  { %v11277_v25 = vpop.f32.mrb[76].mxu0 }
 0x1ed   :  { %v11279_v47 = vpop.f32.mrb[77].mxu0 }
 0x1f0   :  { %v11281_v32 = vpop.f32.mrb[78].mxu0 }
 0x1f1   :  { %v11283_v33 = vpop.f32.mrb[79].mxu0 }
 0x1f4   :  { %v11285_v55 = vpop.f32.mrb[80].mxu0 }
 0x1f5   :  { %v11287_v34 = vpop.f32.mrb[81].mxu0 }
 0x1f8   :  { %v11289_v49 = vpop.f32.mrb[82].mxu0 }
 0x1f9   :  { %v11291_v39 = vpop.f32.mrb[83].mxu0 }
 0x1fc   :  { %v11293_v41 = vpop.f32.mrb[84].mxu0 }
 0x1fd   :  { %v11295_v23 = vpop.f32.mrb[85].mxu0 }
 0x200   :  { %v11297_v36 = vpop.f32.mrb[86].mxu0 }
 0x201   :  { %v11299_v63 = vpop.f32.mrb[87].mxu0 }
 0x204   :  { %v11301_v43 = vpop.f32.mrb[88].mxu0 }
 0x205   :  { %15409 = vst [vmem:[#allocation103_spill] sm:$0xff] %v11301_v43  ;;  %v11303_v56 = vpop.f32.mrb[89].mxu0 }
 0x206   :  { %15410 = vst [vmem:[#allocation104_spill] sm:$0xff] %v11303_v56 }
 0x208   :  { %v11305_v12 = vpop.f32.mrb[90].mxu0 }
 0x209   :  { %15411 = vst [vmem:[#allocation105_spill] sm:$0xff] %v11305_v12  ;;  %v11307_v29 = vpop.f32.mrb[91].mxu0 }
 0x20a   :  { %15412 = vst [vmem:[#allocation106_spill] sm:$0xff] %v11307_v29 }
 0x20c   :  { %v11309_v59 = vpop.f32.mrb[92].mxu0 }
 0x20d   :  { %15413 = vst [vmem:[#allocation107_spill] sm:$0xff] %v11309_v59  ;;  %v11311_v35 = vpop.f32.mrb[93].mxu0 }
 0x20e   :  { %15414 = vst [vmem:[#allocation108_spill] sm:$0xff] %v11311_v35 }
 0x210   :  { %v11313_v54 = vpop.f32.mrb[94].mxu0 }
 0x211   :  { %15415 = vst [vmem:[#allocation109_spill] sm:$0xff] %v11313_v54  ;;  %v11315_v1 = vpop.f32.mrb[95].mxu0 }
 0x212   :  { %15416 = vst [vmem:[#allocation110_spill] sm:$0xff] %v11315_v1 }
 0x214   :  { %v11317_v7 = vpop.f32.mrb[96].mxu0 }
 0x215   :  { %v11319_v10 = vpop.f32.mrb[97].mxu0 }
 0x218   :  { %v11321_v61 = vpop.f32.mrb[98].mxu0 }
 0x219   :  { %v11323_v43 = vpop.f32.mrb[99].mxu0 }
 0x21c   :  { %v11325_v56 = vpop.f32.mrb[100].mxu0 }
 0x21d   :  { %v11327_v12 = vpop.f32.mrb[101].mxu0 }
 0x220   :  { %v11329_v29 = vpop.f32.mrb[102].mxu0 }
 0x221   :  { %v11331_v59 = vpop.f32.mrb[103].mxu0 }
 0x224   :  { %v11333_v35 = vpop.f32.mrb[104].mxu0 }
 0x225   :  { %15417 = vst [vmem:[#allocation111_spill] sm:$0xff] %v11333_v35  ;;  %v11335_v54 = vpop.f32.mrb[105].mxu0 }
 0x226   :  { %15418 = vst [vmem:[#allocation112_spill] sm:$0xff] %v11335_v54 }
 0x228   :  { %v11337_v1 = vpop.f32.mrb[106].mxu0 }
 0x229   :  { %15419 = vst [vmem:[#allocation113_spill] sm:$0xff] %v11337_v1  ;;  %v11339_v30 = vpop.f32.mrb[107].mxu0 }
 0x22a   :  { %15420 = vst [vmem:[#allocation114_spill] sm:$0xff] %v11339_v30 }
 0x22c   :  { %v11341_v58 = vpop.f32.mrb[108].mxu0 }
 0x22d   :  { %15421 = vst [vmem:[#allocation115_spill] sm:$0xff] %v11341_v58  ;;  %v11343_v37 = vpop.f32.mrb[109].mxu0 }
 0x22e   :  { %15422 = vst [vmem:[#allocation116_spill] sm:$0xff] %v11343_v37 }
 0x230   :  { %v11345_v60 = vpop.f32.mrb[110].mxu0 }
 0x231   :  { %15423 = vst [vmem:[#allocation117_spill] sm:$0xff] %v11345_v60  ;;  %v11347_v13 = vpop.f32.mrb[111].mxu0 }
 0x232   :  { %15424 = vst [vmem:[#allocation118_spill] sm:$0xff] %v11347_v13 }
 0x234   :  { %v11349_v44 = vpop.f32.mrb[112].mxu0 }
 0x235   :  { %15425 = vst [vmem:[#allocation119_spill] sm:$0xff] %v11349_v44  ;;  %v11351_v18 = vpop.f32.mrb[113].mxu0 }
 0x236   :  { %15426 = vst [vmem:[#allocation120_spill] sm:$0xff] %v11351_v18  ;;  %v10696_v18 = vmov 1966171168  }
 0x238   :  { %v11353_v0 = vpop.f32.mrb[114].mxu0 }
 0x239   :  { %15427 = vst [vmem:[#allocation121_spill] sm:$0xff] %v11353_v0  ;;  %v11355_v35 = vpop.f32.mrb[115].mxu0  ;;  %v1428_v0 = vunpack.c.l.s4 %v10696_v18 }
 0x23a   :  { %15428 = vst [vmem:[#allocation122_spill] sm:$0xff] %v11355_v35 }
 0x23c   :  { %v11357_v54 = vpop.f32.mrb[116].mxu0 }
 0x23d   :  { %15429 = vst [vmem:[#allocation123_spill] sm:$0xff] %v11357_v54  ;;  %v11359_v1 = vpop.f32.mrb[117].mxu0 }
 0x23e   :  { %15430 = vst [vmem:[#allocation124_spill] sm:$0xff] %v11359_v1  ;;  %v1429_v1 = vunpack.c.0.s8 %v1428_v0 }
 0x240   :  { %v11361_v30 = vpop.f32.mrb[118].mxu0 }
 0x241   :  { %15431 = vst [vmem:[#allocation125_spill] sm:$0xff] %v11361_v30  ;;  %v11363_v58 = vpop.f32.mrb[119].mxu0  ;;  %v11378_v30 = vshrl.u32 %v15193_v5, 7 }
 0x242   :  { %15432 = vst [vmem:[#allocation126_spill] sm:$0xff] %v11363_v58 }
 0x243   :  { %15439 = vst [vmem:[#allocation133_spill] sm:$0xff] %v11378_v30 }
 0x244   :  { %v11365_v37 = vpop.f32.mrb[120].mxu0 }
 0x245   :  { %15433 = vst [vmem:[#allocation127_spill] sm:$0xff] %v11365_v37  ;;  %v11367_v60 = vpop.f32.mrb[121].mxu0 }
 0x246   :  { %15434 = vst [vmem:[#allocation128_spill] sm:$0xff] %v11367_v60  ;;  %v11385_v60 = vsub.s32 %v1429_v1, %v11378_v30 }
 0x248   :  { %v11369_v13 = vpop.f32.mrb[122].mxu0  ;;  %15442 = vst [vmem:[#allocation136_spill] sm:$0xff] %v11385_v60 }
 0x249   :  { %15435 = vst [vmem:[#allocation129_spill] sm:$0xff] %v11369_v13  ;;  %v11371_v44 = vpop.f32.mrb[123].mxu0 }
 0x24a   :  { %15436 = vst [vmem:[#allocation130_spill] sm:$0xff] %v11371_v44 }
 0x24c   :  { %v11373_v35 = vpop.f32.mrb[124].mxu0 }
 0x24d   :  { %15437 = vst [vmem:[#allocation131_spill] sm:$0xff] %v11373_v35  ;;  %v11375_v54 = vpop.f32.mrb[125].mxu0 }
 0x24e   :  { %15438 = vst [vmem:[#allocation132_spill] sm:$0xff] %v11375_v54 }
 0x250   :  { %v11380_v58 = vpop.f32.mrb[126].mxu0 }
 0x251   :  { %15440 = vst [vmem:[#allocation134_spill] sm:$0xff] %v11380_v58  ;;  %v11382_v37 = vpop.f32.mrb[127].mxu0  ;;  %v11394_v58 = vsub.s32 0, %v11378_v30 }
 0x252   :  { %15441 = vst [vmem:[#allocation135_spill] sm:$0xff] %v11382_v37 }
 0x253   :  { %15444 = vst [vmem:[#allocation138_spill] sm:$0xff] %v11394_v58 }
 0x254   :  { %v8669_v13 = vpop.f32.mrb[128].mxu0 }
 0x255   :  { %v1475_v44 = vcombine.high %v8669_v13, %v8669_v13  ;;  %v1482_v18 = vrot.slane %v8669_v13, %v11385_v60  ;;  %v1415_v11 = vpop.f32.mrb[129].mxu0 }
 0x256   :  { %v1433_v35 = vrot.slane %v1415_v11, %v11385_v60  ;;  %v1426_v52 = vcombine.high %v1415_v11, %v1415_v11 }
 0x257   :  { %v11390_v0 = vrot.slane %v1475_v44, %v11385_v60  ;;  %v1490_v5 = vcombine.high %v1482_v18, %v1482_v18  ;;  %v1498_v54 = vrot.slane %v1482_v18, %v11385_v60 }
 0x258   :  { %v1449_v1 = vrot.slane %v1433_v35, %v11385_v60  ;;  %v11398_v37 = vrot.slane %v1426_v52, %v11385_v60  ;;  %v1441_v3 = vcombine.high %v1433_v35, %v1433_v35 }
 0x259   :  { %15443 = vst [vmem:[#allocation137_spill] sm:$0xff] %v11390_v0  ;;  %v11402_v13 = vrot.slane %v11390_v0, %v11385_v60  ;;  %v11405_v11 = vrot.slane %v1490_v5, %v11385_v60  ;;  %v1520_v44 = vcombine.high %v1498_v54, %v1498_v54  ;;  %v1559_v62 = vrot.slane %v1498_v54, %v11394_v58 }
 0x25a   :  { %15445 = vst [vmem:[#allocation139_spill] sm:$0xff] %v11398_v37  ;;  %v1527_v18 = vrot.slane %v1449_v1, %v11394_v58  ;;  %v11411_v30 = vrot.slane %v11398_v37, %v11385_v60  ;;  %v11414_v52 = vrot.slane %v1441_v3, %v11385_v60  ;;  %v1471_v31 = vcombine.high %v1449_v1, %v1449_v1  ;;  %v15452_v1 = vld [vmem:[#allocation52_spill] sm:$0xff] }
 0x25b   :  { %15446 = vst [vmem:[#allocation140_spill] sm:$0xff] %v11402_v13  ;;  %15447 = vst [vmem:[#allocation141_spill] sm:$0xff] %v11405_v11  ;;  %v1563_v35 = vrot.slane %v11405_v11, %v11394_v58  ;;  %v1567_v50 = vrot.slane %v1520_v44, %v11394_v58  ;;  %v1575_v5 = vrot.slane %v11402_v13, %v11394_v58 }
 0x25c   :  { %v1669_v54 = vadd.f32 %v11253_v48, %v1559_v62  ;;  %v1668_v2 = vadd.f32 %v1559_v62, %v11255_v27  ;;  %v1672_v0 = vadd.f32 %v1559_v62, %v11263_v8  ;;  %v1670_v37 = vadd.f32 %v1559_v62, %v11259_v16 }
 0x25d   :  { %v1673_v3 = vadd.f32 %v11261_v20, %v1559_v62  ;;  %v1671_v60 = vadd.f32 %v11257_v28, %v1559_v62  ;;  %v1674_v11 = vadd.f32 %v1559_v62, %v11267_v21  ;;  %v1605_v44 = vadd.f32 %v11102_v4, %v1527_v18 }
 0x25e   :  { %10057 = vtanh.f32 %v1669_v54  ;;  %v11430_v13 = vadd.f32 %v11265_v9, %v1559_v62  ;;  %v1608_v48 = vadd.f32 %v1527_v18, %v11116_v46  ;;  %v11434_v27 = vadd.f32 %v11114_v51, %v1527_v18  ;;  %v15456_v54 = vld [vmem:[#allocation74_spill] sm:$0xff] }
 0x25f   :  { %10059 = vtanh.f32 %v1668_v2  ;;  %v11437_v8 = vadd.f32 %v1527_v18, %v11104_v17  ;;  %v11440_v16 = vadd.f32 %v1527_v18, %v11110_v6  ;;  %v11443_v20 = vadd.f32 %v11108_v53, %v1527_v18 }
 0x260   :  { %10061 = vtanh.f32 %v1672_v0  ;;  %v11446_v21 = vadd.f32 %v1527_v18, %v11122_v38  ;;  %v11449_v9 = vadd.f32 %v11120_v40, %v1527_v18  ;;  %v11452_v28 = vadd.f32 %v11269_v22, %v1563_v35  ;;  %v15454_v18 = vld [vmem:[#allocation57_spill] sm:$0xff] }
 0x261   :  { %10063 = vtanh.f32 %v1670_v37  ;;  %v11455_v46 = vadd.f32 %v1563_v35, %v11275_v42  ;;  %v11458_v51 = vadd.f32 %v11285_v55, %v1567_v50  ;;  %v11461_v62 = vadd.f32 %v11273_v15, %v1563_v35 }
 0x262   :  { %v11465_v38 = vrot.slane %v11414_v52, %v11394_v58  ;;  %v11468_v40 = vadd.f32 %v1563_v35, %v11271_v14  ;;  %v11471_v22 = vadd.f32 %v11289_v49, %v1567_v50  ;;  %v11474_v37 = vadd.f32 %v1567_v50, %v11287_v34 }
 0x263   :  { %v11477_v42 = vrot.slane %v1471_v31, %v11394_v58  ;;  %v11480_v55 = vadd.f32 %v1575_v5, %v11319_v10  ;;  %v11483_v15 = vadd.f32 %v1567_v50, %v11291_v39  ;;  %v11486_v2 = vadd.f32 %v1567_v50, %v11295_v23  ;;  %v11506_v10 = vld [vmem:[#allocation11] ss:$0 sm:$0xff] }
 0x264   :  { %10065 = vtanh.f32 %v1673_v3  ;;  %v11489_v14 = vadd.f32 %v1563_v35, %v11279_v47  ;;  %v11492_v49 = vadd.f32 %v1575_v5, %v11323_v43  ;;  %v11495_v34 = vadd.f32 %v11317_v7, %v1575_v5 }
 0x265   :  { %10067 = vtanh.f32 %v1671_v60  ;;  %v11498_v31 = vadd.f32 %v1563_v35, %v11283_v33  ;;  %v11501_v39 = vadd.f32 %v11277_v25, %v1563_v35  ;;  %v11504_v23 = vadd.f32 %v11281_v32, %v1563_v35 }
 0x266   :  { %v11509_v47 = vadd.f32 %v11293_v41, %v1567_v50  ;;  %v11512_v43 = vadd.f32 %v11297_v36, %v1567_v50  ;;  %v11515_v7 = vadd.f32 %v11321_v61, %v1575_v5  ;;  %v11519_v33 = vrot.slane %v11411_v30, %v11394_v58  ;;  %v15450_v36 = vld [vmem:[#allocation137_spill] sm:$0xff] }
 0x267   :  { %v11522_v25 = vadd.f32 %v11325_v56, %v1575_v5  ;;  %v11525_v32 = vadd.f32 %v1567_v50, %v11299_v63  ;;  %v11529_v41 = vadd.f32 %v11465_v38, %v11134_v19  ;;  %10069 = vtanh.f32 %v1605_v44  ;;  %v15457_v44 = vld [vmem:[#allocation58_spill] sm:$0xff] }
 0x268   :  { %v10058_v60 = vpop.eup %10057  ;;  %v11532_v4 = vadd.f32 %v1575_v5, %v11327_v12  ;;  %v11536_v61 = vadd.f32 %v11150_v57, %v11477_v42  ;;  %v11539_v17 = vadd.f32 %v1575_v5, %v11331_v59  ;;  %10071 = vtanh.f32 %v1674_v11 }
 0x269   :  { %v10060_v56 = vpop.eup %10059  ;;  %v11542_v50 = vmul.f32 %v10058_v60, %v11506_v10  ;;  %v11546_v19 = vadd.f32 %v11132_v24, %v11465_v38  ;;  %v11549_v53 = vadd.f32 %v11329_v29, %v1575_v5  ;;  %v11556_v57 = vadd.f32 %v11156_v45, %v11477_v42  ;;  %v15451_v29 = vld [vmem:[#allocation72_spill] sm:$0xff] }
 0x26a   :  { %v10062_v12 = vpop.eup %10061  ;;  %v11552_v6 = vmul.f32 %v10060_v56, %v11506_v10  ;;  %v11560_v59 = vadd.f32 %v11465_v38, %v11128_v26  ;;  %v1491_v24 = vcombine.high %v15450_v36, %v15450_v36  ;;  %v11568_v0 = vadd.f32 %v11519_v33, %v15451_v29  ;;  %v15453_v26 = vld [vmem:[#allocation60_spill] sm:$0xff]  ;;  %v15459_v56 = vld [vmem:[#allocation141_spill] sm:$0xff] }
 0x26b   :  { %15448 = vst [vmem:[#allocation142_spill] sm:$0xff] %v11542_v50  ;;  %v10064_v63 = vpop.eup %10063  ;;  %2637 = vrot.lane.b32.xlu0 %v11542_v50, %s10697_s5  ;;  %v11572_v45 = vadd.f32 %v15452_v1, %v11465_v38  ;;  %10073 = vtanh.f32 %v1608_v48  ;;  %v11578_v11 = vadd.f32 %v11477_v42, %v15453_v26  ;;  %v11582_v35 = vadd.f32 %v11477_v42, %v15454_v18  ;;  %v15461_v1 = vld [vmem:[#allocation56_spill] sm:$0xff] }
 0x26c   :  { %15449 = vst [vmem:[#allocation143_spill] sm:$0xff] %v11552_v6  ;;  %2635 = vrot.lane.b32.xlu1 %v11552_v6, %s10697_s5  ;;  %v11585_v5 = vmul.f32 %v10062_v12, %v11506_v10  ;;  %10075 = vtanh.f32 %v11430_v13  ;;  %v11590_v3 = vadd.f32 %v11519_v33, %v15456_v54  ;;  %v11594_v48 = vadd.f32 %v11477_v42, %v15457_v44  ;;  %v15462_v13 = vld [vmem:[#allocation54_spill] sm:$0xff]  ;;  %v15464_v54 = vld [vmem:[#allocation136_spill] sm:$0xff]  ;;  %v15465_v44 = vld [vmem:[#allocation55_spill] sm:$0xff] }
 0x26d   :  { %v1522_v36 = vcombine.high %v15459_v56, %v15459_v56  ;;  %v11599_v29 = vmul.f32 %v10064_v63, %v11506_v10  ;;  %v11603_v12 = vadd.f32 %v11465_v38, %v15461_v1  ;;  %v11607_v26 = vadd.f32 %v11465_v38, %v15462_v13  ;;  %v15467_v63 = vld [vmem:[#allocation71_spill] sm:$0xff]  ;;  %v15469_v1 = vld [vmem:[#allocation61_spill] sm:$0xff] }
 0x26e   :  { %15455 = vst [vmem:[#allocation137_spill] sm:$0xff] %v11585_v5  ;;  %15458 = vst [vmem:[#allocation72_spill] sm:$0xff] %v11594_v48  ;;  %v10066_v60 = vpop.eup %10065  ;;  %v11610_v50 = vrot.slane %v1491_v24, %v15464_v54  ;;  %v11616_v56 = vadd.f32 %v15465_v44, %v11465_v38  ;;  %v11620_v6 = vadd.f32 %v15467_v63, %v11519_v33  ;;  %10077 = vtanh.f32 %v11434_v27  ;;  %v15471_v13 = vld [vmem:[#allocation53_spill] sm:$0xff]  ;;  %v15474_v63 = vld [vmem:[#allocation75_spill] sm:$0xff] }
 0x26f   :  { %15460 = vst [vmem:[#allocation52_spill] sm:$0xff] %v11599_v29  ;;  %15463 = vst [vmem:[#allocation60_spill] sm:$0xff] %v11607_v26  ;;  %v10068_v18 = vpop.eup %10067  ;;  %2643 = vrot.lane.b32.xlu0 %v11585_v5, %s10697_s5  ;;  %v11627_v24 = vadd.f32 %v15469_v1, %v11477_v42  ;;  %v11631_v5 = vadd.f32 %v15471_v13, %v11465_v38  ;;  %v11634_v44 = vmul.f32 %v10066_v60, %v11506_v10  ;;  %v15478_v1 = vld [vmem:[#allocation140_spill] sm:$0xff]  ;;  %v15480_v60 = vld [vmem:[#allocation73_spill] sm:$0xff] }
 0x270   :  { %15466 = vst [vmem:[#allocation57_spill] sm:$0xff] %v11616_v56  ;;  %15468 = vst [vmem:[#allocation74_spill] sm:$0xff] %v11620_v6  ;;  %2639 = vrot.lane.b32.xlu1 %v11599_v29, %s10697_s5  ;;  %10079 = vtanh.f32 %v11437_v8  ;;  %v11639_v6 = vadd.f32 %v15474_v63, %v11519_v33  ;;  %v15476_v29 = vld [vmem:[#allocation59_spill] sm:$0xff]  ;;  %v1571_v38 = vrot.slane %v1522_v36, %v11394_v58 }
 0x271   :  { %15470 = vst [vmem:[#allocation58_spill] sm:$0xff] %v11627_v24  ;;  %15472 = vst [vmem:[#allocation141_spill] sm:$0xff] %v11631_v5  ;;  %v11643_v27 = vadd.f32 %v15476_v29, %v11477_v42  ;;  %v10070_v26 = vpop.eup %10069  ;;  %v1521_v24 = vcombine.high %v15478_v1, %v15478_v1  ;;  %v11649_v13 = vmul.f32 %v10068_v18, %v11506_v10  ;;  %v15482_v29 = vld [vmem:[#allocation62_spill] sm:$0xff]  ;;  %v15484_v1 = vld [vmem:[#allocation76_spill] sm:$0xff]  ;;  %10081 = vtanh.f32 %v11440_v16 }
 0x272   :  { %15473 = vst [vmem:[#allocation56_spill] sm:$0xff] %v11634_v44  ;;  %15475 = vst [vmem:[#allocation54_spill] sm:$0xff] %v11639_v6  ;;  %v11653_v8 = vadd.f32 %v15480_v60, %v11519_v33  ;;  %v10072_v5 = vpop.eup %10071  ;;  %v1579_v63 = vrot.slane %v11610_v50, %v11394_v58  ;;  %v11665_v36 = vadd.f32 %v11519_v33, %v15484_v1  ;;  %v15486_v18 = vld [vmem:[#allocation78_spill] sm:$0xff]  ;;  %v15494_v16 = vld [vmem:[#allocation111_spill] sm:$0xff]  ;;  %10083 = vtanh.f32 %v11443_v20 }
 0x273   :  { %15477 = vst [vmem:[#allocation55_spill] sm:$0xff] %v11643_v27  ;;  %15479 = vst [vmem:[#allocation71_spill] sm:$0xff] %v11649_v13  ;;  %2645 = vrot.lane.b32.xlu0 %v11634_v44, %s10697_s5  ;;  %v11661_v27 = vadd.f32 %v11477_v42, %v15482_v29  ;;  %v11671_v60 = vadd.f32 %v11519_v33, %v15486_v18  ;;  %v15488_v44 = vld [vmem:[#allocation77_spill] sm:$0xff]  ;;  %v1583_v1 = vrot.slane %v1521_v24, %v11394_v58  ;;  %v15492_v18 = vld [vmem:[#allocation104_spill] sm:$0xff] }
 0x274   :  { %15481 = vst [vmem:[#allocation61_spill] sm:$0xff] %v11653_v8  ;;  %15485 = vst [vmem:[#allocation75_spill] sm:$0xff] %v11665_v36  ;;  %2641 = vrot.lane.b32.xlu1 %v11649_v13, %s10697_s5  ;;  %v11674_v8 = vmul.f32 %v10070_v26, %v11506_v10  ;;  %v11679_v42 = vadd.f32 %v15488_v44, %v11519_v33  ;;  %v15490_v36 = vld [vmem:[#allocation139_spill] sm:$0xff]  ;;  %v11685_v13 = vmul.f32 %v10072_v5, %v11506_v10  ;;  %v15496_v24 = vld [vmem:[#allocation108_spill] sm:$0xff] }
 0x275   :  { %15483 = vst [vmem:[#allocation53_spill] sm:$0xff] %v11661_v27  ;;  %15487 = vst [vmem:[#allocation59_spill] sm:$0xff] %v11671_v60  ;;  %v10074_v29 = vpop.eup %10073  ;;  %v1442_v27 = vcombine.high %v15490_v36, %v15490_v36  ;;  %v11688_v60 = vadd.f32 %v1571_v38, %v15492_v18  ;;  %v11693_v6 = vadd.f32 %v15494_v16, %v1579_v63  ;;  %v15498_v36 = vld [vmem:[#allocation114_spill] sm:$0xff]  ;;  %v15505_v20 = vld [vmem:[#allocation103_spill] sm:$0xff]  ;;  %10085 = vtanh.f32 %v11446_v21 }
 0x276   :  { %15489 = vst [vmem:[#allocation140_spill] sm:$0xff] %v11679_v42  ;;  %15491 = vst [vmem:[#allocation73_spill] sm:$0xff] %v11685_v13  ;;  %v10076_v26 = vpop.eup %10075  ;;  %v1473_v33 = vcombine.high %v11414_v52, %v11414_v52  ;;  %v11700_v44 = vadd.f32 %v1571_v38, %v15496_v24  ;;  %v11703_v5 = vmul.f32 %v10074_v29, %v11506_v10  ;;  %v15503_v29 = vld [vmem:[#allocation107_spill] sm:$0xff]  ;;  %v15519_v21 = vld [vmem:[#allocation118_spill] sm:$0xff]  ;;  %10087 = vtanh.f32 %v11449_v9 }
 0x277   :  { %15493 = vst [vmem:[#allocation62_spill] sm:$0xff] %v11688_v60  ;;  %2509 = vrot.lane.b32.xlu0 %v11674_v8, %s10697_s5  ;;  %15495 = vst [vmem:[#allocation76_spill] sm:$0xff] %v11693_v6  ;;  %v11707_v18 = vadd.f32 %v1579_v63, %v15498_v36  ;;  %v11710_v16 = vrot.slane %v1442_v27, %v15464_v54  ;;  %v11713_v52 = vmul.f32 %v10076_v26, %v11506_v10  ;;  %v15501_v6 = vld [vmem:[#allocation119_spill] sm:$0xff] }
 0x278   :  { %2647 = vrot.lane.b32.xlu1 %v11685_v13, %s10697_s5  ;;  %15497 = vst [vmem:[#allocation78_spill] sm:$0xff] %v11700_v44  ;;  %v10078_v60 = vpop.eup %10077  ;;  %v11716_v13 = vadd.f32 %v15501_v6, %v1583_v1  ;;  %v11721_v44 = vadd.f32 %v15503_v29, %v1571_v38  ;;  %v11724_v36 = vadd.f32 %v15505_v20, %v1571_v38  ;;  %v15507_v6 = vld [vmem:[#allocation113_spill] sm:$0xff]  ;;  %v15537_v9 = vld [vmem:[#allocation115_spill] sm:$0xff]  ;;  %10089 = vtanh.f32 %v11452_v28 }
 0x279   :  { %15499 = vst [vmem:[#allocation77_spill] sm:$0xff] %v11707_v18  ;;  %15500 = vst [vmem:[#allocation139_spill] sm:$0xff] %v11713_v52  ;;  %v1472_v27 = vcombine.high %v11411_v30, %v11411_v30  ;;  %v1539_v54 = vrot.slane %v1473_v33, %v11394_v58  ;;  %v11732_v26 = vadd.f32 %v15507_v6, %v1579_v63  ;;  %v15511_v20 = vld [vmem:[#allocation121_spill] sm:$0xff]  ;;  %10091 = vtanh.f32 %v11455_v46 }
 0x27a   :  { %15502 = vst [vmem:[#allocation104_spill] sm:$0xff] %v11716_v13  ;;  %v10080_v24 = vpop.eup %10079  ;;  %15504 = vst [vmem:[#allocation111_spill] sm:$0xff] %v11721_v44  ;;  %v15509_v13 = vld [vmem:[#allocation106_spill] sm:$0xff]  ;;  %v11738_v29 = vmul.f32 %v10078_v60, %v11506_v10  ;;  %v15513_v30 = vld [vmem:[#allocation105_spill] sm:$0xff]  ;;  %v1547_v33 = vrot.slane %v11710_v16, %v11394_v58  ;;  %v11795_v48 = vadd.f32 %v15537_v9, %v1579_v63  ;;  %10093 = vtanh.f32 %v11458_v51 }
 0x27b   :  { %2515 = vrot.lane.b32.xlu0 %v11703_v5, %s10697_s5  ;;  %15506 = vst [vmem:[#allocation108_spill] sm:$0xff] %v11724_v36  ;;  %15508 = vst [vmem:[#allocation114_spill] sm:$0xff] %v11732_v26  ;;  %v11735_v18 = vadd.f32 %v1571_v38, %v15509_v13  ;;  %v11742_v36 = vadd.f32 %v15511_v20, %v1583_v1  ;;  %v11745_v44 = vadd.f32 %v15513_v30, %v1571_v38  ;;  %v10082_v26 = vpop.eup %10081  ;;  %v15521_v30 = vld [vmem:[#allocation120_spill] sm:$0xff]  ;;  %v15549_v9 = vld [vmem:[#allocation126_spill] sm:$0xff] }
 0x27c   :  { %2649 = vrot.lane.b32.xlu1 %v11713_v52, %s10697_s5  ;;  %v11750_v6 = vmul.f32 %v10080_v24, %v11506_v10  ;;  %v15515_v52 = vld [vmem:[#allocation109_spill] sm:$0xff]  ;;  %v11761_v20 = vadd.f32 %v1579_v63, %v15519_v21  ;;  %v15529_v21 = vld [vmem:[#allocation110_spill] sm:$0xff]  ;;  %10095 = vtanh.f32 %v11461_v62 }
 0x27d   :  { %15510 = vst [vmem:[#allocation119_spill] sm:$0xff] %v11735_v18  ;;  %15512 = vst [vmem:[#allocation107_spill] sm:$0xff] %v11742_v36  ;;  %v11753_v13 = vadd.f32 %v15515_v52, %v1571_v38  ;;  %v15517_v18 = vld [vmem:[#allocation112_spill] sm:$0xff]  ;;  %v15523_v24 = vld [vmem:[#allocation117_spill] sm:$0xff]  ;;  %10097 = vtanh.f32 %v11471_v22 }
 0x27e   :  { %15514 = vst [vmem:[#allocation103_spill] sm:$0xff] %v11745_v44  ;;  %v11756_v60 = vadd.f32 %v1579_v63, %v15517_v18  ;;  %15520 = vst [vmem:[#allocation121_spill] sm:$0xff] %v11761_v20  ;;  %v11764_v44 = vadd.f32 %v1583_v1, %v15521_v30  ;;  %v11769_v36 = vadd.f32 %v15523_v24, %v1579_v63  ;;  %v15525_v52 = vld [vmem:[#allocation122_spill] sm:$0xff]  ;;  %v15533_v24 = vld [vmem:[#allocation116_spill] sm:$0xff]  ;;  %10099 = vtanh.f32 %v11468_v40 }
 0x27f   :  { %15516 = vst [vmem:[#allocation113_spill] sm:$0xff] %v11753_v13  ;;  %2517 = vrot.lane.b32.xlu0 %v11738_v29, %s10697_s5  ;;  %v11772_v13 = vadd.f32 %v1583_v1, %v15525_v52  ;;  %v1551_v18 = vrot.slane %v1472_v27, %v11394_v58  ;;  %v11780_v20 = vadd.f32 %v1571_v38, %v15529_v21  ;;  %v10084_v52 = vpop.eup %10083  ;;  %15538 = vst [vmem:[#allocation110_spill] sm:$0xff] %v11795_v48  ;;  %v15539_v38 = vld [vmem:[#allocation82_spill] sm:$0xff] }
 0x280   :  { %15518 = vst [vmem:[#allocation106_spill] sm:$0xff] %v11756_v60  ;;  %15522 = vst [vmem:[#allocation105_spill] sm:$0xff] %v11764_v44  ;;  %2507 = vrot.lane.b32.xlu1 %v11750_v6, %s10697_s5  ;;  %v15527_v60 = vld [vmem:[#allocation64_spill] sm:$0xff]  ;;  %v11783_v30 = vmul.f32 %v10082_v26, %v11506_v10  ;;  %v15531_v44 = vld [vmem:[#allocation79_spill] sm:$0xff]  ;;  %v11816_v48 = vadd.f32 %v1583_v1, %v15549_v9  ;;  %10101 = vtanh.f32 %v11480_v55 }
 0x281   :  { %15524 = vst [vmem:[#allocation109_spill] sm:$0xff] %v11769_v36  ;;  %15526 = vst [vmem:[#allocation112_spill] sm:$0xff] %v11772_v13  ;;  %v11777_v42 = vadd.f32 %v1539_v54, %v15527_v60  ;;  %v11786_v56 = vadd.f32 %v15531_v44, %v1547_v33  ;;  %v11789_v36 = vadd.f32 %v1579_v63, %v15533_v24  ;;  %v15535_v13 = vld [vmem:[#allocation68_spill] sm:$0xff]  ;;  %v15543_v44 = vld [vmem:[#allocation87_spill] sm:$0xff]  ;;  %10103 = vtanh.f32 %v11474_v37 }
 0x282   :  { %15530 = vst [vmem:[#allocation120_spill] sm:$0xff] %v11780_v20  ;;  %v11792_v27 = vadd.f32 %v1539_v54, %v15535_v13  ;;  %v11800_v60 = vadd.f32 %v1547_v33, %v15539_v38  ;;  %v15541_v26 = vld [vmem:[#allocation124_spill] sm:$0xff]  ;;  %v11806_v20 = vadd.f32 %v15543_v44, %v1551_v18  ;;  %v15545_v24 = vld [vmem:[#allocation123_spill] sm:$0xff]  ;;  %v1870_v13 = vmul.f32 %v10084_v52, %v11506_v10  ;;  %v15551_v38 = vld [vmem:[#allocation81_spill] sm:$0xff] }
 0x283   :  { %15528 = vst [vmem:[#allocation118_spill] sm:$0xff] %v11777_v42  ;;  %15532 = vst [vmem:[#allocation117_spill] sm:$0xff] %v11786_v56  ;;  %v11803_v21 = vadd.f32 %v1583_v1, %v15541_v26  ;;  %v10086_v56 = vpop.eup %10085  ;;  %v15553_v26 = vld [vmem:[#allocation125_spill] sm:$0xff]  ;;  %10105 = vtanh.f32 %v11486_v2 }
 0x284   :  { %15534 = vst [vmem:[#allocation122_spill] sm:$0xff] %v11789_v36  ;;  %15536 = vst [vmem:[#allocation64_spill] sm:$0xff] %v11792_v27  ;;  %2511 = vrot.lane.b32.xlu1 %v11783_v30, %s10697_s5  ;;  %v11809_v36 = vadd.f32 %v15545_v24, %v1583_v1  ;;  %v15547_v27 = vld [vmem:[#allocation67_spill] sm:$0xff]  ;;  %v15555_v44 = vld [vmem:[#allocation89_spill] sm:$0xff]  ;;  %10107 = vtanh.f32 %v11483_v15 }
 0x285   :  { %15540 = vst [vmem:[#allocation79_spill] sm:$0xff] %v11800_v60  ;;  %15542 = vst [vmem:[#allocation116_spill] sm:$0xff] %v11803_v21  ;;  %v11813_v63 = vadd.f32 %v15547_v27, %v1539_v54  ;;  %v11819_v60 = vadd.f32 %v15551_v38, %v1547_v33  ;;  %v11822_v21 = vadd.f32 %v15553_v26, %v1583_v1  ;;  %v15559_v9 = vld [vmem:[#allocation69_spill] sm:$0xff]  ;;  %v15563_v26 = vld [vmem:[#allocation83_spill] sm:$0xff]  ;;  %10109 = vtanh.f32 %v11492_v49 }
 0x286   :  { %15544 = vst [vmem:[#allocation68_spill] sm:$0xff] %v11806_v20  ;;  %15546 = vst [vmem:[#allocation115_spill] sm:$0xff] %v11809_v36  ;;  %v11826_v24 = vadd.f32 %v15555_v44, %v1551_v18  ;;  %v15557_v36 = vld [vmem:[#allocation63_spill] sm:$0xff]  ;;  %v1523_v27 = vcombine.high %v11610_v50, %v11610_v50  ;;  %v1873_v1 = vmul.f32 %v10086_v56, %v11506_v10  ;;  %10111 = vtanh.f32 %v11489_v14 }
 0x287   :  { %15548 = vst [vmem:[#allocation82_spill] sm:$0xff] %v11813_v63  ;;  %15550 = vst [vmem:[#allocation124_spill] sm:$0xff] %v11816_v48  ;;  %v11829_v52 = vadd.f32 %v15557_v36, %v1539_v54  ;;  %v11834_v48 = vadd.f32 %v15559_v9, %v1539_v54  ;;  %v15561_v63 = vld [vmem:[#allocation66_spill] sm:$0xff]  ;;  %v1474_v36 = vcombine.high %v11710_v16, %v11710_v16  ;;  %10113 = vtanh.f32 %v11498_v31 }
 0x288   :  { %15552 = vst [vmem:[#allocation87_spill] sm:$0xff] %v11819_v60  ;;  %15554 = vst [vmem:[#allocation123_spill] sm:$0xff] %v11822_v21  ;;  %2513 = vrot.lane.b32.xlu1 %v1870_v13, %s10697_s5  ;;  %v11837_v38 = vadd.f32 %v1539_v54, %v15561_v63  ;;  %v11841_v21 = vadd.f32 %v15563_v26, %v1547_v33  ;;  %v15565_v60 = vld [vmem:[#allocation65_spill] sm:$0xff]  ;;  %v15569_v9 = vld [vmem:[#allocation94_spill] sm:$0xff]  ;;  %10115 = vtanh.f32 %v11495_v34 }
 0x289   :  { %15556 = vst [vmem:[#allocation67_spill] sm:$0xff] %v11826_v24  ;;  %15558 = vst [vmem:[#allocation126_spill] sm:$0xff] %v11829_v52  ;;  %v11844_v44 = vadd.f32 %v15565_v60, %v1539_v54  ;;  %v10088_v24 = vpop.eup %10087  ;;  %v15567_v52 = vld [vmem:[#allocation86_spill] sm:$0xff]  ;;  %v15571_v63 = vld [vmem:[#allocation80_spill] sm:$0xff]  ;;  %v1587_v60 = vrot.slane %v1523_v27, %v11394_v58  ;;  %10117 = vtanh.f32 %v11504_v23 }
 0x28a   :  { %15560 = vst [vmem:[#allocation81_spill] sm:$0xff] %v11834_v48  ;;  %15562 = vst [vmem:[#allocation125_spill] sm:$0xff] %v11837_v38  ;;  %v11849_v50 = vadd.f32 %v1547_v33, %v15567_v52  ;;  %v11852_v48 = vadd.f32 %v1551_v18, %v15569_v9  ;;  %v11856_v56 = vadd.f32 %v1547_v33, %v15571_v63  ;;  %v15573_v26 = vld [vmem:[#allocation93_spill] sm:$0xff]  ;;  %v15576_v16 = vld [vmem:[#allocation90_spill] sm:$0xff]  ;;  %10119 = vtanh.f32 %v11501_v39 }
 0x28b   :  { %15564 = vst [vmem:[#allocation89_spill] sm:$0xff] %v11841_v21  ;;  %15566 = vst [vmem:[#allocation63_spill] sm:$0xff] %v11844_v44  ;;  %v11859_v38 = vadd.f32 %v15573_v26, %v1551_v18  ;;  %v15575_v44 = vld [vmem:[#allocation88_spill] sm:$0xff]  ;;  %v11866_v20 = vadd.f32 %v1551_v18, %v15576_v16  ;;  %v1874_v52 = vmul.f32 %v10088_v24, %v11506_v10  ;;  %v15578_v9 = vld [vmem:[#allocation70_spill] sm:$0xff] }
 0x28c   :  { %15568 = vst [vmem:[#allocation69_spill] sm:$0xff] %v11849_v50  ;;  %15570 = vst [vmem:[#allocation66_spill] sm:$0xff] %v11852_v48  ;;  %2519 = vrot.lane.b32.xlu1 %v1873_v1, %s10697_s5  ;;  %v11863_v21 = vadd.f32 %v1551_v18, %v15575_v44  ;;  %v11870_v48 = vadd.f32 %v1539_v54, %v15578_v9  ;;  %v15579_v50 = vld [vmem:[#allocation84_spill] sm:$0xff]  ;;  %v1555_v63 = vrot.slane %v1474_v36, %v11394_v58  ;;  %v15582_v27 = vld [vmem:[#allocation91_spill] sm:$0xff] }
 0x28d   :  { %15572 = vst [vmem:[#allocation83_spill] sm:$0xff] %v11856_v56  ;;  %15574 = vst [vmem:[#allocation65_spill] sm:$0xff] %v11859_v38  ;;  %v11873_v42 = vadd.f32 %v1547_v33, %v15579_v50  ;;  %v15581_v26 = vld [vmem:[#allocation92_spill] sm:$0xff]  ;;  %v11880_v56 = vadd.f32 %v15582_v27, %v1551_v18  ;;  %v15584_v44 = vld [vmem:[#allocation85_spill] sm:$0xff] }
 0x28e   :  { %15577 = vst [vmem:[#allocation86_spill] sm:$0xff] %v11866_v20  ;;  %v11877_v38 = vadd.f32 %v1551_v18, %v15581_v26  ;;  %v11884_v16 = vadd.f32 %v15584_v44, %v1547_v33  ;;  %v15585_v24 = vld [vmem:[#allocation128_spill] sm:$0xff]  ;;  %v15587_v54 = vld [vmem:[#allocation129_spill] sm:$0xff]  ;;  %v15589_v50 = vld [vmem:[#allocation135_spill] sm:$0xff] }
 0x28f   :  { %15580 = vst [vmem:[#allocation94_spill] sm:$0xff] %v11873_v42  ;;  %15583 = vst [vmem:[#allocation80_spill] sm:$0xff] %v11880_v56  ;;  %v11887_v20 = vadd.f32 %v1587_v60, %v15585_v24  ;;  %v11890_v9 = vadd.f32 %v15587_v54, %v1587_v60  ;;  %v11893_v42 = vadd.f32 %v1587_v60, %v15589_v50  ;;  %v15591_v36 = vld [vmem:[#allocation96_spill] sm:$0xff]  ;;  %v15593_v58 = vld [vmem:[#allocation97_spill] sm:$0xff] }
 0x290   :  { %2521 = vrot.lane.b32.xlu1 %v1874_v52, %s10697_s5  ;;  %v11896_v26 = vadd.f32 %v1555_v63, %v15591_v36  ;;  %v11899_v18 = vadd.f32 %v15593_v58, %v1555_v63  ;;  %v15595_v27 = vld [vmem:[#allocation127_spill] sm:$0xff]  ;;  %v15597_v33 = vld [vmem:[#allocation100_spill] sm:$0xff]  ;;  %v15599_v24 = vld [vmem:[#allocation130_spill] sm:$0xff] }
 0x291   :  { %15586 = vst [vmem:[#allocation93_spill] sm:$0xff] %v11887_v20  ;;  %15588 = vst [vmem:[#allocation88_spill] sm:$0xff] %v11890_v9  ;;  %v11902_v56 = vadd.f32 %v15595_v27, %v1587_v60  ;;  %v11905_v44 = vadd.f32 %v1555_v63, %v15597_v33  ;;  %v11908_v20 = vadd.f32 %v1587_v60, %v15599_v24  ;;  %v15601_v54 = vld [vmem:[#allocation101_spill] sm:$0xff]  ;;  %v15602_v50 = vld [vmem:[#allocation132_spill] sm:$0xff] }
 0x292   :  { %15590 = vst [vmem:[#allocation90_spill] sm:$0xff] %v11893_v42  ;;  %15592 = vst [vmem:[#allocation70_spill] sm:$0xff] %v11896_v26  ;;  %v11911_v9 = vadd.f32 %v15601_v54, %v1555_v63  ;;  %v11914_v42 = vadd.f32 %v1587_v60, %v15602_v50  ;;  %v15604_v36 = vld [vmem:[#allocation131_spill] sm:$0xff]  ;;  %v15606_v27 = vld [vmem:[#allocation98_spill] sm:$0xff]  ;;  %v1995_v54 = vsel %vm15294_vm0, %v11750_v6, 0.0  ;;  %v2001_v6 = vsel %vm15294_vm0, %v11783_v30, 0.0 }
 0x293   :  { %15594 = vst [vmem:[#allocation84_spill] sm:$0xff] %v11899_v18  ;;  %15596 = vst [vmem:[#allocation92_spill] sm:$0xff] %v11902_v56  ;;  %v11917_v26 = vadd.f32 %v15604_v36, %v1587_v60  ;;  %v15605_v58 = vld [vmem:[#allocation95_spill] sm:$0xff]  ;;  %v11923_v56 = vadd.f32 %v1555_v63, %v15606_v27  ;;  %v15608_v24 = vld [vmem:[#allocation102_spill] sm:$0xff]  ;;  %v1998_v36 = vsel %vm15294_vm0, %v11674_v8, 0.0  ;;  %v2013_v27 = vsel %vm15294_vm0, %v1873_v1, 0.0  ;;  %v10090_v8 = vpop.eup %10089 }
 0x294   :  { %15598 = vst [vmem:[#allocation91_spill] sm:$0xff] %v11905_v44  ;;  %15600 = vst [vmem:[#allocation85_spill] sm:$0xff] %v11908_v20  ;;  %v11920_v18 = vadd.f32 %v15605_v58, %v1555_v63  ;;  %v15607_v33 = vld [vmem:[#allocation99_spill] sm:$0xff]  ;;  %v11929_v20 = vadd.f32 %v1555_v63, %v15608_v24  ;;  %v15609_v50 = vld [vmem:[#allocation134_spill] sm:$0xff]  ;;  %v2007_v58 = vsel %vm15294_vm0, %v11703_v5, 0.0  ;;  %v2010_v5 = vsel %vm15294_vm0, %v11738_v29, 0.0  ;;  %v10092_v1 = vpop.eup %10091 }
 0x295   :  { %15603 = vst [vmem:[#allocation128_spill] sm:$0xff] %v11914_v42  ;;  %v11926_v44 = vadd.f32 %v15607_v33, %v1555_v63  ;;  %v11934_v42 = vadd.f32 %v15609_v50, %v1587_v60  ;;  %v2004_v60 = vsel %vm15294_vm0, %v1870_v13, 0.0  ;;  %v11951_v28 = vmul.f32 %v10090_v8, %v11506_v10  ;;  %v10094_v51 = vpop.eup %10093 }
 0x296   :  { %v2016_v30 = vsel %vm15294_vm0, %v1874_v52, 0.0  ;;  %v11958_v46 = vmul.f32 %v10092_v1, %v11506_v10  ;;  %v11965_v62 = vmul.f32 %v10094_v51, %v11506_v10  ;;  %v10096_v29 = vpop.eup %10095  ;;  %10121 = vtanh.f32 %v11512_v43 }
 0x297   :  { %15610 = vst [vmem:[#allocation129_spill] sm:$0xff] %v11951_v28  ;;  %v11972_v22 = vmul.f32 %v10096_v29, %v11506_v10  ;;  %v10098_v40 = vpop.eup %10097  ;;  %10123 = vtanh.f32 %v11509_v47 }
 0x298   :  { %15611 = vst [vmem:[#allocation135_spill] sm:$0xff] %v11958_v46  ;;  %15612 = vst [vmem:[#allocation96_spill] sm:$0xff] %v11965_v62  ;;  %v10100_v13 = vpop.eup %10099  ;;  %v11979_v37 = vmul.f32 %v10098_v40, %v11506_v10  ;;  %10125 = vtanh.f32 %v11522_v25 }
 0x299   :  { %15613 = vst [vmem:[#allocation97_spill] sm:$0xff] %v11972_v22  ;;  %v10102_v55 = vpop.eup %10101  ;;  %v11983_v2 = vmul.f32 %v10100_v13, %v11506_v10  ;;  %10127 = vtanh.f32 %v11515_v7 }
 0x29a   :  { %15614 = vst [vmem:[#allocation127_spill] sm:$0xff] %v11979_v37  ;;  %v10104_v52 = vpop.eup %10103  ;;  %v11991_v15 = vmul.f32 %v10102_v55, %v11506_v10  ;;  %10129 = vtanh.f32 %v11529_v41 }
 0x29b   :  { %15615 = vst [vmem:[#allocation100_spill] sm:$0xff] %v11983_v2  ;;  %v10106_v49 = vpop.eup %10105  ;;  %v11995_v14 = vmul.f32 %v10104_v52, %v11506_v10  ;;  %10131 = vtanh.f32 %v11525_v32 }
 0x29c   :  { %15616 = vst [vmem:[#allocation130_spill] sm:$0xff] %v11991_v15  ;;  %v10108_v63 = vpop.eup %10107  ;;  %v12003_v31 = vmul.f32 %v10106_v49, %v11506_v10  ;;  %10133 = vtanh.f32 %v11536_v61 }
 0x29d   :  { %15617 = vst [vmem:[#allocation101_spill] sm:$0xff] %v11995_v14  ;;  %v10110_v33 = vpop.eup %10109  ;;  %v12007_v34 = vmul.f32 %v10108_v63, %v11506_v10  ;;  %10135 = vtanh.f32 %v11532_v4  ;;  %v15634_v63 = vld [vmem:[#allocation72_spill] sm:$0xff] }
 0x29e   :  { %1996 = vadd.xlane.f32.xlu0 %v1995_v54  ;;  %15618 = vst [vmem:[#allocation132_spill] sm:$0xff] %v12003_v31  ;;  %v10112_v24 = vpop.eup %10111  ;;  %v12015_v23 = vmul.f32 %v10110_v33, %v11506_v10  ;;  %10137 = vtanh.f32 %v11546_v19 }
 0x29f   :  { %15619 = vst [vmem:[#allocation131_spill] sm:$0xff] %v12007_v34  ;;  %v10114_v54 = vpop.eup %10113  ;;  %v12019_v39 = vmul.f32 %v10112_v24, %v11506_v10  ;;  %10139 = vtanh.f32 %v11539_v17 }
 0x2a0   :  { %15620 = vst [vmem:[#allocation95_spill] sm:$0xff] %v12015_v23  ;;  %v10116_v50 = vpop.eup %10115  ;;  %v12027_v43 = vmul.f32 %v10114_v54, %v11506_v10  ;;  %10141 = vtanh.f32 %v11556_v57  ;;  %v15635_v54 = vld [vmem:[#allocation57_spill] sm:$0xff] }
 0x2a1   :  { %15621 = vst [vmem:[#allocation98_spill] sm:$0xff] %v12019_v39  ;;  %v12031_v47 = vmul.f32 %v10116_v50, %v11506_v10  ;;  %10143 = vtanh.f32 %v11549_v53  ;;  %v15636_v50 = vld [vmem:[#allocation60_spill] sm:$0xff] }
 0x2a2   :  { %1999 = vadd.xlane.f32.xlu0 %v1998_v36  ;;  %15622 = vst [vmem:[#allocation99_spill] sm:$0xff] %v12027_v43  ;;  %v10118_v36 = vpop.eup %10117  ;;  %10145 = vtanh.f32 %v11568_v0 }
 0x2a3   :  { %15623 = vst [vmem:[#allocation102_spill] sm:$0xff] %v12031_v47  ;;  %v12039_v25 = vmul.f32 %v10118_v36, %v11506_v10  ;;  %10147 = vtanh.f32 %v11560_v59 }
 0x2a4   :  { %10149 = vtanh.f32 %v11578_v11 }
 0x2a5   :  { %15624 = vst [vmem:[#allocation134_spill] sm:$0xff] %v12039_v25 }
 0x2a6   :  { %2008 = vadd.xlane.f32.xlu0 %v2007_v58  ;;  %v10120_v58 = vpop.eup %10119  ;;  %10151 = vtanh.f32 %v11572_v45 }
 0x2a7   :  { %v12043_v7 = vmul.f32 %v10120_v58, %v11506_v10 }
 0x2a9   :  { %15625 = vst [vmem:[#allocation144_spill] sm:$0xff] %v12043_v7 }
 0x2aa   :  { %2014 = vadd.xlane.f32.xlu0 %v2013_v27  ;;  %v10122_v27 = vpop.eup %10121  ;;  %10153 = vtanh.f32 %v11590_v3 }
 0x2ab   :  { %v12051_v41 = vmul.f32 %v10122_v27, %v11506_v10 }
 0x2ad   :  { %15626 = vst [vmem:[#allocation145_spill] sm:$0xff] %v12051_v41 }
 0x2b4   :  { %2002 = vadd.xlane.f32.xlu1 %v2001_v6  ;;  %v10124_v6 = vpop.eup %10123  ;;  %10155 = vtanh.f32 %v11582_v35 }
 0x2b5   :  { %v12055_v32 = vmul.f32 %v10124_v6, %v11506_v10  ;;  %v15637_v6 = vld [vmem:[#allocation58_spill] sm:$0xff] }
 0x2b7   :  { %15627 = vst [vmem:[#allocation146_spill] sm:$0xff] %v12055_v32 }
 0x2b8   :  { %2005 = vadd.xlane.f32.xlu1 %v2004_v60  ;;  %v10126_v60 = vpop.eup %10125  ;;  %10157 = vtanh.f32 %v11603_v12 }
 0x2b9   :  { %v10128_v8 = vpop.eup %10127  ;;  %v12063_v61 = vmul.f32 %v10126_v60, %v11506_v10  ;;  %10159 = vtanh.f32 %v15634_v63 }
 0x2ba   :  { %v12067_v4 = vmul.f32 %v10128_v8, %v11506_v10  ;;  %v15638_v8 = vld [vmem:[#allocation74_spill] sm:$0xff] }
 0x2bb   :  { %15628 = vst [vmem:[#allocation147_spill] sm:$0xff] %v12063_v61 }
 0x2bc   :  { %2011 = vadd.xlane.f32.xlu1 %v2010_v5  ;;  %v10130_v5 = vpop.eup %10129  ;;  %15629 = vst [vmem:[#allocation148_spill] sm:$0xff] %v12067_v4  ;;  %10161 = vtanh.f32 %v15635_v54  ;;  %v15644_v54 = vld [vmem:[#allocation55_spill] sm:$0xff] }
 0x2bd   :  { %v10132_v1 = vpop.eup %10131  ;;  %v12075_v19 = vmul.f32 %v10130_v5, %v11506_v10  ;;  %10163 = vtanh.f32 %v15636_v50 }
 0x2be   :  { %v12079_v17 = vmul.f32 %v10132_v1, %v11506_v10 }
 0x2c0   :  { %2017 = vadd.xlane.f32.xlu1 %v2016_v30  ;;  %2653 = vrot.lane.b32.xlu0 %v11951_v28, %s10697_s5  ;;  %v10134_v30 = vpop.eup %10133  ;;  %15630 = vst [vmem:[#allocation149_spill] sm:$0xff] %v12079_v17  ;;  %10165 = vtanh.f32 %v15637_v6 }
 0x2c1   :  { %v10136_v51 = vpop.eup %10135  ;;  %v12087_v57 = vmul.f32 %v10134_v30, %v11506_v10  ;;  %10167 = vtanh.f32 %v15638_v8 }
 0x2c2   :  { %v10138_v29 = vpop.eup %10137  ;;  %v12091_v53 = vmul.f32 %v10136_v51, %v11506_v10 }
 0x2c3   :  { %v10140_v40 = vpop.eup %10139  ;;  %v12099_v0 = vmul.f32 %v10138_v29, %v11506_v10 }
 0x2c4   :  { %2655 = vrot.lane.b32.xlu0 %v11958_v46, %s10697_s5  ;;  %15631 = vst [vmem:[#allocation150_spill] sm:$0xff] %v12091_v53  ;;  %v10142_v13 = vpop.eup %10141  ;;  %v12103_v59 = vmul.f32 %v10140_v40, %v11506_v10  ;;  %v15641_v40 = vld [vmem:[#allocation54_spill] sm:$0xff] }
 0x2c5   :  { %v10144_v55 = vpop.eup %10143  ;;  %v12111_v11 = vmul.f32 %v10142_v13, %v11506_v10  ;;  %10169 = vtanh.f32 %v15641_v40 }
 0x2c6   :  { %15632 = vst [vmem:[#allocation151_spill] sm:$0xff] %v12103_v59  ;;  %v10146_v52 = vpop.eup %10145  ;;  %v12115_v45 = vmul.f32 %v10144_v55, %v11506_v10  ;;  %v15642_v55 = vld [vmem:[#allocation141_spill] sm:$0xff] }
 0x2c7   :  { %v10148_v49 = vpop.eup %10147  ;;  %v12123_v3 = vmul.f32 %v10146_v52, %v11506_v10  ;;  %10171 = vtanh.f32 %v15642_v55 }
 0x2c8   :  { %2669 = vrot.lane.b32.xlu0 %v11965_v62, %s10697_s5  ;;  %15633 = vst [vmem:[#allocation152_spill] sm:$0xff] %v12115_v45  ;;  %v10150_v33 = vpop.eup %10149  ;;  %v12127_v35 = vmul.f32 %v10148_v49, %v11506_v10  ;;  %10173 = vtanh.f32 %v15644_v54 }
 0x2c9   :  { %v10152_v24 = vpop.eup %10151  ;;  %v12135_v12 = vmul.f32 %v10150_v33, %v11506_v10 }
 0x2ca   :  { %v10154_v36 = vpop.eup %10153  ;;  %v12139_v58 = vmul.f32 %v10152_v24, %v11506_v10 }
 0x2cb   :  { %v10156_v27 = vpop.eup %10155  ;;  %v12147_v60 = vmul.f32 %v10154_v36, %v11506_v10 }
 0x2cc   :  { %2657 = vrot.lane.b32.xlu0 %v11972_v22, %s10697_s5  ;;  %v10158_v5 = vpop.eup %10157  ;;  %v12153_v30 = vmul.f32 %v10156_v27, %v11506_v10 }
 0x2cd   :  { %v10160_v51 = vpop.eup %10159  ;;  %v12163_v13 = vmul.f32 %v10158_v5, %v11506_v10  ;;  %v15646_v5 = vld [vmem:[#allocation61_spill] sm:$0xff] }
 0x2ce   :  { %v10162_v52 = vpop.eup %10161  ;;  %v12167_v49 = vmul.f32 %v10160_v51, %v11506_v10  ;;  %10175 = vtanh.f32 %v15646_v5 }
 0x2cf   :  { %v10164_v63 = vpop.eup %10163  ;;  %v12176_v24 = vmul.f32 %v10162_v52, %v11506_v10 }
 0x2d0   :  { %2673 = vrot.lane.b32.xlu0 %v11979_v37, %s10697_s5  ;;  %v10166_v50 = vpop.eup %10165  ;;  %v1879_v27 = vmul.f32 %v10164_v63, %v11506_v10 }
 0x2d1   :  { %2651 = vrot.lane.b32.xlu1 %v11983_v2, %s10697_s5  ;;  %v10168_v6 = vpop.eup %10167  ;;  %v12186_v8 = vmul.f32 %v10166_v50, %v11506_v10  ;;  %v15649_v50 = vld [vmem:[#allocation53_spill] sm:$0xff] }
 0x2d2   :  { %v10170_v51 = vpop.eup %10169  ;;  %v12192_v55 = vmul.f32 %v10168_v6, %v11506_v10  ;;  %10177 = vtanh.f32 %v15649_v50 }
 0x2d3   :  { %v10172_v52 = vpop.eup %10171  ;;  %v12201_v54 = vmul.f32 %v10170_v51, %v11506_v10 }
 0x2d4   :  { %2699 = vrot.lane.b32.xlu0 %v11991_v15, %s10697_s5  ;;  %v12205_v5 = vmul.f32 %v10172_v52, %v11506_v10  ;;  %v15652_v52 = vld [vmem:[#allocation59_spill] sm:$0xff] }
 0x2d5   :  { %2667 = vrot.lane.b32.xlu1 %v11995_v14, %s10697_s5 }
 0x2d8   :  { %2675 = vrot.lane.b32.xlu0 %v12003_v31, %s10697_s5 }
 0x2d9   :  { %2671 = vrot.lane.b32.xlu1 %v12007_v34, %s10697_s5 }
 0x2dc   :  { %2703 = vrot.lane.b32.xlu0 %v12015_v23, %s10697_s5 }
 0x2dd   :  { %2659 = vrot.lane.b32.xlu1 %v12019_v39, %s10697_s5  ;;  %v12157_v29 = vpop.permute.xlu0 %2637 }
 0x2de   :  { %v12150_v1 = vpop.permute.xlu1 %2635  ;;  %15640 = vst [vmem:[#allocation57_spill] sm:$0xff] %v12157_v29 }
 0x2df   :  { %15639 = vst [vmem:[#allocation72_spill] sm:$0xff] %v12150_v1 }
 0x2e0   :  { %2663 = vrot.lane.b32.xlu0 %v12027_v43, %s10697_s5 }
 0x2e1   :  { %2701 = vrot.lane.b32.xlu1 %v12031_v47, %s10697_s5  ;;  %v12179_v36 = vpop.permute.xlu0 %2643 }
 0x2e2   :  { %v12171_v33 = vpop.permute.xlu1 %2639  ;;  %15645 = vst [vmem:[#allocation58_spill] sm:$0xff] %v12179_v36  ;;  %v2031_v36 = vsel %vm15294_vm0, %v1879_v27, 0.0 }
 0x2e3   :  { %15643 = vst [vmem:[#allocation60_spill] sm:$0xff] %v12171_v33 }
 0x2e4   :  { %2665 = vrot.lane.b32.xlu0 %v12039_v25, %s10697_s5 }
 0x2e5   :  { %2661 = vrot.lane.b32.xlu1 %v12043_v7, %s10697_s5  ;;  %v12196_v63 = vpop.permute.xlu0 %2645 }
 0x2e6   :  { %v12189_v40 = vpop.permute.xlu1 %2641  ;;  %15648 = vst [vmem:[#allocation54_spill] sm:$0xff] %v12196_v63 }
 0x2e7   :  { %15647 = vst [vmem:[#allocation74_spill] sm:$0xff] %v12189_v40  ;;  %v15737_v40 = vld [vmem:[#allocation67_spill] sm:$0xff] }
 0x2e8   :  { %2681 = vrot.lane.b32.xlu0 %v12051_v41, %s10697_s5 }
 0x2e9   :  { %2677 = vrot.lane.b32.xlu1 %v12055_v32, %s10697_s5 }
 0x2ea   :  { %v12209_v6 = vpop.permute.xlu1 %2647 }
 0x2eb   :  { %15650 = vst [vmem:[#allocation141_spill] sm:$0xff] %v12209_v6 }
 0x2ec   :  { %2709 = vrot.lane.b32.xlu0 %v12063_v61, %s10697_s5  ;;  %v12214_v61 = vpop.permute.xlu0 %2509 }
 0x2ed   :  { %2705 = vrot.lane.b32.xlu1 %v12067_v4, %s10697_s5 }
 0x2ee   :  { %v12222_v41 = vpop.permute.xlu1 %2649 }
 0x2ef   :  { %15653 = vst [vmem:[#allocation55_spill] sm:$0xff] %v12222_v41 }
 0x2f0   :  { %2527 = vrot.lane.b32.xlu0 %v12075_v19, %s10697_s5 }
 0x2f1   :  { %2679 = vrot.lane.b32.xlu1 %v12079_v17, %s10697_s5  ;;  %v12227_v17 = vpop.permute.xlu0 %2515 }
 0x2f2   :  { %v12233_v63 = vpop.permute.xlu1 %2507 }
 0x2f4   :  { %2541 = vrot.lane.b32.xlu0 %v12087_v57, %s10697_s5 }
 0x2f5   :  { %2707 = vrot.lane.b32.xlu1 %v12091_v53, %s10697_s5 }
 0x2f6   :  { %v12240_v43 = vpop.permute.xlu1 %2511 }
 0x2f8   :  { %2529 = vrot.lane.b32.xlu0 %v12099_v0, %s10697_s5 }
 0x2f9   :  { %2711 = vrot.lane.b32.xlu1 %v12103_v59, %s10697_s5  ;;  %v15651_v59 = vld [vmem:[#allocation75_spill] sm:$0xff] }
 0x2fa   :  { %10179 = vtanh.f32 %v15651_v59  ;;  %v15654_v59 = vld [vmem:[#allocation140_spill] sm:$0xff]  ;;  %v12251_v23 = vpop.permute.xlu1 %2513 }
 0x2fb   :  { %10181 = vtanh.f32 %v15652_v52  ;;  %v12236_v52 = vpop.permute.xlu0 %2517 }
 0x2fc   :  { %2545 = vrot.lane.b32.xlu0 %v12111_v11, %s10697_s5  ;;  %10183 = vtanh.f32 %v15654_v59 }
 0x2fd   :  { %2713 = vrot.lane.b32.xlu1 %v12115_v45, %s10697_s5  ;;  %v10174_v45 = vpop.eup %10173 }
 0x2fe   :  { %v12217_v51 = vmul.f32 %v10174_v45, %v11506_v10  ;;  %v10176_v50 = vpop.eup %10175  ;;  %v12259_v31 = vpop.permute.xlu1 %2519 }
 0x2ff   :  { %v12225_v25 = vmul.f32 %v10176_v50, %v11506_v10  ;;  %v10178_v53 = vpop.eup %10177 }
 0x300   :  { %2571 = vrot.lane.b32.xlu0 %v12123_v3, %s10697_s5  ;;  %v1889_v45 = vmul.f32 %v10178_v53, %v11506_v10 }
 0x301   :  { %2523 = vrot.lane.b32.xlu1 %v12127_v35, %s10697_s5 }
 0x302   :  { %v12267_v47 = vpop.permute.xlu1 %2521 }
 0x304   :  { %2547 = vrot.lane.b32.xlu0 %v12135_v12, %s10697_s5  ;;  %v10180_v6 = vpop.eup %10179 }
 0x305   :  { %2525 = vrot.lane.b32.xlu1 %v12139_v58, %s10697_s5  ;;  %v1903_v50 = vmul.f32 %v10180_v6, %v11506_v10  ;;  %v10182_v41 = vpop.eup %10181 }
 0x306   :  { %v1905_v59 = vmul.f32 %v10182_v41, %v11506_v10  ;;  %v10184_v32 = vpop.eup %10183 }
 0x307   :  { %v12249_v7 = vmul.f32 %v10184_v32, %v11506_v10 }
 0x308   :  { %2575 = vrot.lane.b32.xlu0 %v12147_v60, %s10697_s5 }
 0x309   :  { %2539 = vrot.lane.b32.xlu1 %v12153_v30, %s10697_s5 }
 0x30c   :  { %2535 = vrot.lane.b32.xlu0 %v12163_v13, %s10697_s5 }
 0x30d   :  { %2543 = vrot.lane.b32.xlu1 %v12167_v49, %s10697_s5 }
 0x310   :  { %2537 = vrot.lane.b32.xlu0 %v12176_v24, %s10697_s5 }
 0x311   :  { %2531 = vrot.lane.b32.xlu1 %v1879_v27, %s10697_s5 }
 0x314   :  { %2553 = vrot.lane.b32.xlu0 %v12186_v8, %s10697_s5 }
 0x315   :  { %2573 = vrot.lane.b32.xlu1 %v12192_v55, %s10697_s5 }
 0x318   :  { %2581 = vrot.lane.b32.xlu0 %v12201_v54, %s10697_s5 }
 0x319   :  { %2533 = vrot.lane.b32.xlu1 %v12205_v5, %s10697_s5 }
 0x31d   :  { %2549 = vrot.lane.b32.xlu1 %v12217_v51, %s10697_s5 }
 0x321   :  { %2577 = vrot.lane.b32.xlu1 %v12225_v25, %s10697_s5 }
 0x325   :  { %2551 = vrot.lane.b32.xlu1 %v1889_v45, %s10697_s5 }
 0x329   :  { %2579 = vrot.lane.b32.xlu1 %v1903_v50, %s10697_s5 }
 0x32b   :  { %v12242_v4 = vpop.xlane.xlu0 %1996 }
 0x32c   :  { %15655 = vst [vmem:[#allocation61_spill] sm:$0xff] %v12242_v4  ;;  %v2019_v4 = vsel %vm15294_vm0, %v12127_v35, 0.0  ;;  %v2037_v35 = vsel %vm15294_vm0, %v12163_v13, 0.0  ;;  %v2055_v13 = vsel %vm15294_vm0, %v12135_v12, 0.0  ;;  %v2028_v12 = vsel %vm15294_vm0, %v12099_v0, 0.0 }
 0x32d   :  { %2583 = vrot.lane.b32.xlu1 %v1905_v59, %s10697_s5  ;;  %v2040_v0 = vsel %vm15294_vm0, %v12176_v24, 0.0 }
 0x32f   :  { %v12246_v53 = vpop.xlane.xlu0 %1999 }
 0x330   :  { %15656 = vst [vmem:[#allocation53_spill] sm:$0xff] %v12246_v53  ;;  %v2025_v53 = vsel %vm15294_vm0, %v12075_v19, 0.0  ;;  %v2043_v19 = vsel %vm15294_vm0, %v12153_v30, 0.0  ;;  %v2061_v30 = vsel %vm15294_vm0, %v1889_v45, 0.0 }
 0x331   :  { %2585 = vrot.lane.b32.xlu1 %v12249_v7, %s10697_s5 }
 0x333   :  { %v12255_v6 = vpop.xlane.xlu0 %2008 }
 0x334   :  { %15657 = vst [vmem:[#allocation75_spill] sm:$0xff] %v12255_v6 }
 0x337   :  { %v12261_v41 = vpop.xlane.xlu0 %2014  ;;  %2020 = vadd.xlane.f32.xlu0 %v2019_v4 }
 0x338   :  { %15658 = vst [vmem:[#allocation59_spill] sm:$0xff] %v12261_v41 }
 0x33b   :  { %2026 = vadd.xlane.f32.xlu0 %v2025_v53  ;;  %v12265_v32 = vpop.permute.xlu0 %2653 }
 0x33c   :  { %15659 = vst [vmem:[#allocation140_spill] sm:$0xff] %v12265_v32 }
 0x33f   :  { %2032 = vadd.xlane.f32.xlu0 %v2031_v36  ;;  %v12272_v39 = vpop.permute.xlu0 %2655  ;;  %v2049_v36 = vsel %vm15294_vm0, %v12167_v49, 0.0 }
 0x340   :  { %15661 = vst [vmem:[#allocation154_spill] sm:$0xff] %v12272_v39  ;;  %v15747_v39 = vld [vmem:[#allocation69_spill] sm:$0xff] }
 0x341   :  { %v12270_v6 = vpop.xlane.xlu1 %2002 }
 0x342   :  { %15660 = vst [vmem:[#allocation153_spill] sm:$0xff] %v12270_v6 }
 0x343   :  { %2038 = vadd.xlane.f32.xlu0 %v2037_v35  ;;  %v12280_v53 = vpop.permute.xlu0 %2669 }
 0x344   :  { %15663 = vst [vmem:[#allocation156_spill] sm:$0xff] %v12280_v53 }
 0x345   :  { %v12276_v4 = vpop.xlane.xlu1 %2005 }
 0x346   :  { %15662 = vst [vmem:[#allocation155_spill] sm:$0xff] %v12276_v4 }
 0x347   :  { %2044 = vadd.xlane.f32.xlu0 %v2043_v19  ;;  %v12288_v6 = vpop.permute.xlu0 %2657 }
 0x348   :  { %15666 = vst [vmem:[#allocation159_spill] sm:$0xff] %v12288_v6 }
 0x349   :  { %v12282_v41 = vpop.xlane.xlu1 %2011 }
 0x34a   :  { %15664 = vst [vmem:[#allocation157_spill] sm:$0xff] %v12282_v41  ;;  %v2022_v41 = vsel %vm15294_vm0, %v12139_v58, 0.0  ;;  %v2034_v58 = vsel %vm15294_vm0, %v12205_v5, 0.0 }
 0x34b   :  { %2050 = vadd.xlane.f32.xlu0 %v2049_v36  ;;  %v12295_v19 = vpop.permute.xlu0 %2673  ;;  %v2091_v36 = vsel %vm15294_vm0, %v12123_v3, 0.0 }
 0x34c   :  { %15668 = vst [vmem:[#allocation161_spill] sm:$0xff] %v12295_v19 }
 0x34d   :  { %v12286_v27 = vpop.xlane.xlu1 %2017 }
 0x34e   :  { %15665 = vst [vmem:[#allocation158_spill] sm:$0xff] %v12286_v27  ;;  %v12408_v27 = vld [vmem:[#allocation11] ss:$0 sm:$0xff] }
 0x34f   :  { %2056 = vadd.xlane.f32.xlu0 %v2055_v13  ;;  %v12305_v13 = vpop.permute.xlu0 %2699 }
 0x350   :  { %15670 = vst [vmem:[#allocation163_spill] sm:$0xff] %v12305_v13 }
 0x351   :  { %v12292_v35 = vpop.permute.xlu1 %2651 }
 0x352   :  { %15667 = vst [vmem:[#allocation160_spill] sm:$0xff] %v12292_v35 }
 0x353   :  { %2062 = vadd.xlane.f32.xlu0 %v2061_v30  ;;  %v2097_v30 = vsel %vm15294_vm0, %v12147_v60, 0.0  ;;  %v12314_v3 = vpop.permute.xlu0 %2675  ;;  %v2046_v60 = vsel %vm15294_vm0, %v12087_v57, 0.0  ;;  %v15679_v57 = vld [vmem:[#allocation76_spill] sm:$0xff] }
 0x354   :  { %15672 = vst [vmem:[#allocation165_spill] sm:$0xff] %v12314_v3 }
 0x355   :  { %v12299_v49 = vpop.permute.xlu1 %2667  ;;  %2023 = vadd.xlane.f32.xlu1 %v2022_v41  ;;  %v2103_v41 = vsel %vm15294_vm0, %v1903_v50, 0.0  ;;  %v2052_v50 = vsel %vm15294_vm0, %v12111_v11, 0.0 }
 0x356   :  { %15669 = vst [vmem:[#allocation162_spill] sm:$0xff] %v12299_v49 }
 0x357   :  { %2092 = vadd.xlane.f32.xlu0 %v2091_v36  ;;  %v12323_v5 = vpop.permute.xlu0 %2703 }
 0x358   :  { %15674 = vst [vmem:[#allocation167_spill] sm:$0xff] %v12323_v5 }
 0x359   :  { %2029 = vadd.xlane.f32.xlu1 %v2028_v12  ;;  %v12307_v45 = vpop.permute.xlu1 %2671  ;;  %v2109_v12 = vsel %vm15294_vm0, %v1905_v59, 0.0  ;;  %v2058_v59 = vsel %vm15294_vm0, %v12217_v51, 0.0 }
 0x35a   :  { %15671 = vst [vmem:[#allocation164_spill] sm:$0xff] %v12307_v45 }
 0x35b   :  { %2098 = vadd.xlane.f32.xlu0 %v2097_v30 }
 0x35d   :  { %2035 = vadd.xlane.f32.xlu1 %v2034_v58  ;;  %v12316_v36 = vpop.permute.xlu1 %2659  ;;  %v15676_v58 = vld [vmem:[#allocation62_spill] sm:$0xff] }
 0x35e   :  { %15673 = vst [vmem:[#allocation166_spill] sm:$0xff] %v12316_v36  ;;  %10185 = vtanh.f32 %v15676_v58  ;;  %v2094_v58 = vsel %vm15294_vm0, %v12192_v55, 0.0 }
 0x35f   :  { %2104 = vadd.xlane.f32.xlu0 %v2103_v41  ;;  %v12330_v41 = vpop.permute.xlu0 %2663  ;;  %10187 = vtanh.f32 %v15679_v57 }
 0x360   :  { %15677 = vst [vmem:[#allocation62_spill] sm:$0xff] %v12330_v41  ;;  %v15683_v41 = vld [vmem:[#allocation77_spill] sm:$0xff] }
 0x361   :  { %2041 = vadd.xlane.f32.xlu1 %v2040_v0  ;;  %v12325_v30 = vpop.permute.xlu1 %2701  ;;  %v2064_v0 = vsel %vm15294_vm0, %v12186_v8, 0.0 }
 0x362   :  { %15675 = vst [vmem:[#allocation168_spill] sm:$0xff] %v12325_v30 }
 0x363   :  { %2110 = vadd.xlane.f32.xlu0 %v2109_v12  ;;  %v12339_v12 = vpop.permute.xlu0 %2665 }
 0x364   :  { %15680 = vst [vmem:[#allocation76_spill] sm:$0xff] %v12339_v12  ;;  %v15699_v12 = vld [vmem:[#allocation119_spill] sm:$0xff] }
 0x365   :  { %2047 = vadd.xlane.f32.xlu1 %v2046_v60  ;;  %v12332_v24 = vpop.permute.xlu1 %2661  ;;  %v15682_v60 = vld [vmem:[#allocation78_spill] sm:$0xff] }
 0x366   :  { %15678 = vst [vmem:[#allocation169_spill] sm:$0xff] %v12332_v24  ;;  %10189 = vtanh.f32 %v15682_v60  ;;  %v15687_v60 = vld [vmem:[#allocation104_spill] sm:$0xff] }
 0x367   :  { %10191 = vtanh.f32 %v15683_v41  ;;  %v12350_v57 = vpop.permute.xlu0 %2681 }
 0x368   :  { %15685 = vst [vmem:[#allocation77_spill] sm:$0xff] %v12350_v57  ;;  %10193 = vtanh.f32 %v15687_v60 }
 0x369   :  { %2053 = vadd.xlane.f32.xlu1 %v2052_v50  ;;  %v12341_v11 = vpop.permute.xlu1 %2677  ;;  %v10186_v50 = vpop.eup %10185 }
 0x36a   :  { %15681 = vst [vmem:[#allocation170_spill] sm:$0xff] %v12341_v11  ;;  %v12348_v51 = vmul.f32 %v10186_v50, %v11506_v10  ;;  %v2106_v50 = vsel %vm15294_vm0, %v12201_v54, 0.0  ;;  %v15693_v54 = vld [vmem:[#allocation114_spill] sm:$0xff]  ;;  %v15703_v11 = vld [vmem:[#allocation103_spill] sm:$0xff] }
 0x36c   :  { %15684 = vst [vmem:[#allocation78_spill] sm:$0xff] %v12348_v51 }
 0x36d   :  { %2059 = vadd.xlane.f32.xlu1 %v2058_v59  ;;  %v10188_v59 = vpop.eup %10187  ;;  %v12352_v8 = vpop.permute.xlu1 %2705 }
 0x36e   :  { %15686 = vst [vmem:[#allocation171_spill] sm:$0xff] %v12352_v8  ;;  %v12360_v55 = vmul.f32 %v10188_v59, %v11506_v10  ;;  %v2112_v59 = vsel %vm15294_vm0, %v12249_v7, 0.0  ;;  %v15697_v7 = vld [vmem:[#allocation107_spill] sm:$0xff]  ;;  %v15701_v8 = vld [vmem:[#allocation113_spill] sm:$0xff] }
 0x370   :  { %15688 = vst [vmem:[#allocation104_spill] sm:$0xff] %v12360_v55  ;;  %v10190_v41 = vpop.eup %10189 }
 0x371   :  { %2065 = vadd.xlane.f32.xlu1 %v2064_v0  ;;  %v2100_v0 = vsel %vm15294_vm0, %v12225_v25, 0.0  ;;  %v12368_v25 = vpop.permute.xlu1 %2679  ;;  %v12372_v57 = vmul.f32 %v10190_v41, %v11506_v10  ;;  %v10192_v60 = vpop.eup %10191 }
 0x372   :  { %15690 = vst [vmem:[#allocation173_spill] sm:$0xff] %v12368_v25  ;;  %v10194_v25 = vpop.eup %10193 }
 0x375   :  { %2095 = vadd.xlane.f32.xlu1 %v2094_v58  ;;  %v12366_v58 = vpop.permute.xlu0 %2709  ;;  %v12385_v41 = vpop.permute.xlu1 %2707 }
 0x376   :  { %15689 = vst [vmem:[#allocation172_spill] sm:$0xff] %v12366_v58  ;;  %v15695_v58 = vld [vmem:[#allocation108_spill] sm:$0xff] }
 0x377   :  { %15696 = vst [vmem:[#allocation108_spill] sm:$0xff] %v12385_v41 }
 0x379   :  { %2101 = vadd.xlane.f32.xlu1 %v2100_v0  ;;  %2683 = vrot.lane.b32.xlu0 %v12348_v51, %s10697_s5  ;;  %v15691_v0 = vld [vmem:[#allocation111_spill] sm:$0xff] }
 0x37a   :  { %10195 = vtanh.f32 %v15691_v0  ;;  %15692 = vst [vmem:[#allocation111_spill] sm:$0xff] %v12372_v57  ;;  %v12383_v0 = vpop.permute.xlu0 %2527 }
 0x37b   :  { %10197 = vtanh.f32 %v15693_v54 }
 0x37c   :  { %10199 = vtanh.f32 %v15695_v58 }
 0x37d   :  { %2107 = vadd.xlane.f32.xlu1 %v2106_v50  ;;  %2717 = vrot.lane.b32.xlu0 %v12360_v55, %s10697_s5  ;;  %v12380_v50 = vmul.f32 %v10192_v60, %v11506_v10  ;;  %10201 = vtanh.f32 %v15697_v7  ;;  %v12398_v60 = vpop.permute.xlu1 %2711 }
 0x37e   :  { %10203 = vtanh.f32 %v15699_v12  ;;  %v12396_v58 = vpop.permute.xlu0 %2541  ;;  %15700 = vst [vmem:[#allocation119_spill] sm:$0xff] %v12398_v60  ;;  %v15704_v12 = vld [vmem:[#allocation121_spill] sm:$0xff]  ;;  %v15706_v60 = vld [vmem:[#allocation106_spill] sm:$0xff] }
 0x37f   :  { %15694 = vst [vmem:[#allocation114_spill] sm:$0xff] %v12380_v50  ;;  %10205 = vtanh.f32 %v15701_v8 }
 0x380   :  { %10207 = vtanh.f32 %v15703_v11 }
 0x381   :  { %2113 = vadd.xlane.f32.xlu1 %v2112_v59  ;;  %2691 = vrot.lane.b32.xlu0 %v12372_v57, %s10697_s5  ;;  %v12391_v59 = vmul.f32 %v10194_v25, %v11506_v10  ;;  %10209 = vtanh.f32 %v15704_v12  ;;  %v15709_v12 = vld [vmem:[#allocation109_spill] sm:$0xff] }
 0x382   :  { %10211 = vtanh.f32 %v15706_v60  ;;  %v12414_v3 = vpop.permute.xlu0 %2529  ;;  %v15711_v60 = vld [vmem:[#allocation105_spill] sm:$0xff] }
 0x383   :  { %15698 = vst [vmem:[#allocation107_spill] sm:$0xff] %v12391_v59  ;;  %10213 = vtanh.f32 %v15709_v12  ;;  %v15713_v12 = vld [vmem:[#allocation118_spill] sm:$0xff] }
 0x384   :  { %v10196_v54 = vpop.eup %10195  ;;  %10215 = vtanh.f32 %v15711_v60  ;;  %v15715_v60 = vld [vmem:[#allocation112_spill] sm:$0xff] }
 0x385   :  { %2719 = vrot.lane.b32.xlu0 %v12380_v50, %s10697_s5  ;;  %v12402_v41 = vmul.f32 %v10196_v54, %v11506_v10  ;;  %v10198_v7 = vpop.eup %10197  ;;  %v12416_v10 = vpop.permute.xlu1 %2713  ;;  %10217 = vtanh.f32 %v15713_v12 }
 0x386   :  { %v10200_v25 = vpop.eup %10199  ;;  %v12411_v5 = vmul.f32 %v12408_v27, %v10198_v7  ;;  %15707 = vst [vmem:[#allocation121_spill] sm:$0xff] %v12416_v10  ;;  %v12435_v4 = vpop.permute.xlu0 %2545  ;;  %10219 = vtanh.f32 %v15715_v60 }
 0x387   :  { %15702 = vst [vmem:[#allocation113_spill] sm:$0xff] %v12402_v41  ;;  %v10202_v8 = vpop.eup %10201  ;;  %v12419_v11 = vmul.f32 %v12408_v27, %v10200_v25 }
 0x388   :  { %15705 = vst [vmem:[#allocation103_spill] sm:$0xff] %v12411_v5  ;;  %v10204_v54 = vpop.eup %10203  ;;  %v12427_v7 = vmul.f32 %v12408_v27, %v10202_v8 }
 0x389   :  { %2733 = vrot.lane.b32.xlu0 %v12391_v59, %s10697_s5  ;;  %15708 = vst [vmem:[#allocation106_spill] sm:$0xff] %v12419_v11  ;;  %v12431_v10 = vmul.f32 %v12408_v27, %v10204_v54 }
 0x38a   :  { %15710 = vst [vmem:[#allocation109_spill] sm:$0xff] %v12427_v7  ;;  %v12458_v60 = vpop.permute.xlu0 %2571 }
 0x38b   :  { %15712 = vst [vmem:[#allocation105_spill] sm:$0xff] %v12431_v10 }
 0x38d   :  { %2693 = vrot.lane.b32.xlu0 %v12402_v41, %s10697_s5  ;;  %v10206_v41 = vpop.eup %10205 }
 0x38e   :  { %v10208_v25 = vpop.eup %10207  ;;  %v12443_v8 = vmul.f32 %v12408_v27, %v10206_v41  ;;  %v15719_v41 = vld [vmem:[#allocation120_spill] sm:$0xff]  ;;  %v12479_v30 = vpop.permute.xlu0 %2547 }
 0x38f   :  { %v10210_v54 = vpop.eup %10209  ;;  %v12447_v59 = vmul.f32 %v12408_v27, %v10208_v25 }
 0x390   :  { %15714 = vst [vmem:[#allocation118_spill] sm:$0xff] %v12443_v8  ;;  %v10212_v50 = vpop.eup %10211  ;;  %v12455_v12 = vmul.f32 %v12408_v27, %v10210_v54 }
 0x391   :  { %2721 = vrot.lane.b32.xlu0 %v12411_v5, %s10697_s5  ;;  %v12437_v5 = vpop.permute.xlu1 %2523  ;;  %15716 = vst [vmem:[#allocation112_spill] sm:$0xff] %v12447_v59  ;;  %v10214_v57 = vpop.eup %10213  ;;  %v12463_v25 = vmul.f32 %v12408_v27, %v10212_v50 }
 0x392   :  { %2685 = vrot.lane.b32.xlu1 %v12419_v11, %s10697_s5  ;;  %v10216_v55 = vpop.eup %10215  ;;  %v12471_v54 = vmul.f32 %v12408_v27, %v10214_v57 }
 0x393   :  { %15720 = vst [vmem:[#allocation120_spill] sm:$0xff] %v12463_v25 }
 0x395   :  { %2737 = vrot.lane.b32.xlu0 %v12427_v7, %s10697_s5  ;;  %v15717_v7 = vld [vmem:[#allocation117_spill] sm:$0xff]  ;;  %v12460_v24 = vpop.permute.xlu1 %2525 }
 0x396   :  { %2687 = vrot.lane.b32.xlu1 %v12431_v10, %s10697_s5  ;;  %10221 = vtanh.f32 %v15717_v7  ;;  %15718 = vst [vmem:[#allocation117_spill] sm:$0xff] %v12455_v12  ;;  %v15721_v7 = vld [vmem:[#allocation64_spill] sm:$0xff] }
 0x397   :  { %10223 = vtanh.f32 %v15719_v41  ;;  %15722 = vst [vmem:[#allocation64_spill] sm:$0xff] %v12471_v54  ;;  %v15723_v41 = vld [vmem:[#allocation122_spill] sm:$0xff] }
 0x398   :  { %10225 = vtanh.f32 %v15721_v7  ;;  %v15725_v7 = vld [vmem:[#allocation79_spill] sm:$0xff] }
 0x399   :  { %2697 = vrot.lane.b32.xlu0 %v12443_v8, %s10697_s5  ;;  %10227 = vtanh.f32 %v15723_v41  ;;  %v10218_v8 = vpop.eup %10217  ;;  %v15726_v41 = vld [vmem:[#allocation110_spill] sm:$0xff] }
 0x39a   :  { %2689 = vrot.lane.b32.xlu1 %v12447_v59, %s10697_s5  ;;  %v12475_v59 = vmul.f32 %v12408_v27, %v10216_v55  ;;  %v10220_v50 = vpop.eup %10219  ;;  %10229 = vtanh.f32 %v15725_v7  ;;  %v12487_v57 = vmul.f32 %v12408_v27, %v10218_v8  ;;  %v15729_v8 = vld [vmem:[#allocation116_spill] sm:$0xff] }
 0x39b   :  { %10231 = vtanh.f32 %v15726_v41  ;;  %v12502_v41 = vpop.permute.xlu0 %2575 }
 0x39c   :  { %15724 = vst [vmem:[#allocation122_spill] sm:$0xff] %v12475_v59 }
 0x39d   :  { %2727 = vrot.lane.b32.xlu0 %v12455_v12, %s10697_s5  ;;  %v12481_v12 = vpop.permute.xlu1 %2539 }
 0x39e   :  { %2715 = vrot.lane.b32.xlu1 %v12463_v25, %s10697_s5  ;;  %v12491_v25 = vmul.f32 %v12408_v27, %v10220_v50 }
 0x39f   :  { %v12523_v15 = vpop.permute.xlu0 %2535 }
 0x3a0   :  { %v10222_v55 = vpop.eup %10221  ;;  %15727 = vst [vmem:[#allocation79_spill] sm:$0xff] %v12491_v25 }
 0x3a1   :  { %2729 = vrot.lane.b32.xlu0 %v12471_v54, %s10697_s5  ;;  %v10224_v36 = vpop.eup %10223  ;;  %v15728_v54 = vld [vmem:[#allocation68_spill] sm:$0xff]  ;;  %v12499_v7 = vmul.f32 %v12408_v27, %v10222_v55  ;;  %v12504_v13 = vpop.permute.xlu1 %2543 }
 0x3a2   :  { %2731 = vrot.lane.b32.xlu1 %v12475_v59, %s10697_s5  ;;  %10233 = vtanh.f32 %v15728_v54  ;;  %v10226_v59 = vpop.eup %10225  ;;  %v12507_v50 = vmul.f32 %v12408_v27, %v10224_v36  ;;  %v15731_v54 = vld [vmem:[#allocation82_spill] sm:$0xff] }
 0x3a3   :  { %10235 = vtanh.f32 %v15729_v8  ;;  %v10228_v19 = vpop.eup %10227  ;;  %v12515_v55 = vmul.f32 %v12408_v27, %v10226_v59  ;;  %v15732_v8 = vld [vmem:[#allocation115_spill] sm:$0xff] }
 0x3a4   :  { %15730 = vst [vmem:[#allocation110_spill] sm:$0xff] %v12507_v50  ;;  %10237 = vtanh.f32 %v15731_v54  ;;  %v12519_v10 = vmul.f32 %v12408_v27, %v10228_v19  ;;  %v15734_v54 = vld [vmem:[#allocation87_spill] sm:$0xff] }
 0x3a5   :  { %2555 = vrot.lane.b32.xlu0 %v12487_v57, %s10697_s5  ;;  %10239 = vtanh.f32 %v15732_v8  ;;  %v12525_v37 = vpop.permute.xlu1 %2531  ;;  %v15735_v8 = vld [vmem:[#allocation124_spill] sm:$0xff] }
 0x3a6   :  { %2735 = vrot.lane.b32.xlu1 %v12491_v25, %s10697_s5  ;;  %v10230_v25 = vpop.eup %10229  ;;  %15733 = vst [vmem:[#allocation68_spill] sm:$0xff] %v12519_v10  ;;  %10241 = vtanh.f32 %v15734_v54 }
 0x3a7   :  { %v10232_v36 = vpop.eup %10231  ;;  %v12531_v59 = vmul.f32 %v12408_v27, %v10230_v25  ;;  %10243 = vtanh.f32 %v15735_v8  ;;  %v15738_v25 = vld [vmem:[#allocation123_spill] sm:$0xff]  ;;  %v12546_v8 = vpop.permute.xlu0 %2537 }
 0x3a8   :  { %10245 = vtanh.f32 %v15737_v40  ;;  %v15740_v40 = vld [vmem:[#allocation81_spill] sm:$0xff] }
 0x3a9   :  { %2589 = vrot.lane.b32.xlu0 %v12499_v7, %s10697_s5  ;;  %10247 = vtanh.f32 %v15738_v25  ;;  %v12548_v51 = vpop.permute.xlu1 %2573  ;;  %v15741_v25 = vld [vmem:[#allocation126_spill] sm:$0xff] }
 0x3aa   :  { %2695 = vrot.lane.b32.xlu1 %v12507_v50, %s10697_s5  ;;  %v12535_v50 = vmul.f32 %v12408_v27, %v10232_v36  ;;  %10249 = vtanh.f32 %v15740_v40  ;;  %v15744_v40 = vld [vmem:[#allocation89_spill] sm:$0xff] }
 0x3ab   :  { %10251 = vtanh.f32 %v15741_v25  ;;  %v12567_v11 = vpop.permute.xlu0 %2553  ;;  %v15745_v25 = vld [vmem:[#allocation125_spill] sm:$0xff] }
 0x3ac   :  { %v10234_v19 = vpop.eup %10233  ;;  %15736 = vst [vmem:[#allocation116_spill] sm:$0xff] %v12535_v50  ;;  %15743 = vst [vmem:[#allocation87_spill] sm:$0xff] %v12567_v11  ;;  %10253 = vtanh.f32 %v15744_v40 }
 0x3ad   :  { %2563 = vrot.lane.b32.xlu0 %v12515_v55, %s10697_s5  ;;  %v10236_v45 = vpop.eup %10235  ;;  %v12543_v54 = vmul.f32 %v12408_v27, %v10234_v19  ;;  %v12569_v53 = vpop.permute.xlu1 %2533  ;;  %10255 = vtanh.f32 %v15745_v25 }
 0x3ae   :  { %2723 = vrot.lane.b32.xlu1 %v12519_v10, %s10697_s5  ;;  %v10238_v10 = vpop.eup %10237  ;;  %v12551_v36 = vmul.f32 %v12408_v27, %v10236_v45  ;;  %10257 = vtanh.f32 %v15747_v39  ;;  %v15751_v39 = vld [vmem:[#allocation66_spill] sm:$0xff] }
 0x3af   :  { %v10240_v6 = vpop.eup %10239  ;;  %v12559_v19 = vmul.f32 %v12408_v27, %v10238_v10  ;;  %v12590_v25 = vpop.permute.xlu0 %2581 }
 0x3b0   :  { %15739 = vst [vmem:[#allocation82_spill] sm:$0xff] %v12551_v36  ;;  %v12563_v22 = vmul.f32 %v12408_v27, %v10240_v6  ;;  %15749 = vst [vmem:[#allocation67_spill] sm:$0xff] %v12590_v25 }
 0x3b1   :  { %2591 = vrot.lane.b32.xlu0 %v12531_v59, %s10697_s5  ;;  %v12592_v62 = vpop.permute.xlu1 %2549 }
 0x3b2   :  { %2725 = vrot.lane.b32.xlu1 %v12535_v50, %s10697_s5  ;;  %v10242_v50 = vpop.eup %10241  ;;  %15742 = vst [vmem:[#allocation115_spill] sm:$0xff] %v12563_v22 }
 0x3b3   :  { %v10244_v45 = vpop.eup %10243  ;;  %v12575_v10 = vmul.f32 %v12408_v27, %v10242_v50  ;;  %v15748_v50 = vld [vmem:[#allocation63_spill] sm:$0xff] }
 0x3b4   :  { %v10246_v6 = vpop.eup %10245  ;;  %10259 = vtanh.f32 %v15748_v50  ;;  %v15752_v50 = vld [vmem:[#allocation83_spill] sm:$0xff] }
 0x3b5   :  { %2605 = vrot.lane.b32.xlu0 %v12543_v54, %s10697_s5  ;;  %v10248_v34 = vpop.eup %10247  ;;  %v12587_v40 = vmul.f32 %v12408_v27, %v10246_v6  ;;  %10261 = vtanh.f32 %v15751_v39  ;;  %v12613_v32 = vpop.permute.xlu1 %2577  ;;  %v15754_v39 = vld [vmem:[#allocation65_spill] sm:$0xff] }
 0x3b6   :  { %2739 = vrot.lane.b32.xlu1 %v12551_v36, %s10697_s5  ;;  %v12579_v36 = vmul.f32 %v12408_v27, %v10244_v45  ;;  %v12595_v45 = vmul.f32 %v12408_v27, %v10248_v34  ;;  %10263 = vtanh.f32 %v15752_v50 }
 0x3b7   :  { %10265 = vtanh.f32 %v15754_v39 }
 0x3b8   :  { %15746 = vst [vmem:[#allocation124_spill] sm:$0xff] %v12579_v36  ;;  %15750 = vst [vmem:[#allocation123_spill] sm:$0xff] %v12595_v45  ;;  %10267 = vtanh.f32 %v11863_v21 }
 0x3b9   :  { %2565 = vrot.lane.b32.xlu0 %v12559_v19, %s10697_s5  ;;  %v12635_v21 = vpop.permute.xlu1 %2551 }
 0x3ba   :  { %2741 = vrot.lane.b32.xlu1 %v12563_v22, %s10697_s5  ;;  %v10250_v22 = vpop.eup %10249 }
 0x3bb   :  { %v10252_v49 = vpop.eup %10251  ;;  %v12603_v6 = vmul.f32 %v12408_v27, %v10250_v22 }
 0x3bc   :  { %v12609_v34 = vmul.f32 %v12408_v27, %v10252_v49 }
 0x3bd   :  { %2593 = vrot.lane.b32.xlu0 %v12575_v10, %s10697_s5 }
 0x3be   :  { %2743 = vrot.lane.b32.xlu1 %v12579_v36, %s10697_s5  ;;  %v10254_v36 = vpop.eup %10253 }
 0x3bf   :  { %v10256_v33 = vpop.eup %10255  ;;  %v12619_v22 = vmul.f32 %v12408_v27, %v10254_v36  ;;  %v15756_v36 = vld [vmem:[#allocation86_spill] sm:$0xff] }
 0x3c0   :  { %v10258_v50 = vpop.eup %10257  ;;  %v12625_v49 = vmul.f32 %v12408_v27, %v10256_v33  ;;  %10269 = vtanh.f32 %v15756_v36 }
 0x3c1   :  { %2609 = vrot.lane.b32.xlu0 %v12587_v40, %s10697_s5  ;;  %v12632_v39 = vmul.f32 %v12408_v27, %v10258_v50  ;;  %10271 = vtanh.f32 %v11870_v48 }
 0x3c2   :  { %2745 = vrot.lane.b32.xlu1 %v12595_v45, %s10697_s5 }
 0x3c4   :  { %v12606_v46 = vpop.xlane.xlu0 %2020 }
 0x3c5   :  { %15753 = vst [vmem:[#allocation81_spill] sm:$0xff] %v12606_v46  ;;  %2569 = vrot.lane.b32.xlu0 %v12603_v6, %s10697_s5  ;;  %v10260_v46 = vpop.eup %10259 }
 0x3c6   :  { %2557 = vrot.lane.b32.xlu1 %v12609_v34, %s10697_s5  ;;  %v10262_v14 = vpop.eup %10261  ;;  %v12640_v33 = vmul.f32 %v12408_v27, %v10260_v46  ;;  %v12655_v46 = vpop.permute.xlu1 %2579 }
 0x3c7   :  { %v12647_v50 = vmul.f32 %v12408_v27, %v10262_v14  ;;  %15760 = vst [vmem:[#allocation63_spill] sm:$0xff] %v12655_v46  ;;  %v15762_v14 = vld [vmem:[#allocation94_spill] sm:$0xff] }
 0x3c8   :  { %v12622_v45 = vpop.xlane.xlu0 %2026  ;;  %10273 = vtanh.f32 %v15762_v14 }
 0x3c9   :  { %15755 = vst [vmem:[#allocation126_spill] sm:$0xff] %v12622_v45  ;;  %2597 = vrot.lane.b32.xlu0 %v12619_v22, %s10697_s5  ;;  %v10264_v45 = vpop.eup %10263  ;;  %15758 = vst [vmem:[#allocation125_spill] sm:$0xff] %v12647_v50  ;;  %10275 = vtanh.f32 %v11877_v38 }
 0x3ca   :  { %2559 = vrot.lane.b32.xlu1 %v12625_v49, %s10697_s5  ;;  %v10266_v36 = vpop.eup %10265 }
 0x3cb   :  { %v10268_v35 = vpop.eup %10267  ;;  %v12659_v1 = vmul.f32 %v12408_v27, %v10266_v36 }
 0x3cc   :  { %v12637_v29 = vpop.xlane.xlu0 %2032  ;;  %v12665_v48 = vmul.f32 %v12408_v27, %v10268_v35  ;;  %v15766_v35 = vld [vmem:[#allocation80_spill] sm:$0xff] }
 0x3cd   :  { %15757 = vst [vmem:[#allocation89_spill] sm:$0xff] %v12637_v29  ;;  %2599 = vrot.lane.b32.xlu0 %v12632_v39, %s10697_s5  ;;  %v1907_v29 = vmul.f32 %v12408_v27, %v10264_v45  ;;  %15761 = vst [vmem:[#allocation66_spill] sm:$0xff] %v12659_v1  ;;  %v12672_v45 = vpop.permute.xlu1 %2583  ;;  %10277 = vtanh.f32 %v15766_v35 }
 0x3ce   :  { %2561 = vrot.lane.b32.xlu1 %v12640_v33, %s10697_s5  ;;  %15764 = vst [vmem:[#allocation65_spill] sm:$0xff] %v12672_v45  ;;  %10279 = vtanh.f32 %v11884_v16 }
 0x3d0   :  { %v12650_v28 = vpop.xlane.xlu0 %2038 }
 0x3d1   :  { %15759 = vst [vmem:[#allocation69_spill] sm:$0xff] %v12650_v28  ;;  %2615 = vrot.lane.b32.xlu0 %v12647_v50, %s10697_s5  ;;  %v10270_v28 = vpop.eup %10269  ;;  %v12685_v11 = vpop.permute.xlu1 %2585 }
 0x3d2   :  { %2587 = vrot.lane.b32.xlu1 %v1907_v29, %s10697_s5  ;;  %v12677_v14 = vmul.f32 %v12408_v27, %v10270_v28  ;;  %15768 = vst [vmem:[#allocation80_spill] sm:$0xff] %v12685_v11 }
 0x3d4   :  { %v12662_v2 = vpop.xlane.xlu0 %2044 }
 0x3d5   :  { %15763 = vst [vmem:[#allocation83_spill] sm:$0xff] %v12662_v2  ;;  %2617 = vrot.lane.b32.xlu0 %v12659_v1, %s10697_s5  ;;  %v10272_v2 = vpop.eup %10271 }
 0x3d6   :  { %2603 = vrot.lane.b32.xlu1 %v12665_v48, %s10697_s5  ;;  %v1897_v1 = vmul.f32 %v12408_v27, %v10272_v2  ;;  %v10274_v25 = vpop.eup %10273 }
 0x3d7   :  { %v1911_v28 = vmul.f32 %v12408_v27, %v10274_v25 }
 0x3d8   :  { %v12674_v36 = vpop.xlane.xlu0 %2050 }
 0x3d9   :  { %15765 = vst [vmem:[#allocation86_spill] sm:$0xff] %v12674_v36  ;;  %v10276_v36 = vpop.eup %10275 }
 0x3da   :  { %2607 = vrot.lane.b32.xlu1 %v12677_v14, %s10697_s5  ;;  %v1919_v2 = vmul.f32 %v12408_v27, %v10276_v36 }
 0x3dc   :  { %v12682_v50 = vpop.xlane.xlu0 %2056 }
 0x3dd   :  { %15767 = vst [vmem:[#allocation94_spill] sm:$0xff] %v12682_v50  ;;  %v10278_v50 = vpop.eup %10277 }
 0x3de   :  { %2567 = vrot.lane.b32.xlu1 %v1897_v1, %s10697_s5  ;;  %v12702_v16 = vmul.f32 %v12408_v27, %v10278_v50 }
 0x3e0   :  { %v12689_v38 = vpop.xlane.xlu0 %2062  ;;  %15773 = vst [vmem:[#allocation178_spill] sm:$0xff] %v12702_v16 }
 0x3e1   :  { %15769 = vst [vmem:[#allocation174_spill] sm:$0xff] %v12689_v38  ;;  %v10280_v38 = vpop.eup %10279 }
 0x3e2   :  { %v12692_v45 = vpop.xlane.xlu1 %2023  ;;  %2595 = vrot.lane.b32.xlu1 %v1911_v28, %s10697_s5 }
 0x3e3   :  { %15770 = vst [vmem:[#allocation175_spill] sm:$0xff] %v12692_v45 }
 0x3e4   :  { %v12695_v35 = vpop.xlane.xlu0 %2092 }
 0x3e5   :  { %15771 = vst [vmem:[#allocation176_spill] sm:$0xff] %v12695_v35  ;;  %v12711_v35 = vmul.f32 %v12408_v27, %v10280_v38  ;;  %v2073_v38 = vsel %vm15294_vm0, %v12625_v49, 0.0  ;;  %v2115_v49 = vsel %vm15294_vm0, %v1907_v29, 0.0  ;;  %v2133_v29 = vsel %vm15294_vm0, %v12632_v39, 0.0 }
 0x3e6   :  { %v12698_v46 = vpop.xlane.xlu1 %2029  ;;  %2611 = vrot.lane.b32.xlu1 %v1919_v2, %s10697_s5  ;;  %v2145_v39 = vsel %vm15294_vm0, %v12677_v14, 0.0  ;;  %v2118_v14 = vsel %vm15294_vm0, %v12499_v7, 0.0  ;;  %v15794_v7 = vld [vmem:[#allocation90_spill] sm:$0xff] }
 0x3e7   :  { %15772 = vst [vmem:[#allocation177_spill] sm:$0xff] %v12698_v46 }
 0x3e8   :  { %v12704_v11 = vpop.xlane.xlu0 %2098 }
 0x3e9   :  { %15774 = vst [vmem:[#allocation179_spill] sm:$0xff] %v12704_v11  ;;  %v2067_v11 = vsel %vm15294_vm0, %v12487_v57, 0.0 }
 0x3ea   :  { %v12706_v25 = vpop.xlane.xlu1 %2035  ;;  %2613 = vrot.lane.b32.xlu1 %v12702_v16, %s10697_s5  ;;  %v2079_v16 = vsel %vm15294_vm0, %v12515_v55, 0.0  ;;  %v2121_v55 = vsel %vm15294_vm0, %v12531_v59, 0.0 }
 0x3eb   :  { %15775 = vst [vmem:[#allocation180_spill] sm:$0xff] %v12706_v25 }
 0x3ec   :  { %v12717_v46 = vpop.xlane.xlu0 %2104 }
 0x3ed   :  { %15777 = vst [vmem:[#allocation182_spill] sm:$0xff] %v12717_v46 }
 0x3ee   :  { %v12713_v36 = vpop.xlane.xlu1 %2041  ;;  %2601 = vrot.lane.b32.xlu1 %v12711_v35, %s10697_s5 }
 0x3ef   :  { %15776 = vst [vmem:[#allocation181_spill] sm:$0xff] %v12713_v36 }
 0x3f0   :  { %v12723_v25 = vpop.xlane.xlu0 %2110 }
 0x3f1   :  { %15779 = vst [vmem:[#allocation184_spill] sm:$0xff] %v12723_v25 }
 0x3f2   :  { %v12719_v50 = vpop.xlane.xlu1 %2047 }
 0x3f3   :  { %15778 = vst [vmem:[#allocation183_spill] sm:$0xff] %v12719_v50 }
 0x3f4   :  { %2068 = vadd.xlane.f32.xlu0 %v2067_v11  ;;  %v12733_v46 = vpop.permute.xlu0 %2683  ;;  %v2085_v11 = vsel %vm15294_vm0, %v1897_v1, 0.0  ;;  %v2127_v1 = vsel %vm15294_vm0, %v1911_v28, 0.0  ;;  %v2076_v28 = vsel %vm15294_vm0, %v12640_v33, 0.0  ;;  %v2088_v33 = vsel %vm15294_vm0, %v12603_v6, 0.0 }
 0x3f6   :  { %v12725_v45 = vpop.xlane.xlu1 %2053 }
 0x3f8   :  { %2074 = vadd.xlane.f32.xlu0 %v2073_v38  ;;  %v12738_v57 = vpop.permute.xlu0 %2717 }
 0x3fa   :  { %v12729_v36 = vpop.xlane.xlu1 %2059 }
 0x3fb   :  { %15780 = vst [vmem:[#allocation185_spill] sm:$0xff] %v12729_v36 }
 0x3fc   :  { %2080 = vadd.xlane.f32.xlu0 %v2079_v16  ;;  %v12747_v36 = vpop.permute.xlu0 %2691 }
 0x3fd   :  { %15783 = vst [vmem:[#allocation188_spill] sm:$0xff] %v12747_v36 }
 0x3fe   :  { %v12735_v50 = vpop.xlane.xlu1 %2065 }
 0x3ff   :  { %15781 = vst [vmem:[#allocation186_spill] sm:$0xff] %v12735_v50 }
 0x400   :  { %2086 = vadd.xlane.f32.xlu0 %v2085_v11  ;;  %v12752_v11 = vpop.permute.xlu0 %2719 }
 0x401   :  { %15785 = vst [vmem:[#allocation190_spill] sm:$0xff] %v12752_v11 }
 0x402   :  { %v12740_v25 = vpop.xlane.xlu1 %2095 }
 0x404   :  { %2116 = vadd.xlane.f32.xlu0 %v2115_v49  ;;  %v2070_v49 = vsel %vm15294_vm0, %v12609_v34, 0.0  ;;  %v2082_v34 = vsel %vm15294_vm0, %v12559_v19, 0.0  ;;  %v15790_v19 = vld [vmem:[#allocation93_spill] sm:$0xff] }
 0x405   :  { %10281 = vtanh.f32 %v15790_v19  ;;  %v2136_v19 = vsel %vm15294_vm0, %v12711_v35, 0.0 }
 0x406   :  { %v12743_v38 = vpop.xlane.xlu1 %2101 }
 0x407   :  { %15782 = vst [vmem:[#allocation187_spill] sm:$0xff] %v12743_v38  ;;  %v2921_v38 = vsel %vm15294_vm0, %v12383_v0, 0.0  ;;  %v2924_v0 = vsel %vm15294_vm0, %v12414_v3, 0.0 }
 0x408   :  { %2122 = vadd.xlane.f32.xlu0 %v2121_v55  ;;  %v2139_v55 = vsel %vm15294_vm0, %v12665_v48, 0.0  ;;  %v2151_v48 = vsel %vm15294_vm0, %v1919_v2, 0.0  ;;  %v2124_v2 = vsel %vm15294_vm0, %v12575_v10, 0.0 }
 0x40a   :  { %v12749_v16 = vpop.xlane.xlu1 %2107 }
 0x40b   :  { %15784 = vst [vmem:[#allocation189_spill] sm:$0xff] %v12749_v16  ;;  %v12764_v16 = vpop.permute.xlu0 %2733 }
 0x40c   :  { %2128 = vadd.xlane.f32.xlu0 %v2127_v1  ;;  %15787 = vst [vmem:[#allocation192_spill] sm:$0xff] %v12764_v16  ;;  %v2915_v16 = vsel %vm15294_vm0, %v12437_v5, 0.0 }
 0x40e   :  { %v12754_v50 = vpop.xlane.xlu1 %2113 }
 0x40f   :  { %15786 = vst [vmem:[#allocation191_spill] sm:$0xff] %v12754_v50 }
 0x410   :  { %2134 = vadd.xlane.f32.xlu0 %v2133_v29  ;;  %v12774_v29 = vpop.permute.xlu0 %2693 }
 0x411   :  { %15788 = vst [vmem:[#allocation193_spill] sm:$0xff] %v12774_v29 }
 0x412   :  { %v12760_v59 = vpop.permute.xlu1 %2685  ;;  %2071 = vadd.xlane.f32.xlu1 %v2070_v49 }
 0x414   :  { %2140 = vadd.xlane.f32.xlu0 %v2139_v55  ;;  %v12781_v55 = vpop.permute.xlu0 %2721 }
 0x415   :  { %15789 = vst [vmem:[#allocation194_spill] sm:$0xff] %v12781_v55 }
 0x416   :  { %2077 = vadd.xlane.f32.xlu1 %v2076_v28  ;;  %v12768_v1 = vpop.permute.xlu1 %2687 }
 0x418   :  { %2146 = vadd.xlane.f32.xlu0 %v2145_v39  ;;  %v12790_v39 = vpop.permute.xlu0 %2737 }
 0x419   :  { %15791 = vst [vmem:[#allocation93_spill] sm:$0xff] %v12790_v39 }
 0x41a   :  { %2083 = vadd.xlane.f32.xlu1 %v2082_v34  ;;  %v12777_v49 = vpop.permute.xlu1 %2689  ;;  %v15792_v34 = vld [vmem:[#allocation88_spill] sm:$0xff] }
 0x41b   :  { %10283 = vtanh.f32 %v15792_v34 }
 0x41c   :  { %2152 = vadd.xlane.f32.xlu0 %v2151_v48  ;;  %v2130_v48 = vsel %vm15294_vm0, %v12619_v22, 0.0  ;;  %10285 = vtanh.f32 %v15794_v7  ;;  %v2142_v22 = vsel %vm15294_vm0, %v12543_v54, 0.0  ;;  %v15800_v7 = vld [vmem:[#allocation84_spill] sm:$0xff]  ;;  %v15803_v54 = vld [vmem:[#allocation91_spill] sm:$0xff] }
 0x41e   :  { %2089 = vadd.xlane.f32.xlu1 %v2088_v33  ;;  %v12785_v28 = vpop.permute.xlu1 %2715  ;;  %v12798_v33 = vpop.permute.xlu0 %2697 }
 0x41f   :  { %15795 = vst [vmem:[#allocation90_spill] sm:$0xff] %v12798_v33 }
 0x422   :  { %2119 = vadd.xlane.f32.xlu1 %v2118_v14  ;;  %v12793_v6 = vpop.permute.xlu1 %2731  ;;  %v10282_v14 = vpop.eup %10281 }
 0x423   :  { %15793 = vst [vmem:[#allocation88_spill] sm:$0xff] %v12793_v6  ;;  %v12806_v34 = vmul.f32 %v12408_v27, %v10282_v14  ;;  %v2148_v14 = vsel %vm15294_vm0, %v12587_v40, 0.0 }
 0x425   :  { %v10284_v39 = vpop.eup %10283 }
 0x426   :  { %2125 = vadd.xlane.f32.xlu1 %v2124_v2  ;;  %v12802_v10 = vpop.permute.xlu1 %2735  ;;  %v15797_v2 = vld [vmem:[#allocation70_spill] sm:$0xff]  ;;  %v12816_v35 = vmul.f32 %v12408_v27, %v10284_v39 }
 0x427   :  { %15796 = vst [vmem:[#allocation195_spill] sm:$0xff] %v12802_v10  ;;  %10287 = vtanh.f32 %v15797_v2  ;;  %15798 = vst [vmem:[#allocation70_spill] sm:$0xff] %v12806_v34 }
 0x428   :  { %10289 = vtanh.f32 %v15800_v7  ;;  %15801 = vst [vmem:[#allocation84_spill] sm:$0xff] %v12816_v35  ;;  %v15806_v7 = vld [vmem:[#allocation92_spill] sm:$0xff] }
 0x429   :  { %10291 = vtanh.f32 %v15803_v54 }
 0x42a   :  { %2131 = vadd.xlane.f32.xlu1 %v2130_v48  ;;  %v12810_v48 = vpop.permute.xlu0 %2727  ;;  %v12818_v2 = vpop.permute.xlu1 %2695  ;;  %10293 = vtanh.f32 %v15806_v7  ;;  %v15809_v7 = vld [vmem:[#allocation128_spill] sm:$0xff] }
 0x42b   :  { %15799 = vst [vmem:[#allocation196_spill] sm:$0xff] %v12810_v48  ;;  %15802 = vst [vmem:[#allocation197_spill] sm:$0xff] %v12818_v2  ;;  %10295 = vtanh.f32 %v11911_v9 }
 0x42e   :  { %2137 = vadd.xlane.f32.xlu1 %v2136_v19  ;;  %v10286_v19 = vpop.eup %10285  ;;  %v12833_v33 = vpop.permute.xlu1 %2723 }
 0x42f   :  { %v12828_v48 = vmul.f32 %v12408_v27, %v10286_v19  ;;  %15807 = vst [vmem:[#allocation92_spill] sm:$0xff] %v12833_v33 }
 0x431   :  { %15805 = vst [vmem:[#allocation198_spill] sm:$0xff] %v12828_v48  ;;  %v10288_v39 = vpop.eup %10287 }
 0x432   :  { %2143 = vadd.xlane.f32.xlu1 %v2142_v22  ;;  %2747 = vrot.lane.b32.xlu0 %v12806_v34, %s10697_s5  ;;  %v12825_v22 = vpop.permute.xlu0 %2729  ;;  %v12837_v40 = vmul.f32 %v12408_v27, %v10288_v39  ;;  %v10290_v54 = vpop.eup %10289 }
 0x433   :  { %15804 = vst [vmem:[#allocation91_spill] sm:$0xff] %v12825_v22  ;;  %v12845_v19 = vmul.f32 %v12408_v27, %v10290_v54 }
 0x436   :  { %2149 = vadd.xlane.f32.xlu1 %v2148_v14  ;;  %2753 = vrot.lane.b32.xlu0 %v12816_v35, %s10697_s5  ;;  %v15808_v14 = vld [vmem:[#allocation85_spill] sm:$0xff]  ;;  %v12840_v22 = vpop.permute.xlu0 %2555  ;;  %v12848_v35 = vpop.permute.xlu1 %2725 }
 0x437   :  { %10297 = vtanh.f32 %v15808_v14  ;;  %15810 = vst [vmem:[#allocation85_spill] sm:$0xff] %v12848_v35 }
 0x438   :  { %10299 = vtanh.f32 %v15809_v7 }
 0x439   :  { %10301 = vtanh.f32 %v11917_v26 }
 0x43a   :  { %2759 = vrot.lane.b32.xlu0 %v12828_v48, %s10697_s5  ;;  %v10292_v48 = vpop.eup %10291  ;;  %v12852_v39 = vpop.permute.xlu0 %2589  ;;  %10303 = vtanh.f32 %v11920_v18 }
 0x43b   :  { %v10294_v9 = vpop.eup %10293  ;;  %v12855_v14 = vmul.f32 %v12408_v27, %v10292_v48  ;;  %v12863_v7 = vpop.permute.xlu1 %2739  ;;  %10305 = vtanh.f32 %v11923_v56 }
 0x43c   :  { %v10296_v33 = vpop.eup %10295  ;;  %v12859_v54 = vmul.f32 %v12408_v27, %v10294_v9  ;;  %15812 = vst [vmem:[#allocation199_spill] sm:$0xff] %v12863_v7  ;;  %10307 = vtanh.f32 %v11926_v44 }
 0x43d   :  { %v12868_v35 = vmul.f32 %v12408_v27, %v10296_v33  ;;  %10309 = vtanh.f32 %v11929_v20 }
 0x43e   :  { %2619 = vrot.lane.b32.xlu0 %v12837_v40, %s10697_s5  ;;  %15811 = vst [vmem:[#allocation128_spill] sm:$0xff] %v12859_v54  ;;  %v12874_v9 = vpop.permute.xlu0 %2563  ;;  %10311 = vtanh.f32 %v11934_v42  ;;  %v2954_v42 = vsel %vm15294_vm0, %v12592_v62, 0.0  ;;  %v2996_v62 = vsel %vm15294_vm0, %v12613_v32, 0.0  ;;  %v2163_v32 = vsel %vm15294_vm0, %v12837_v40, 0.0 }
 0x43f   :  { %v12881_v7 = vpop.permute.xlu1 %2741  ;;  %v2936_v40 = vsel %vm15294_vm0, %v12546_v8, 0.0 }
 0x440   :  { %15814 = vst [vmem:[#allocation201_spill] sm:$0xff] %v12881_v7 }
 0x441   :  { %v10298_v2 = vpop.eup %10297 }
 0x442   :  { %2625 = vrot.lane.b32.xlu0 %v12845_v19, %s10697_s5  ;;  %v12872_v26 = vmul.f32 %v12408_v27, %v10298_v2  ;;  %v10300_v48 = vpop.eup %10299  ;;  %v12888_v2 = vpop.permute.xlu0 %2591 }
 0x443   :  { %v12884_v33 = vmul.f32 %v12408_v27, %v10300_v48  ;;  %v10302_v18 = vpop.eup %10301 }
 0x444   :  { %15813 = vst [vmem:[#allocation200_spill] sm:$0xff] %v12872_v26  ;;  %v12892_v10 = vmul.f32 %v12408_v27, %v10302_v18  ;;  %v10304_v55 = vpop.eup %10303 }
 0x445   :  { %15815 = vst [vmem:[#allocation202_spill] sm:$0xff] %v12884_v33  ;;  %v12900_v56 = vmul.f32 %v12408_v27, %v10304_v55  ;;  %v10306_v48 = vpop.eup %10305 }
 0x446   :  { %2627 = vrot.lane.b32.xlu0 %v12855_v14, %s10697_s5  ;;  %15816 = vst [vmem:[#allocation203_spill] sm:$0xff] %v12892_v10  ;;  %v12909_v18 = vmul.f32 %v12408_v27, %v10306_v48 }
 0x447   :  { %2749 = vrot.lane.b32.xlu1 %v12859_v54, %s10697_s5 }
 0x44a   :  { %2633 = vrot.lane.b32.xlu0 %v12868_v35, %s10697_s5 }
 0x44b   :  { %2751 = vrot.lane.b32.xlu1 %v12872_v26, %s10697_s5  ;;  %v12894_v26 = vpop.permute.xlu1 %2743 }
 0x44c   :  { %15817 = vst [vmem:[#allocation204_spill] sm:$0xff] %v12894_v26  ;;  %v10308_v26 = vpop.eup %10307 }
 0x44d   :  { %v12916_v20 = vmul.f32 %v12408_v27, %v10308_v26  ;;  %v10310_v55 = vpop.eup %10309  ;;  %v2891_v26 = vsel %vm15294_vm0, %v12233_v63, 0.0 }
 0x44f   :  { %2755 = vrot.lane.b32.xlu1 %v12884_v33, %s10697_s5  ;;  %v12902_v33 = vpop.permute.xlu0 %2605  ;;  %v12906_v44 = vpop.permute.xlu1 %2745 }
 0x450   :  { %15818 = vst [vmem:[#allocation205_spill] sm:$0xff] %v12906_v44  ;;  %v12923_v44 = vmul.f32 %v12408_v27, %v10310_v55  ;;  %v2918_v55 = vsel %vm15294_vm0, %v12460_v24, 0.0 }
 0x453   :  { %2757 = vrot.lane.b32.xlu1 %v12892_v10, %s10697_s5  ;;  %v12913_v10 = vpop.permute.xlu0 %2565  ;;  %v12918_v7 = vpop.permute.xlu1 %2557 }
 0x454   :  { %v2978_v8 = vsel %vm15294_vm0, %v12913_v10, 0.0 }
 0x457   :  { %2621 = vrot.lane.b32.xlu1 %v12900_v56, %s10697_s5  ;;  %v12925_v48 = vpop.permute.xlu0 %2593  ;;  %v2560_v29 = vpop.permute.xlu1 %2559 }
 0x45b   :  { %2623 = vrot.lane.b32.xlu1 %v12909_v18, %s10697_s5  ;;  %v12929_v34 = vpop.permute.xlu0 %2609  ;;  %v2562_v54 = vpop.permute.xlu1 %2561 }
 0x45f   :  { %2629 = vrot.lane.b32.xlu1 %v12916_v20, %s10697_s5  ;;  %v12935_v11 = vpop.permute.xlu0 %2569  ;;  %v2588_v50 = vpop.permute.xlu1 %2587 }
 0x463   :  { %2631 = vrot.lane.b32.xlu1 %v12923_v44, %s10697_s5  ;;  %v12939_v6 = vpop.permute.xlu0 %2597  ;;  %v12943_v63 = vpop.permute.xlu1 %2603 }
 0x467   :  { %v12947_v5 = vpop.permute.xlu0 %2599  ;;  %v12951_v24 = vpop.permute.xlu1 %2607 }
 0x469   :  { %2892 = vadd.xlane.f32.xlu0 %v2891_v26  ;;  %v2939_v26 = vsel %vm15294_vm0, %v12481_v12, 0.0  ;;  %v2945_v12 = vsel %vm15294_vm0, %v12504_v13, 0.0  ;;  %v2948_v13 = vsel %vm15294_vm0, %v12435_v4, 0.0  ;;  %v2930_v4 = vsel %vm15294_vm0, %v12569_v53, 0.0 }
 0x46d   :  { %2916 = vadd.xlane.f32.xlu0 %v2915_v16  ;;  %v2942_v16 = vsel %vm15294_vm0, %v12396_v58, 0.0  ;;  %v2894_v58 = vsel %vm15294_vm0, %v12214_v61, 0.0  ;;  %v2900_v61 = vsel %vm15294_vm0, %v12251_v23, 0.0 }
 0x471   :  { %2919 = vadd.xlane.f32.xlu0 %v2918_v55  ;;  %v12953_v55 = vpop.permute.xlu0 %2615 }
 0x475   :  { %2922 = vadd.xlane.f32.xlu0 %v2921_v38  ;;  %v12957_v38 = vpop.permute.xlu1 %2567 }
 0x476   :  { %v2981_v10 = vsel %vm15294_vm0, %v12957_v38, 0.0  ;;  %v15837_v38 = vld [vmem:[#allocation67_spill] sm:$0xff] }
 0x479   :  { %2940 = vadd.xlane.f32.xlu0 %v2939_v26  ;;  %v12961_v26 = vpop.permute.xlu0 %2617  ;;  %v12967_v36 = vpop.permute.xlu1 %2595 }
 0x47d   :  { %2943 = vadd.xlane.f32.xlu0 %v2942_v16  ;;  %v2927_v16 = vsel %vm15294_vm0, %v12525_v37, 0.0 }
 0x481   :  { %2925 = vadd.xlane.f32.xlu0 %v2924_v0  ;;  %v12969_v3 = vpop.xlane.xlu0 %2068  ;;  %v2897_v0 = vsel %vm15294_vm0, %v12240_v43, 0.0  ;;  %v2903_v43 = vsel %vm15294_vm0, %v12227_v17, 0.0  ;;  %v2987_v17 = vsel %vm15294_vm0, %v12458_v60, 0.0  ;;  %v2993_v60 = vsel %vm15294_vm0, %v12502_v41, 0.0 }
 0x485   :  { %2946 = vadd.xlane.f32.xlu0 %v2945_v12  ;;  %v12977_v12 = vpop.permute.xlu1 %2611  ;;  %v12979_v37 = vpop.xlane.xlu0 %2074 }
 0x487   :  { %2895 = vadd.xlane.f32.xlu1 %v2894_v58  ;;  %v2990_v58 = vsel %vm15294_vm0, %v12548_v51, 0.0  ;;  %v2963_v51 = vsel %vm15294_vm0, %v12840_v22, 0.0  ;;  %v2972_v22 = vsel %vm15294_vm0, %v2562_v54, 0.0  ;;  %v3014_v54 = vsel %vm15294_vm0, %v12852_v39, 0.0 }
 0x489   :  { %2928 = vadd.xlane.f32.xlu0 %v2927_v16  ;;  %v12987_v16 = vpop.permute.xlu1 %2613  ;;  %v12989_v23 = vpop.xlane.xlu0 %2080 }
 0x48b   :  { %2898 = vadd.xlane.f32.xlu1 %v2897_v0  ;;  %v2906_v0 = vsel %vm15294_vm0, %v12236_v52, 0.0 }
 0x48d   :  { %2949 = vadd.xlane.f32.xlu0 %v2948_v13  ;;  %v12997_v13 = vpop.permute.xlu1 %2601  ;;  %v12999_v53 = vpop.xlane.xlu0 %2086 }
 0x48e   :  { %15819 = vst [vmem:[#allocation206_spill] sm:$0xff] %v12999_v53 }
 0x48f   :  { %2901 = vadd.xlane.f32.xlu1 %v2900_v61  ;;  %v2969_v61 = vsel %vm15294_vm0, %v2560_v29, 0.0  ;;  %v3011_v29 = vsel %vm15294_vm0, %v2588_v50, 0.0  ;;  %v2909_v50 = vsel %vm15294_vm0, %v12259_v31, 0.0 }
 0x491   :  { %2991 = vadd.xlane.f32.xlu0 %v2990_v58  ;;  %v2951_v58 = vsel %vm15294_vm0, %v12479_v30, 0.0  ;;  %v2966_v30 = vsel %vm15294_vm0, %v12918_v7, 0.0  ;;  %v2933_v7 = vsel %vm15294_vm0, %v12523_v15, 0.0  ;;  %v2975_v15 = vsel %vm15294_vm0, %v12874_v9, 0.0 }
 0x492   :  { %v3038_v9 = vsel %vm15294_vm0, %v12902_v33, 0.0  ;;  %v2912_v33 = vsel %vm15294_vm0, %v12267_v47, 0.0  ;;  %v3020_v47 = vsel %vm15294_vm0, %v12925_v48, 0.0  ;;  %v3041_v48 = vsel %vm15294_vm0, %v12951_v24, 0.0 }
 0x493   :  { %2904 = vadd.xlane.f32.xlu1 %v2903_v43  ;;  %v13007_v43 = vpop.xlane.xlu0 %2116 }
 0x495   :  { %2931 = vadd.xlane.f32.xlu0 %v2930_v4 }
 0x497   :  { %2907 = vadd.xlane.f32.xlu1 %v2906_v0 }
 0x499   :  { %2964 = vadd.xlane.f32.xlu0 %v2963_v51  ;;  %v13018_v51 = vpop.xlane.xlu0 %2122 }
 0x49a   :  { %15820 = vst [vmem:[#allocation207_spill] sm:$0xff] %v13018_v51 }
 0x49b   :  { %2988 = vadd.xlane.f32.xlu1 %v2987_v17 }
 0x49d   :  { %2970 = vadd.xlane.f32.xlu0 %v2969_v61  ;;  %v13025_v41 = vpop.xlane.xlu0 %2128 }
 0x49e   :  { %15822 = vst [vmem:[#allocation209_spill] sm:$0xff] %v13025_v41 }
 0x49f   :  { %v13004_v52 = vpop.xlane.xlu1 %2071  ;;  %2952 = vadd.xlane.f32.xlu1 %v2951_v58 }
 0x4a1   :  { %2973 = vadd.xlane.f32.xlu0 %v2972_v22  ;;  %v13035_v39 = vpop.xlane.xlu0 %2134  ;;  %v10312_v22 = vpop.eup %10311 }
 0x4a2   :  { %15824 = vst [vmem:[#allocation211_spill] sm:$0xff] %v13035_v39  ;;  %v13042_v31 = vmul.f32 %v12408_v27, %v10312_v22  ;;  %v3017_v27 = vsel %vm15294_vm0, %v12888_v2, 0.0  ;;  %v2166_v2 = vsel %vm15294_vm0, %v12900_v56, 0.0  ;;  %v3035_v56 = vsel %vm15294_vm0, %v12943_v63, 0.0 }
 0x4a3   :  { %v13011_v4 = vpop.xlane.xlu1 %2077  ;;  %2994 = vadd.xlane.f32.xlu1 %v2993_v60 }
 0x4a4   :  { %15826 = vst [vmem:[#allocation213_spill] sm:$0xff] %v13042_v31 }
 0x4a5   :  { %3012 = vadd.xlane.f32.xlu0 %v3011_v29  ;;  %v13044_v29 = vpop.xlane.xlu0 %2140 }
 0x4a7   :  { %v13016_v0 = vpop.xlane.xlu1 %2083  ;;  %2967 = vadd.xlane.f32.xlu1 %v2966_v30 }
 0x4ab   :  { %v13022_v17 = vpop.xlane.xlu1 %2089  ;;  %3015 = vadd.xlane.f32.xlu1 %v3014_v54  ;;  %v13054_v54 = vpop.xlane.xlu0 %2146 }
 0x4ac   :  { %15821 = vst [vmem:[#allocation208_spill] sm:$0xff] %v13022_v17 }
 0x4af   :  { %v13029_v61 = vpop.xlane.xlu1 %2119  ;;  %2910 = vadd.xlane.f32.xlu1 %v2909_v50 }
 0x4b3   :  { %v13033_v58 = vpop.xlane.xlu1 %2125  ;;  %2934 = vadd.xlane.f32.xlu1 %v2933_v7  ;;  %v13060_v7 = vpop.xlane.xlu0 %2152 }
 0x4b4   :  { %15823 = vst [vmem:[#allocation210_spill] sm:$0xff] %v13033_v58 }
 0x4b7   :  { %v13039_v60 = vpop.xlane.xlu1 %2131  ;;  %2955 = vadd.xlane.f32.xlu1 %v2954_v42  ;;  %v13068_v42 = vpop.permute.xlu0 %2747 }
 0x4b8   :  { %15825 = vst [vmem:[#allocation212_spill] sm:$0xff] %v13039_v60  ;;  %15828 = vst [vmem:[#allocation215_spill] sm:$0xff] %v13068_v42  ;;  %v15861_v42 = vld [vmem:[#allocation96_spill] sm:$0xff] }
 0x4b9   :  { %v2238_v39 = vsel %vm15294_vm0, %v15861_v42, 0.0 }
 0x4bb   :  { %2976 = vadd.xlane.f32.xlu1 %v2975_v15  ;;  %2761 = vrot.lane.b32.xlu0 %v13042_v31, %s10697_s5  ;;  %v13050_v30 = vpop.xlane.xlu1 %2137 }
 0x4bc   :  { %15827 = vst [vmem:[#allocation214_spill] sm:$0xff] %v13050_v30 }
 0x4bf   :  { %2997 = vadd.xlane.f32.xlu1 %v2996_v62  ;;  %v13058_v50 = vpop.xlane.xlu1 %2143  ;;  %v13074_v62 = vpop.permute.xlu0 %2753 }
 0x4c0   :  { %15830 = vst [vmem:[#allocation217_spill] sm:$0xff] %v13074_v62  ;;  %v15853_v62 = vld [vmem:[#allocation129_spill] sm:$0xff] }
 0x4c3   :  { %3018 = vadd.xlane.f32.xlu1 %v3017_v27  ;;  %v13064_v22 = vpop.xlane.xlu1 %2149 }
 0x4c7   :  { %3039 = vadd.xlane.f32.xlu1 %v3038_v9  ;;  %v13072_v15 = vpop.permute.xlu1 %2749  ;;  %v13082_v9 = vpop.permute.xlu0 %2759 }
 0x4c8   :  { %15829 = vst [vmem:[#allocation216_spill] sm:$0xff] %v13072_v15  ;;  %15832 = vst [vmem:[#allocation219_spill] sm:$0xff] %v13082_v9 }
 0x4cb   :  { %2164 = vadd.xlane.f32.xlu1 %v2163_v32  ;;  %v13078_v27 = vpop.permute.xlu1 %2751  ;;  %v2957_v32 = vsel %vm15294_vm0, %v12635_v21, 0.0 }
 0x4cc   :  { %15831 = vst [vmem:[#allocation218_spill] sm:$0xff] %v13078_v27  ;;  %v15855_v27 = vld [vmem:[#allocation57_spill] sm:$0xff] }
 0x4cf   :  { %2167 = vadd.xlane.f32.xlu1 %v2166_v2  ;;  %v13088_v2 = vpop.permute.xlu1 %2755 }
 0x4d0   :  { %15833 = vst [vmem:[#allocation220_spill] sm:$0xff] %v13088_v2 }
 0x4d3   :  { %2913 = vadd.xlane.f32.xlu1 %v2912_v33  ;;  %v2620_v33 = vpop.permute.xlu0 %2619 }
 0x4d4   :  { %v3059_v63 = vsel %vm15294_vm0, %v2620_v33, 0.0 }
 0x4d7   :  { %2937 = vadd.xlane.f32.xlu1 %v2936_v40  ;;  %v13094_v40 = vpop.permute.xlu1 %2757  ;;  %v2626_v9 = vpop.permute.xlu0 %2625 }
 0x4d8   :  { %15834 = vst [vmem:[#allocation221_spill] sm:$0xff] %v13094_v40 }
 0x4da   :  { %3036 = vadd.xlane.f32.xlu0 %v3035_v56  ;;  %v15835_v56 = vld [vmem:[#allocation63_spill] sm:$0xff] }
 0x4db   :  { %2958 = vadd.xlane.f32.xlu1 %v2957_v32  ;;  %v2999_v21 = vsel %vm15294_vm0, %v15835_v56, 0.0  ;;  %v2169_v32 = vsel %vm15294_vm0, %v12909_v18, 0.0  ;;  %v15836_v18 = vld [vmem:[#allocation87_spill] sm:$0xff] }
 0x4de   :  { %3021 = vadd.xlane.f32.xlu0 %v3020_v47  ;;  %v2622_v47 = vpop.permute.xlu1 %2621 }
 0x4df   :  { %2979 = vadd.xlane.f32.xlu1 %v2978_v8  ;;  %v3062_v33 = vsel %vm15294_vm0, %v2622_v47, 0.0  ;;  %v2628_v8 = vpop.permute.xlu0 %2627  ;;  %v2984_v47 = vsel %vm15294_vm0, %v12935_v11, 0.0 }
 0x4e2   :  { %3060 = vadd.xlane.f32.xlu0 %v3059_v63  ;;  %v3023_v63 = vsel %vm15294_vm0, %v12967_v36, 0.0  ;;  %v2624_v56 = vpop.permute.xlu1 %2623 }
 0x4e3   :  { %3000 = vadd.xlane.f32.xlu1 %v2999_v21  ;;  %v2960_v21 = vsel %vm15294_vm0, %v15836_v18, 0.0  ;;  %v3065_v24 = vsel %vm15294_vm0, %v2624_v56, 0.0  ;;  %v2172_v56 = vsel %vm15294_vm0, %v12845_v19, 0.0  ;;  %v3068_v18 = vsel %vm15294_vm0, %v2626_v9, 0.0  ;;  %v15839_v9 = vld [vmem:[#allocation178_spill] sm:$0xff] }
 0x4e4   :  { %v3029_v19 = vsel %vm15294_vm0, %v12947_v5, 0.0 }
 0x4e6   :  { %2170 = vadd.xlane.f32.xlu0 %v2169_v32  ;;  %v13111_v32 = vpop.permute.xlu0 %2633 }
 0x4e7   :  { %3042 = vadd.xlane.f32.xlu1 %v3041_v48  ;;  %v3002_v48 = vsel %vm15294_vm0, %v15837_v38, 0.0 }
 0x4ea   :  { %2982 = vadd.xlane.f32.xlu0 %v2981_v10  ;;  %v3044_v10 = vsel %vm15294_vm0, %v12929_v34, 0.0  ;;  %v2175_v34 = vsel %vm15294_vm0, %v12855_v14, 0.0  ;;  %v2630_v14 = vpop.permute.xlu1 %2629 }
 0x4eb   :  { %3063 = vadd.xlane.f32.xlu1 %v3062_v33  ;;  %v3026_v33 = vsel %vm15294_vm0, %v12939_v6, 0.0  ;;  %v3047_v6 = vsel %vm15294_vm0, %v12977_v12, 0.0 }
 0x4ee   :  { %3024 = vadd.xlane.f32.xlu0 %v3023_v63 }
 0x4ef   :  { %2961 = vadd.xlane.f32.xlu1 %v2960_v21  ;;  %v15838_v21 = vld [vmem:[#allocation65_spill] sm:$0xff] }
 0x4f2   :  { %3066 = vadd.xlane.f32.xlu0 %v3065_v24  ;;  %v3005_v24 = vsel %vm15294_vm0, %v15838_v21, 0.0  ;;  %v3050_v21 = vsel %vm15294_vm0, %v12987_v16, 0.0 }
 0x4f3   :  { %3003 = vadd.xlane.f32.xlu1 %v3002_v48  ;;  %v2154_v48 = vsel %vm15294_vm0, %v15839_v9, 0.0 }
 0x4f6   :  { %2985 = vadd.xlane.f32.xlu0 %v2984_v47  ;;  %v2893_v36 = vpop.xlane.xlu0 %2892 }
 0x4f7   :  { %3045 = vadd.xlane.f32.xlu1 %v3044_v10  ;;  %v3071_v10 = vsel %vm15294_vm0, %v2628_v8, 0.0  ;;  %v2632_v8 = vpop.permute.xlu1 %2631 }
 0x4fa   :  { %3027 = vadd.xlane.f32.xlu0 %v3026_v33  ;;  %v13121_v63 = vpop.xlane.xlu0 %2916  ;;  %v15840_v33 = vld [vmem:[#allocation80_spill] sm:$0xff] }
 0x4fb   :  { %2173 = vadd.xlane.f32.xlu1 %v2172_v56  ;;  %v3008_v12 = vsel %vm15294_vm0, %v15840_v33, 0.0  ;;  %v2178_v56 = vsel %vm15294_vm0, %v12916_v20, 0.0  ;;  %v15842_v20 = vld [vmem:[#allocation125_spill] sm:$0xff] }
 0x4fc   :  { %v2157_v9 = vsel %vm15294_vm0, %v15842_v20, 0.0 }
 0x4fe   :  { %3069 = vadd.xlane.f32.xlu0 %v3068_v18  ;;  %v13126_v11 = vpop.xlane.xlu0 %2919  ;;  %v15841_v18 = vlaneseq }
 0x4ff   :  { %3006 = vadd.xlane.f32.xlu1 %v3005_v24 }
 0x500   :  { %v13148_v5 = vand.u32 127, %v15841_v18  ;;  %v15846_v18 = vld [vmem:[#allocation66_spill] sm:$0xff] }
 0x502   :  { %2176 = vadd.xlane.f32.xlu0 %v2175_v34  ;;  %v13134_v38 = vpop.xlane.xlu0 %2922  ;;  %v4194_v34 = vadd.s32 4294967232, %v13148_v5 }
 0x503   :  { %3048 = vadd.xlane.f32.xlu1 %v3047_v6  ;;  %v4199_v6 = vadd.s32 4294967224, %v13148_v5 }
 0x506   :  { %3030 = vadd.xlane.f32.xlu0 %v3029_v19  ;;  %v13140_v47 = vpop.xlane.xlu0 %2940  ;;  %v3053_v19 = vsel %vm15294_vm0, %v12953_v55, 0.0 }
 0x507   :  { %2155 = vadd.xlane.f32.xlu1 %v2154_v48  ;;  %v4206_v48 = vadd.s32 4294967216, %v13148_v5 }
 0x50a   :  { %3072 = vadd.xlane.f32.xlu0 %v3071_v10  ;;  %v13152_v24 = vpop.xlane.xlu0 %2943  ;;  %v15843_v10 = vld [vmem:[#allocation133_spill] sm:$0xff] }
 0x50b   :  { %3009 = vadd.xlane.f32.xlu1 %v3008_v12  ;;  %v13162_v16 = vsub.s32 %v4194_v34, %v15843_v10  ;;  %v13165_v33 = vsub.s32 %v4199_v6, %v15843_v10  ;;  %v13175_v20 = vsub.s32 %v4206_v48, %v15843_v10  ;;  %v4213_v34 = vadd.s32 4294967208, %v13148_v5 }
 0x50d   :  { %15844 = vst [vmem:[#allocation63_spill] sm:$0xff] %v13162_v16  ;;  %15845 = vst [vmem:[#allocation87_spill] sm:$0xff] %v13165_v33  ;;  %v4198_v6 = vrot.slane %v2893_v36, %v13162_v16  ;;  %v13185_v48 = vsub.s32 %v4213_v34, %v15843_v10  ;;  %v4220_v36 = vadd.s32 4294967200, %v13148_v5 }
 0x50e   :  { %2179 = vadd.xlane.f32.xlu0 %v2178_v56  ;;  %v13167_v56 = vpop.xlane.xlu0 %2925  ;;  %15847 = vst [vmem:[#allocation67_spill] sm:$0xff] %v13175_v20 }
 0x50f   :  { %3051 = vadd.xlane.f32.xlu1 %v3050_v21  ;;  %v2160_v21 = vsel %vm15294_vm0, %v15846_v18, 0.0  ;;  %v3056_v18 = vsel %vm15294_vm0, %v12961_v26, 0.0  ;;  %v2184_v26 = vsel %vm15294_vm0, %v12868_v35, 0.0  ;;  %v13198_v34 = vsub.s32 %v4220_v36, %v15843_v10 }
 0x512   :  { %3054 = vadd.xlane.f32.xlu0 %v3053_v19  ;;  %v3032_v19 = vsel %vm15294_vm0, %v12997_v13, 0.0  ;;  %v3074_v13 = vsel %vm15294_vm0, %v2630_v14, 0.0  ;;  %v2181_v14 = vsel %vm15294_vm0, %v12923_v44, 0.0  ;;  %v3077_v44 = vsel %vm15294_vm0, %v2632_v8, 0.0 }
 0x513   :  { %2158 = vadd.xlane.f32.xlu1 %v2157_v9 }
 0x514   :  { %v2896_v12 = vpop.xlane.xlu1 %2895 }
 0x515   :  { %v4203_v55 = vrot.slane %v2896_v12, %v13165_v33 }
 0x516   :  { %2161 = vadd.xlane.f32.xlu0 %v2160_v21  ;;  %v13187_v21 = vpop.xlane.xlu0 %2946 }
 0x517   :  { %3033 = vadd.xlane.f32.xlu1 %v3032_v19  ;;  %v4205_v12 = vsel %vm15282_vm1, %v4203_v55, %v4198_v6  ;;  %v4227_v55 = vadd.s32 4294967192, %v13148_v5 }
 0x518   :  { %v2899_v9 = vpop.xlane.xlu1 %2898 }
 0x519   :  { %v4210_v31 = vrot.slane %v2899_v9, %v13175_v20 }
 0x51a   :  { %3057 = vadd.xlane.f32.xlu0 %v3056_v18  ;;  %v13201_v18 = vpop.xlane.xlu0 %2928 }
 0x51b   :  { %v4212_v19 = vsel %vm15281_vm2, %v4210_v31, %v4205_v12  ;;  %3075 = vadd.xlane.f32.xlu1 %v3074_v13  ;;  %v15848_v13 = vld [vmem:[#allocation143_spill] sm:$0xff] }
 0x51c   :  { %v2902_v9 = vpop.xlane.xlu1 %2901  ;;  %v2187_v35 = vsel %vm15294_vm0, %v15848_v13, 0.0 }
 0x51d   :  { %v4217_v40 = vrot.slane %v2902_v9, %v13185_v48  ;;  %v13207_v9 = vsub.s32 %v4227_v55, %v15843_v10 }
 0x51e   :  { %2185 = vadd.xlane.f32.xlu0 %v2184_v26  ;;  %v15849_v26 = vld [vmem:[#allocation100_spill] sm:$0xff]  ;;  %v13216_v55 = vpop.xlane.xlu0 %2949 }
 0x51f   :  { %v4219_v6 = vsel %vm4218_vm3, %v4217_v40, %v4212_v19  ;;  %2182 = vadd.xlane.f32.xlu1 %v2181_v14  ;;  %v2211_v14 = vsel %vm15294_vm0, %v15849_v26, 0.0  ;;  %v4304_v42 = vrot.slane %v13216_v55, %v13185_v48 }
 0x520   :  { %v2905_v31 = vpop.xlane.xlu1 %2904 }
 0x521   :  { %v4224_v12 = vrot.slane %v2905_v31, %v13198_v34  ;;  %v3080_v31 = vsel %vm15294_vm0, %v13111_v32, 0.0 }
 0x522   :  { %2188 = vadd.xlane.f32.xlu0 %v2187_v35  ;;  %v15850_v35 = vld [vmem:[#allocation72_spill] sm:$0xff]  ;;  %v2992_v26 = vpop.xlane.xlu0 %2991 }
 0x523   :  { %v4226_v36 = vsel %vm15284_vm4, %v4224_v12, %v4219_v6  ;;  %3078 = vadd.xlane.f32.xlu1 %v3077_v44  ;;  %v3083_v6 = vsel %vm15294_vm0, %v15850_v35, 0.0  ;;  %v15851_v12 = vld [vmem:[#allocation142_spill] sm:$0xff] }
 0x524   :  { %v2908_v40 = vpop.xlane.xlu1 %2907  ;;  %v2190_v44 = vsel %vm15294_vm0, %v15851_v12, 0.0 }
 0x525   :  { %v4231_v19 = vrot.slane %v2908_v40, %v13207_v9 }
 0x526   :  { %2212 = vadd.xlane.f32.xlu0 %v2211_v14  ;;  %v15852_v14 = vld [vmem:[#allocation160_spill] sm:$0xff] }
 0x527   :  { %v4233_v13 = vsel %vm4232_vm5, %v4231_v19, %v4226_v36  ;;  %3081 = vadd.xlane.f32.xlu1 %v3080_v31  ;;  %v3107_v2 = vsel %vm15294_vm0, %v15852_v14, 0.0  ;;  %v2214_v36 = vsel %vm15294_vm0, %v15853_v62, 0.0  ;;  %v4372_v19 = vrot.slane %v2992_v26, %v13165_v33  ;;  %v15856_v26 = vld [vmem:[#allocation101_spill] sm:$0xff] }
 0x528   :  { %v2989_v8 = vpop.xlane.xlu1 %2988  ;;  %v3086_v14 = vsel %vm15294_vm0, %v15855_v27, 0.0 }
 0x529   :  { %v4368_v32 = vrot.slane %v2989_v8, %v13162_v16  ;;  %v13235_v8 = vpop.xlane.xlu0 %2931 }
 0x52a   :  { %3084 = vadd.xlane.f32.xlu0 %v3083_v6  ;;  %v15854_v6 = vld [vmem:[#allocation52_spill] sm:$0xff] }
 0x52b   :  { %2191 = vadd.xlane.f32.xlu1 %v2190_v44  ;;  %v2193_v12 = vsel %vm15294_vm0, %v15854_v6, 0.0  ;;  %v4373_v44 = vsel %vm15282_vm1, %v4372_v19, %v4368_v32  ;;  %v15857_v6 = vld [vmem:[#allocation140_spill] sm:$0xff] }
 0x52c   :  { %v2953_v40 = vpop.xlane.xlu1 %2952  ;;  %v3110_v32 = vsel %vm15294_vm0, %v15857_v6, 0.0  ;;  %v15860_v6 = vld [vmem:[#allocation162_spill] sm:$0xff] }
 0x52d   :  { %v2965_v27 = vpop.xlane.xlu0 %2964 }
 0x52e   :  { %3108 = vadd.xlane.f32.xlu0 %v3107_v2 }
 0x52f   :  { %2215 = vadd.xlane.f32.xlu1 %v2214_v36  ;;  %v2235_v36 = vsel %vm15294_vm0, %v15856_v26, 0.0 }
 0x530   :  { %v2995_v31 = vpop.xlane.xlu1 %2994 }
 0x531   :  { %v4377_v35 = vrot.slane %v2995_v31, %v13175_v20  ;;  %v4234_v31 = vadd.s32 4294967184, %v13148_v5 }
 0x532   :  { %2194 = vadd.xlane.f32.xlu0 %v2193_v12  ;;  %v15858_v12 = vld [vmem:[#allocation60_spill] sm:$0xff] }
 0x533   :  { %v13238_v2 = vsel %vm15281_vm2, %v4377_v35, %v4373_v44  ;;  %3087 = vadd.xlane.f32.xlu1 %v3086_v14  ;;  %v3089_v15 = vsel %vm15294_vm0, %v15858_v12, 0.0  ;;  %v13250_v35 = vsub.s32 %v4234_v31, %v15843_v10  ;;  %v15859_v44 = vld [vmem:[#allocation135_spill] sm:$0xff]  ;;  %v4294_v31 = vrot.slane %v13152_v24, %v13165_v33  ;;  %v2971_v12 = vpop.xlane.xlu0 %2970 }
 0x534   :  { %v2968_v62 = vpop.xlane.xlu1 %2967  ;;  %v2217_v14 = vsel %vm15294_vm0, %v15859_v44, 0.0  ;;  %v4299_v44 = vrot.slane %v13187_v21, %v13175_v20 }
 0x536   :  { %2236 = vadd.xlane.f32.xlu0 %v2235_v36 }
 0x537   :  { %3111 = vadd.xlane.f32.xlu1 %v3110_v32  ;;  %v3131_v32 = vsel %vm15294_vm0, %v15860_v6, 0.0  ;;  %v4290_v6 = vrot.slane %v13140_v47, %v13162_v16  ;;  %v2974_v60 = vpop.xlane.xlu0 %2973 }
 0x538   :  { %v13245_v19 = vpop.xlane.xlu1 %3015 }
 0x53a   :  { %3090 = vadd.xlane.f32.xlu0 %v3089_v15 }
 0x53b   :  { %2218 = vadd.xlane.f32.xlu1 %v2217_v14  ;;  %v4333_v14 = vrot.slane %v2968_v62, %v13165_v33  ;;  %v4295_v62 = vsel %vm15282_vm1, %v4294_v31, %v4290_v6  ;;  %v15865_v31 = vld [vmem:[#allocation156_spill] sm:$0xff] }
 0x53c   :  { %v2911_v26 = vpop.xlane.xlu1 %2910  ;;  %v4300_v30 = vsel %vm15281_vm2, %v4299_v44, %v4295_v62  ;;  %v3134_v6 = vsel %vm15294_vm0, %v15865_v31, 0.0 }
 0x53d   :  { %v4238_v36 = vrot.slane %v2911_v26, %v13250_v35  ;;  %v4305_v55 = vsel %vm4218_vm3, %v4304_v42, %v4300_v30  ;;  %v4343_v30 = vrot.slane %v2974_v60, %v13185_v48  ;;  %v15866_v42 = vld [vmem:[#allocation106_spill] sm:$0xff] }
 0x53e   :  { %3132 = vadd.xlane.f32.xlu0 %v3131_v32  ;;  %v15862_v32 = vld [vmem:[#allocation71_spill] sm:$0xff] }
 0x53f   :  { %v13262_v15 = vsel %vm4239_vm6, %v4238_v36, %v4233_v13  ;;  %2239 = vadd.xlane.f32.xlu1 %v2238_v39  ;;  %v2196_v24 = vsel %vm15294_vm0, %v15862_v32, 0.0  ;;  %v4329_v13 = vrot.slane %v2965_v27, %v13162_v16  ;;  %v4309_v39 = vrot.slane %v2953_v40, %v13198_v34  ;;  %v15863_v36 = vld [vmem:[#allocation154_spill] sm:$0xff]  ;;  %v15864_v40 = vld [vmem:[#allocation131_spill] sm:$0xff] }
 0x540   :  { %v13267_v26 = vpop.xlane.xlu1 %2934  ;;  %v3113_v21 = vsel %vm15294_vm0, %v15863_v36, 0.0  ;;  %v4338_v32 = vrot.slane %v2971_v12, %v13175_v20 }
 0x541   :  { %v4334_v47 = vsel %vm15282_vm1, %v4333_v14, %v4329_v13  ;;  %v4310_v36 = vsel %vm15284_vm4, %v4309_v39, %v4305_v55  ;;  %v2262_v13 = vsel %vm15294_vm0, %v15866_v42, 0.0 }
 0x542   :  { %2197 = vadd.xlane.f32.xlu0 %v2196_v24  ;;  %v2241_v24 = vsel %vm15294_vm0, %v15864_v40, 0.0  ;;  %v4339_v44 = vsel %vm15281_vm2, %v4338_v32, %v4334_v47  ;;  %v3013_v32 = vpop.xlane.xlu0 %3012 }
 0x543   :  { %3114 = vadd.xlane.f32.xlu1 %v3113_v21  ;;  %v4344_v39 = vsel %vm4218_vm3, %v4343_v30, %v4339_v44  ;;  %v15867_v21 = vld [vmem:[#allocation97_spill] sm:$0xff]  ;;  %v4407_v44 = vrot.slane %v3013_v32, %v13162_v16 }
 0x544   :  { %v2956_v41 = vpop.xlane.xlu1 %2955  ;;  %v2220_v62 = vsel %vm15294_vm0, %v15867_v21, 0.0  ;;  %v15871_v21 = vld [vmem:[#allocation137_spill] sm:$0xff] }
 0x545   :  { %v4314_v27 = vrot.slane %v2956_v41, %v13207_v9 }
 0x546   :  { %2242 = vadd.xlane.f32.xlu0 %v2241_v24  ;;  %v4411_v24 = vrot.slane %v13245_v19, %v13165_v33  ;;  %v15870_v19 = vld [vmem:[#allocation74_spill] sm:$0xff] }
 0x547   :  { %v13292_v14 = vsel %vm4232_vm5, %v4314_v27, %v4310_v36  ;;  %3135 = vadd.xlane.f32.xlu1 %v3134_v6  ;;  %v15868_v27 = vld [vmem:[#allocation159_spill] sm:$0xff]  ;;  %v15869_v36 = vld [vmem:[#allocation78_spill] sm:$0xff] }
 0x548   :  { %v2977_v12 = vpop.xlane.xlu1 %2976  ;;  %v3116_v40 = vsel %vm15294_vm0, %v15868_v27, 0.0  ;;  %v2259_v31 = vsel %vm15294_vm0, %v15869_v36, 0.0  ;;  %v4412_v42 = vsel %vm15282_vm1, %v4411_v24, %v4407_v44  ;;  %v15873_v27 = vld [vmem:[#allocation127_spill] sm:$0xff]  ;;  %v4241_v24 = vadd.s32 4294967176, %v13148_v5 }
 0x549   :  { %v4348_v41 = vrot.slane %v2977_v12, %v13198_v34  ;;  %v3158_v36 = vsel %vm15294_vm0, %v12760_v59, 0.0 }
 0x54a   :  { %2263 = vadd.xlane.f32.xlu0 %v2262_v13  ;;  %v3092_v13 = vsel %vm15294_vm0, %v15870_v19, 0.0  ;;  %v13351_v59 = vsub.s32 %v4241_v24, %v15843_v10 }
 0x54b   :  { %v13302_v47 = vsel %vm15284_vm4, %v4348_v41, %v4344_v39  ;;  %2221 = vadd.xlane.f32.xlu1 %v2220_v62  ;;  %v3155_v41 = vsel %vm15294_vm0, %v12733_v46, 0.0  ;;  %v2199_v62 = vsel %vm15294_vm0, %v15871_v21, 0.0  ;;  %v3409_v46 = vadd.s32 4294967288, %v13148_v5 }
 0x54c   :  { %v2998_v55 = vpop.xlane.xlu1 %2997  ;;  %v4260_v21 = vrot.slane %v13134_v38, %v13175_v20 }
 0x54d   :  { %v4382_v60 = vrot.slane %v2998_v55, %v13185_v48  ;;  %v15872_v55 = vld [vmem:[#allocation164_spill] sm:$0xff]  ;;  %v13342_v44 = vsub.s32 %v3409_v46, %v15843_v10 }
 0x54e   :  { %3117 = vadd.xlane.f32.xlu0 %v3116_v40  ;;  %v3137_v32 = vsel %vm15294_vm0, %v15872_v55, 0.0  ;;  %v2244_v40 = vsel %vm15294_vm0, %v15873_v27, 0.0 }
 0x54f   :  { %v13313_v6 = vsel %vm4218_vm3, %v4382_v60, %v13238_v2  ;;  %2260 = vadd.xlane.f32.xlu1 %v2259_v31  ;;  %v13339_v31 = vsub.s32 %v13148_v5, %v15843_v10 }
 0x550   :  { %v3019_v30 = vpop.xlane.xlu1 %3018 }
 0x551   :  { %v4416_v12 = vrot.slane %v3019_v30, %v13175_v20 }
 0x552   :  { %3156 = vadd.xlane.f32.xlu0 %v3155_v41 }
 0x553   :  { %v13323_v39 = vsel %vm15281_vm2, %v4416_v12, %v4412_v42  ;;  %3093 = vadd.xlane.f32.xlu1 %v3092_v13  ;;  %v15874_v12 = vld [vmem:[#allocation130_spill] sm:$0xff]  ;;  %v4255_v42 = vrot.slane %v13126_v11, %v13165_v33  ;;  %v4265_v11 = vrot.slane %v13167_v56, %v13185_v48 }
 0x554   :  { %v13325_v2 = vpop.xlane.xlu1 %3039  ;;  %v2283_v41 = vsel %vm15294_vm0, %v15874_v12, 0.0  ;;  %v15877_v12 = vld [vmem:[#allocation105_spill] sm:$0xff] }
 0x556   :  { %2200 = vadd.xlane.f32.xlu0 %v2199_v62  ;;  %v15875_v62 = vld [vmem:[#allocation98_spill] sm:$0xff] }
 0x557   :  { %3138 = vadd.xlane.f32.xlu1 %v3137_v32  ;;  %v2223_v55 = vsel %vm15294_vm0, %v15875_v62, 0.0  ;;  %v4251_v32 = vrot.slane %v13121_v63, %v13162_v16  ;;  %v15876_v63 = vld [vmem:[#allocation58_spill] sm:$0xff] }
 0x558   :  { %v2165_v60 = vpop.xlane.xlu1 %2164 }
 0x559   :  { %v3695_v19 = vrot.slane %v2165_v60, %v13339_v31  ;;  %v4270_v60 = vrot.slane %v13201_v18, %v13198_v34  ;;  %v4256_v38 = vsel %vm15282_vm1, %v4255_v42, %v4251_v32  ;;  %v2265_v18 = vsel %vm15294_vm0, %v15877_v12, 0.0  ;;  %v13378_v42 = vpop.permute.xlu0 %2761 }
 0x55a   :  { %2245 = vadd.xlane.f32.xlu0 %v2244_v40  ;;  %v4275_v40 = vrot.slane %v13235_v8, %v13207_v9  ;;  %v4261_v56 = vsel %vm15281_vm2, %v4260_v21, %v4256_v38  ;;  %15878 = vst [vmem:[#allocation65_spill] sm:$0xff] %v13378_v42 }
 0x55b   :  { %3159 = vadd.xlane.f32.xlu1 %v3158_v36  ;;  %v3095_v36 = vsel %vm15294_vm0, %v15876_v63, 0.0 }
 0x55c   :  { %v2168_v30 = vpop.xlane.xlu1 %2167 }
 0x55d   :  { %v3699_v13 = vrot.slane %v2168_v30, %v13342_v44  ;;  %v4280_v30 = vrot.slane %v13267_v26, %v13250_v35  ;;  %v15879_v26 = vld [vmem:[#allocation161_spill] sm:$0xff] }
 0x55e   :  { %2284 = vadd.xlane.f32.xlu0 %v2283_v41  ;;  %v4266_v41 = vsel %vm4218_vm3, %v4265_v11, %v4261_v56  ;;  %v15880_v11 = vld [vmem:[#allocation102_spill] sm:$0xff]  ;;  %v15881_v56 = vld [vmem:[#allocation163_spill] sm:$0xff] }
 0x55f   :  { %v13362_v46 = vsel %vm3414_vm7, %v3699_v13, %v3695_v19  ;;  %2224 = vadd.xlane.f32.xlu1 %v2223_v55  ;;  %v4271_v19 = vsel %vm15284_vm4, %v4270_v60, %v4266_v41  ;;  %v3140_v55 = vsel %vm15294_vm0, %v15879_v26, 0.0  ;;  %v4450_v60 = vrot.slane %v13325_v2, %v13165_v33 }
 0x560   :  { %v2914_v27 = vpop.xlane.xlu1 %2913  ;;  %v4276_v21 = vsel %vm4232_vm5, %v4275_v40, %v4271_v19 }
 0x561   :  { %v4245_v24 = vrot.slane %v2914_v27, %v13351_v59  ;;  %v4281_v32 = vsel %vm4239_vm6, %v4280_v30, %v4276_v21  ;;  %v2286_v27 = vsel %vm15294_vm0, %v15880_v11, 0.0  ;;  %v3179_v30 = vsel %vm15294_vm0, %v15881_v56, 0.0 }
 0x562   :  { %3096 = vadd.xlane.f32.xlu0 %v3095_v36 }
 0x563   :  { %v4247_v8 = vsel %vm4246_vm8, %v4245_v24, %v13262_v15  ;;  %2266 = vadd.xlane.f32.xlu1 %v2265_v18  ;;  %v15882_v18 = vld [vmem:[#allocation166_spill] sm:$0xff] }
 0x564   :  { %v2938_v13 = vpop.xlane.xlu1 %2937  ;;  %v3119_v41 = vsel %vm15294_vm0, %v15882_v18, 0.0 }
 0x565   :  { %v4285_v62 = vrot.slane %v2938_v13, %v13351_v59 }
 0x566   :  { %3141 = vadd.xlane.f32.xlu0 %v3140_v55  ;;  %v3416_v55 = vadd.s32 4294967280, %v13148_v5 }
 0x567   :  { %v4286_v15 = vsel %vm4246_vm8, %v4285_v62, %v4281_v32  ;;  %2287 = vadd.xlane.f32.xlu1 %v2286_v27  ;;  %v3037_v38 = vpop.xlane.xlu0 %3036  ;;  %v15883_v62 = vld [vmem:[#allocation56_spill] sm:$0xff] }
 0x568   :  { %v13394_v40 = vsel %vm15283_vm9, %v4286_v15, %v4247_v8  ;;  %v4446_v24 = vrot.slane %v3037_v38, %v13162_v16  ;;  %v2959_v63 = vpop.xlane.xlu1 %2958  ;;  %v2202_v26 = vsel %vm15294_vm0, %v15883_v62, 0.0 }
 0x569   :  { %v4319_v36 = vrot.slane %v2959_v63, %v13250_v35  ;;  %v13422_v63 = vsub.s32 %v3416_v55, %v15843_v10 }
 0x56a   :  { %v4451_v12 = vsel %vm15282_vm1, %v4450_v60, %v4446_v24  ;;  %3180 = vadd.xlane.f32.xlu0 %v3179_v30  ;;  %v15884_v60 = vld [vmem:[#allocation132_spill] sm:$0xff] }
 0x56b   :  { %v13405_v2 = vsel %vm4239_vm6, %v4319_v36, %v13292_v14  ;;  %3120 = vadd.xlane.f32.xlu1 %v3119_v41  ;;  %v3022_v8 = vpop.xlane.xlu0 %3021  ;;  %v3161_v14 = vsel %vm15294_vm0, %v12768_v1, 0.0  ;;  %v2247_v24 = vsel %vm15294_vm0, %v15884_v60, 0.0  ;;  %v15886_v41 = vld [vmem:[#allocation95_spill] sm:$0xff]  ;;  %v15888_v60 = vld [vmem:[#allocation104_spill] sm:$0xff] }
 0x56c   :  { %v4421_v19 = vrot.slane %v3022_v8, %v13185_v48  ;;  %v2980_v13 = vpop.xlane.xlu1 %2979  ;;  %v2289_v8 = vsel %vm15294_vm0, %v15886_v41, 0.0  ;;  %v15890_v41 = vld [vmem:[#allocation73_spill] sm:$0xff] }
 0x56d   :  { %v4353_v21 = vrot.slane %v2980_v13, %v13207_v9  ;;  %v15887_v13 = vld [vmem:[#allocation144_spill] sm:$0xff] }
 0x56e   :  { %v4422_v32 = vsel %vm4218_vm3, %v4421_v19, %v13323_v39  ;;  %2203 = vadd.xlane.f32.xlu0 %v2202_v26  ;;  %v15885_v39 = vld [vmem:[#allocation168_spill] sm:$0xff]  ;;  %v3430_v26 = vadd.s32 4294967264, %v13148_v5 }
 0x56f   :  { %v4354_v11 = vsel %vm4232_vm5, %v4353_v21, %v13302_v47  ;;  %3162 = vadd.xlane.f32.xlu1 %v3161_v14  ;;  %v3061_v27 = vpop.xlane.xlu0 %3060  ;;  %v3182_v36 = vsel %vm15294_vm0, %v15885_v39, 0.0 }
 0x570   :  { %v3001_v15 = vpop.xlane.xlu1 %3000 }
 0x571   :  { %v4387_v38 = vrot.slane %v3001_v15, %v13198_v34  ;;  %v3444_v15 = vadd.s32 4294967248, %v13148_v5 }
 0x572   :  { %2248 = vadd.xlane.f32.xlu0 %v2247_v24  ;;  %v2310_v24 = vsel %vm15294_vm0, %v15888_v60, 0.0 }
 0x573   :  { %v13428_v1 = vsel %vm15284_vm4, %v4387_v38, %v13313_v6  ;;  %3183 = vadd.xlane.f32.xlu1 %v3182_v36  ;;  %v2171_v47 = vpop.xlane.xlu0 %2170  ;;  %v2226_v6 = vsel %vm15294_vm0, %v15887_v13, 0.0  ;;  %v4485_v38 = vrot.slane %v3061_v27, %v13162_v16  ;;  %v15891_v13 = vld [vmem:[#allocation146_spill] sm:$0xff] }
 0x574   :  { %v3704_v56 = vrot.slane %v2171_v47, %v13422_v63  ;;  %v3043_v30 = vpop.xlane.xlu1 %3042 }
 0x575   :  { %v4455_v18 = vrot.slane %v3043_v30, %v13175_v20  ;;  %v13455_v30 = vsub.s32 %v3430_v26, %v15843_v10  ;;  %v15892_v26 = vld [vmem:[#allocation169_spill] sm:$0xff] }
 0x576   :  { %v13436_v19 = vsel %vm3421_vm10, %v3704_v56, %v13362_v46  ;;  %2290 = vadd.xlane.f32.xlu0 %v2289_v8  ;;  %v13460_v8 = vsel %vm15294_vm0, %v15890_v41, 0.0 }
 0x577   :  { %v13441_v21 = vsel %vm15281_vm2, %v4455_v18, %v4451_v12  ;;  %2227 = vadd.xlane.f32.xlu1 %v2226_v6  ;;  %v2983_v62 = vpop.xlane.xlu0 %2982  ;;  %v15889_v12 = vld [vmem:[#allocation112_spill] sm:$0xff]  ;;  %v13467_v6 = vsub.s32 %v3444_v15, %v15843_v10  ;;  %v15895_v15 = vld [vmem:[#allocation99_spill] sm:$0xff] }
 0x578   :  { %v4358_v55 = vrot.slane %v2983_v62, %v13250_v35  ;;  %v3064_v14 = vpop.xlane.xlu1 %3063  ;;  %v2268_v36 = vsel %vm15294_vm0, %v15889_v12, 0.0  ;;  %v3423_v62 = vadd.s32 4294967272, %v13148_v5 }
 0x579   :  { %v4489_v46 = vrot.slane %v3064_v14, %v13165_v33  ;;  %v3122_v14 = vsel %vm15294_vm0, %v15892_v26, 0.0 }
 0x57a   :  { %v4359_v39 = vsel %vm4239_vm6, %v4358_v55, %v4354_v11  ;;  %2311 = vadd.xlane.f32.xlu0 %v2310_v24  ;;  %v13464_v11 = vsel %vm15294_vm0, %v15891_v13, 0.0  ;;  %v15894_v24 = vld [vmem:[#allocation148_spill] sm:$0xff] }
 0x57b   :  { %v4490_v47 = vsel %vm15282_vm1, %v4489_v46, %v4485_v38  ;;  %2269 = vadd.xlane.f32.xlu1 %v2268_v36  ;;  %v3025_v56 = vpop.xlane.xlu0 %3024  ;;  %v15893_v46 = vld [vmem:[#allocation120_spill] sm:$0xff]  ;;  %v13480_v12 = vsel %vm15294_vm0, %v15894_v24, 0.0  ;;  %v13484_v36 = vsel %vm15294_vm0, %v15895_v15, 0.0  ;;  %v15898_v15 = vld [vmem:[#allocation114_spill] sm:$0xff]  ;;  %vm3456_vm1 = vcmask 523712  }
 0x57c   :  { %v4426_v27 = vrot.slane %v3025_v56, %v13198_v34  ;;  %v2962_v18 = vpop.xlane.xlu1 %2961  ;;  %v2307_v60 = vsel %vm15294_vm0, %v15893_v46, 0.0  ;;  %v3437_v56 = vadd.s32 4294967256, %v13148_v5  ;;  %v15897_v46 = vld [vmem:[#allocation122_spill] sm:$0xff]  ;;  %v13502_v42 = vsel %vm15294_vm0, %v15898_v15, 0.0  ;;  %v15901_v15 = vld [vmem:[#allocation139_spill] sm:$0xff] }
 0x57d   :  { %v4324_v55 = vrot.slane %v2962_v18, %v13351_v59  ;;  %v13498_v24 = vsel %vm15294_vm0, %v15897_v46, 0.0 }
 0x57e   :  { %v13474_v38 = vsel %vm15284_vm4, %v4426_v27, %v4422_v32  ;;  %3123 = vadd.xlane.f32.xlu0 %v3122_v14  ;;  %v15896_v27 = vld [vmem:[#allocation111_spill] sm:$0xff] }
 0x57f   :  { %v4325_v18 = vsel %vm4246_vm8, %v4324_v55, %v13405_v2  ;;  %2308 = vadd.xlane.f32.xlu1 %v2307_v60  ;;  %v3067_v32 = vpop.xlane.xlu0 %3066  ;;  %v13491_v41 = vsel %vm15294_vm0, %v15896_v27, 0.0  ;;  %v13505_v2 = vsub.s32 %v3423_v62, %v15843_v10  ;;  %v3164_v60 = vsel %vm15294_vm0, %v12777_v49, 0.0  ;;  %v15900_v27 = vld [vmem:[#allocation54_spill] sm:$0xff] }
 0x580   :  { %v4834_v13 = vsel %vm15291_vm11, %v4325_v18, %v13394_v40  ;;  %v4494_v26 = vrot.slane %v3067_v32, %v13175_v20  ;;  %v3004_v14 = vpop.xlane.xlu1 %3003  ;;  %v15899_v40 = vld [vmem:[#allocation107_spill] sm:$0xff]  ;;  %v3098_v46 = vsel %vm15294_vm0, %v15900_v27, 0.0  ;;  %v13521_v62 = vsel %vm15294_vm0, %v15901_v15, 0.0  ;;  %v15904_v27 = vld [vmem:[#allocation53_spill] sm:$0xff] }
 0x581   :  { %v4392_v55 = vrot.slane %v3004_v14, %v13207_v9  ;;  %v13512_v18 = vsel %vm15294_vm0, %v15899_v40, 0.0  ;;  %15902 = vst [vmem:[#allocation178_spill] sm:$0xff] %v13521_v62  ;;  %v13524_v14 = vsub.s32 %v3437_v56, %v15843_v10  ;;  %v3451_v49 = vadd.s32 4294967240, %v13148_v5  ;;  %v15905_v15 = vld [vmem:[#allocation175_spill] sm:$0xff]  ;;  %v15906_v5 = vld [vmem:[#allocation153_spill] sm:$0xff] }
 0x582   :  { %v13515_v32 = vsel %vm15281_vm2, %v4494_v26, %v4490_v47  ;;  %3165 = vadd.xlane.f32.xlu0 %v3164_v60  ;;  %v15903_v26 = vld [vmem:[#allocation61_spill] sm:$0xff]  ;;  %v3413_v20 = vrot.slane %v15904_v27, %v13342_v44  ;;  %v3465_v33 = vrot.slane %v15905_v15, %v13342_v44  ;;  %v3420_v62 = vrot.slane %v15906_v5, %v13422_v63 }
 0x583   :  { %v13529_v40 = vsel %vm4232_vm5, %v4392_v55, %v13428_v1  ;;  %3099 = vadd.xlane.f32.xlu1 %v3098_v46  ;;  %v2986_v47 = vpop.xlane.xlu0 %2985  ;;  %v3408_v60 = vrot.slane %v15903_v26, %v13339_v31  ;;  %v15907_v1 = vld [vmem:[#allocation155_spill] sm:$0xff]  ;;  %v3203_v26 = vsel %vm15294_vm0, %v12785_v28, 0.0  ;;  %v15908_v27 = vld [vmem:[#allocation81_spill] sm:$0xff]  ;;  %vm3449_vm2 = vcmask 458112  }
 0x584   :  { %v4363_v56 = vrot.slane %v2986_v47, %v13351_v59  ;;  %v3046_v16 = vpop.xlane.xlu1 %3045  ;;  %v3427_v55 = vrot.slane %v15907_v1, %v13505_v2  ;;  %v3461_v53 = vrot.slane %v15908_v27, %v13339_v31  ;;  %v15909_v47 = vld [vmem:[#allocation165_spill] sm:$0xff]  ;;  %v13551_v5 = vsub.s32 %v3451_v49, %v15843_v10 }
 0x585   :  { %v4460_v46 = vrot.slane %v3046_v16, %v13185_v48  ;;  %v3143_v17 = vsel %vm15294_vm0, %v15909_v47, 0.0  ;;  %v3415_v27 = vsel %vm3414_vm7, %v3413_v20, %v3408_v60  ;;  %v15914_v20 = vld [vmem:[#allocation75_spill] sm:$0xff] }
 0x586   :  { %v4364_v15 = vsel %vm4246_vm8, %v4363_v56, %v4359_v39  ;;  %3204 = vadd.xlane.f32.xlu0 %v3203_v26  ;;  %15910 = vst [vmem:[#allocation80_spill] sm:$0xff] %v13551_v5  ;;  %v3466_v39 = vsel %vm3414_vm7, %v3465_v33, %v3461_v53  ;;  %v15911_v56 = vld [vmem:[#allocation177_spill] sm:$0xff]  ;;  %v3422_v49 = vsel %vm3421_vm10, %v3420_v62, %v3415_v27 }
 0x587   :  { %v13554_v1 = vsel %vm15286_vm15, %v4364_v15, %v4834_v13  ;;  %v4461_v28 = vsel %vm4218_vm3, %v4460_v46, %v13441_v21  ;;  %3144 = vadd.xlane.f32.xlu1 %v3143_v17  ;;  %v3028_v16 = vpop.xlane.xlu0 %3027  ;;  %v3475_v26 = vrot.slane %v15911_v56, %v13505_v2  ;;  %v15912_v13 = vld [vmem:[#allocation126_spill] sm:$0xff]  ;;  %v15913_v21 = vld [vmem:[#allocation183_spill] sm:$0xff]  ;;  %v3434_v60 = vrot.slane %v15914_v20, %v13455_v30  ;;  %v15916_v27 = vld [vmem:[#allocation157_spill] sm:$0xff] }
 0x588   :  { %v4431_v47 = vrot.slane %v3028_v16, %v13207_v9  ;;  %v2174_v10 = vpop.xlane.xlu1 %2173  ;;  %v3470_v15 = vrot.slane %v15912_v13, %v13422_v63  ;;  %v3504_v17 = vrot.slane %v15913_v21, %v13342_v44  ;;  %v3429_v53 = vsel %vm3428_vm12, %v3427_v55, %v3422_v49  ;;  %v15915_v16 = vld [vmem:[#allocation167_spill] sm:$0xff]  ;;  %v15919_v49 = vld [vmem:[#allocation180_spill] sm:$0xff] }
 0x589   :  { %v3709_v46 = vrot.slane %v2174_v10, %v13505_v2  ;;  %v3185_v62 = vsel %vm15294_vm0, %v15915_v16, 0.0  ;;  %v3441_v56 = vrot.slane %v15916_v27, %v13524_v14  ;;  %v15917_v13 = vld [vmem:[#allocation83_spill] sm:$0xff]  ;;  %v3485_v16 = vrot.slane %v15919_v49, %v13524_v14 }
 0x58a   :  { %v4432_v33 = vsel %vm4232_vm5, %v4431_v47, %v13474_v38  ;;  %2206 = vadd.xlane.f32.xlu0 %v13460_v8  ;;  %v3500_v21 = vrot.slane %v15917_v13, %v13339_v31  ;;  %v3471_v10 = vsel %vm3421_vm10, %v3470_v15, %v3466_v39  ;;  %v15918_v38 = vld [vmem:[#allocation59_spill] sm:$0xff]  ;;  %v15920_v13 = vld [vmem:[#allocation89_spill] sm:$0xff] }
 0x58b   :  { %v3710_v20 = vsel %vm3428_vm12, %v3709_v46, %v13436_v19  ;;  %3186 = vadd.xlane.f32.xlu1 %v3185_v62  ;;  %v3070_v55 = vpop.xlane.xlu0 %3069  ;;  %v3448_v47 = vrot.slane %v15918_v38, %v13467_v6  ;;  %v3476_v8 = vsel %vm3428_vm12, %v3475_v26, %v3471_v10  ;;  %v3480_v58 = vrot.slane %v15920_v13, %v13455_v30  ;;  %v15921_v26 = vld [vmem:[#allocation86_spill] sm:$0xff] }
 0x58c   :  { %v4499_v27 = vrot.slane %v3070_v55, %v13185_v48  ;;  %v3007_v51 = vpop.xlane.xlu1 %3006  ;;  %v3505_v39 = vsel %vm3414_vm7, %v3504_v17, %v3500_v21  ;;  %v3514_v19 = vrot.slane %v12725_v45, %v13505_v2  ;;  %v3436_v46 = vsel %vm15285_vm13, %v3434_v60, %v3429_v53  ;;  %v15922_v21 = vld [vmem:[#allocation158_spill] sm:$0xff] }
 0x58d   :  { %v4397_v15 = vrot.slane %v3007_v51, %v13250_v35  ;;  %v3509_v62 = vrot.slane %v15921_v26, %v13422_v63  ;;  %v3206_v55 = vsel %vm15294_vm0, %v12738_v57, 0.0  ;;  %v3443_v17 = vsel %vm3442_vm14, %v3441_v56, %v3436_v46  ;;  %v15926_v46 = vld [vmem:[#allocation94_spill] sm:$0xff] }
 0x58e   :  { %v4500_v10 = vsel %vm4218_vm3, %v4499_v27, %v13515_v32  ;;  %2251 = vadd.xlane.f32.xlu0 %v13464_v11  ;;  %v3455_v45 = vrot.slane %v15922_v21, %v13551_v5  ;;  %v3481_v51 = vsel %vm15285_vm13, %v3480_v58, %v3476_v8  ;;  %v15923_v32 = vld [vmem:[#allocation181_spill] sm:$0xff]  ;;  %v3519_v26 = vrot.slane %v15926_v46, %v13455_v30 }
 0x58f   :  { %v4398_v60 = vsel %vm4239_vm6, %v4397_v15, %v13529_v40  ;;  %3207 = vadd.xlane.f32.xlu1 %v3206_v55  ;;  %v2177_v53 = vpop.xlane.xlu0 %2176  ;;  %v3486_v38 = vsel %vm3442_vm14, %v3485_v16, %v3481_v51  ;;  %v3495_v11 = vrot.slane %v15923_v32, %v13551_v5  ;;  %v3510_v49 = vsel %vm3421_vm10, %v3509_v62, %v3505_v39  ;;  %v15924_v27 = vld [vmem:[#allocation69_spill] sm:$0xff] }
 0x590   :  { %v3714_v57 = vrot.slane %v2177_v53, %v13455_v30  ;;  %v3049_v56 = vpop.xlane.xlu1 %3048  ;;  %v3490_v13 = vrot.slane %v15924_v27, %v13467_v6  ;;  %v3515_v58 = vsel %vm3428_vm12, %v3514_v19, %v3510_v49  ;;  %v15925_v8 = vld [vmem:[#allocation185_spill] sm:$0xff]  ;;  %v3450_v16 = vsel %vm3449_vm2, %v3448_v47, %v3443_v17  ;;  %v15928_v47 = vld [vmem:[#allocation62_spill] sm:$0xff]  ;;  %v15931_v27 = vld [vmem:[#allocation171_spill] sm:$0xff] }
 0x591   :  { %v3524_v40 = vrot.slane %v15925_v8, %v13524_v14  ;;  %v4465_v15 = vrot.slane %v3049_v56, %v13198_v34  ;;  %v15927_v62 = vld [vmem:[#allocation141_spill] sm:$0xff]  ;;  %v3457_v21 = vsel %vm3456_vm1, %v3455_v45, %v3450_v16  ;;  %v13634_v17 = vsel %vm15294_vm0, %v15928_v47, 0.0  ;;  %v15929_v45 = vld [vmem:[#allocation170_spill] sm:$0xff]  ;;  %v15933_v8 = vld [vmem:[#allocation179_spill] sm:$0xff] }
 0x592   :  { %v3715_v39 = vsel %vm15285_vm13, %v3714_v57, %v3710_v20  ;;  %2293 = vadd.xlane.f32.xlu0 %v13480_v12  ;;  %v3101_v55 = vsel %vm15294_vm0, %v15927_v62, 0.0  ;;  %v3491_v19 = vsel %vm3449_vm2, %v3490_v13, %v3486_v38  ;;  %v3520_v12 = vsel %vm15285_vm13, %v3519_v26, %v3515_v58  ;;  %v15932_v13 = vld [vmem:[#allocation176_spill] sm:$0xff] }
 0x593   :  { %v4466_v51 = vsel %vm15284_vm4, %v4465_v15, %v4461_v28  ;;  %2230 = vadd.xlane.f32.xlu1 %v13484_v36  ;;  %v3031_v53 = vpop.xlane.xlu0 %3030  ;;  %v3496_v20 = vsel %vm3456_vm1, %v3495_v11, %v3491_v19  ;;  %v3146_v38 = vsel %vm15294_vm0, %v15929_v45, 0.0  ;;  %v15930_v28 = vld [vmem:[#allocation174_spill] sm:$0xff]  ;;  %v3525_v36 = vsel %vm3442_vm14, %v3524_v40, %v3520_v12  ;;  %v15935_v62 = vld [vmem:[#allocation184_spill] sm:$0xff] }
 0x594   :  { %v4436_v32 = vrot.slane %v3031_v53, %v13250_v35  ;;  %v13639_v49 = vpop.xlane.xlu1 %2155  ;;  %v3529_v57 = vrot.slane %v15930_v28, %v13467_v6  ;;  %v3582_v56 = vrot.slane %v12740_v25, %v13342_v44  ;;  %v13650_v11 = vsel %vm15294_vm0, %v15931_v27, 0.0  ;;  %v15934_v25 = vld [vmem:[#allocation182_spill] sm:$0xff] }
 0x595   :  { %v3578_v58 = vrot.slane %v15932_v13, %v13339_v31  ;;  %v3587_v15 = vrot.slane %v15933_v8, %v13422_v63  ;;  %v3660_v16 = vrot.slane %v13058_v50, %v13342_v44  ;;  %v3597_v40 = vrot.slane %v15934_v25, %v13455_v30 }
 0x596   :  { %v13659_v46 = vsel %vm4239_vm6, %v4436_v32, %v4432_v33  ;;  %2332 = vadd.xlane.f32.xlu0 %v13498_v24  ;;  %v13665_v26 = vsel %vm15283_vm9, %v3496_v20, %v3457_v21  ;;  %v3607_v19 = vrot.slane %v15935_v62, %v13467_v6  ;;  %v3543_v53 = vrot.slane %v13004_v52, %v13342_v44  ;;  %v15936_v21 = vld [vmem:[#allocation188_spill] sm:$0xff]  ;;  %v15937_v32 = vld [vmem:[#allocation186_spill] sm:$0xff] }
 0x597   :  { %2272 = vadd.xlane.f32.xlu1 %v13491_v41  ;;  %v3073_v50 = vpop.xlane.xlu0 %3072  ;;  %v13673_v33 = vsel %vm3449_vm2, %v3529_v57, %v3525_v36  ;;  %v3656_v24 = vrot.slane %v13044_v29, %v13339_v31  ;;  %v13680_v20 = vsel %vm15294_vm0, %v15936_v21, 0.0  ;;  %v3534_v45 = vrot.slane %v15937_v32, %v13551_v5 }
 0x598   :  { %v4504_v47 = vrot.slane %v3073_v50, %v13198_v34  ;;  %v3010_v12 = vpop.xlane.xlu1 %3009  ;;  %v3583_v52 = vsel %vm3414_vm7, %v3582_v56, %v3578_v58  ;;  %v3539_v41 = vrot.slane %v12969_v3, %v13339_v31  ;;  %vm4049_vm9 = vcmask 1044484  }
 0x599   :  { %v4402_v28 = vrot.slane %v3010_v12, %v13351_v59  ;;  %v3661_v29 = vsel %vm3414_vm7, %v3660_v16, %v3656_v24  ;;  %v3670_v57 = vrot.slane %v13064_v22, %v13505_v2  ;;  %v3553_v56 = vrot.slane %v13011_v4, %v13505_v2  ;;  %v15938_v16 = vld [vmem:[#allocation187_spill] sm:$0xff] }
 0x59a   :  { %v13692_v36 = vsel %vm15284_vm4, %v4504_v47, %v4500_v10  ;;  %3102 = vadd.xlane.f32.xlu0 %v3101_v55  ;;  %v3544_v27 = vsel %vm3414_vm7, %v3543_v53, %v3539_v41  ;;  %v3665_v3 = vrot.slane %v13054_v54, %v13422_v63  ;;  %v3548_v22 = vrot.slane %v12979_v37, %v13422_v63 }
 0x59b   :  { %v4403_v13 = vsel %vm4246_vm8, %v4402_v28, %v4398_v60  ;;  %2314 = vadd.xlane.f32.xlu1 %v13502_v42  ;;  %v2180_v58 = vpop.xlane.xlu0 %2179  ;;  %v3621_v10 = vrot.slane %v13029_v61, %v13342_v44  ;;  %v3592_v54 = vrot.slane %v15938_v16, %v13505_v2  ;;  %v3617_v60 = vrot.slane %v13007_v43, %v13339_v31 }
 0x59c   :  { %v4836_v55 = vsel %vm4049_vm9, %v4403_v13, %v13554_v1  ;;  %v3719_v8 = vrot.slane %v2180_v58, %v13524_v14  ;;  %v3052_v4 = vpop.xlane.xlu1 %3051  ;;  %v3666_v42 = vsel %vm3421_vm10, %v3665_v3, %v3661_v29  ;;  %v3549_v37 = vsel %vm3421_vm10, %v3548_v22, %v3544_v27 }
 0x59d   :  { %v4470_v53 = vrot.slane %v3052_v4, %v13207_v9  ;;  %v3671_v61 = vsel %vm3428_vm12, %v3670_v57, %v3666_v42  ;;  %v3680_v1 = vrot.slane %v13639_v49, %v13524_v14  ;;  %v3554_v24 = vsel %vm3428_vm12, %v3553_v56, %v3549_v37 }
 0x59e   :  { %v13719_v50 = vsel %vm3442_vm14, %v3719_v8, %v3715_v39  ;;  %3147 = vadd.xlane.f32.xlu0 %v3146_v38  ;;  %v3563_v43 = vrot.slane %v13016_v0, %v13524_v14  ;;  %v3675_v47 = vrot.slane %v13060_v7, %v13455_v30  ;;  %v3558_v49 = vrot.slane %v12989_v23, %v13455_v30  ;;  %v15939_v38 = vld [vmem:[#allocation210_spill] sm:$0xff]  ;;  %v15940_v7 = vld [vmem:[#allocation207_spill] sm:$0xff] }
 0x59f   :  { %v4471_v12 = vsel %vm4232_vm5, %v4470_v53, %v4466_v51  ;;  %2335 = vadd.xlane.f32.xlu1 %v13512_v18  ;;  %v3055_v21 = vpop.xlane.xlu0 %3054  ;;  %v3622_v39 = vsel %vm3414_vm7, %v3621_v10, %v3617_v60  ;;  %v3631_v41 = vrot.slane %v15939_v38, %v13505_v2  ;;  %v3588_v0 = vsel %vm3421_vm10, %v3587_v15, %v3583_v52  ;;  %v15941_v15 = vld [vmem:[#allocation208_spill] sm:$0xff]  ;;  %v15942_v8 = vld [vmem:[#allocation206_spill] sm:$0xff]  ;;  %v15944_v53 = vld [vmem:[#allocation189_spill] sm:$0xff] }
 0x5a0   :  { %v4475_v28 = vrot.slane %v3055_v21, %v13250_v35  ;;  %v2159_v29 = vpop.xlane.xlu1 %2158  ;;  %v3626_v57 = vrot.slane %v15940_v7, %v13422_v63  ;;  %v3676_v51 = vsel %vm15285_vm13, %v3675_v47, %v3671_v61  ;;  %v3593_v27 = vsel %vm3428_vm12, %v3592_v54, %v3588_v0  ;;  %v15943_v54 = vld [vmem:[#allocation212_spill] sm:$0xff]  ;;  %v15945_v61 = vld [vmem:[#allocation209_spill] sm:$0xff]  ;;  %v15948_v7 = vld [vmem:[#allocation191_spill] sm:$0xff] }
 0x5a1   :  { %v3685_v18 = vrot.slane %v2159_v29, %v13467_v6  ;;  %v3559_v23 = vsel %vm15285_vm13, %v3558_v49, %v3554_v24  ;;  %v3681_v56 = vsel %vm3442_vm14, %v3680_v1, %v3676_v51  ;;  %v3573_v52 = vrot.slane %v15941_v15, %v13551_v5  ;;  %v15946_v24 = vld [vmem:[#allocation88_spill] sm:$0xff] }
 0x5a2   :  { %v4476_v3 = vsel %vm4239_vm6, %v4475_v28, %v4471_v12  ;;  %3189 = vadd.xlane.f32.xlu0 %v13650_v11  ;;  %v3564_v13 = vsel %vm3442_vm14, %v3563_v43, %v3559_v23  ;;  %v3627_v58 = vsel %vm3421_vm10, %v3626_v57, %v3622_v39  ;;  %v3568_v4 = vrot.slane %v15942_v8, %v13467_v6  ;;  %v15951_v23 = vld [vmem:[#allocation190_spill] sm:$0xff] }
 0x5a3   :  { %v3686_v22 = vsel %vm3449_vm2, %v3685_v18, %v3681_v56  ;;  %3126 = vadd.xlane.f32.xlu1 %v13634_v17  ;;  %v2162_v10 = vpop.xlane.xlu0 %2161  ;;  %v3632_v16 = vsel %vm3428_vm12, %v3631_v41, %v3627_v58  ;;  %v3641_v11 = vrot.slane %v15943_v54, %v13524_v14  ;;  %v3602_v37 = vrot.slane %v15944_v53, %v13524_v14  ;;  %v15952_v54 = vld [vmem:[#allocation149_spill] sm:$0xff] }
 0x5a4   :  { %v3690_v60 = vrot.slane %v2162_v10, %v13551_v5  ;;  %v3034_v42 = vpop.xlane.xlu1 %3033  ;;  %v3636_v1 = vrot.slane %v15945_v61, %v13455_v30  ;;  %v3227_v43 = vsel %vm15294_vm0, %v15946_v24, 0.0  ;;  %v3535_v47 = vsel %vm3456_vm1, %v3534_v45, %v13673_v33  ;;  %v15954_v24 = vld [vmem:[#allocation150_spill] sm:$0xff] }
 0x5a5   :  { %v4441_v17 = vrot.slane %v3034_v42, %v13351_v59  ;;  %v3598_v12 = vsel %vm15285_vm13, %v3597_v40, %v3593_v27  ;;  %v3569_v21 = vsel %vm3449_vm2, %v3568_v4, %v3564_v13  ;;  %vm4051_vm4 = vcmask 1045509   ;;  %v15947_v40 = vld [vmem:[#allocation214_spill] sm:$0xff] }
 0x5a6   :  { %v3691_v49 = vsel %vm3456_vm1, %v3690_v60, %v3686_v22  ;;  %3228 = vadd.xlane.f32.xlu0 %v3227_v43  ;;  %v3574_v39 = vsel %vm3456_vm1, %v3573_v52, %v3569_v21  ;;  %v3637_v38 = vsel %vm15285_vm13, %v3636_v1, %v3632_v16  ;;  %v3651_v45 = vrot.slane %v15947_v40, %v13551_v5  ;;  %v15953_v60 = vld [vmem:[#allocation192_spill] sm:$0xff] }
 0x5a7   :  { %v4442_v32 = vsel %vm4246_vm8, %v4441_v17, %v13659_v46  ;;  %3168 = vadd.xlane.f32.xlu1 %v13680_v20  ;;  %v3058_v33 = vpop.xlane.xlu0 %3057  ;;  %v3642_v25 = vsel %vm3442_vm14, %v3641_v11, %v3637_v38  ;;  %v3603_v0 = vsel %vm3442_vm14, %v3602_v37, %v3598_v12  ;;  %v3612_v57 = vrot.slane %v15948_v7, %v13551_v5  ;;  %v15949_v46 = vld [vmem:[#allocation211_spill] sm:$0xff]  ;;  %v15955_v12 = vld [vmem:[#allocation134_spill] sm:$0xff] }
 0x5a8   :  { %v4837_v41 = vsel %vm4051_vm4, %v4442_v32, %v4836_v55  ;;  %v4480_v28 = vrot.slane %v3058_v33, %v13351_v59  ;;  %v3076_v29 = vpop.xlane.xlu1 %3075  ;;  %v3646_v51 = vrot.slane %v15949_v46, %v13467_v6  ;;  %v4046_v18 = vsel %vm15291_vm11, %v3535_v47, %v13665_v26  ;;  %v15950_v55 = vld [vmem:[#allocation178_spill] sm:$0xff]  ;;  %v15956_v32 = vld [vmem:[#allocation79_spill] sm:$0xff] }
 0x5a9   :  { %v4509_v20 = vrot.slane %v3076_v29, %v13207_v9  ;;  %vm15288_vm13 = vcmask 1046534   ;;  %v3209_v56 = vsel %vm15294_vm0, %v15951_v23, 0.0  ;;  %v4048_v13 = vsel %vm15286_vm15, %v3574_v39, %v4046_v18 }
 0x5aa   :  { %v4481_v27 = vsel %vm4246_vm8, %v4480_v28, %v4476_v3  ;;  %2209 = vadd.xlane.f32.xlu0 %v15950_v55  ;;  %v3647_v15 = vsel %vm3449_vm2, %v3646_v51, %v3642_v25  ;;  %v3608_v26 = vsel %vm3449_vm2, %v3607_v19, %v3603_v0  ;;  %v2253_v11 = vsel %vm15294_vm0, %v15952_v54, 0.0  ;;  %v15957_v25 = vld [vmem:[#allocation113_spill] sm:$0xff]  ;;  %v15963_v54 = vld [vmem:[#allocation87_spill] sm:$0xff] }
 0x5ab   :  { %v4838_v52 = vsel %vm15288_vm13, %v4481_v27, %v4837_v41  ;;  %v4510_v58 = vsel %vm4232_vm5, %v4509_v20, %v13692_v36  ;;  %3210 = vadd.xlane.f32.xlu1 %v3209_v56  ;;  %v2186_v22 = vpop.xlane.xlu0 %2185  ;;  %v3652_v3 = vsel %vm3456_vm1, %v3651_v45, %v3647_v15  ;;  %v3613_v4 = vsel %vm3456_vm1, %v3612_v57, %v3608_v26  ;;  %v15958_v57 = vld [vmem:[#allocation128_spill] sm:$0xff]  ;;  %v15959_v20 = vld [vmem:[#allocation103_spill] sm:$0xff] }
 0x5ac   :  { %v3729_v10 = vrot.slane %v2186_v22, %v13551_v5  ;;  %v2183_v8 = vpop.xlane.xlu1 %2182  ;;  %v4050_v36 = vsel %vm4049_vm9, %v3613_v4, %v4048_v13  ;;  %v3230_v62 = vsel %vm15294_vm0, %v15953_v60, 0.0  ;;  %vm15287_vm15 = vcmask 1047559   ;;  %v15960_v15 = vld [vmem:[#allocation76_spill] sm:$0xff]  ;;  %v15962_v4 = vld [vmem:[#allocation63_spill] sm:$0xff] }
 0x5ad   :  { %v3724_v16 = vrot.slane %v2183_v8, %v13467_v6  ;;  %v4052_v19 = vsel %vm4051_vm4, %v3652_v3, %v4050_v36  ;;  %v2295_v43 = vsel %vm15294_vm0, %v15954_v24, 0.0  ;;  %v2232_v21 = vsel %vm15294_vm0, %v15955_v12, 0.0  ;;  %v15964_v36 = vld [vmem:[#allocation193_spill] sm:$0xff]  ;;  %v15967_v24 = vld [vmem:[#allocation194_spill] sm:$0xff] }
 0x5ae   :  { %2254 = vadd.xlane.f32.xlu0 %v2253_v11  ;;  %v4054_v37 = vsel %vm15288_vm13, %v3691_v49, %v4052_v19  ;;  %v2337_v33 = vsel %vm15294_vm0, %v15956_v32, 0.0  ;;  %v2274_v40 = vsel %vm15294_vm0, %v15957_v25, 0.0  ;;  %v2358_v46 = vsel %vm15294_vm0, %v15958_v57, 0.0  ;;  %v15965_v19 = vld [vmem:[#allocation55_spill] sm:$0xff] }
 0x5af   :  { %v3725_v42 = vsel %vm3449_vm2, %v3724_v16, %v13719_v50  ;;  %3231 = vadd.xlane.f32.xlu1 %v3230_v62  ;;  %v2189_v53 = vpop.xlane.xlu0 %2188  ;;  %v2316_v18 = vsel %vm15294_vm0, %v15959_v20, 0.0  ;;  %v3170_v60 = vsel %vm15294_vm0, %v15964_v36, 0.0 }
 0x5b0   :  { %v3730_v61 = vsel %vm3456_vm1, %v3729_v10, %v3725_v42  ;;  %v3079_v1 = vpop.xlane.xlu1 %3078  ;;  %v3734_v0 = vrot.slane %v2189_v53, %v13339_v31  ;;  %v3104_v42 = vsel %vm15294_vm0, %v15965_v19, 0.0  ;;  %v15979_v19 = vld [vmem:[#allocation109_spill] sm:$0xff] }
 0x5b1   :  { %v4514_v17 = vrot.slane %v3079_v1, %v13250_v35  ;;  %v4056_v47 = vsel %vm15287_vm15, %v3730_v61, %v4054_v37 }
 0x5b2   :  { %2296 = vadd.xlane.f32.xlu0 %v2295_v43  ;;  %v3212_v43 = vsel %vm15294_vm0, %v15967_v24, 0.0 }
 0x5b3   :  { %v4515_v50 = vsel %vm4239_vm6, %v4514_v17, %v4510_v58  ;;  %2233 = vadd.xlane.f32.xlu1 %v2232_v21  ;;  %v2213_v39 = vpop.xlane.xlu0 %2212  ;;  %v15961_v58 = vld [vmem:[#allocation70_spill] sm:$0xff] }
 0x5b4   :  { %v3082_v38 = vpop.xlane.xlu1 %3081  ;;  %v3773_v56 = vrot.slane %v2213_v39, %v13339_v31  ;;  %v2355_v22 = vsel %vm15294_vm0, %v15961_v58, 0.0  ;;  %v15970_v39 = vld [vmem:[#allocation67_spill] sm:$0xff] }
 0x5b5   :  { %v4519_v49 = vrot.slane %v3082_v38, %v13351_v59 }
 0x5b6   :  { %2338 = vadd.xlane.f32.xlu0 %v2337_v33  ;;  %v15971_v33 = vld [vmem:[#allocation215_spill] sm:$0xff] }
 0x5b7   :  { %v4520_v45 = vsel %vm4246_vm8, %v4519_v49, %v4515_v50  ;;  %2275 = vadd.xlane.f32.xlu1 %v2274_v40  ;;  %v3085_v41 = vpop.xlane.xlu0 %3084  ;;  %v3251_v25 = vsel %vm15294_vm0, %v15971_v33, 0.0 }
 0x5b8   :  { %v2192_v28 = vpop.xlane.xlu1 %2191  ;;  %v4839_v29 = vsel %vm15287_vm15, %v4520_v45, %v4838_v52  ;;  %v3128_v52 = vsel %vm15294_vm0, %v15960_v15, 0.0  ;;  %v4524_v16 = vrot.slane %v3085_v41, %v15962_v4  ;;  %vm15966_vm15 = vcmask 654912   ;;  %v15973_v45 = vld [vmem:[#allocation108_spill] sm:$0xff] }
 0x5b9   :  { %v3738_v7 = vrot.slane %v2192_v28, %v13342_v44  ;;  %v13838_v51 = vsel %vm15294_vm0, %v4056_v47, %v4839_v29  ;;  %v15968_v47 = vld [vmem:[#allocation173_spill] sm:$0xff]  ;;  %vm15969_vm13 = vmmov %vm15966_vm15  ;;  %v3191_v41 = vsel %vm15294_vm0, %v15973_v45, 0.0  ;;  %v15984_v45 = vld [vmem:[#allocation172_spill] sm:$0xff] }
 0x5ba   :  { %2359 = vadd.xlane.f32.xlu0 %v2358_v46  ;;  %v3149_v12 = vsel %vm15294_vm0, %v15968_v47, 0.0  ;;  %v15974_v46 = vld [vmem:[#allocation145_spill] sm:$0xff] }
 0x5bb   :  { %v3739_v27 = vsel %vm3414_vm7, %v3738_v7, %v3734_v0  ;;  %2317 = vadd.xlane.f32.xlu1 %v2316_v18  ;;  %v3109_v55 = vpop.xlane.xlu0 %3108  ;;  %v2256_v20 = vsel %vm15294_vm0, %v15974_v46, 0.0  ;;  %v15975_v18 = vld [vmem:[#allocation195_spill] sm:$0xff] }
 0x5bc   :  { %v2216_v23 = vpop.xlane.xlu1 %2215  ;;  %v4563_v1 = vrot.slane %v3109_v55, %v15962_v4 }
 0x5bd   :  { %v3777_v13 = vrot.slane %v2216_v23, %v13342_v44 }
 0x5be   :  { %3129 = vadd.xlane.f32.xlu0 %v3128_v52  ;;  %v15976_v52 = vld [vmem:[#allocation147_spill] sm:$0xff] }
 0x5bf   :  { %v3778_v26 = vsel %vm3414_vm7, %v3777_v13, %v3773_v56  ;;  %2356 = vadd.xlane.f32.xlu1 %v2355_v22  ;;  %v2195_v3 = vpop.xlane.xlu0 %2194  ;;  %v2298_v58 = vsel %vm15294_vm0, %v15976_v52, 0.0 }
 0x5c0   :  { %v3743_v10 = vrot.slane %v2195_v3, %v13422_v63  ;;  %v3088_v8 = vpop.xlane.xlu1 %3087 }
 0x5c1   :  { %v4528_v11 = vrot.slane %v3088_v8, %v15963_v54 }
 0x5c2   :  { %v3744_v62 = vsel %vm3421_vm10, %v3743_v10, %v3739_v27  ;;  %3171 = vadd.xlane.f32.xlu0 %v3170_v60  ;;  %v3233_v27 = vsel %vm15294_vm0, %v15975_v18, 0.0  ;;  %v15986_v18 = vld [vmem:[#allocation93_spill] sm:$0xff] }
 0x5c3   :  { %v4529_v53 = vsel %vm15966_vm15, %v4528_v11, %v4524_v16  ;;  %3105 = vadd.xlane.f32.xlu1 %v3104_v42  ;;  %v2237_v37 = vpop.xlane.xlu0 %2236  ;;  %vm15972_vm15 = vcmask 720512   ;;  %v2340_v42 = vsel %vm15294_vm0, %v15979_v19, 0.0 }
 0x5c4   :  { %v3112_v61 = vpop.xlane.xlu1 %3111  ;;  %v3812_v7 = vrot.slane %v2237_v37, %v13339_v31 }
 0x5c5   :  { %v4567_v17 = vrot.slane %v3112_v61, %v15963_v54 }
 0x5c6   :  { %3213 = vadd.xlane.f32.xlu0 %v3212_v43  ;;  %v15982_v43 = vld [vmem:[#allocation77_spill] sm:$0xff] }
 0x5c7   :  { %v4568_v21 = vsel %vm15969_vm13, %v4567_v17, %v4563_v1  ;;  %3150 = vadd.xlane.f32.xlu1 %v3149_v12  ;;  %v3091_v50 = vpop.xlane.xlu0 %3090  ;;  %vm15978_vm13 = vmmov %vm15972_vm15  ;;  %v3152_v47 = vsel %vm15294_vm0, %v15982_v43, 0.0  ;;  %v15983_v12 = vld [vmem:[#allocation68_spill] sm:$0xff] }
 0x5c8   :  { %v4533_v38 = vrot.slane %v3091_v50, %v15970_v39  ;;  %v2219_v49 = vpop.xlane.xlu1 %2218 }
 0x5c9   :  { %v3782_v32 = vrot.slane %v2219_v49, %v13422_v63 }
 0x5ca   :  { %v4534_v40 = vsel %vm15972_vm15, %v4533_v38, %v4529_v53  ;;  %3252 = vadd.xlane.f32.xlu0 %v3251_v25  ;;  %v15980_v53 = vld [vmem:[#allocation110_spill] sm:$0xff]  ;;  %vm15981_vm15 = vcmask 654912  }
 0x5cb   :  { %v3783_v28 = vsel %vm3421_vm10, %v3782_v32, %v3778_v26  ;;  %3192 = vadd.xlane.f32.xlu1 %v3191_v41  ;;  %v3133_v29 = vpop.xlane.xlu0 %3132  ;;  %v15977_v26 = vld [vmem:[#allocation216_spill] sm:$0xff]  ;;  %v2277_v37 = vsel %vm15294_vm0, %v15980_v53, 0.0  ;;  %v3194_v41 = vsel %vm15294_vm0, %v15984_v45, 0.0  ;;  %v15998_v45 = vld [vmem:[#allocation119_spill] sm:$0xff] }
 0x5cc   :  { %v2240_v0 = vpop.xlane.xlu1 %2239  ;;  %v3254_v3 = vsel %vm15294_vm0, %v15977_v26, 0.0  ;;  %v4602_v36 = vrot.slane %v3133_v29, %v15962_v4  ;;  %v15988_v26 = vld [vmem:[#allocation118_spill] sm:$0xff]  ;;  %v15992_v53 = vld [vmem:[#allocation116_spill] sm:$0xff] }
 0x5cd   :  { %v3816_v57 = vrot.slane %v2240_v0, %v13342_v44  ;;  %v15985_v0 = vld [vmem:[#allocation200_spill] sm:$0xff] }
 0x5ce   :  { %2257 = vadd.xlane.f32.xlu0 %v2256_v20 }
 0x5cf   :  { %v3817_v55 = vsel %vm3414_vm7, %v3816_v57, %v3812_v7  ;;  %3234 = vadd.xlane.f32.xlu1 %v3233_v27  ;;  %v2198_v23 = vpop.xlane.xlu0 %2197  ;;  %v2361_v7 = vsel %vm15294_vm0, %v15985_v0, 0.0  ;;  %v3236_v27 = vsel %vm15294_vm0, %v15986_v18, 0.0  ;;  %v15999_v0 = vld [vmem:[#allocation82_spill] sm:$0xff] }
 0x5d0   :  { %v3748_v56 = vrot.slane %v2198_v23, %v13505_v2  ;;  %v3115_v13 = vpop.xlane.xlu1 %3114 }
 0x5d1   :  { %v4572_v15 = vrot.slane %v3115_v13, %v15970_v39 }
 0x5d2   :  { %v3749_v22 = vsel %vm3428_vm12, %v3748_v56, %v3744_v62  ;;  %2299 = vadd.xlane.f32.xlu0 %v2298_v58 }
 0x5d3   :  { %v4573_v10 = vsel %vm15978_vm13, %v4572_v15, %v4568_v21  ;;  %3255 = vadd.xlane.f32.xlu1 %v3254_v3  ;;  %v2243_v8 = vpop.xlane.xlu0 %2242  ;;  %v2319_v21 = vsel %vm15294_vm0, %v15983_v12, 0.0  ;;  %v2280_v3 = vsel %vm15294_vm0, %v15988_v26, 0.0  ;;  %vm15989_vm13 = vcmask 326912   ;;  %v15995_v12 = vld [vmem:[#allocation84_spill] sm:$0xff] }
 0x5d4   :  { %v3821_v16 = vrot.slane %v2243_v8, %v13422_v63  ;;  %v3136_v11 = vpop.xlane.xlu1 %3135  ;;  %v15990_v8 = vld [vmem:[#allocation92_spill] sm:$0xff] }
 0x5d5   :  { %v4606_v60 = vrot.slane %v3136_v11, %v15963_v54 }
 0x5d6   :  { %v3822_v62 = vsel %vm3421_vm10, %v3821_v16, %v3817_v55  ;;  %2341 = vadd.xlane.f32.xlu0 %v2340_v42  ;;  %v15987_v55 = vld [vmem:[#allocation197_spill] sm:$0xff]  ;;  %v3215_v16 = vsel %vm15294_vm0, %v15990_v8, 0.0  ;;  %v16005_v8 = vld [vmem:[#allocation115_spill] sm:$0xff] }
 0x5d7   :  { %v4607_v61 = vsel %vm15981_vm15, %v4606_v60, %v4602_v36  ;;  %2278 = vadd.xlane.f32.xlu1 %v2277_v37  ;;  %v2264_v1 = vpop.xlane.xlu0 %2263  ;;  %v3173_v23 = vsel %vm15294_vm0, %v15987_v55, 0.0  ;;  %vm15991_vm15 = vcmask 720512  }
 0x5d8   :  { %v2222_v17 = vpop.xlane.xlu1 %2221  ;;  %v3855_v33 = vrot.slane %v2264_v1, %v13342_v44  ;;  %v15993_v1 = vld [vmem:[#allocation218_spill] sm:$0xff] }
 0x5d9   :  { %v3787_v24 = vrot.slane %v2222_v17, %v13505_v2 }
 0x5da   :  { %3153 = vadd.xlane.f32.xlu0 %v3152_v47 }
 0x5db   :  { %v3788_v50 = vsel %vm3428_vm12, %v3787_v24, %v3783_v28  ;;  %2320 = vadd.xlane.f32.xlu1 %v2319_v21  ;;  %v3118_v38 = vpop.xlane.xlu0 %3117  ;;  %v2364_v21 = vsel %vm15294_vm0, %v15995_v12, 0.0 }
 0x5dc   :  { %v4577_v49 = vrot.slane %v3118_v38, %v13185_v48  ;;  %v2261_v32 = vpop.xlane.xlu1 %2260  ;;  %v15996_v38 = vld [vmem:[#allocation151_spill] sm:$0xff] }
 0x5dd   :  { %v3851_v25 = vrot.slane %v2261_v32, %v13339_v31 }
 0x5de   :  { %v13910_v29 = vsel %vm4218_vm3, %v4577_v49, %v4573_v10  ;;  %3195 = vadd.xlane.f32.xlu0 %v3194_v41  ;;  %v3197_v41 = vsel %vm15294_vm0, %v15998_v45, 0.0 }
 0x5df   :  { %v3856_v28 = vsel %vm3414_vm7, %v3855_v33, %v3851_v25  ;;  %2362 = vadd.xlane.f32.xlu1 %v2361_v7  ;;  %v3157_v57 = vpop.xlane.xlu0 %3156  ;;  %v2343_v7 = vsel %vm15294_vm0, %v15999_v0, 0.0 }
 0x5e0   :  { %v3094_v46 = vpop.xlane.xlu1 %3093  ;;  %v4641_v19 = vrot.slane %v3157_v57, %v15962_v4 }
 0x5e1   :  { %v4538_v20 = vrot.slane %v3094_v46, %v13185_v48 }
 0x5e2   :  { %3237 = vadd.xlane.f32.xlu0 %v3236_v27  ;;  %v16001_v27 = vld [vmem:[#allocation90_spill] sm:$0xff] }
 0x5e3   :  { %v13921_v56 = vsel %vm4218_vm3, %v4538_v20, %v4534_v40  ;;  %3174 = vadd.xlane.f32.xlu1 %v3173_v23  ;;  %v2201_v13 = vpop.xlane.xlu0 %2200  ;;  %v16000_v20 = vld [vmem:[#allocation199_spill] sm:$0xff]  ;;  %v3176_v55 = vsel %vm15294_vm0, %v16001_v27, 0.0 }
 0x5e4   :  { %v3753_v15 = vrot.slane %v2201_v13, %v13455_v30  ;;  %v3139_v52 = vpop.xlane.xlu1 %3138  ;;  %v3239_v18 = vsel %vm15294_vm0, %v16000_v20, 0.0 }
 0x5e5   :  { %v4611_v58 = vrot.slane %v3139_v52, %v15970_v39  ;;  %v16004_v52 = vld [vmem:[#allocation85_spill] sm:$0xff] }
 0x5e6   :  { %v13928_v10 = vsel %vm15989_vm13, %v3753_v15, %v3749_v22  ;;  %2281 = vadd.xlane.f32.xlu0 %v2280_v3  ;;  %v2322_v22 = vsel %vm15294_vm0, %v15992_v53, 0.0  ;;  %vm15994_vm13 = vcmask 654912   ;;  %v16003_v15 = vld [vmem:[#allocation152_spill] sm:$0xff] }
 0x5e7   :  { %v13933_v40 = vsel %vm15991_vm15, %v4611_v58, %v4607_v61  ;;  %3216 = vadd.xlane.f32.xlu1 %v3215_v16  ;;  %v2246_v11 = vpop.xlane.xlu0 %2245  ;;  %v3257_v61 = vsel %vm15294_vm0, %v15993_v1, 0.0  ;;  %vm15997_vm15 = vcmask 326912   ;;  %v3218_v58 = vsel %vm15294_vm0, %v16004_v52, 0.0 }
 0x5e8   :  { %v3826_v36 = vrot.slane %v2246_v11, %v13505_v2  ;;  %v3160_v60 = vpop.xlane.xlu1 %3159  ;;  %v2346_v16 = vsel %vm15294_vm0, %v16005_v8, 0.0  ;;  %v16006_v11 = vld [vmem:[#allocation217_spill] sm:$0xff] }
 0x5e9   :  { %v4645_v42 = vrot.slane %v3160_v60, %v15963_v54 }
 0x5ea   :  { %v13941_v37 = vsel %vm3428_vm12, %v3826_v36, %v3822_v62  ;;  %2323 = vadd.xlane.f32.xlu0 %v2322_v22  ;;  %v2301_v62 = vsel %vm15294_vm0, %v15996_v38, 0.0  ;;  %v3260_v36 = vsel %vm15294_vm0, %v16006_v11, 0.0  ;;  %v16008_v22 = vld [vmem:[#allocation117_spill] sm:$0xff] }
 0x5eb   :  { %v13946_v17 = vsel %vm15994_vm13, %v4645_v42, %v4641_v19  ;;  %3258 = vadd.xlane.f32.xlu1 %v3257_v61  ;;  %v13948_v24 = vpop.xlane.xlu0 %2284  ;;  %v16007_v42 = vld [vmem:[#allocation121_spill] sm:$0xff]  ;;  %v2325_v1 = vsel %vm15294_vm0, %v16008_v22, 0.0  ;;  %vm16036_vm13 = vcmask 1041409  }
 0x5ec   :  { %v2225_v43 = vpop.xlane.xlu1 %2224  ;;  %v3200_v53 = vsel %vm15294_vm0, %v16007_v42, 0.0 }
 0x5ed   :  { %v3792_v47 = vrot.slane %v2225_v43, %v13455_v30 }
 0x5ee   :  { %2365 = vadd.xlane.f32.xlu0 %v2364_v21  ;;  %v16010_v21 = vld [vmem:[#allocation202_spill] sm:$0xff] }
 0x5ef   :  { %v13956_v49 = vsel %vm15997_vm15, %v3792_v47, %v3788_v50  ;;  %2302 = vadd.xlane.f32.xlu1 %v2301_v62  ;;  %v13958_v32 = vpop.xlane.xlu0 %3096  ;;  %v16009_v47 = vld [vmem:[#allocation201_spill] sm:$0xff]  ;;  %v2367_v38 = vsel %vm15294_vm0, %v16010_v21, 0.0  ;;  %vm16038_vm15 = vcmask 851712  }
 0x5f0   :  { %v2267_v33 = vpop.xlane.xlu1 %2266  ;;  %v3242_v12 = vsel %vm15294_vm0, %v16009_v47, 0.0 }
 0x5f1   :  { %v3860_v25 = vrot.slane %v2267_v33, %v13422_v63 }
 0x5f2   :  { %3198 = vadd.xlane.f32.xlu0 %v3197_v41  ;;  %v16013_v41 = vld [vmem:[#allocation196_spill] sm:$0xff] }
 0x5f3   :  { %v13966_v57 = vsel %vm3421_vm10, %v3860_v25, %v3856_v28  ;;  %2344 = vadd.xlane.f32.xlu1 %v2343_v7  ;;  %v13968_v46 = vpop.xlane.xlu0 %3141  ;;  %v2304_v28 = vsel %vm15294_vm0, %v16003_v15, 0.0  ;;  %v16012_v25 = vld [vmem:[#allocation64_spill] sm:$0xff]  ;;  %v3221_v0 = vsel %vm15294_vm0, %v16013_v41, 0.0 }
 0x5f4   :  { %v13970_v50 = vpop.xlane.xlu1 %2287  ;;  %v2328_v45 = vsel %vm15294_vm0, %v16012_v25, 0.0 }
 0x5f6   :  { %3240 = vadd.xlane.f32.xlu0 %v3239_v18  ;;  %v16014_v18 = vld [vmem:[#allocation203_spill] sm:$0xff] }
 0x5f7   :  { %3177 = vadd.xlane.f32.xlu1 %v3176_v55  ;;  %v13976_v23 = vpop.xlane.xlu0 %3180  ;;  %v2370_v27 = vsel %vm15294_vm0, %v16014_v18, 0.0  ;;  %v16015_v55 = vld [vmem:[#allocation220_spill] sm:$0xff] }
 0x5f8   :  { %16002 = vst [vmem:[#allocation125_spill] sm:$0xff] %v13976_v23  ;;  %v13978_v13 = vpop.xlane.xlu1 %3120  ;;  %v3263_v15 = vsel %vm15294_vm0, %v16015_v55, 0.0 }
 0x5fa   :  { %2305 = vadd.xlane.f32.xlu0 %v2304_v28 }
 0x5fb   :  { %3219 = vadd.xlane.f32.xlu1 %v3218_v58  ;;  %v13984_v26 = vpop.xlane.xlu0 %2203  ;;  %v16016_v58 = vld [vmem:[#allocation204_spill] sm:$0xff] }
 0x5fc   :  { %v13986_v3 = vpop.xlane.xlu1 %3162  ;;  %v3245_v8 = vsel %vm15294_vm0, %v16016_v58, 0.0  ;;  %v16025_v58 = vld [vmem:[#allocation198_spill] sm:$0xff] }
 0x5fe   :  { %2347 = vadd.xlane.f32.xlu0 %v2346_v16  ;;  %v16017_v16 = vld [vmem:[#allocation124_spill] sm:$0xff] }
 0x5ff   :  { %3261 = vadd.xlane.f32.xlu1 %v3260_v36  ;;  %v13992_v60 = vpop.xlane.xlu0 %2248  ;;  %v2349_v11 = vsel %vm15294_vm0, %v16017_v16, 0.0 }
 0x600   :  { %v13994_v19 = vpop.xlane.xlu1 %3183 }
 0x602   :  { %3201 = vadd.xlane.f32.xlu0 %v3200_v53  ;;  %v16019_v53 = vld [vmem:[#allocation123_spill] sm:$0xff] }
 0x603   :  { %2326 = vadd.xlane.f32.xlu1 %v2325_v1  ;;  %v14000_v61 = vpop.xlane.xlu0 %2290  ;;  %v2352_v22 = vsel %vm15294_vm0, %v16019_v53, 0.0  ;;  %v16020_v1 = vld [vmem:[#allocation91_spill] sm:$0xff] }
 0x604   :  { %v14002_v43 = vpop.xlane.xlu1 %2227  ;;  %v3224_v47 = vsel %vm15294_vm0, %v16020_v1, 0.0 }
 0x606   :  { %3243 = vadd.xlane.f32.xlu0 %v3242_v12 }
 0x607   :  { %2368 = vadd.xlane.f32.xlu1 %v2367_v38  ;;  %v14008_v62 = vpop.xlane.xlu0 %2311  ;;  %v16021_v38 = vld [vmem:[#allocation205_spill] sm:$0xff] }
 0x608   :  { %16011 = vst [vmem:[#allocation133_spill] sm:$0xff] %v14008_v62  ;;  %v14010_v33 = vpop.xlane.xlu1 %2269  ;;  %v3248_v25 = vsel %vm15294_vm0, %v16021_v38, 0.0 }
 0x60a   :  { %2329 = vadd.xlane.f32.xlu0 %v2328_v45  ;;  %v16022_v45 = vld [vmem:[#allocation221_spill] sm:$0xff] }
 0x60b   :  { %3222 = vadd.xlane.f32.xlu1 %v3221_v0  ;;  %v14016_v7 = vpop.xlane.xlu0 %3123  ;;  %v3266_v41 = vsel %vm15294_vm0, %v16022_v45, 0.0 }
 0x60c   :  { %v14018_v20 = vpop.xlane.xlu1 %2308 }
 0x60e   :  { %2371 = vadd.xlane.f32.xlu0 %v2370_v27  ;;  %v16024_v27 = vld [vmem:[#allocation213_spill] sm:$0xff] }
 0x60f   :  { %3264 = vadd.xlane.f32.xlu1 %v3263_v15  ;;  %v14024_v28 = vpop.xlane.xlu0 %3165  ;;  %v2376_v55 = vsel %vm15294_vm0, %v16024_v27, 0.0  ;;  %v4851_v15 = vld [vmem:[#allocation7] sm:$0xff] }
 0x610   :  { %v14026_v52 = vpop.xlane.xlu1 %3099  ;;  %v14057_v53 = vadd.f32 %v4851_v15, %v13838_v51 }
 0x612   :  { %3246 = vadd.xlane.f32.xlu0 %v3245_v8  ;;  %v2373_v8 = vsel %vm15294_vm0, %v16025_v58, 0.0  ;;  %16026 = vst [vmem:[#allocation100_spill] sm:$0xff] %v14057_v53 }
 0x613   :  { %2350 = vadd.xlane.f32.xlu1 %v2349_v11  ;;  %v14032_v36 = vpop.xlane.xlu0 %3204 }
 0x614   :  { %16018 = vst [vmem:[#allocation66_spill] sm:$0xff] %v14032_v36  ;;  %v14034_v42 = vpop.xlane.xlu1 %3144  ;;  %v3797_v36 = vrot.slane %v14002_v43, %v13524_v14 }
 0x616   :  { %2353 = vadd.xlane.f32.xlu0 %v2352_v22  ;;  %v16027_v22 = vld [vmem:[#allocation219_spill] sm:$0xff] }
 0x617   :  { %3225 = vadd.xlane.f32.xlu1 %v3224_v47  ;;  %v2207_v12 = vpop.xlane.xlu0 %2206  ;;  %v3269_v1 = vsel %vm15294_vm0, %v16027_v22, 0.0 }
 0x618   :  { %v14040_v21 = vpop.xlane.xlu1 %3186 }
 0x61a   :  { %3249 = vadd.xlane.f32.xlu0 %v3248_v25  ;;  %v16029_v25 = vld [vmem:[#allocation65_spill] sm:$0xff] }
 0x61b   :  { %3267 = vadd.xlane.f32.xlu1 %v3266_v41  ;;  %v14046_v0 = vpop.xlane.xlu0 %2251  ;;  %v3272_v45 = vsel %vm15294_vm0, %v16029_v25, 0.0  ;;  %vm16070_vm0 = vcmask 326912  }
 0x61c   :  { %v14048_v18 = vpop.xlane.xlu1 %3207 }
 0x61d   :  { %16023 = vst [vmem:[#allocation143_spill] sm:$0xff] %v14048_v18 }
 0x61e   :  { %2377 = vadd.xlane.f32.xlu0 %v2376_v55 }
 0x61f   :  { %2374 = vadd.xlane.f32.xlu1 %v2373_v8  ;;  %v14054_v16 = vpop.xlane.xlu0 %2293 }
 0x620   :  { %v2231_v11 = vpop.xlane.xlu1 %2230 }
 0x622   :  { %4855 = vmax.xlane.f32.xlu0 %v14057_v53 }
 0x623   :  { %3270 = vadd.xlane.f32.xlu1 %v3269_v1  ;;  %v14062_v47 = vpop.xlane.xlu0 %2332 }
 0x624   :  { %16028 = vst [vmem:[#allocation72_spill] sm:$0xff] %v14062_v47  ;;  %v14064_v38 = vpop.xlane.xlu1 %2272 }
 0x627   :  { %3273 = vadd.xlane.f32.xlu1 %v3272_v45  ;;  %v3103_v41 = vpop.xlane.xlu0 %3102  ;;  %v3758_v45 = vrot.slane %v13984_v26, %v13524_v14 }
 0x628   :  { %v14068_v27 = vpop.xlane.xlu1 %2314 }
 0x629   :  { %16030 = vst [vmem:[#allocation142_spill] sm:$0xff] %v14068_v27 }
 0x62b   :  { %v14070_v55 = vpop.xlane.xlu0 %3147 }
 0x62c   :  { %v14072_v51 = vpop.xlane.xlu1 %2335 }
 0x62d   :  { %16031 = vst [vmem:[#allocation160_spill] sm:$0xff] %v14072_v51  ;;  %v3763_v51 = vrot.slane %v2207_v12, %v13467_v6 }
 0x62f   :  { %v14074_v15 = vpop.xlane.xlu0 %3189 }
 0x630   :  { %16032 = vst [vmem:[#allocation129_spill] sm:$0xff] %v14074_v15  ;;  %v3127_v58 = vpop.xlane.xlu1 %3126  ;;  %v3802_v15 = vrot.slane %v2231_v11, %v13467_v6 }
 0x633   :  { %v14076_v8 = vpop.xlane.xlu0 %3228 }
 0x634   :  { %16033 = vst [vmem:[#allocation52_spill] sm:$0xff] %v14076_v8  ;;  %v14078_v22 = vpop.xlane.xlu1 %3168 }
 0x637   :  { %v2210_v1 = vpop.xlane.xlu0 %2209 }
 0x638   :  { %v14080_v53 = vpop.xlane.xlu1 %3210  ;;  %v3768_v8 = vrot.slane %v2210_v1, %v13551_v5 }
 0x639   :  { %16034 = vst [vmem:[#allocation57_spill] sm:$0xff] %v14080_v53  ;;  %v3759_v53 = vsel %vm3442_vm14, %v3758_v45, %v13928_v10 }
 0x63a   :  { %v3764_v23 = vsel %vm3449_vm2, %v3763_v51, %v3759_v53  ;;  %v4587_v53 = vrot.slane %v14016_v7, %v13207_v9  ;;  %v4548_v51 = vrot.slane %v14026_v52, %v13207_v9 }
 0x63b   :  { %v2255_v47 = vpop.xlane.xlu0 %2254  ;;  %v3769_v12 = vsel %vm3456_vm1, %v3768_v8, %v3764_v23  ;;  %v4592_v8 = vrot.slane %v3127_v58, %v13250_v35 }
 0x63c   :  { %v14082_v25 = vpop.xlane.xlu1 %3231 }
 0x63d   :  { %16035 = vst [vmem:[#allocation101_spill] sm:$0xff] %v14082_v25  ;;  %v3798_v25 = vsel %vm3442_vm14, %v3797_v36, %v13956_v49  ;;  %v4582_v36 = vrot.slane %v13978_v13, %v13198_v34 }
 0x63e   :  { %v3803_v43 = vsel %vm3449_vm2, %v3802_v15, %v3798_v25  ;;  %v4553_v15 = vrot.slane %v3103_v41, %v13250_v35 }
 0x63f   :  { %v14091_v27 = vpop.xlane.xlu0 %2296 }
 0x640   :  { %v2234_v62 = vpop.xlane.xlu1 %2233 }
 0x641   :  { %v3807_v26 = vrot.slane %v2234_v62, %v13551_v5  ;;  %v4543_v62 = vrot.slane %v13958_v32, %v13198_v34 }
 0x643   :  { %v3808_v11 = vsel %vm3456_vm1, %v3807_v26, %v3803_v43  ;;  %v14102_v1 = vpop.xlane.xlu0 %2338  ;;  %v4544_v32 = vsel %vm16038_vm15, %v4543_v62, %v13921_v56  ;;  %v3831_v62 = vrot.slane %v13992_v60, %v13455_v30 }
 0x644   :  { %v4057_v4 = vsel %vm16036_vm13, %v3808_v11, %v3769_v12  ;;  %v14105_v18 = vpop.xlane.xlu1 %2275  ;;  %vm16039_vm13 = vmmov %vm16038_vm15  ;;  %v4549_v12 = vsel %vm4232_vm5, %v4548_v51, %v4544_v32  ;;  %vm16040_vm15 = vcmask 1041409  }
 0x645   :  { %v4583_v13 = vsel %vm16039_vm13, %v4582_v36, %v13910_v29  ;;  %v4554_v41 = vsel %vm4239_vm6, %v4553_v15, %v4549_v12  ;;  %v3841_v15 = vrot.slane %v2255_v47, %v13467_v6  ;;  %vm16041_vm13 = vcmask 326912  }
 0x646   :  { %v4588_v7 = vsel %vm4232_vm5, %v4587_v53, %v4583_v13  ;;  %v3836_v53 = vrot.slane %v14046_v0, %v13524_v14  ;;  %v4621_v47 = vrot.slane %v14034_v42, %v13198_v34 }
 0x647   :  { %v14107_v10 = vpop.xlane.xlu0 %2359  ;;  %v4593_v58 = vsel %vm4239_vm6, %v4592_v8, %v4588_v7  ;;  %v3832_v8 = vsel %vm16041_vm13, %v3831_v62, %v13941_v37  ;;  %v4616_v37 = vrot.slane %v13968_v46, %v13185_v48 }
 0x648   :  { %16037 = vst [vmem:[#allocation140_spill] sm:$0xff] %v14107_v10  ;;  %v14109_v45 = vpop.xlane.xlu1 %2317  ;;  %v3837_v32 = vsel %vm3442_vm14, %v3836_v53, %v3832_v8 }
 0x649   :  { %v3842_v60 = vsel %vm3449_vm2, %v3841_v15, %v3837_v32 }
 0x64b   :  { %v3130_v49 = vpop.xlane.xlu0 %3129 }
 0x64c   :  { %v14115_v23 = vpop.xlane.xlu1 %2356  ;;  %v4597_v25 = vrot.slane %v3130_v49, %v13351_v59 }
 0x64e   :  { %v4598_v11 = vsel %vm4246_vm8, %v4597_v25, %v4593_v58  ;;  %v4626_v58 = vrot.slane %v14070_v55, %v13207_v9 }
 0x64f   :  { %v14124_v26 = vpop.xlane.xlu0 %3171 }
 0x650   :  { %v3106_v43 = vpop.xlane.xlu1 %3105 }
 0x651   :  { %v4558_v52 = vrot.slane %v3106_v43, %v13351_v59 }
 0x653   :  { %v4559_v49 = vsel %vm4246_vm8, %v4558_v52, %v4554_v41  ;;  %v14137_v10 = vpop.xlane.xlu0 %3213 }
 0x654   :  { %v4840_v56 = vsel %vm16040_vm15, %v4598_v11, %v4559_v49  ;;  %v3151_v29 = vpop.xlane.xlu1 %3150  ;;  %vm16042_vm15 = vcmask 851712  }
 0x655   :  { %v4631_v49 = vrot.slane %v3151_v29, %v13250_v35 }
 0x657   :  { %v14142_v36 = vpop.xlane.xlu0 %3252 }
 0x658   :  { %v14146_v51 = vpop.xlane.xlu1 %3192 }
 0x65b   :  { %v2258_v25 = vpop.xlane.xlu0 %2257 }
 0x65c   :  { %v3846_v13 = vrot.slane %v2258_v25, %v13551_v5  ;;  %v14153_v43 = vpop.xlane.xlu1 %3234 }
 0x65e   :  { %v3847_v7 = vsel %vm3456_vm1, %v3846_v13, %v3842_v60  ;;  %v3870_v13 = vrot.slane %v14064_v38, %v13455_v30 }
 0x65f   :  { %v4058_v0 = vsel %vm15291_vm11, %v3847_v7, %v4057_v4  ;;  %v14158_v12 = vpop.xlane.xlu0 %2299  ;;  %v4617_v4 = vsel %vm4218_vm3, %v4616_v37, %v13933_v40  ;;  %v3865_v40 = vrot.slane %v14010_v33, %v13505_v2  ;;  %v3875_v7 = vrot.slane %v14105_v18, %v13524_v14 }
 0x660   :  { %v14160_v52 = vpop.xlane.xlu1 %3255  ;;  %v4622_v62 = vsel %vm16042_vm15, %v4621_v47, %v4617_v4  ;;  %vm16043_vm15 = vcmask 1043459  }
 0x661   :  { %v4627_v15 = vsel %vm4232_vm5, %v4626_v58, %v4622_v62 }
 0x662   :  { %v4632_v42 = vsel %vm4239_vm6, %v4631_v49, %v4627_v15 }
 0x663   :  { %v14166_v41 = vpop.xlane.xlu0 %2341 }
 0x664   :  { %v2279_v11 = vpop.xlane.xlu1 %2278 }
 0x665   :  { %v3880_v47 = vrot.slane %v2279_v11, %v13467_v6 }
 0x667   :  { %v3154_v53 = vpop.xlane.xlu0 %3153 }
 0x668   :  { %v4636_v46 = vrot.slane %v3154_v53, %v13351_v59  ;;  %v14176_v8 = vpop.xlane.xlu1 %2320 }
 0x66a   :  { %v4637_v25 = vsel %vm4246_vm8, %v4636_v46, %v4632_v42  ;;  %v4650_v42 = vrot.slane %v13986_v3, %v15970_v39  ;;  %v3890_v3 = vrot.slane %v13948_v24, %v13339_v31  ;;  %v3914_v24 = vrot.slane %v14158_v12, %v13524_v14 }
 0x66b   :  { %v4841_v55 = vsel %vm15291_vm11, %v4637_v25, %v4840_v56  ;;  %v14181_v32 = vpop.xlane.xlu0 %3195  ;;  %v3866_v56 = vsel %vm3428_vm12, %v3865_v40, %v13966_v57  ;;  %v4655_v25 = vrot.slane %v14024_v28, %v13185_v48 }
 0x66c   :  { %v14183_v29 = vpop.xlane.xlu1 %2362  ;;  %v3871_v58 = vsel %vm16041_vm13, %v3870_v13, %v3866_v56  ;;  %v3894_v13 = vrot.slane %v13970_v50, %v13342_v44  ;;  %v4665_v56 = vrot.slane %v14124_v26, %v13207_v9  ;;  %vm16044_vm13 = vcmask 720512  }
 0x66d   :  { %v3876_v4 = vsel %vm3442_vm14, %v3875_v7, %v3871_v58  ;;  %v4651_v28 = vsel %vm16044_vm13, %v4650_v42, %v13946_v17  ;;  %v3904_v50 = vrot.slane %v14054_v16, %v13505_v2  ;;  %vm16046_vm13 = vcmask 326912  }
 0x66e   :  { %v3881_v38 = vsel %vm3449_vm2, %v3880_v47, %v3876_v4  ;;  %v3899_v47 = vrot.slane %v14000_v61, %v13422_v63  ;;  %v3895_v26 = vsel %vm3414_vm7, %v3894_v13, %v3890_v3 }
 0x66f   :  { %v14189_v60 = vpop.xlane.xlu0 %3237 }
 0x670   :  { %v3175_v37 = vpop.xlane.xlu1 %3174 }
 0x671   :  { %v4670_v58 = vrot.slane %v3175_v37, %v13250_v35 }
 0x673   :  { %v2282_v49 = vpop.xlane.xlu0 %2281 }
 0x674   :  { %v3885_v33 = vrot.slane %v2282_v49, %v13551_v5  ;;  %v14199_v62 = vpop.xlane.xlu1 %3216  ;;  %v3909_v49 = vrot.slane %v14091_v27, %v13455_v30 }
 0x676   :  { %v3886_v53 = vsel %vm3456_vm1, %v3885_v33, %v3881_v38  ;;  %v3900_v33 = vsel %vm3421_vm10, %v3899_v47, %v3895_v26 }
 0x677   :  { %v4059_v18 = vsel %vm16043_vm15, %v3886_v53, %v4058_v0  ;;  %v14204_v15 = vpop.xlane.xlu0 %2323  ;;  %v4660_v0 = vrot.slane %v14078_v22, %v13198_v34  ;;  %v4656_v22 = vsel %vm4218_vm3, %v4655_v25, %v4651_v28  ;;  %vm16045_vm15 = vcmask 851712  }
 0x678   :  { %v14206_v11 = vpop.xlane.xlu1 %3258  ;;  %v3905_v27 = vsel %vm3428_vm12, %v3904_v50, %v3900_v33  ;;  %v4689_v33 = vrot.slane %v14040_v21, %v15970_v39 }
 0x679   :  { %v4661_v4 = vsel %vm16045_vm15, %v4660_v0, %v4656_v22  ;;  %v3910_v42 = vsel %vm16046_vm13, %v3909_v49, %v3905_v27  ;;  %vm16047_vm15 = vcmask 1043459   ;;  %v16053_v27 = vld [vmem:[#allocation125_spill] sm:$0xff]  ;;  %vm16058_vm13 = vcmask 654912  }
 0x67a   :  { %v4666_v16 = vsel %vm4232_vm5, %v4665_v56, %v4661_v4  ;;  %v3915_v12 = vsel %vm3442_vm14, %v3914_v24, %v3910_v42  ;;  %v16054_v42 = vld [vmem:[#allocation133_spill] sm:$0xff]  ;;  %vm16061_vm11 = vmmov %vm16058_vm13 }
 0x67b   :  { %v14208_v57 = vpop.xlane.xlu0 %2365  ;;  %v4671_v53 = vsel %vm4239_vm6, %v4670_v58, %v4666_v16  ;;  %v16051_v16 = vld [vmem:[#allocation143_spill] sm:$0xff] }
 0x67c   :  { %v2303_v46 = vpop.xlane.xlu1 %2302 }
 0x67d   :  { %v3919_v37 = vrot.slane %v2303_v46, %v13467_v6 }
 0x67f   :  { %v14214_v40 = vpop.xlane.xlu0 %3198  ;;  %v3920_v46 = vsel %vm3449_vm2, %v3919_v37, %v3915_v12  ;;  %v4723_v37 = vrot.slane %v16051_v16, %v15963_v54  ;;  %v16059_v16 = vld [vmem:[#allocation160_spill] sm:$0xff] }
 0x680   :  { %v14220_v7 = vpop.xlane.xlu1 %2344 }
 0x683   :  { %v14236_v61 = vpop.xlane.xlu0 %3240 }
 0x684   :  { %v3178_v17 = vpop.xlane.xlu1 %3177 }
 0x685   :  { %v4675_v38 = vrot.slane %v3178_v17, %v13351_v59  ;;  %v3929_v17 = vrot.slane %v14018_v20, %v13339_v31 }
 0x687   :  { %v4676_v25 = vsel %vm4246_vm8, %v4675_v38, %v4671_v53  ;;  %v2306_v13 = vpop.xlane.xlu0 %2305  ;;  %v16052_v38 = vld [vmem:[#allocation63_spill] sm:$0xff] }
 0x688   :  { %v14252_v0 = vsel %vm16047_vm15, %v4676_v25, %v4841_v55  ;;  %v3924_v47 = vrot.slane %v2306_v13, %v13551_v5  ;;  %v14255_v56 = vpop.xlane.xlu1 %3219  ;;  %v4680_v53 = vrot.slane %v16053_v27, %v16052_v38  ;;  %v3933_v25 = vrot.slane %v16054_v42, %v13342_v44  ;;  %v16055_v13 = vld [vmem:[#allocation142_spill] sm:$0xff] }
 0x689   :  { %16048 = vst [vmem:[#allocation60_spill] sm:$0xff] %v14252_v0  ;;  %v3938_v12 = vrot.slane %v16055_v13, %v13422_v63  ;;  %v3972_v27 = vrot.slane %v16059_v16, %v13342_v44  ;;  %vm16060_vm15 = vcmask 720512   ;;  %v16062_v13 = vld [vmem:[#allocation72_spill] sm:$0xff]  ;;  %v4767_v16 = vrot.slane %v14153_v43, %v15970_v39 }
 0x68a   :  { %v3925_v3 = vsel %vm3456_vm1, %v3924_v47, %v3920_v46  ;;  %v3968_v0 = vrot.slane %v16062_v13, %v13339_v31 }
 0x68b   :  { %v14260_v28 = vsel %vm4049_vm9, %v3925_v3, %v4059_v18  ;;  %v14262_v50 = vpop.xlane.xlu0 %2347  ;;  %v4684_v18 = vrot.slane %v13994_v19, %v15963_v54  ;;  %v16056_v19 = vld [vmem:[#allocation66_spill] sm:$0xff]  ;;  %v3934_v3 = vsel %vm3414_vm7, %v3933_v25, %v3929_v17  ;;  %v16065_v17 = vld [vmem:[#allocation101_spill] sm:$0xff]  ;;  %v3977_v25 = vrot.slane %v14102_v1, %v13422_v63  ;;  %v16066_v1 = vld [vmem:[#allocation52_spill] sm:$0xff] }
 0x68c   :  { %16049 = vst [vmem:[#allocation135_spill] sm:$0xff] %v14260_v28  ;;  %v14264_v58 = vpop.xlane.xlu1 %3261  ;;  %v4719_v20 = vrot.slane %v16056_v19, %v16052_v38  ;;  %v3939_v19 = vsel %vm3421_vm10, %v3938_v12, %v3934_v3  ;;  %v4699_v12 = vrot.slane %v14146_v51, %v13198_v34  ;;  %v4758_v3 = vrot.slane %v16066_v1, %v16052_v38 }
 0x68d   :  { %v4685_v21 = vsel %vm16058_vm13, %v4684_v18, %v4680_v53  ;;  %v4762_v53 = vrot.slane %v16065_v17, %v15963_v54  ;;  %v3982_v51 = vrot.slane %v14166_v41, %v13505_v2  ;;  %v4704_v17 = vrot.slane %v14181_v32, %v13207_v9 }
 0x68e   :  { %v4690_v28 = vsel %vm16060_vm15, %v4689_v33, %v4685_v21  ;;  %v4724_v42 = vsel %vm16061_vm11, %v4723_v37, %v4719_v20  ;;  %v3943_v37 = vrot.slane %v14109_v45, %v13505_v2  ;;  %v4007_v20 = vrot.slane %v14115_v23, %v13339_v31  ;;  %vm16068_vm11 = vmmov %vm16060_vm15 }
 0x68f   :  { %v14266_v22 = vpop.xlane.xlu0 %3201  ;;  %v3973_v21 = vsel %vm3414_vm7, %v3972_v27, %v3968_v0  ;;  %v4801_v45 = vrot.slane %v14160_v52, %v15963_v54  ;;  %v3948_v0 = vrot.slane %v14176_v8, %v13455_v30  ;;  %v4763_v13 = vsel %vm16058_vm13, %v4762_v53, %v4758_v3 }
 0x690   :  { %v14268_v49 = vpop.xlane.xlu1 %2326  ;;  %v3978_v43 = vsel %vm3421_vm10, %v3977_v25, %v3973_v21  ;;  %v4797_v54 = vrot.slane %v14142_v36, %v16052_v38  ;;  %vm16069_vm15 = vcmask 851712   ;;  %v4016_v36 = vrot.slane %v14183_v29, %v13422_v63 }
 0x691   :  { %v3983_v38 = vsel %vm3428_vm12, %v3982_v51, %v3978_v43  ;;  %v4772_v53 = vrot.slane %v14189_v60, %v13185_v48  ;;  %v4738_v25 = vrot.slane %v14199_v62, %v13198_v34  ;;  %v4021_v32 = vrot.slane %v14208_v57, %v13505_v2 }
 0x692   :  { %v3987_v63 = vrot.slane %v14220_v7, %v13455_v30  ;;  %v4777_v60 = vrot.slane %v14236_v61, %v13198_v34  ;;  %v4743_v62 = vrot.slane %v14255_v56, %v13207_v9  ;;  %v4811_v57 = vrot.slane %v14264_v58, %v13185_v48 }
 0x693   :  { %v14270_v55 = vpop.xlane.xlu0 %3243  ;;  %v3958_v56 = vrot.slane %v14268_v49, %v13467_v6 }
 0x694   :  { %v14272_v26 = vpop.xlane.xlu1 %2368 }
 0x697   :  { %v14274_v4 = vpop.xlane.xlu0 %2329 }
 0x698   :  { %16050 = vst [vmem:[#allocation162_spill] sm:$0xff] %v14274_v4  ;;  %v14276_v24 = vpop.xlane.xlu1 %3222  ;;  %v16063_v4 = vld [vmem:[#allocation129_spill] sm:$0xff] }
 0x699   :  { %v4694_v5 = vrot.slane %v16063_v4, %v13185_v48  ;;  %v4733_v4 = vrot.slane %v14137_v10, %v13185_v48  ;;  %v16067_v10 = vld [vmem:[#allocation140_spill] sm:$0xff] }
 0x69a   :  { %v4011_v23 = vrot.slane %v16067_v10, %v13342_v44 }
 0x69b   :  { %v14292_v47 = vpop.xlane.xlu0 %2371  ;;  %v4695_v31 = vsel %vm4218_vm3, %v4694_v5, %v4690_v28  ;;  %v3944_v5 = vsel %vm3428_vm12, %v3943_v37, %v3939_v19  ;;  %v3953_v37 = vrot.slane %v14204_v15, %v13524_v14  ;;  %v3992_v15 = vrot.slane %v14262_v50, %v13524_v14 }
 0x69c   :  { %v14296_v46 = vpop.xlane.xlu1 %3264  ;;  %v4012_v44 = vsel %vm3414_vm7, %v4011_v23, %v4007_v20  ;;  %v4700_v28 = vsel %vm16069_vm15, %v4699_v12, %v4695_v31  ;;  %v3949_v19 = vsel %vm16070_vm0, %v3948_v0, %v3944_v5  ;;  %v4806_v20 = vrot.slane %v14206_v11, %v15970_v39  ;;  %vm16071_vm0 = vmmov %vm16069_vm15 }
 0x69d   :  { %16057 = vst [vmem:[#allocation96_spill] sm:$0xff] %v14296_v46  ;;  %v16064_v46 = vld [vmem:[#allocation57_spill] sm:$0xff]  ;;  %v4705_v11 = vsel %vm4232_vm5, %v4704_v17, %v4700_v28  ;;  %v4017_v2 = vsel %vm3421_vm10, %v4016_v36, %v4012_v44  ;;  %v4026_v50 = vrot.slane %v14272_v26, %v13455_v30  ;;  %v3954_v12 = vsel %vm3442_vm14, %v3953_v37, %v3949_v19  ;;  %vm16072_vm7 = vmmov %vm16068_vm11 }
 0x69e   :  { %v4728_v18 = vrot.slane %v16064_v46, %v15970_v39  ;;  %v4022_v1 = vsel %vm3428_vm12, %v4021_v32, %v4017_v2  ;;  %vm16073_vm10 = vcmask 326912   ;;  %vm16074_vm15 = vmmov %vm16071_vm0  ;;  %v4782_v31 = vrot.slane %v14270_v55, %v13207_v9 }
 0x69f   :  { %v14315_v33 = vpop.xlane.xlu0 %3246  ;;  %v3988_v48 = vsel %vm16073_vm10, %v3987_v63, %v3983_v38  ;;  %v4031_v10 = vrot.slane %v14292_v47, %v13524_v14  ;;  %v3959_v23 = vsel %vm3449_vm2, %v3958_v56, %v3954_v12  ;;  %vm16075_vm12 = vmmov %vm16073_vm10  ;;  %v4748_v0 = vrot.slane %v14276_v24, %v13250_v35  ;;  %v16077_v43 = vld [vmem:[#allocation162_spill] sm:$0xff] }
 0x6a0   :  { %v14325_v46 = vpop.xlane.xlu1 %2350  ;;  %v4729_v27 = vsel %vm16068_vm11, %v4728_v18, %v4724_v42  ;;  %v4768_v42 = vsel %vm16068_vm11, %v4767_v16, %v4763_v13  ;;  %v4802_v18 = vsel %vm16058_vm13, %v4801_v45, %v4797_v54  ;;  %v3993_v49 = vsel %vm3442_vm14, %v3992_v15, %v3988_v48  ;;  %v16076_v13 = vld [vmem:[#allocation80_spill] sm:$0xff]  ;;  %v16082_v15 = vld [vmem:[#allocation135_spill] sm:$0xff] }
 0x6a1   :  { %v4734_v41 = vsel %vm4218_vm3, %v4733_v4, %v4729_v27  ;;  %v4709_v4 = vrot.slane %v14214_v40, %v13250_v35  ;;  %v4714_v40 = vrot.slane %v14266_v22, %v13351_v59  ;;  %v4773_v7 = vsel %vm4218_vm3, %v4772_v53, %v4768_v42  ;;  %v16079_v42 = vld [vmem:[#allocation100_spill] sm:$0xff] }
 0x6a2   :  { %v4739_v61 = vsel %vm16071_vm0, %v4738_v25, %v4734_v41  ;;  %v4807_v21 = vsel %vm16072_vm7, %v4806_v20, %v4802_v18  ;;  %v4778_v3 = vsel %vm16074_vm15, %v4777_v60, %v4773_v7  ;;  %v4027_v51 = vsel %vm16075_vm12, %v4026_v50, %v4022_v1  ;;  %v10322_v1 = vld [vmem:[#allocation5 + $0x140] sm:$0xff]  ;;  %v10323_v48 = vld [vmem:[#allocation5 + $0x148] sm:$0xff] }
 0x6a3   :  { %v14346_v52 = vpop.xlane.xlu0 %2353  ;;  %v4710_v22 = vsel %vm4239_vm6, %v4709_v4, %v4705_v11  ;;  %v4744_v16 = vsel %vm4232_vm5, %v4743_v62, %v4739_v61  ;;  %v4812_v30 = vsel %vm4218_vm3, %v4811_v57, %v4807_v21  ;;  %v3963_v54 = vrot.slane %v16077_v43, %v16076_v13  ;;  %vm16080_vm3 = vmmov %vm16071_vm0  ;;  %v4852_v61 = vld [vmem:[#allocation7 + $0x8] sm:$0xff] }
 0x6a4   :  { %v14352_v8 = vpop.xlane.xlu1 %3225  ;;  %v4715_v26 = vsel %vm4246_vm8, %v4714_v40, %v4710_v22  ;;  %v4787_v5 = vrot.slane %v14315_v33, %v13250_v35  ;;  %v3997_v55 = vrot.slane %v14325_v46, %v13467_v6  ;;  %v16078_v44 = vld [vmem:[#allocation96_spill] sm:$0xff]  ;;  %v4002_v24 = vrot.slane %v14346_v52, %v16076_v13  ;;  %v10324_v22 = vld [vmem:[#allocation5 + $0x170] sm:$0xff] }
 0x6a5   :  { %v4753_v14 = vrot.slane %v14352_v8, %v13351_v59  ;;  %v4816_v41 = vrot.slane %v16078_v44, %v13198_v34  ;;  %v4783_v33 = vsel %vm4232_vm5, %v4782_v31, %v4778_v3  ;;  %v4032_v36 = vsel %vm3442_vm14, %v4031_v10, %v4027_v51  ;;  %v10325_v3 = vld [vmem:[#allocation5 + $0x178] sm:$0xff]  ;;  %v10328_v44 = vld [vmem:[#allocation5 + $0x150] sm:$0xff] }
 0x6a6   :  { %v4749_v8 = vsel %vm4239_vm6, %v4748_v0, %v4744_v16  ;;  %v3964_v19 = vsel %vm3456_vm1, %v3963_v54, %v3959_v23  ;;  %v4788_v53 = vsel %vm4239_vm6, %v4787_v5, %v4783_v33  ;;  %v3998_v25 = vsel %vm3449_vm2, %v3997_v55, %v3993_v49  ;;  %v16088_v0 = vld [vmem:[#allocation136_spill] sm:$0xff]  ;;  %v16090_v54 = vld [vmem:[#allocation138_spill] sm:$0xff] }
 0x6a7   :  { %v3250_v29 = vpop.xlane.xlu0 %3249  ;;  %v4754_v37 = vsel %vm4246_vm8, %v4753_v14, %v4749_v8  ;;  %v4817_v20 = vsel %vm16080_vm3, %v4816_v41, %v4812_v30  ;;  %vm16085_vm11 = vcmask 1047559   ;;  %v9752_v16 = vpack.i.bf16 %v10325_v3, %v10324_v22  ;;  %v10326_v55 = vld [vmem:[#allocation5 + $0x1a0] sm:$0xff]  ;;  %v10327_v14 = vld [vmem:[#allocation5 + $0x1a8] sm:$0xff]  ;;  %v10329_v41 = vld [vmem:[#allocation5 + $0x158] sm:$0xff] }
 0x6a8   :  { %v3268_v39 = vpop.xlane.xlu1 %3267  ;;  %v4792_v28 = vrot.slane %v3250_v29, %v13351_v59  ;;  %v16081_v29 = vld [vmem:[#allocation60_spill] sm:$0xff]  ;;  %v10350_v22 = vld [vmem:[#allocation5 + $0x250] sm:$0xff]  ;;  %v10351_v3 = vld [vmem:[#allocation5 + $0x258] sm:$0xff] }
 0x6a9   :  { %v4843_v4 = vsel %vm4049_vm9, %v4715_v26, %v16081_v29  ;;  %v10333_v33 = vld [vmem:[#allocation5 + $0x168] sm:$0xff] }
 0x6aa   :  { %v4793_v32 = vsel %vm4246_vm8, %v4792_v28, %v4788_v53  ;;  %v4844_v11 = vsel %vm4051_vm4, %v4754_v37, %v4843_v4  ;;  %v10330_v28 = vld [vmem:[#allocation5 + $0x1c0] sm:$0xff]  ;;  %v10338_v53 = vld [vmem:[#allocation5 + $0x1f0] sm:$0xff] }
 0x6ab   :  { %v2378_v58 = vpop.xlane.xlu0 %2377 }
 0x6ac   :  { %v2375_v45 = vpop.xlane.xlu1 %2374  ;;  %v4041_v46 = vrot.slane %v2378_v58, %v16076_v13  ;;  %v9737_v58 = vpack.i.bf16 %v10323_v48, %v10322_v1  ;;  %v10348_v1 = vld [vmem:[#allocation5 + $0x1e0] sm:$0xff]  ;;  %v10349_v48 = vld [vmem:[#allocation5 + $0x1e8] sm:$0xff] }
 0x6ad   :  { %v4036_v27 = vrot.slane %v2375_v45, %v13467_v6  ;;  %v4821_v6 = vrot.slane %v3268_v39, %v13207_v9  ;;  %v4003_v9 = vsel %vm3456_vm1, %v4002_v24, %v3998_v25  ;;  %v4061_v39 = vsel %vm4051_vm4, %v3964_v19, %v16082_v15  ;;  %v10339_v25 = vld [vmem:[#allocation5 + $0x1f8] sm:$0xff]  ;;  %v10342_v15 = vld [vmem:[#allocation5 + $0x1b0] sm:$0xff] }
 0x6ae   :  { %v9742_v24 = vpack.i.bf16 %v10329_v41, %v10328_v44  ;;  %v9792_v37 = vpack.i.bf16 %v10339_v25, %v10338_v53 }
 0x6af   :  { %v4856_v47 = vpop.xlane.xlu0 %4855  ;;  %v4037_v34 = vsel %vm3449_vm2, %v4036_v27, %v4032_v36  ;;  %vm16083_vm2 = vcmask 1046534  }
 0x6b0   :  { %v4859_v18 = vsub.f32 %v16079_v42, %v4856_v47  ;;  %v3271_v17 = vpop.xlane.xlu1 %3270  ;;  %v4042_v60 = vsel %vm3456_vm1, %v4041_v46, %v4037_v34  ;;  %v4062_v57 = vsel %vm16083_vm2, %v4003_v9, %v4061_v39  ;;  %vm16084_vm14 = vmmov %vm16083_vm2  ;;  %vm16087_vm1 = vcmask 523264   ;;  %v10331_v42 = vld [vmem:[#allocation5 + $0x1c8] sm:$0xff]  ;;  %v10335_v46 = vld [vmem:[#allocation5 + $0x1d8] sm:$0xff] }
 0x6b1   :  { %v4826_v52 = vrot.slane %v3271_v17, %v13250_v35  ;;  %v4822_v35 = vsel %vm4232_vm5, %v4821_v6, %v4817_v20  ;;  %v4845_v40 = vsel %vm16084_vm14, %v4793_v32, %v4844_v11  ;;  %v4063_v56 = vsel %vm16085_vm11, %v4042_v60, %v4062_v57  ;;  %vm16086_vm5 = vmmov %vm16085_vm11  ;;  %v10332_v17 = vld [vmem:[#allocation5 + $0x160] sm:$0xff]  ;;  %v10334_v6 = vld [vmem:[#allocation5 + $0x1d0] sm:$0xff] }
 0x6b2   :  { %v4861_v38 = vmul.f32 1.442695, %v4859_v18  ;;  %v9767_v47 = vpack.i.bf16 %v10327_v14, %v10326_v55  ;;  %v9777_v18 = vpack.i.bf16 %v10331_v42, %v10330_v28  ;;  %v9747_v36 = vpack.i.bf16 %v10333_v33, %v10332_v17  ;;  %v10336_v34 = vld [vmem:[#allocation5 + $0x180] sm:$0xff]  ;;  %v10340_v32 = vld [vmem:[#allocation5 + $0x190] sm:$0xff]  ;;  %v10343_v39 = vld [vmem:[#allocation5 + $0x1b8] sm:$0xff] }
 0x6b3   :  { %v4827_v2 = vsel %vm4239_vm6, %v4826_v52, %v4822_v35  ;;  %v9782_v8 = vpack.i.bf16 %v10335_v46, %v10334_v6  ;;  %v9772_v11 = vpack.i.bf16 %v10343_v39, %v10342_v15  ;;  %v10344_v57 = vld [vmem:[#allocation5 + $0x220] sm:$0xff]  ;;  %vm10700_vm6 = vmmov 0   ;;  %v10358_v55 = vld [vmem:[#allocation5 + $0x230] sm:$0xff]  ;;  %v10359_v14 = vld [vmem:[#allocation5 + $0x238] sm:$0xff] }
 0x6b4   :  { %10313 = vpow2.f32 %v4861_v38  ;;  %v3274_v63 = vpop.xlane.xlu1 %3273  ;;  %v10337_v38 = vld [vmem:[#allocation5 + $0x188] sm:$0xff]  ;;  %vm16098_vm13 = vmmov %vm16087_vm1 }
 0x6b5   :  { %v4831_v62 = vrot.slane %v3274_v63, %v13351_v59  ;;  %v9757_v52 = vpack.i.bf16 %v10337_v38, %v10336_v34  ;;  %v10341_v63 = vld [vmem:[#allocation5 + $0x198] sm:$0xff]  ;;  %vm16100_vm0 = vmmov %vm16087_vm1 }
 0x6b6   :  { %v9762_v29 = vpack.i.bf16 %v10341_v63, %v10340_v32  ;;  %vm16167_vm7 = vmmov %vm16100_vm0 }
 0x6b7   :  { %v4832_v7 = vsel %vm4246_vm8, %v4831_v62, %v4827_v2  ;;  %v15295_v62 = vmov 0.0|0.0   ;;  %vm16096_vm8 = vmmov %vm16087_vm1 }
 0x6b8   :  { %v4846_v50 = vsel %vm16086_vm5, %v4832_v7, %v4845_v40  ;;  %9370 = vmatprep.subr.bf16.mxu1 %v15295_v62  ;;  %9310 = vmatprep.subr.bf16.mxu0 %v15295_v62  ;;  %v10345_v40 = vld [vmem:[#allocation5 + $0x228] sm:$0xff]  ;;  %vm16170_vm10 = vmmov %vm16100_vm0 }
 0x6b9   :  { %v4850_v59 = vsel %vm16087_vm1, %v4063_v56, %v4846_v50  ;;  %v9807_v7 = vpack.i.bf16 %v10345_v40, %v10344_v57  ;;  %v15297_v56 = vmov 0.0   ;;  %v10346_v50 = vld [vmem:[#allocation5 + $0x240] sm:$0xff]  ;;  %vm16171_vm15 = vmmov %vm16100_vm0 }
 0x6ba   :  { %v4854_v12 = vadd.f32 %v4852_v61, %v4850_v59  ;;  %8781 = vmatprep.mubr.msk.f32.mxu1 %vm10700_vm6, %v15297_v56  ;;  %8686 = vmatprep.mubr.msk.f32.mxu0 %vm10700_vm6, %v15297_v56  ;;  %v10347_v59 = vld [vmem:[#allocation5 + $0x248] sm:$0xff]  ;;  %vm16172_vm12 = vmmov %vm16100_vm0 }
 0x6bb   :  { %vm16173_vm3 = vmmov %vm16100_vm0 }
 0x6bc   :  { %4857 = vmax.xlane.f32.xlu1 %v4854_v12  ;;  %vm16174_vm2 = vmmov %vm16100_vm0 }
 0x6bd   :  { %vm16175_vm14 = vmmov %vm16100_vm0 }
 0x6be   :  { %v10314_v21 = vpop.eup %10313  ;;  %vm16176_vm11 = vmmov %vm16100_vm0 }
 0x6bf   :  { %4865 = vadd.xlane.f32.xlu0 %v10314_v21  ;;  %vm16177_vm5 = vmmov %vm16100_vm0 }
 0x6c0   :  { %vm16182_vm1 = vmmov %vm16100_vm0 }
 0x6d5   :  { %9738 = vrot.lane.b32.xlu0 %v9737_v58, %s10698_s25  ;;  %v9787_v58 = vpack.i.bf16 %v10349_v48, %v10348_v1  ;;  %v10363_v1 = vld [vmem:[#allocation5 + $0x2a8] sm:$0xff] }
 0x6d9   :  { %9753 = vrot.lane.b32.xlu0 %v9752_v16, %s10698_s25  ;;  %v9822_v16 = vpack.i.bf16 %v10351_v3, %v10350_v22  ;;  %v10365_v22 = vld [vmem:[#allocation5 + $0x288] sm:$0xff] }
 0x749   :  { %v4858_v49 = vpop.xlane.xlu1 %4857 }
 0x74a   :  { %v4860_v45 = vsub.f32 %v4854_v12, %v4858_v49  ;;  %v9817_v12 = vpack.i.bf16 %v10347_v59, %v10346_v50  ;;  %v10352_v49 = vld [vmem:[#allocation5 + $0x200] sm:$0xff] }
 0x74c   :  { %v4863_v30 = vmul.f32 1.442695, %v4860_v45  ;;  %v4866_v26 = vpop.xlane.xlu0 %4865  ;;  %v10353_v45 = vld [vmem:[#allocation5 + $0x208] sm:$0xff] }
 0x74d   :  { %10315 = vrcp.f32 %v4866_v26  ;;  %v10354_v26 = vld [vmem:[#allocation5 + $0x270] sm:$0xff] }
 0x74e   :  { %10317 = vpow2.f32 %v4863_v30  ;;  %v9797_v30 = vpack.i.bf16 %v10353_v45, %v10352_v49 }
 0x750   :  { %v9739_v19 = vpop.permute.xlu0 %9738 }
 0x751   :  { %v9741_v20 = vunpack.i.h.bf16 %v9739_v19  ;;  %v9740_v9 = vunpack.i.l.bf16 %v9739_v19 }
 0x753   :  { %v9371_v60 = vpack.c.bf16 %v9741_v20, %v9740_v9 }
 0x755   :  { %9372 = vmatpush3.bf16.msra.mxu1 %v9371_v60 }
 0x756   :  { %9373 = vmatprep.subr.bf16.mxu1 %v15295_v62 }
 0x757   :  { %v10316_v31 = vpop.eup %10315 }
 0x758   :  { %v14458_v10 = vpop.eup %10317  ;;  %v14460_v23 = vmul.f32 %v10316_v31, %v10314_v21  ;;  %v10355_v31 = vld [vmem:[#allocation5 + $0x278] sm:$0xff] }
 0x759   :  { %4867 = vadd.xlane.f32.xlu1 %v14458_v10 }
 0x75a   :  { %v4877_v51 = vcombine.high %v14460_v23, %v14460_v23  ;;  %4873 = vst [vmem:[#allocation14] sm:$0xff] %v14460_v23 }
 0x75c   :  { %v4891_v27 = vrot.slane %v4877_v51, %v16088_v0  ;;  %v9832_v51 = vpack.i.bf16 %v10355_v31, %v10354_v26  ;;  %v10366_v26 = vld [vmem:[#allocation5 + $0x2c0] sm:$0xff]  ;;  %v10367_v31 = vld [vmem:[#allocation5 + $0x2c8] sm:$0xff] }
 0x75e   :  { %v4893_v13 = vcombine.high %v4891_v27, %v4891_v27  ;;  %v14485_v35 = vrot.slane %v4891_v27, %v16088_v0  ;;  %v10356_v27 = vld [vmem:[#allocation5 + $0x210] sm:$0xff] }
 0x760   :  { %v14468_v43 = vrot.slane %v4893_v13, %v16088_v0  ;;  %16092 = vst [vmem:[#allocation131_spill] sm:$0xff] %v14485_v35  ;;  %v14496_v61 = vcombine.high %v14485_v35, %v14485_v35  ;;  %v10357_v13 = vld [vmem:[#allocation5 + $0x218] sm:$0xff] }
 0x762   :  { %16089 = vst [vmem:[#allocation71_spill] sm:$0xff] %v14468_v43  ;;  %v5488_v5 = vrot.slane %v14468_v43, %v16090_v54  ;;  %v14481_v4 = vcombine.high %v14468_v43, %v14468_v43  ;;  %16093 = vst [vmem:[#allocation156_spill] sm:$0xff] %v14496_v61  ;;  %v5590_v21 = vrot.slane %v14496_v61, %v16090_v54 }
 0x764   :  { %5489 = vrot.lane.b32.xlu0 %v5488_v5, %s10697_s5  ;;  %16091 = vst [vmem:[#allocation154_spill] sm:$0xff] %v14481_v4  ;;  %v5692_v2 = vrot.slane %v14481_v4, %v16090_v54  ;;  %v9802_v5 = vpack.i.bf16 %v10357_v13, %v10356_v27  ;;  %v10368_v13 = vld [vmem:[#allocation5 + $0x290] sm:$0xff] }
 0x768   :  { %9768 = vrot.lane.b32.xlu0 %v9767_v47, %s10698_s25  ;;  %v9812_v47 = vpack.i.bf16 %v10359_v14, %v10358_v55 }
 0x76a   :  { %9743 = vrot.lane.b32.xlu1 %v9742_v24, %s10698_s25 }
 0x76c   :  { %9778 = vrot.lane.b32.xlu0 %v9777_v18, %s10698_s25  ;;  %v9754_v18 = vpop.permute.xlu0 %9753 }
 0x76d   :  { %v9756_v33 = vunpack.i.h.bf16 %v9754_v18 }
 0x76e   :  { %9748 = vrot.lane.b32.xlu1 %v9747_v36, %s10698_s25  ;;  %v9755_v36 = vunpack.i.l.bf16 %v9754_v18  ;;  %v10372_v18 = vld [vmem:[#allocation5 + $0x2b0] sm:$0xff] }
 0x770   :  { %9783 = vrot.lane.b32.xlu0 %v9782_v8, %s10698_s25  ;;  %v9380_v19 = vpack.c.bf16 %v9756_v33, %v9755_v36 }
 0x772   :  { %9758 = vrot.lane.b32.xlu1 %v9757_v52, %s10698_s25 }
 0x774   :  { %9793 = vrot.lane.b32.xlu0 %v9792_v37, %s10698_s25 }
 0x776   :  { %9763 = vrot.lane.b32.xlu1 %v9762_v29, %s10698_s25 }
 0x778   :  { %5693 = vrot.lane.b32.xlu0 %v5692_v2, %s10697_s5  ;;  %v10361_v2 = vld [vmem:[#allocation5 + $0x268] sm:$0xff] }
 0x77a   :  { %9773 = vrot.lane.b32.xlu1 %v9772_v11, %s10698_s25  ;;  %v10360_v11 = vld [vmem:[#allocation5 + $0x260] sm:$0xff] }
 0x77b   :  { %v9827_v57 = vpack.i.bf16 %v10361_v2, %v10360_v11 }
 0x77c   :  { %9808 = vrot.lane.b32.xlu0 %v9807_v7, %s10698_s25 }
 0x77e   :  { %5591 = vrot.lane.b32.xlu1 %v5590_v21, %s10697_s5  ;;  %v10362_v21 = vld [vmem:[#allocation5 + $0x2a0] sm:$0xff] }
 0x77f   :  { %v9847_v48 = vpack.i.bf16 %v10363_v1, %v10362_v21  ;;  %v10380_v1 = vld [vmem:[#allocation5 + $0x300] sm:$0xff] }
 0x780   :  { %9818 = vrot.lane.b32.xlu0 %v9817_v12, %s10698_s25 }
 0x782   :  { %9788 = vrot.lane.b32.xlu1 %v9787_v58, %s10698_s25  ;;  %v10364_v58 = vld [vmem:[#allocation5 + $0x280] sm:$0xff] }
 0x783   :  { %v9837_v3 = vpack.i.bf16 %v10365_v22, %v10364_v58 }
 0x784   :  { %9823 = vrot.lane.b32.xlu0 %v9822_v16, %s10698_s25 }
 0x786   :  { %9798 = vrot.lane.b32.xlu1 %v9797_v30, %s10698_s25 }
 0x788   :  { %9833 = vrot.lane.b32.xlu0 %v9832_v51, %s10698_s25  ;;  %v9857_v51 = vpack.i.bf16 %v10367_v31, %v10366_v26 }
 0x78a   :  { %9803 = vrot.lane.b32.xlu1 %v9802_v5, %s10698_s25  ;;  %v10369_v5 = vld [vmem:[#allocation5 + $0x298] sm:$0xff] }
 0x78b   :  { %v9842_v55 = vpack.i.bf16 %v10369_v5, %v10368_v13 }
 0x78e   :  { %9813 = vrot.lane.b32.xlu1 %v9812_v47, %s10698_s25 }
 0x7d6   :  { %v5490_v37 = vpop.permute.xlu0 %5489 }
 0x7da   :  { %v9769_v40 = vpop.permute.xlu0 %9768 }
 0x7db   :  { %v9771_v50 = vunpack.i.h.bf16 %v9769_v40  ;;  %v9770_v59 = vunpack.i.l.bf16 %v9769_v40 }
 0x7dd   :  { %v9389_v49 = vpack.c.bf16 %v9771_v50, %v9770_v59  ;;  %v10378_v59 = vld [vmem:[#allocation5 + $0x320] sm:$0xff] }
 0x7de   :  { %v9779_v27 = vpop.permute.xlu0 %9778 }
 0x7df   :  { %v9781_v14 = vunpack.i.h.bf16 %v9779_v27  ;;  %v9780_v47 = vunpack.i.l.bf16 %v9779_v27  ;;  %v10385_v27 = vld [vmem:[#allocation5 + $0x318] sm:$0xff] }
 0x7e2   :  { %v9784_v36 = vpop.permute.xlu0 %9783 }
 0x7e6   :  { %v4868_v44 = vpop.xlane.xlu1 %4867  ;;  %v9794_v11 = vpop.permute.xlu0 %9793 }
 0x7e7   :  { %10319 = vrcp.f32 %v4868_v44  ;;  %v9796_v40 = vunpack.i.h.bf16 %v9794_v11 }
 0x7ea   :  { %v9744_v41 = vpop.permute.xlu1 %9743  ;;  %v5694_v5 = vpop.permute.xlu0 %5693 }
 0x7eb   :  { %v9746_v24 = vunpack.i.h.bf16 %v9744_v41  ;;  %v9745_v28 = vunpack.i.l.bf16 %v9744_v41  ;;  %v10370_v41 = vld [vmem:[#allocation5 + $0x2d0] sm:$0xff] }
 0x7ed   :  { %v9374_v42 = vpack.c.bf16 %v9746_v24, %v9745_v28  ;;  %v10371_v24 = vld [vmem:[#allocation5 + $0x2d8] sm:$0xff] }
 0x7ee   :  { %v9749_v17 = vpop.permute.xlu1 %9748  ;;  %v9862_v28 = vpack.i.bf16 %v10371_v24, %v10370_v41  ;;  %v10387_v41 = vld [vmem:[#allocation5 + $0x358] sm:$0xff] }
 0x7ef   :  { %v9751_v6 = vunpack.i.h.bf16 %v9749_v17  ;;  %v9750_v46 = vunpack.i.l.bf16 %v9749_v17  ;;  %9375 = vmatpush3.bf16.msra.mxu1 %v9374_v42  ;;  %v10373_v17 = vld [vmem:[#allocation5 + $0x2b8] sm:$0xff] }
 0x7f0   :  { %9376 = vmatprep.subr.bf16.mxu1 %v15295_v62  ;;  %v9852_v33 = vpack.i.bf16 %v10373_v17, %v10372_v18 }
 0x7f1   :  { %v10320_v8 = vpop.eup %10319  ;;  %v9377_v34 = vpack.c.bf16 %v9751_v6, %v9750_v46  ;;  %v9395_v6 = vpack.c.bf16 %v9781_v14, %v9780_v47  ;;  %v9786_v46 = vunpack.i.h.bf16 %v9784_v36 }
 0x7f2   :  { %v14516_v38 = vmul.f32 %v10320_v8, %v14458_v10  ;;  %v9759_v52 = vpop.permute.xlu1 %9758  ;;  %v9785_v8 = vunpack.i.l.bf16 %v9784_v36 }
 0x7f3   :  { %v9761_v53 = vunpack.i.h.bf16 %v9759_v52  ;;  %v9760_v25 = vunpack.i.l.bf16 %v9759_v52  ;;  %9378 = vmatpush3.bf16.msra.mxu1 %v9377_v34  ;;  %v10374_v34 = vld [vmem:[#allocation5 + $0x2f0] sm:$0xff]  ;;  %v10375_v52 = vld [vmem:[#allocation5 + $0x2f8] sm:$0xff] }
 0x7f4   :  { %4874 = vst [vmem:[#allocation14 + $0x8] sm:$0xff] %v14516_v38  ;;  %9379 = vmatprep.subr.bf16.mxu1 %v15295_v62  ;;  %v4933_v20 = vrot.slane %v14516_v38, %v16088_v0  ;;  %v4926_v22 = vcombine.high %v14516_v38, %v14516_v38 }
 0x7f5   :  { %v9383_v10 = vpack.c.bf16 %v9761_v53, %v9760_v25 }
 0x7f6   :  { %v9764_v9 = vpop.permute.xlu1 %9763  ;;  %v14523_v32 = vrot.slane %v4933_v20, %v16088_v0  ;;  %v4941_v63 = vcombine.high %v4933_v20, %v4933_v20  ;;  %v9398_v20 = vpack.c.bf16 %v9786_v46, %v9785_v8  ;;  %v4940_v38 = vrot.slane %v4926_v22, %v16088_v0  ;;  %v10390_v8 = vld [vmem:[#allocation5 + $0x370] sm:$0xff] }
 0x7f7   :  { %v9766_v29 = vunpack.i.h.bf16 %v9764_v9  ;;  %v9765_v60 = vunpack.i.l.bf16 %v9764_v9  ;;  %9381 = vmatpush3.bf16.msra.mxu1 %v9380_v19  ;;  %v9872_v19 = vpack.i.bf16 %v10375_v52, %v10374_v34  ;;  %v10391_v34 = vld [vmem:[#allocation5 + $0x378] sm:$0xff] }
 0x7f8   :  { %16094 = vst [vmem:[#allocation106_spill] sm:$0xff] %v14523_v32  ;;  %v5794_v15 = vrot.slane %v14523_v32, %v16090_v54  ;;  %9382 = vmatprep.subr.bf16.mxu1 %v15295_v62  ;;  %v14529_v39 = vrot.slane %v4941_v63, %v16088_v0  ;;  %v14550_v53 = vcombine.high %v14523_v32, %v14523_v32 }
 0x7f9   :  { %v9386_v12 = vpack.c.bf16 %v9766_v29, %v9765_v60  ;;  %v10376_v29 = vld [vmem:[#allocation5 + $0x2e0] sm:$0xff]  ;;  %v10377_v60 = vld [vmem:[#allocation5 + $0x2e8] sm:$0xff]  ;;  %v4942_v17 = vcombine.high %v4940_v38, %v4940_v38  ;;  %v9912_v52 = vpack.i.bf16 %v10391_v34, %v10390_v8 }
 0x7fa   :  { %16095 = vst [vmem:[#allocation97_spill] sm:$0xff] %v14529_v39  ;;  %5795 = vrot.lane.b32.xlu1 %v5794_v15, %s10697_s5  ;;  %8782 = vmatmul.mubr.msk.f32.vlgmr.msra.gmra.mrb[0].mxu1 %vm16096_vm8, %v5490_v37  ;;  %v5896_v7 = vrot.slane %v14529_v39, %v16090_v54  ;;  %v9774_v16 = vpop.permute.xlu1 %9773  ;;  %16097 = vst [vmem:[#allocation159_spill] sm:$0xff] %v14550_v53  ;;  %v14556_v37 = vcombine.high %v14529_v39, %v14529_v39  ;;  %v14758_v39 = vld [vmem:[#allocation5 + $0x3d8] sm:$0xff] }
 0x7fb   :  { %9384 = vmatpush3.bf16.msra.mxu1 %v9383_v10  ;;  %8800 = vmatprep.mubr.msk.f32.mxu1 %vm10700_vm6, %v15297_v56  ;;  %v9776_v45 = vunpack.i.h.bf16 %v9774_v16  ;;  %v9775_v30 = vunpack.i.l.bf16 %v9774_v16  ;;  %v5998_v10 = vrot.slane %v14550_v53, %v16090_v54  ;;  %v9867_v15 = vpack.i.bf16 %v10377_v60, %v10376_v29  ;;  %v10392_v60 = vld [vmem:[#allocation5 + $0x360] sm:$0xff]  ;;  %v14756_v53 = vld [vmem:[#allocation5 + $0x3d0] sm:$0xff]  ;;  %16164 = vst [vmem:[#allocation112_spill] sm:$0xff] %v14758_v39  ;;  %vm16183_vm8 = vmmov %vm16100_vm0 }
 0x7fc   :  { %5897 = vrot.lane.b32.xlu0 %v5896_v7, %s10697_s5  ;;  %9385 = vmatprep.subr.bf16.mxu1 %v15295_v62  ;;  %16099 = vst [vmem:[#allocation78_spill] sm:$0xff] %v14556_v37  ;;  %v6100_v2 = vrot.slane %v14556_v37, %v16090_v54  ;;  %v9795_v7 = vunpack.i.l.bf16 %v9794_v11  ;;  %16163 = vst [vmem:[#allocation104_spill] sm:$0xff] %v14756_v53 }
 0x7fd   :  { %v9392_v44 = vpack.c.bf16 %v9776_v45, %v9775_v30  ;;  %v10382_v45 = vld [vmem:[#allocation5 + $0x340] sm:$0xff]  ;;  %v10383_v30 = vld [vmem:[#allocation5 + $0x348] sm:$0xff] }
 0x7fe   :  { %9828 = vrot.lane.b32.xlu1 %v9827_v57, %s10698_s25  ;;  %v5592_v42 = vpop.permute.xlu1 %5591  ;;  %v9897_v26 = vpack.i.bf16 %v10383_v30, %v10382_v45  ;;  %v4884_v30 = vrot.slane %v14460_v23, %v16088_v0 }
 0x7ff   :  { %9387 = vmatpush3.bf16.msra.mxu1 %v9386_v12  ;;  %v10379_v12 = vld [vmem:[#allocation5 + $0x328] sm:$0xff] }
 0x800   :  { %9848 = vrot.lane.b32.xlu0 %v9847_v48, %s10698_s25  ;;  %9388 = vmatprep.subr.bf16.mxu1 %v15295_v62  ;;  %v9887_v21 = vpack.i.bf16 %v10379_v12, %v10378_v59  ;;  %v10381_v48 = vld [vmem:[#allocation5 + $0x308] sm:$0xff]  ;;  %v10396_v59 = vld [vmem:[#allocation5 + $0x380] sm:$0xff]  ;;  %v4892_v34 = vcombine.high %v4884_v30, %v4884_v30 }
 0x801   :  { %v9877_v58 = vpack.i.bf16 %v10381_v48, %v10380_v1  ;;  %v10397_v12 = vld [vmem:[#allocation5 + $0x388] sm:$0xff]  ;;  %v10398_v48 = vld [vmem:[#allocation5 + $0x390] sm:$0xff] }
 0x802   :  { %9838 = vrot.lane.b32.xlu1 %v9837_v3, %s10698_s25  ;;  %v9789_v25 = vpop.permute.xlu1 %9788  ;;  %v9404_v3 = vpack.c.bf16 %v9796_v40, %v9795_v7  ;;  %v10394_v40 = vld [vmem:[#allocation5 + $0x3a0] sm:$0xff]  ;;  %v10395_v7 = vld [vmem:[#allocation5 + $0x3a8] sm:$0xff] }
 0x803   :  { %9390 = vmatpush3.bf16.msra.mxu1 %v9389_v49  ;;  %v9791_v9 = vunpack.i.h.bf16 %v9789_v25  ;;  %v9790_v63 = vunpack.i.l.bf16 %v9789_v25 }
 0x804   :  { %9858 = vrot.lane.b32.xlu0 %v9857_v51, %s10698_s25  ;;  %9391 = vmatprep.subr.bf16.mxu1 %v15295_v62  ;;  %v10384_v51 = vld [vmem:[#allocation5 + $0x310] sm:$0xff] }
 0x805   :  { %v9401_v50 = vpack.c.bf16 %v9791_v9, %v9790_v63  ;;  %v9882_v13 = vpack.i.bf16 %v10385_v27, %v10384_v51  ;;  %v14620_v27 = vrot.slane %v4884_v30, %v16088_v0  ;;  %v16145_v30 = vld [vmem:[#allocation47_spill] sm:$0xff] }
 0x806   :  { %9843 = vrot.lane.b32.xlu1 %v9842_v55, %s10698_s25  ;;  %v9799_v57 = vpop.permute.xlu1 %9798 }
 0x807   :  { %9393 = vmatpush3.bf16.msra.mxu1 %v9392_v44  ;;  %v9801_v16 = vunpack.i.h.bf16 %v9799_v57  ;;  %v9800_v49 = vunpack.i.l.bf16 %v9799_v57  ;;  %v10386_v44 = vld [vmem:[#allocation5 + $0x350] sm:$0xff]  ;;  %v4978_v23 = vrot.slane %v14620_v27, %v16090_v54 }
 0x808   :  { %9863 = vrot.lane.b32.xlu0 %v9862_v28, %s10698_s25  ;;  %9394 = vmatprep.subr.bf16.mxu1 %v15295_v62  ;;  %v9902_v24 = vpack.i.bf16 %v10387_v41, %v10386_v44  ;;  %v10388_v28 = vld [vmem:[#allocation5 + $0x330] sm:$0xff]  ;;  %v16113_v44 = vld [vmem:[#allocation27_spill] sm:$0xff] }
 0x809   :  { %v9407_v55 = vpack.c.bf16 %v9801_v16, %v9800_v49  ;;  %v10400_v16 = vld [vmem:[#allocation5 + $0x3b0] sm:$0xff]  ;;  %v10401_v49 = vld [vmem:[#allocation5 + $0x3b8] sm:$0xff] }
 0x80a   :  { %9853 = vrot.lane.b32.xlu1 %v9852_v33, %s10698_s25  ;;  %8801 = vmatmul.mubr.msk.f32.vlgmr.msra.gmra.mrb[2].mxu1 %vm16098_vm13, %v5592_v42  ;;  %v9804_v31 = vpop.permute.xlu1 %9803  ;;  %v10389_v42 = vld [vmem:[#allocation5 + $0x338] sm:$0xff]  ;;  %v9809_v33 = vpop.permute.xlu0 %9808  ;;  %v9932_v45 = vpack.i.bf16 %v10401_v49, %v10400_v16  ;;  %vm16188_vm13 = vmmov %vm16100_vm0 }
 0x80b   :  { %9396 = vmatpush3.bf16.msra.mxu1 %v9395_v6  ;;  %8819 = vmatprep.mubr.msk.f32.mxu1 %vm10700_vm6, %v15297_v56  ;;  %v9806_v14 = vunpack.i.h.bf16 %v9804_v31  ;;  %v9805_v47 = vunpack.i.l.bf16 %v9804_v31  ;;  %v9892_v18 = vpack.i.bf16 %v10389_v42, %v10388_v28  ;;  %v9811_v6 = vunpack.i.h.bf16 %v9809_v33  ;;  %v16105_v31 = vld [vmem:[#allocation24_spill] sm:$0xff]  ;;  %v16114_v41 = vld [vmem:[#allocation26_spill] sm:$0xff]  ;;  %v16116_v28 = vld [vmem:[#allocation35_spill] sm:$0xff] }
 0x80c   :  { %9873 = vrot.lane.b32.xlu0 %v9872_v19, %s10698_s25  ;;  %9397 = vmatprep.subr.bf16.mxu1 %v15295_v62  ;;  %v9810_v46 = vunpack.i.l.bf16 %v9809_v33  ;;  %v14584_v19 = vrot.slane %v4940_v38, %v16088_v0  ;;  %v16117_v42 = vld [vmem:[#allocation34_spill] sm:$0xff]  ;;  %v16142_v16 = vld [vmem:[#allocation51_spill] sm:$0xff] }
 0x80d   :  { %v9410_v36 = vpack.c.bf16 %v9806_v14, %v9805_v47  ;;  %v16111_v14 = vld [vmem:[#allocation22_spill] sm:$0xff] }
 0x80e   :  { %5999 = vrot.lane.b32.xlu1 %v5998_v10, %s10697_s5  ;;  %16101 = vst [vmem:[#allocation74_spill] sm:$0xff] %v14584_v19  ;;  %v9814_v25 = vpop.permute.xlu1 %9813  ;;  %v9413_v9 = vpack.c.bf16 %v9811_v6, %v9810_v46  ;;  %v6202_v29 = vrot.slane %v14584_v19, %v16090_v54  ;;  %v14603_v1 = vcombine.high %v14584_v19, %v14584_v19  ;;  %v16120_v33 = vld [vmem:[#allocation30_spill] sm:$0xff]  ;;  %v16122_v6 = vld [vmem:[#allocation39_spill] sm:$0xff] }
 0x80f   :  { %9399 = vmatpush3.bf16.msra.mxu1 %v9398_v20  ;;  %v14589_v20 = vrot.slane %v4942_v17, %v16088_v0  ;;  %v9816_v63 = vunpack.i.h.bf16 %v9814_v25  ;;  %v9815_v10 = vunpack.i.l.bf16 %v9814_v25  ;;  %v16119_v17 = vld [vmem:[#allocation31_spill] sm:$0xff]  ;;  %v16123_v46 = vld [vmem:[#allocation38_spill] sm:$0xff]  ;;  %v16126_v25 = vld [vmem:[#allocation32_spill] sm:$0xff] }
 0x810   :  { %6101 = vrot.lane.b32.xlu0 %v6100_v2, %s10697_s5  ;;  %9400 = vmatprep.subr.bf16.mxu1 %v15295_v62  ;;  %16103 = vst [vmem:[#allocation164_spill] sm:$0xff] %v14603_v1  ;;  %v16124_v8 = vpack.i.bf16 %v16122_v6, %v16123_v46  ;;  %v16143_v49 = vld [vmem:[#allocation50_spill] sm:$0xff] }
 0x811   :  { %16102 = vst [vmem:[#allocation137_spill] sm:$0xff] %v14589_v20  ;;  %v6304_v2 = vrot.slane %v14589_v20, %v16090_v54  ;;  %v9416_v57 = vpack.c.bf16 %v9816_v63, %v9815_v10  ;;  %v16128_v63 = vld [vmem:[#allocation41_spill] sm:$0xff]  ;;  %v16129_v10 = vld [vmem:[#allocation40_spill] sm:$0xff]  ;;  %v14752_v37 = vcombine.high %v14589_v20, %v14589_v20 }
 0x812   :  { %9868 = vrot.lane.b32.xlu1 %v9867_v15, %s10698_s25  ;;  %v10393_v15 = vld [vmem:[#allocation5 + $0x368] sm:$0xff] }
 0x813   :  { %9402 = vmatpush3.bf16.msra.mxu1 %v9401_v50  ;;  %v9907_v11 = vpack.i.bf16 %v10393_v15, %v10392_v60  ;;  %v9927_v50 = vpack.i.bf16 %v10395_v7, %v10394_v40  ;;  %v14658_v60 = vrot.slane %v4892_v34, %v16088_v0  ;;  %v16131_v15 = vld [vmem:[#allocation37_spill] sm:$0xff]  ;;  %v16135_v7 = vld [vmem:[#allocation44_spill] sm:$0xff]  ;;  %16162 = vst [vmem:[#allocation144_spill] sm:$0xff] %v14752_v37 }
 0x814   :  { %9888 = vrot.lane.b32.xlu0 %v9887_v21, %s10698_s25  ;;  %9403 = vmatprep.subr.bf16.mxu1 %v15295_v62  ;;  %v9917_v21 = vpack.i.bf16 %v10397_v12, %v10396_v59  ;;  %v16134_v40 = vld [vmem:[#allocation45_spill] sm:$0xff]  ;;  %v16137_v12 = vld [vmem:[#allocation43_spill] sm:$0xff]  ;;  %v6508_v61 = vrot.slane %v14752_v37, %v16090_v54 }
 0x815   :  { %v5080_v59 = vrot.slane %v14658_v60, %v16090_v54  ;;  %v16150_v34 = vld [vmem:[#allocation49_spill] sm:$0xff] }
 0x816   :  { %9878 = vrot.lane.b32.xlu1 %v9877_v58, %s10698_s25  ;;  %v10399_v58 = vld [vmem:[#allocation5 + $0x398] sm:$0xff] }
 0x817   :  { %9405 = vmatpush3.bf16.msra.mxu1 %v9404_v3  ;;  %v9922_v22 = vpack.i.bf16 %v10399_v58, %v10398_v48  ;;  %v6406_v3 = vrot.slane %v14603_v1, %v16090_v54  ;;  %v14682_v58 = vld [vmem:[#allocation5 + $0x100] sm:$0xff]  ;;  %v14746_v1 = vld [vmem:[#allocation5 + $0x3c8] sm:$0xff] }
 0x818   :  { %9898 = vrot.lane.b32.xlu0 %v9897_v26, %s10698_s25  ;;  %9406 = vmatprep.subr.bf16.mxu1 %v15295_v62  ;;  %v16104_v26 = vld [vmem:[#allocation25_spill] sm:$0xff]  ;;  %16140 = vst [vmem:[#allocation127_spill] sm:$0xff] %v14682_v58  ;;  %16161 = vst [vmem:[#allocation95_spill] sm:$0xff] %v14746_v1 }
 0x819   :  { %v16106_v51 = vpack.i.bf16 %v16104_v26, %v16105_v31 }
 0x81a   :  { %9883 = vrot.lane.b32.xlu1 %v9882_v13, %s10698_s25  ;;  %8820 = vmatmul.mubr.msk.f32.vlgmr.msra.gmra.mrb[4].mxu1 %vm16100_vm0, %v5694_v5  ;;  %v16107_v13 = vld [vmem:[#allocation29_spill] sm:$0xff]  ;;  %v16108_v5 = vld [vmem:[#allocation28_spill] sm:$0xff] }
 0x81b   :  { %9408 = vmatpush3.bf16.msra.mxu1 %v9407_v55  ;;  %8838 = vmatprep.mubr.msk.f32.mxu1 %vm10700_vm6, %v15297_v56  ;;  %v16109_v38 = vpack.i.bf16 %v16107_v13, %v16108_v5  ;;  %v16110_v55 = vld [vmem:[#allocation23_spill] sm:$0xff] }
 0x81c   :  { %9903 = vrot.lane.b32.xlu0 %v9902_v24, %s10698_s25  ;;  %9409 = vmatprep.subr.bf16.mxu1 %v15295_v62  ;;  %v16112_v47 = vpack.i.bf16 %v16110_v55, %v16111_v14  ;;  %v16115_v24 = vpack.i.bf16 %v16113_v44, %v16114_v41  ;;  %v14744_v56 = vld [vmem:[#allocation5 + $0x3c0] sm:$0xff] }
 0x81d   :  { %16160 = vst [vmem:[#allocation168_spill] sm:$0xff] %v14744_v56  ;;  %v10037_v19 = vpack.i.bf16 %v14746_v1, %v14744_v56 }
 0x81e   :  { %9893 = vrot.lane.b32.xlu1 %v9892_v18, %s10698_s25  ;;  %v16118_v18 = vpack.i.bf16 %v16116_v28, %v16117_v42 }
 0x81f   :  { %9411 = vmatpush3.bf16.msra.mxu1 %v9410_v36  ;;  %v16121_v36 = vpack.i.bf16 %v16119_v17, %v16120_v33 }
 0x820   :  { %9913 = vrot.lane.b32.xlu0 %v9912_v52, %s10698_s25  ;;  %9412 = vmatprep.subr.bf16.mxu1 %v15295_v62  ;;  %v16125_v52 = vld [vmem:[#allocation33_spill] sm:$0xff] }
 0x822   :  { %6203 = vrot.lane.b32.xlu1 %v6202_v29, %s10697_s5  ;;  %v16130_v29 = vpack.i.bf16 %v16128_v63, %v16129_v10 }
 0x823   :  { %9414 = vmatpush3.bf16.msra.mxu1 %v9413_v9  ;;  %v16127_v9 = vpack.i.bf16 %v16125_v52, %v16126_v25 }
 0x824   :  { %6305 = vrot.lane.b32.xlu0 %v6304_v2, %s10697_s5  ;;  %9415 = vmatprep.subr.bf16.mxu1 %v15295_v62 }
 0x826   :  { %9908 = vrot.lane.b32.xlu1 %v9907_v11, %s10698_s25  ;;  %v16132_v11 = vld [vmem:[#allocation36_spill] sm:$0xff] }
 0x827   :  { %9417 = vmatpush3.bf16.msra.mxu1 %v9416_v57  ;;  %v16133_v2 = vpack.i.bf16 %v16131_v15, %v16132_v11  ;;  %v14666_v57 = vcombine.high %v14620_v27, %v14620_v27 }
 0x828   :  { %9928 = vrot.lane.b32.xlu0 %v9927_v50, %s10698_s25  ;;  %9418 = vmatprep.subr.bf16.mxu1 %v15295_v62  ;;  %v16136_v50 = vpack.i.bf16 %v16134_v40, %v16135_v7  ;;  %v14737_v62 = vld [vmem:[#allocation5 + $0x3e0] sm:$0xff] }
 0x829   :  { %v5182_v0 = vrot.slane %v14666_v57, %v16090_v54  ;;  %16158 = vst [vmem:[#allocation56_spill] sm:$0xff] %v14737_v62 }
 0x82a   :  { %9918 = vrot.lane.b32.xlu1 %v9917_v21, %s10698_s25  ;;  %v16138_v21 = vld [vmem:[#allocation42_spill] sm:$0xff] }
 0x82b   :  { %v16139_v48 = vpack.i.bf16 %v16137_v12, %v16138_v21 }
 0x82c   :  { %6407 = vrot.lane.b32.xlu0 %v6406_v3, %s10697_s5 }
 0x82e   :  { %9923 = vrot.lane.b32.xlu1 %v9922_v22, %s10698_s25  ;;  %v14684_v22 = vld [vmem:[#allocation5 + $0x108] sm:$0xff] }
 0x82f   :  { %16141 = vst [vmem:[#allocation130_spill] sm:$0xff] %v14684_v22  ;;  %v10017_v3 = vpack.i.bf16 %v14684_v22, %v14682_v58 }
 0x830   :  { %9943 = vrot.lane.b32.xlu0 %v16106_v51, %s10698_s25  ;;  %v16146_v51 = vld [vmem:[#allocation46_spill] sm:$0xff] }
 0x832   :  { %9933 = vrot.lane.b32.xlu1 %v9932_v45, %s10698_s25  ;;  %v16144_v45 = vpack.i.bf16 %v16142_v16, %v16143_v49 }
 0x834   :  { %9953 = vrot.lane.b32.xlu0 %v16109_v38, %s10698_s25  ;;  %v16147_v38 = vpack.i.bf16 %v16145_v30, %v16146_v51 }
 0x836   :  { %9938 = vrot.lane.b32.xlu1 %v16112_v47, %s10698_s25  ;;  %v14696_v47 = vld [vmem:[#allocation5 + $0x110] sm:$0xff] }
 0x837   :  { %16148 = vst [vmem:[#allocation98_spill] sm:$0xff] %v14696_v47 }
 0x838   :  { %4979 = vrot.lane.b32.xlu0 %v4978_v23, %s10697_s5  ;;  %v14698_v23 = vld [vmem:[#allocation5 + $0x118] sm:$0xff] }
 0x839   :  { %16149 = vst [vmem:[#allocation58_spill] sm:$0xff] %v14698_v23 }
 0x83a   :  { %9948 = vrot.lane.b32.xlu1 %v16115_v24, %s10698_s25  ;;  %v10022_v24 = vpack.i.bf16 %v14698_v23, %v14696_v47 }
 0x83c   :  { %9968 = vrot.lane.b32.xlu0 %v16118_v18, %s10698_s25  ;;  %v14703_v18 = vld [vmem:[#allocation5 + $0xf0] sm:$0xff] }
 0x83e   :  { %9958 = vrot.lane.b32.xlu1 %v16121_v36, %s10698_s25  ;;  %v14705_v36 = vld [vmem:[#allocation5 + $0xf8] sm:$0xff] }
 0x840   :  { %9978 = vrot.lane.b32.xlu0 %v16124_v8, %s10698_s25  ;;  %v10012_v8 = vpack.i.bf16 %v14705_v36, %v14703_v18 }
 0x842   :  { %9963 = vrot.lane.b32.xlu1 %v16127_v9, %s10698_s25  ;;  %v16151_v9 = vld [vmem:[#allocation48_spill] sm:$0xff] }
 0x844   :  { %9983 = vrot.lane.b32.xlu0 %v16130_v29, %s10698_s25  ;;  %v16152_v29 = vpack.i.bf16 %v16150_v34, %v16151_v9 }
 0x846   :  { %9973 = vrot.lane.b32.xlu1 %v16133_v2, %s10698_s25  ;;  %v14713_v2 = vld [vmem:[#allocation5 + $0x130] sm:$0xff] }
 0x847   :  { %16153 = vst [vmem:[#allocation105_spill] sm:$0xff] %v14713_v2 }
 0x848   :  { %9993 = vrot.lane.b32.xlu0 %v16136_v50, %s10698_s25  ;;  %v14715_v50 = vld [vmem:[#allocation5 + $0x138] sm:$0xff] }
 0x849   :  { %16154 = vst [vmem:[#allocation161_spill] sm:$0xff] %v14715_v50 }
 0x84a   :  { %5081 = vrot.lane.b32.xlu1 %v5080_v59, %s10697_s5  ;;  %v10032_v59 = vpack.i.bf16 %v14715_v50, %v14713_v2  ;;  %v14769_v50 = vld [vmem:[#allocation5 + $0x3f8] sm:$0xff] }
 0x84b   :  { %16166 = vst [vmem:[#allocation146_spill] sm:$0xff] %v14769_v50 }
 0x84c   :  { %5183 = vrot.lane.b32.xlu0 %v5182_v0, %s10697_s5  ;;  %v14722_v0 = vcombine.high %v14658_v60, %v14658_v60 }
 0x84e   :  { %9988 = vrot.lane.b32.xlu1 %v16139_v48, %s10698_s25  ;;  %16155 = vst [vmem:[#allocation102_spill] sm:$0xff] %v14722_v0  ;;  %v5284_v48 = vrot.slane %v14722_v0, %v16090_v54 }
 0x850   :  { %10008 = vrot.lane.b32.xlu0 %v16144_v45, %s10698_s25  ;;  %v14728_v45 = vld [vmem:[#allocation5 + $0x120] sm:$0xff] }
 0x851   :  { %16156 = vst [vmem:[#allocation163_spill] sm:$0xff] %v14728_v45 }
 0x852   :  { %9998 = vrot.lane.b32.xlu1 %v16147_v38, %s10698_s25  ;;  %v14730_v38 = vld [vmem:[#allocation5 + $0x128] sm:$0xff] }
 0x853   :  { %16157 = vst [vmem:[#allocation166_spill] sm:$0xff] %v14730_v38 }
 0x854   :  { %10018 = vrot.lane.b32.xlu0 %v10017_v3, %s10698_s25  ;;  %v9819_v3 = vpop.permute.xlu0 %9818 }
 0x855   :  { %v9821_v32 = vunpack.i.h.bf16 %v9819_v3  ;;  %v9820_v4 = vunpack.i.l.bf16 %v9819_v3 }
 0x856   :  { %10003 = vrot.lane.b32.xlu1 %v16152_v29, %s10698_s25  ;;  %v10027_v29 = vpack.i.bf16 %v14730_v38, %v14728_v45 }
 0x858   :  { %10023 = vrot.lane.b32.xlu0 %v10022_v24, %s10698_s25  ;;  %v5386_v24 = vrot.slane %v14485_v35, %v16090_v54  ;;  %v14767_v35 = vld [vmem:[#allocation5 + $0x3f0] sm:$0xff] }
 0x859   :  { %16165 = vst [vmem:[#allocation73_spill] sm:$0xff] %v14767_v35  ;;  %v10052_v3 = vpack.i.bf16 %v14769_v50, %v14767_v35 }
 0x85a   :  { %10013 = vrot.lane.b32.xlu1 %v10012_v8, %s10698_s25  ;;  %v14739_v8 = vld [vmem:[#allocation5 + $0x3e8] sm:$0xff] }
 0x85b   :  { %16159 = vst [vmem:[#allocation132_spill] sm:$0xff] %v14739_v8 }
 0x85c   :  { %10033 = vrot.lane.b32.xlu0 %v10032_v59, %s10698_s25  ;;  %v10047_v59 = vpack.i.bf16 %v14739_v8, %v14737_v62 }
 0x85e   :  { %5285 = vrot.lane.b32.xlu1 %v5284_v48, %s10697_s5  ;;  %v9824_v48 = vpop.permute.xlu0 %9823 }
 0x85f   :  { %v9826_v43 = vunpack.i.h.bf16 %v9824_v48 }
 0x860   :  { %5387 = vrot.lane.b32.xlu0 %v5386_v24, %s10697_s5  ;;  %v10042_v24 = vpack.i.bf16 %v14758_v39, %v14756_v53 }
 0x862   :  { %10028 = vrot.lane.b32.xlu1 %v10027_v29, %s10698_s25  ;;  %v9834_v20 = vpop.permute.xlu0 %9833  ;;  %v9419_v29 = vpack.c.bf16 %v9821_v32, %v9820_v4  ;;  %v16169_v4 = vmov 0.0|0.0  }
 0x863   :  { %v9836_v37 = vunpack.i.h.bf16 %v9834_v20  ;;  %v9835_v38 = vunpack.i.l.bf16 %v9834_v20 }
 0x864   :  { %10048 = vrot.lane.b32.xlu0 %v10047_v59, %s10698_s25  ;;  %v9825_v59 = vunpack.i.l.bf16 %v9824_v48 }
 0x866   :  { %10038 = vrot.lane.b32.xlu1 %v10037_v19, %s10698_s25  ;;  %v9422_v54 = vpack.c.bf16 %v9826_v43, %v9825_v59 }
 0x868   :  { %6509 = vrot.lane.b32.xlu0 %v6508_v61, %s10697_s5  ;;  %v16168_v61 = vmov 0.0  }
 0x86a   :  { %10043 = vrot.lane.b32.xlu1 %v10042_v24, %s10698_s25 }
 0x86c   :  { %v5796_v2 = vpop.permute.xlu1 %5795 }
 0x86d   :  { %8839 = vmatmul.mubr.msk.f32.vlgmr.msra.gmra.mrb[6].mxu1 %vm16167_vm7, %v5796_v2  ;;  %v9428_v2 = vpack.c.bf16 %v9836_v37, %v9835_v38  ;;  %vm16193_vm7 = vmmov %vm16100_vm0 }
 0x86e   :  { %9420 = vmatpush3.bf16.msra.mxu1 %v9419_v29  ;;  %v5898_v19 = vpop.permute.xlu0 %5897  ;;  %8857 = vmatprep.mubr.msk.f32.mxu1 %vm10700_vm6, %v16168_v61 }
 0x86f   :  { %9421 = vmatprep.subr.bf16.mxu1 %v16169_v4  ;;  %10053 = vrot.lane.b32.xlu1 %v10052_v3, %s10698_s25 }
 0x870   :  { %v9829_v32 = vpop.permute.xlu1 %9828 }
 0x871   :  { %v9831_v48 = vunpack.i.h.bf16 %v9829_v32  ;;  %v9830_v24 = vunpack.i.l.bf16 %v9829_v32 }
 0x872   :  { %9423 = vmatpush3.bf16.msra.mxu1 %v9422_v54  ;;  %v9849_v50 = vpop.permute.xlu0 %9848 }
 0x873   :  { %v9425_v35 = vpack.c.bf16 %v9831_v48, %v9830_v24  ;;  %9424 = vmatprep.subr.bf16.mxu1 %v16169_v4  ;;  %v9851_v54 = vunpack.i.h.bf16 %v9849_v50  ;;  %v9850_v48 = vunpack.i.l.bf16 %v9849_v50 }
 0x874   :  { %v9839_v43 = vpop.permute.xlu1 %9838 }
 0x875   :  { %v9841_v29 = vunpack.i.h.bf16 %v9839_v43  ;;  %v9840_v59 = vunpack.i.l.bf16 %v9839_v43  ;;  %v9437_v24 = vpack.c.bf16 %v9851_v54, %v9850_v48 }
 0x876   :  { %9426 = vmatpush3.bf16.msra.mxu1 %v9425_v35  ;;  %v9859_v45 = vpop.permute.xlu0 %9858 }
 0x877   :  { %9427 = vmatprep.subr.bf16.mxu1 %v16169_v4  ;;  %v9431_v3 = vpack.c.bf16 %v9841_v29, %v9840_v59  ;;  %v9860_v59 = vunpack.i.l.bf16 %v9859_v45 }
 0x878   :  { %v9844_v8 = vpop.permute.xlu1 %9843 }
 0x879   :  { %v9846_v62 = vunpack.i.h.bf16 %v9844_v8  ;;  %v9845_v23 = vunpack.i.l.bf16 %v9844_v8 }
 0x87a   :  { %9429 = vmatpush3.bf16.msra.mxu1 %v9428_v2  ;;  %v9864_v32 = vpop.permute.xlu0 %9863 }
 0x87b   :  { %9430 = vmatprep.subr.bf16.mxu1 %v16169_v4  ;;  %v9434_v37 = vpack.c.bf16 %v9846_v62, %v9845_v23  ;;  %v9866_v47 = vunpack.i.h.bf16 %v9864_v32  ;;  %v9865_v0 = vunpack.i.l.bf16 %v9864_v32 }
 0x87c   :  { %v9854_v20 = vpop.permute.xlu1 %9853 }
 0x87d   :  { %8858 = vmatmul.mubr.msk.f32.vlgmr.msra.gmra.mrb[8].mxu1 %vm16170_vm10, %v5898_v19  ;;  %v9856_v8 = vunpack.i.h.bf16 %v9854_v20  ;;  %v9855_v43 = vunpack.i.l.bf16 %v9854_v20  ;;  %v9861_v19 = vunpack.i.h.bf16 %v9859_v45  ;;  %v9446_v48 = vpack.c.bf16 %v9866_v47, %v9865_v0  ;;  %vm16194_vm10 = vmmov %vm16100_vm0 }
 0x87e   :  { %9432 = vmatpush3.bf16.msra.mxu1 %v9431_v3  ;;  %v9874_v38 = vpop.permute.xlu0 %9873  ;;  %8876 = vmatprep.mubr.msk.f32.mxu1 %vm10700_vm6, %v16168_v61 }
 0x87f   :  { %9433 = vmatprep.subr.bf16.mxu1 %v16169_v4  ;;  %v9440_v50 = vpack.c.bf16 %v9856_v8, %v9855_v43  ;;  %v9443_v3 = vpack.c.bf16 %v9861_v19, %v9860_v59  ;;  %v9876_v32 = vunpack.i.h.bf16 %v9874_v38  ;;  %v9875_v8 = vunpack.i.l.bf16 %v9874_v38 }
 0x880   :  { %v6000_v35 = vpop.permute.xlu1 %5999 }
 0x881   :  { %v9452_v0 = vpack.c.bf16 %v9876_v32, %v9875_v8 }
 0x882   :  { %9435 = vmatpush3.bf16.msra.mxu1 %v9434_v37  ;;  %v6102_v2 = vpop.permute.xlu0 %6101 }
 0x883   :  { %9436 = vmatprep.subr.bf16.mxu1 %v16169_v4 }
 0x884   :  { %v9869_v29 = vpop.permute.xlu1 %9868 }
 0x885   :  { %v9871_v37 = vunpack.i.h.bf16 %v9869_v29  ;;  %v9870_v39 = vunpack.i.l.bf16 %v9869_v29 }
 0x886   :  { %9438 = vmatpush3.bf16.msra.mxu1 %v9437_v24  ;;  %v9889_v62 = vpop.permute.xlu0 %9888 }
 0x887   :  { %9439 = vmatprep.subr.bf16.mxu1 %v16169_v4  ;;  %v9449_v43 = vpack.c.bf16 %v9871_v37, %v9870_v39 }
 0x888   :  { %v9879_v23 = vpop.permute.xlu1 %9878 }
 0x889   :  { %v9880_v29 = vunpack.i.l.bf16 %v9879_v23 }
 0x88a   :  { %9441 = vmatpush3.bf16.msra.mxu1 %v9440_v50  ;;  %v9899_v54 = vpop.permute.xlu0 %9898 }
 0x88b   :  { %9442 = vmatprep.subr.bf16.mxu1 %v16169_v4 }
 0x88c   :  { %v9884_v20 = vpop.permute.xlu1 %9883 }
 0x88d   :  { %8877 = vmatmul.mubr.msk.f32.vlgmr.msra.gmra.mrb[10].mxu1 %vm16171_vm15, %v6000_v35  ;;  %v9881_v35 = vunpack.i.h.bf16 %v9879_v23  ;;  %v9886_v53 = vunpack.i.h.bf16 %v9884_v20  ;;  %v9885_v22 = vunpack.i.l.bf16 %v9884_v20  ;;  %v9890_v23 = vunpack.i.l.bf16 %v9889_v62  ;;  %vm16204_vm15 = vmmov %vm16100_vm0 }
 0x88e   :  { %9444 = vmatpush3.bf16.msra.mxu1 %v9443_v3  ;;  %v14789_v45 = vpop.permute.xlu0 %9903  ;;  %8895 = vmatprep.mubr.msk.f32.mxu1 %vm10700_vm6, %v16168_v61 }
 0x88f   :  { %9445 = vmatprep.subr.bf16.mxu1 %v16169_v4  ;;  %v9455_v3 = vpack.c.bf16 %v9881_v35, %v9880_v29  ;;  %v9458_v37 = vpack.c.bf16 %v9886_v53, %v9885_v22  ;;  %v9900_v53 = vunpack.i.l.bf16 %v9899_v54  ;;  %v9906_v1 = vunpack.i.h.bf16 %v14789_v45 }
 0x890   :  { %v9894_v24 = vpop.permute.xlu1 %9893 }
 0x891   :  { %v9896_v8 = vunpack.i.h.bf16 %v9894_v24 }
 0x892   :  { %9447 = vmatpush3.bf16.msra.mxu1 %v9446_v48  ;;  %v14794_v19 = vpop.permute.xlu0 %9913  ;;  %v9891_v48 = vunpack.i.h.bf16 %v9889_v62  ;;  %v9901_v62 = vunpack.i.h.bf16 %v9899_v54 }
 0x893   :  { %9448 = vmatprep.subr.bf16.mxu1 %v16169_v4 }
 0x894   :  { %v6204_v47 = vpop.permute.xlu1 %6203  ;;  %v9461_v20 = vpack.c.bf16 %v9891_v48, %v9890_v23 }
 0x896   :  { %9450 = vmatpush3.bf16.msra.mxu1 %v9449_v43  ;;  %v14797_v59 = vpop.permute.xlu0 %6305  ;;  %v9895_v43 = vunpack.i.l.bf16 %v9894_v24  ;;  %v9467_v24 = vpack.c.bf16 %v9901_v62, %v9900_v53 }
 0x897   :  { %9451 = vmatprep.subr.bf16.mxu1 %v16169_v4 }
 0x898   :  { %v9909_v50 = vpop.permute.xlu1 %9908  ;;  %v9464_v22 = vpack.c.bf16 %v9896_v8, %v9895_v43 }
 0x899   :  { %v9910_v16 = vunpack.i.l.bf16 %v9909_v50 }
 0x89a   :  { %9453 = vmatpush3.bf16.msra.mxu1 %v9452_v0  ;;  %v14801_v39 = vpop.permute.xlu0 %9928 }
 0x89b   :  { %9454 = vmatprep.subr.bf16.mxu1 %v16169_v4 }
 0x89c   :  { %v14803_v38 = vpop.permute.xlu1 %9918 }
 0x89d   :  { %8896 = vmatmul.mubr.msk.f32.vlgmr.msra.gmra.mrb[12].mxu1 %vm16172_vm12, %v6102_v2  ;;  %vm16208_vm12 = vmmov %vm16100_vm0 }
 0x89e   :  { %9456 = vmatpush3.bf16.msra.mxu1 %v9455_v3  ;;  %8914 = vmatprep.mubr.msk.f32.mxu1 %vm10700_vm6, %v16168_v61  ;;  %v14811_v0 = vpop.permute.xlu0 %6407 }
 0x89f   :  { %9457 = vmatprep.subr.bf16.mxu1 %v16169_v4 }
 0x8a0   :  { %v14809_v32 = vpop.permute.xlu1 %9923 }
 0x8a2   :  { %9459 = vmatpush3.bf16.msra.mxu1 %v9458_v37  ;;  %v9944_v35 = vpop.permute.xlu0 %9943  ;;  %v9905_v37 = vunpack.i.l.bf16 %v14789_v45 }
 0x8a3   :  { %9460 = vmatprep.subr.bf16.mxu1 %v16169_v4  ;;  %v9946_v3 = vunpack.i.h.bf16 %v9944_v35  ;;  %v9945_v58 = vunpack.i.l.bf16 %v9944_v35  ;;  %v9911_v35 = vunpack.i.h.bf16 %v9909_v50 }
 0x8a4   :  { %v14814_v2 = vpop.permute.xlu1 %9933  ;;  %v9470_v49 = vpack.c.bf16 %v9906_v1, %v9905_v37 }
 0x8a5   :  { %v9314_v8 = vpack.c.bf16 %v9946_v3, %v9945_v58  ;;  %v9473_v1 = vpack.c.bf16 %v9911_v35, %v9910_v16 }
 0x8a6   :  { %9462 = vmatpush3.bf16.msra.mxu1 %v9461_v20  ;;  %v9954_v45 = vpop.permute.xlu0 %9953 }
 0x8a7   :  { %9463 = vmatprep.subr.bf16.mxu1 %v16169_v4  ;;  %v9956_v62 = vunpack.i.h.bf16 %v9954_v45  ;;  %v9955_v53 = vunpack.i.l.bf16 %v9954_v45 }
 0x8a8   :  { %v9939_v29 = vpop.permute.xlu1 %9938 }
 0x8a9   :  { %v9941_v48 = vunpack.i.h.bf16 %v9939_v29  ;;  %v9940_v23 = vunpack.i.l.bf16 %v9939_v29  ;;  %v9320_v50 = vpack.c.bf16 %v9956_v62, %v9955_v53  ;;  %v9931_v53 = vunpack.i.h.bf16 %v14801_v39 }
 0x8aa   :  { %9465 = vmatpush3.bf16.msra.mxu1 %v9464_v22  ;;  %v9916_v22 = vunpack.i.h.bf16 %v14794_v19  ;;  %v4980_v37 = vpop.permute.xlu0 %4979 }
 0x8ab   :  { %v9311_v56 = vpack.c.bf16 %v9941_v48, %v9940_v23  ;;  %9466 = vmatprep.subr.bf16.mxu1 %v16169_v4  ;;  %v9921_v23 = vunpack.i.h.bf16 %v14803_v38 }
 0x8ac   :  { %v9949_v54 = vpop.permute.xlu1 %9948 }
 0x8ad   :  { %v9951_v20 = vunpack.i.h.bf16 %v9949_v54  ;;  %v9950_v43 = vunpack.i.l.bf16 %v9949_v54  ;;  %8915 = vmatmul.mubr.msk.f32.vlgmr.msra.gmra.mrb[14].mxu1 %vm16173_vm3, %v6204_v47  ;;  %9312 = vmatpush3.bf16.msra.mxu0 %v9311_v56  ;;  %v9915_v56 = vunpack.i.l.bf16 %v14794_v19  ;;  %vm16220_vm3 = vmmov %vm16100_vm0 }
 0x8ae   :  { %9468 = vmatpush3.bf16.msra.mxu1 %v9467_v24  ;;  %9313 = vmatprep.subr.bf16.mxu0 %v16169_v4  ;;  %v9920_v24 = vunpack.i.l.bf16 %v14803_v38  ;;  %v9969_v38 = vpop.permute.xlu0 %9968 }
 0x8af   :  { %9469 = vmatprep.subr.bf16.mxu1 %v16169_v4  ;;  %8933 = vmatprep.mubr.msk.f32.mxu1 %vm10700_vm6, %v16168_v61  ;;  %v9317_v58 = vpack.c.bf16 %v9951_v20, %v9950_v43  ;;  %v9476_v48 = vpack.c.bf16 %v9916_v22, %v9915_v56  ;;  %v9926_v20 = vunpack.i.h.bf16 %v14809_v32  ;;  %v9925_v43 = vunpack.i.l.bf16 %v14809_v32 }
 0x8b0   :  { %v9959_v47 = vpop.permute.xlu1 %9958  ;;  %v9971_v35 = vunpack.i.h.bf16 %v9969_v38  ;;  %v9970_v45 = vunpack.i.l.bf16 %v9969_v38  ;;  %v16178_v38 = vpack.c.bf16 %v16110_v55, %v16111_v14  ;;  %v16179_v55 = vpack.c.bf16 %v16104_v26, %v16105_v31 }
 0x8b1   :  { %9315 = vmatpush3.bf16.msra.mxu0 %v9314_v8  ;;  %v9961_v29 = vunpack.i.h.bf16 %v9959_v47  ;;  %v9960_v3 = vunpack.i.l.bf16 %v9959_v47  ;;  %v9479_v8 = vpack.c.bf16 %v9921_v23, %v9920_v24  ;;  %v9482_v32 = vpack.c.bf16 %v9926_v20, %v9925_v43 }
 0x8b2   :  { %9471 = vmatpush3.bf16.msra.mxu1 %v9470_v49  ;;  %9316 = vmatprep.subr.bf16.mxu0 %v16169_v4  ;;  %v9329_v56 = vpack.c.bf16 %v9971_v35, %v9970_v45 }
 0x8b3   :  { %9472 = vmatprep.subr.bf16.mxu1 %v16169_v4  ;;  %v9323_v49 = vpack.c.bf16 %v9961_v29, %v9960_v3  ;;  %v9979_v29 = vpop.permute.xlu0 %9978 }
 0x8b4   :  { %v9964_v16 = vpop.permute.xlu1 %9963  ;;  %v9981_v3 = vunpack.i.h.bf16 %v9979_v29 }
 0x8b5   :  { %9318 = vmatpush3.bf16.msra.mxu0 %v9317_v58  ;;  %v9966_v19 = vunpack.i.h.bf16 %v9964_v16  ;;  %v9965_v54 = vunpack.i.l.bf16 %v9964_v16  ;;  %v9930_v58 = vunpack.i.l.bf16 %v14801_v39  ;;  %v9936_v39 = vunpack.i.h.bf16 %v14814_v2 }
 0x8b6   :  { %9474 = vmatpush3.bf16.msra.mxu1 %v9473_v1  ;;  %9319 = vmatprep.subr.bf16.mxu0 %v16169_v4 }
 0x8b7   :  { %9475 = vmatprep.subr.bf16.mxu1 %v16169_v4  ;;  %v9326_v62 = vpack.c.bf16 %v9966_v19, %v9965_v54  ;;  %v9485_v47 = vpack.c.bf16 %v9931_v53, %v9930_v58  ;;  %v9984_v16 = vpop.permute.xlu0 %9983 }
 0x8b8   :  { %v9974_v22 = vpop.permute.xlu1 %9973  ;;  %v9985_v19 = vunpack.i.l.bf16 %v9984_v16 }
 0x8b9   :  { %9321 = vmatpush3.bf16.msra.mxu0 %v9320_v50  ;;  %v9975_v1 = vunpack.i.l.bf16 %v9974_v22  ;;  %v9935_v50 = vunpack.i.l.bf16 %v14814_v2  ;;  %v9986_v2 = vunpack.i.h.bf16 %v9984_v16  ;;  %v16186_v16 = vpack.c.bf16 %v16116_v28, %v16117_v42 }
 0x8ba   :  { %9477 = vmatpush3.bf16.msra.mxu1 %v9476_v48  ;;  %9322 = vmatprep.subr.bf16.mxu0 %v16169_v4  ;;  %v9980_v48 = vunpack.i.l.bf16 %v9979_v29  ;;  %v16184_v29 = vpack.c.bf16 %v16119_v17, %v16120_v33  ;;  %v16185_v17 = vpack.c.bf16 %v16125_v52, %v16126_v25 }
 0x8bb   :  { %9478 = vmatprep.subr.bf16.mxu1 %v16169_v4  ;;  %v9488_v24 = vpack.c.bf16 %v9936_v39, %v9935_v50  ;;  %v9994_v35 = vpop.permute.xlu0 %9993 }
 0x8bc   :  { %8687 = vmatmul.mubr.msk.f32.vlgmr.msra.gmra.mrb[130].mxu0 %vm16174_vm2, %v4980_v37  ;;  %v5082_v37 = vpop.permute.xlu1 %5081  ;;  %v9996_v45 = vunpack.i.h.bf16 %v9994_v35  ;;  %vm16222_vm2 = vmmov %vm16100_vm0 }
 0x8bd   :  { %8934 = vmatmul.mubr.msk.f32.vlgmr.msra.gmra.mrb[16].mxu1 %vm16175_vm14, %v14797_v59  ;;  %9324 = vmatpush3.bf16.msra.mxu0 %v9323_v49  ;;  %v9976_v59 = vunpack.i.h.bf16 %v9974_v22  ;;  %v9335_v49 = vpack.c.bf16 %v9981_v3, %v9980_v48  ;;  %vm16224_vm14 = vmmov %vm16100_vm0 }
 0x8be   :  { %9480 = vmatpush3.bf16.msra.mxu1 %v9479_v8  ;;  %9325 = vmatprep.subr.bf16.mxu0 %v16169_v4  ;;  %v9338_v8 = vpack.c.bf16 %v9986_v2, %v9985_v19  ;;  %v16187_v19 = vpack.c.bf16 %v16131_v15, %v16132_v11 }
 0x8bf   :  { %9481 = vmatprep.subr.bf16.mxu1 %v16169_v4  ;;  %8705 = vmatprep.mubr.msk.f32.mxu0 %vm10700_vm6, %v16168_v61  ;;  %v9332_v23 = vpack.c.bf16 %v9976_v59, %v9975_v1  ;;  %v5184_v22 = vpop.permute.xlu0 %5183 }
 0x8c0   :  { %8952 = vmatprep.mubr.msk.f32.mxu1 %vm10700_vm6, %v16168_v61  ;;  %v9989_v54 = vpop.permute.xlu1 %9988 }
 0x8c1   :  { %9327 = vmatpush3.bf16.msra.mxu0 %v9326_v62  ;;  %v9991_v20 = vunpack.i.h.bf16 %v9989_v54  ;;  %v9990_v43 = vunpack.i.l.bf16 %v9989_v54  ;;  %v9995_v62 = vunpack.i.l.bf16 %v9994_v35 }
 0x8c2   :  { %9483 = vmatpush3.bf16.msra.mxu1 %v9482_v32  ;;  %9328 = vmatprep.subr.bf16.mxu0 %v16169_v4 }
 0x8c3   :  { %9484 = vmatprep.subr.bf16.mxu1 %v16169_v4  ;;  %v9341_v53 = vpack.c.bf16 %v9991_v20, %v9990_v43  ;;  %v9344_v14 = vpack.c.bf16 %v9996_v45, %v9995_v62  ;;  %v10009_v39 = vpop.permute.xlu0 %10008  ;;  %v16189_v20 = vpack.c.bf16 %v16122_v6, %v16123_v46  ;;  %v16190_v6 = vpack.c.bf16 %v16128_v63, %v16129_v10 }
 0x8c5   :  { %9330 = vmatpush3.bf16.msra.mxu0 %v9329_v56  ;;  %v16180_v56 = vpack.c.bf16 %v16113_v44, %v16114_v41  ;;  %v10011_v44 = vunpack.i.h.bf16 %v10009_v39  ;;  %v10010_v41 = vunpack.i.l.bf16 %v10009_v39  ;;  %v16202_v39 = vld [vmem:[#allocation127_spill] sm:$0xff] }
 0x8c6   :  { %9486 = vmatpush3.bf16.msra.mxu1 %v9485_v47  ;;  %9331 = vmatprep.subr.bf16.mxu0 %v16169_v4  ;;  %v16181_v47 = vpack.c.bf16 %v16107_v13, %v16108_v5 }
 0x8c7   :  { %9487 = vmatprep.subr.bf16.mxu1 %v16169_v4  ;;  %v9353_v5 = vpack.c.bf16 %v10011_v44, %v10010_v41  ;;  %v16203_v44 = vld [vmem:[#allocation130_spill] sm:$0xff] }
 0x8c8   :  { %v9551_v41 = vpack.c.bf16 %v16203_v44, %v16202_v39  ;;  %v10444_v44 = vld [vmem:[#allocation5 + $0x200] sm:$0xff] }
 0x8c9   :  { %9333 = vmatpush3.bf16.msra.mxu0 %v9332_v23 }
 0x8ca   :  { %9489 = vmatpush3.bf16.msra.mxu1 %v9488_v24  ;;  %9334 = vmatprep.subr.bf16.mxu0 %v16169_v4 }
 0x8cb   :  { %9502 = vmatprep.subr.bf16.mxu1 %v16169_v4 }
 0x8cc   :  { %8706 = vmatmul.mubr.msk.f32.vlgmr.msra.gmra.mrb[132].mxu0 %vm16176_vm11, %v5082_v37  ;;  %vm16226_vm11 = vmmov %vm16100_vm0 }
 0x8cd   :  { %8953 = vmatmul.mubr.msk.f32.vlgmr.msra.gmra.mrb[18].mxu1 %vm16177_vm5, %v14811_v0  ;;  %9336 = vmatpush3.bf16.msra.mxu0 %v9335_v49  ;;  %v9999_v0 = vpop.permute.xlu1 %9998  ;;  %vm16228_vm5 = vmmov %vm16100_vm0 }
 0x8ce   :  { %9504 = vmatpush3.bf16.msra.mxu1 %v16178_v38  ;;  %9337 = vmatprep.subr.bf16.mxu0 %v16169_v4  ;;  %v10001_v58 = vunpack.i.h.bf16 %v9999_v0  ;;  %v10000_v32 = vunpack.i.l.bf16 %v9999_v0 }
 0x8cf   :  { %9505 = vmatprep.subr.bf16.mxu1 %v16169_v4  ;;  %8724 = vmatprep.mubr.msk.f32.mxu0 %vm10700_vm6, %v16168_v61 }
 0x8d0   :  { %8990 = vmatprep.mubr.msk.f32.mxu1 %vm10700_vm6, %v16168_v61  ;;  %v9347_v26 = vpack.c.bf16 %v10001_v58, %v10000_v32 }
 0x8d1   :  { %9339 = vmatpush3.bf16.msra.mxu0 %v9338_v8  ;;  %v10004_v59 = vpop.permute.xlu1 %10003 }
 0x8d2   :  { %9507 = vmatpush3.bf16.msra.mxu1 %v16179_v55  ;;  %9340 = vmatprep.subr.bf16.mxu0 %v16169_v4  ;;  %v10006_v31 = vunpack.i.h.bf16 %v10004_v59  ;;  %v10005_v1 = vunpack.i.l.bf16 %v10004_v59  ;;  %v16196_v59 = vpack.c.bf16 %v16150_v34, %v16151_v9  ;;  %v16201_v34 = vld [vmem:[#allocation95_spill] sm:$0xff] }
 0x8d3   :  { %9508 = vmatprep.subr.bf16.mxu1 %v16169_v4 }
 0x8d4   :  { %v9350_v50 = vpack.c.bf16 %v10006_v31, %v10005_v1  ;;  %v16198_v31 = vld [vmem:[#allocation50_spill] sm:$0xff] }
 0x8d5   :  { %9342 = vmatpush3.bf16.msra.mxu0 %v9341_v53  ;;  %v10014_v13 = vpop.permute.xlu1 %10013  ;;  %v16191_v53 = vpack.c.bf16 %v16137_v12, %v16138_v21 }
 0x8d6   :  { %9510 = vmatpush3.bf16.msra.mxu1 %v16180_v56  ;;  %9343 = vmatprep.subr.bf16.mxu0 %v16169_v4  ;;  %v10016_v3 = vunpack.i.h.bf16 %v10014_v13  ;;  %v10015_v48 = vunpack.i.l.bf16 %v10014_v13  ;;  %v16207_v13 = vld [vmem:[#allocation102_spill] sm:$0xff] }
 0x8d7   :  { %9511 = vmatprep.subr.bf16.mxu1 %v16169_v4 }
 0x8d8   :  { %v9356_v24 = vpack.c.bf16 %v10016_v3, %v10015_v48  ;;  %v16210_v3 = vld [vmem:[#allocation58_spill] sm:$0xff] }
 0x8d9   :  { %9345 = vmatpush3.bf16.msra.mxu0 %v9344_v14  ;;  %v5286_v37 = vpop.permute.xlu1 %5285  ;;  %v16192_v14 = vpack.c.bf16 %v16134_v40, %v16135_v7 }
 0x8da   :  { %9513 = vmatpush3.bf16.msra.mxu1 %v16181_v47  ;;  %9346 = vmatprep.subr.bf16.mxu0 %v16169_v4  ;;  %v16200_v47 = vld [vmem:[#allocation168_spill] sm:$0xff] }
 0x8db   :  { %9514 = vmatprep.subr.bf16.mxu1 %v16169_v4  ;;  %v9683_v9 = vpack.c.bf16 %v16201_v34, %v16200_v47  ;;  %v10442_v34 = vld [vmem:[#allocation5 + $0x1f0] sm:$0xff] }
 0x8dc   :  { %8725 = vmatmul.mubr.msk.f32.vlgmr.msra.gmra.mrb[134].mxu0 %vm16182_vm1, %v5184_v22  ;;  %v16195_v22 = vpack.c.bf16 %v16145_v30, %v16146_v51  ;;  %v9548_v51 = vpack.c.bf16 %v14705_v36, %v14703_v18  ;;  %v16205_v18 = vld [vmem:[#allocation104_spill] sm:$0xff]  ;;  %vm16230_vm1 = vmmov %vm16100_vm0 }
 0x8dd   :  { %8991 = vmatmul.mubr.msk.f32.vlgmr.msra.gmra.mrb[20].mxu1 %vm16183_vm8, %v14620_v27  ;;  %9348 = vmatpush3.bf16.msra.mxu0 %v9347_v26  ;;  %v10019_v27 = vpop.permute.xlu0 %10018  ;;  %v10029_v54 = vpop.permute.xlu1 %10028  ;;  %v16197_v26 = vld [vmem:[#allocation51_spill] sm:$0xff]  ;;  %v16206_v36 = vld [vmem:[#allocation112_spill] sm:$0xff]  ;;  %vm16232_vm8 = vmmov %vm16100_vm0 }
 0x8de   :  { %9516 = vmatpush3.bf16.msra.mxu1 %v16184_v29  ;;  %9349 = vmatprep.subr.bf16.mxu0 %v16169_v4  ;;  %v10021_v33 = vunpack.i.h.bf16 %v10019_v27  ;;  %v10020_v23 = vunpack.i.l.bf16 %v10019_v27  ;;  %v10031_v42 = vunpack.i.h.bf16 %v10029_v54  ;;  %v10030_v8 = vunpack.i.l.bf16 %v10029_v54  ;;  %v16211_v27 = vld [vmem:[#allocation56_spill] sm:$0xff] }
 0x8df   :  { %9517 = vmatprep.subr.bf16.mxu1 %v16169_v4  ;;  %8743 = vmatprep.mubr.msk.f32.mxu0 %vm10700_vm6, %v16168_v61  ;;  %v16199_v1 = vpack.c.bf16 %v16197_v26, %v16198_v31  ;;  %v9686_v29 = vpack.c.bf16 %v16206_v36, %v16205_v18  ;;  %v10420_v54 = vld [vmem:[#allocation5 + $0x140] sm:$0xff]  ;;  %v16227_v18 = vld [vmem:[#allocation154_spill] sm:$0xff] }
 0x8e0   :  { %9009 = vmatprep.mubr.msk.f32.mxu1 %vm10700_vm6, %v16168_v61  ;;  %v9359_v52 = vpack.c.bf16 %v10021_v33, %v10020_v23  ;;  %v9365_v38 = vpack.c.bf16 %v10031_v42, %v10030_v8  ;;  %v16213_v23 = vld [vmem:[#allocation163_spill] sm:$0xff]  ;;  %v16219_v8 = vld [vmem:[#allocation144_spill] sm:$0xff]  ;;  %v10446_v36 = vld [vmem:[#allocation5 + $0x210] sm:$0xff] }
 0x8e1   :  { %9351 = vmatpush3.bf16.msra.mxu0 %v9350_v50  ;;  %v10024_v49 = vpop.permute.xlu0 %10023  ;;  %v10039_v11 = vpop.permute.xlu1 %10038  ;;  %v10440_v31 = vld [vmem:[#allocation5 + $0x1e0] sm:$0xff] }
 0x8e2   :  { %9519 = vmatpush3.bf16.msra.mxu1 %v16185_v17  ;;  %9352 = vmatprep.subr.bf16.mxu0 %v16169_v4  ;;  %v10026_v25 = vunpack.i.h.bf16 %v10024_v49  ;;  %v10025_v2 = vunpack.i.l.bf16 %v10024_v49  ;;  %v10041_v35 = vunpack.i.h.bf16 %v10039_v11  ;;  %v10040_v45 = vunpack.i.l.bf16 %v10039_v11  ;;  %v16212_v17 = vld [vmem:[#allocation132_spill] sm:$0xff]  ;;  %v16216_v49 = vld [vmem:[#allocation146_spill] sm:$0xff] }
 0x8e3   :  { %9520 = vmatprep.subr.bf16.mxu1 %v16169_v4  ;;  %v9689_v33 = vpack.c.bf16 %v16212_v17, %v16211_v27  ;;  %v10423_v11 = vld [vmem:[#allocation5 + $0x158] sm:$0xff]  ;;  %v10450_v27 = vld [vmem:[#allocation5 + $0x230] sm:$0xff] }
 0x8e4   :  { %v9362_v28 = vpack.c.bf16 %v10026_v25, %v10025_v2  ;;  %v9491_v63 = vpack.c.bf16 %v10041_v35, %v10040_v45  ;;  %v16217_v25 = vld [vmem:[#allocation105_spill] sm:$0xff]  ;;  %v10427_v35 = vld [vmem:[#allocation5 + $0x178] sm:$0xff] }
 0x8e5   :  { %9354 = vmatpush3.bf16.msra.mxu0 %v9353_v5  ;;  %v10034_v15 = vpop.permute.xlu0 %10033  ;;  %v10044_v0 = vpop.permute.xlu1 %10043  ;;  %v16209_v5 = vld [vmem:[#allocation98_spill] sm:$0xff]  ;;  %v16218_v2 = vld [vmem:[#allocation161_spill] sm:$0xff] }
 0x8e6   :  { %9522 = vmatpush3.bf16.msra.mxu1 %v16186_v16  ;;  %9355 = vmatprep.subr.bf16.mxu0 %v16169_v4  ;;  %v10035_v43 = vunpack.i.l.bf16 %v10034_v15  ;;  %v10046_v10 = vunpack.i.h.bf16 %v10044_v0  ;;  %v10045_v55 = vunpack.i.l.bf16 %v10044_v0  ;;  %v9554_v48 = vpack.c.bf16 %v16210_v3, %v16209_v5  ;;  %v16215_v16 = vld [vmem:[#allocation73_spill] sm:$0xff]  ;;  %v10448_v5 = vld [vmem:[#allocation5 + $0x220] sm:$0xff]  ;;  %v10451_v17 = vld [vmem:[#allocation5 + $0x238] sm:$0xff] }
 0x8e7   :  { %9523 = vmatprep.subr.bf16.mxu1 %v16169_v4  ;;  %v10449_v3 = vld [vmem:[#allocation5 + $0x228] sm:$0xff] }
 0x8e8   :  { %v9494_v32 = vpack.c.bf16 %v10046_v10, %v10045_v55  ;;  %v10430_v10 = vld [vmem:[#allocation5 + $0x190] sm:$0xff]  ;;  %v10431_v55 = vld [vmem:[#allocation5 + $0x198] sm:$0xff] }
 0x8e9   :  { %9357 = vmatpush3.bf16.msra.mxu0 %v9356_v24  ;;  %v5388_v62 = vpop.permute.xlu0 %5387  ;;  %v10054_v40 = vpop.permute.xlu1 %10053  ;;  %v16214_v24 = vld [vmem:[#allocation166_spill] sm:$0xff] }
 0x8ea   :  { %9525 = vmatpush3.bf16.msra.mxu1 %v16187_v19  ;;  %9358 = vmatprep.subr.bf16.mxu0 %v16169_v4  ;;  %v10056_v56 = vunpack.i.h.bf16 %v10054_v40  ;;  %v9560_v19 = vpack.c.bf16 %v16218_v2, %v16217_v25  ;;  %v10456_v2 = vld [vmem:[#allocation5 + $0x260] sm:$0xff] }
 0x8eb   :  { %9526 = vmatprep.subr.bf16.mxu1 %v16169_v4 }
 0x8ec   :  { %8744 = vmatmul.mubr.msk.f32.vlgmr.msra.gmra.mrb[136].mxu0 %vm16188_vm13, %v5286_v37  ;;  %v9557_v37 = vpack.c.bf16 %v16214_v24, %v16213_v23  ;;  %v10452_v23 = vld [vmem:[#allocation5 + $0x240] sm:$0xff]  ;;  %v10453_v24 = vld [vmem:[#allocation5 + $0x248] sm:$0xff]  ;;  %vm16234_vm13 = vmmov %vm16100_vm0 }
 0x8ed   :  { %9010 = vmatmul.mubr.msk.f32.vlgmr.msra.gmra.mrb[22].mxu1 %vm16100_vm0, %v14658_v60  ;;  %9360 = vmatpush3.bf16.msra.mxu0 %v9359_v52  ;;  %v10036_v60 = vunpack.i.h.bf16 %v10034_v15  ;;  %v10049_v58 = vpop.permute.xlu0 %10048  ;;  %v9692_v52 = vpack.c.bf16 %v16216_v49, %v16215_v16  ;;  %v10422_v15 = vld [vmem:[#allocation5 + $0x150] sm:$0xff] }
 0x8ee   :  { %9528 = vmatpush3.bf16.msra.mxu1 %v16189_v20  ;;  %9361 = vmatprep.subr.bf16.mxu0 %v16169_v4  ;;  %v10051_v12 = vunpack.i.h.bf16 %v10049_v58  ;;  %v10050_v21 = vunpack.i.l.bf16 %v10049_v58  ;;  %v16221_v20 = vld [vmem:[#allocation131_spill] sm:$0xff]  ;;  %v16229_v16 = vld [vmem:[#allocation106_spill] sm:$0xff] }
 0x8ef   :  { %9529 = vmatprep.subr.bf16.mxu1 %v16169_v4  ;;  %8762 = vmatprep.mubr.msk.f32.mxu0 %vm10700_vm6, %v16168_v61  ;;  %v9368_v46 = vpack.c.bf16 %v10036_v60, %v10035_v43  ;;  %v9566_v60 = vpack.c.bf16 %v10423_v11, %v10422_v15  ;;  %v10424_v43 = vld [vmem:[#allocation5 + $0x160] sm:$0xff]  ;;  %v10454_v49 = vld [vmem:[#allocation5 + $0x250] sm:$0xff]  ;;  %v10461_v15 = vld [vmem:[#allocation5 + $0x288] sm:$0xff] }
 0x8f0   :  { %9028 = vmatprep.mubr.msk.f32.mxu1 %vm10700_vm6, %v16168_v61  ;;  %v9497_v7 = vpack.c.bf16 %v10051_v12, %v10050_v21  ;;  %v10432_v58 = vld [vmem:[#allocation5 + $0x1a0] sm:$0xff]  ;;  %v10433_v12 = vld [vmem:[#allocation5 + $0x1a8] sm:$0xff] }
 0x8f1   :  { %9363 = vmatpush3.bf16.msra.mxu0 %v9362_v28  ;;  %v6510_v50 = vpop.permute.xlu0 %6509  ;;  %v10421_v28 = vld [vmem:[#allocation5 + $0x148] sm:$0xff]  ;;  %v9581_v21 = vpack.c.bf16 %v10433_v12, %v10432_v58  ;;  %v10470_v58 = vld [vmem:[#allocation5 + $0x2d0] sm:$0xff]  ;;  %v10471_v12 = vld [vmem:[#allocation5 + $0x2d8] sm:$0xff] }
 0x8f2   :  { %9531 = vmatpush3.bf16.msra.mxu1 %v16190_v6  ;;  %9364 = vmatprep.subr.bf16.mxu0 %v16169_v4  ;;  %v9563_v42 = vpack.c.bf16 %v10421_v28, %v10420_v54  ;;  %v10458_v28 = vld [vmem:[#allocation5 + $0x270] sm:$0xff] }
 0x8f3   :  { %9532 = vmatprep.subr.bf16.mxu1 %v16169_v4 }
 0x8f5   :  { %9366 = vmatpush3.bf16.msra.mxu0 %v9365_v38  ;;  %v10425_v38 = vld [vmem:[#allocation5 + $0x168] sm:$0xff] }
 0x8f6   :  { %9534 = vmatpush3.bf16.msra.mxu1 %v16191_v53  ;;  %9367 = vmatprep.subr.bf16.mxu0 %v16169_v4  ;;  %v9569_v6 = vpack.c.bf16 %v10425_v38, %v10424_v43  ;;  %v10429_v53 = vld [vmem:[#allocation5 + $0x188] sm:$0xff]  ;;  %v10462_v43 = vld [vmem:[#allocation5 + $0x290] sm:$0xff]  ;;  %v10463_v38 = vld [vmem:[#allocation5 + $0x298] sm:$0xff] }
 0x8f7   :  { %9535 = vmatprep.subr.bf16.mxu1 %v16169_v4 }
 0x8f9   :  { %9369 = vmatpush3.bf16.msra.mxu0 %v9368_v46  ;;  %v10426_v46 = vld [vmem:[#allocation5 + $0x170] sm:$0xff] }
 0x8fa   :  { %9537 = vmatpush3.bf16.msra.mxu1 %v16192_v14  ;;  %9490 = vmatprep.subr.bf16.mxu0 %v16169_v4  ;;  %v9572_v45 = vpack.c.bf16 %v10427_v35, %v10426_v46  ;;  %v9578_v14 = vpack.c.bf16 %v10431_v55, %v10430_v10  ;;  %v10464_v46 = vld [vmem:[#allocation5 + $0x2a0] sm:$0xff]  ;;  %v10465_v35 = vld [vmem:[#allocation5 + $0x2a8] sm:$0xff] }
 0x8fb   :  { %9538 = vmatprep.subr.bf16.mxu1 %v16169_v4  ;;  %v10469_v10 = vld [vmem:[#allocation5 + $0x2c8] sm:$0xff] }
 0x8fc   :  { %8763 = vmatmul.mubr.msk.f32.vlgmr.msra.gmra.mrb[138].mxu0 %vm16193_vm7, %v5388_v62  ;;  %v10428_v62 = vld [vmem:[#allocation5 + $0x180] sm:$0xff]  ;;  %vm16237_vm7 = vmmov %vm16100_vm0 }
 0x8fd   :  { %9029 = vmatmul.mubr.msk.f32.vlgmr.msra.gmra.mrb[24].mxu1 %vm16194_vm10, %v14666_v57  ;;  %9492 = vmatpush3.bf16.msra.mxu0 %v9491_v63  ;;  %v10055_v57 = vunpack.i.l.bf16 %v10054_v40  ;;  %v9575_v0 = vpack.c.bf16 %v10429_v53, %v10428_v62  ;;  %v16223_v63 = vld [vmem:[#allocation71_spill] sm:$0xff]  ;;  %v10466_v62 = vld [vmem:[#allocation5 + $0x2b0] sm:$0xff]  ;;  %vm16239_vm10 = vmmov %vm16100_vm0 }
 0x8fe   :  { %9540 = vmatpush3.bf16.msra.mxu1 %v16195_v22  ;;  %9493 = vmatprep.subr.bf16.mxu0 %v16169_v4  ;;  %v10435_v22 = vld [vmem:[#allocation5 + $0x1b8] sm:$0xff] }
 0x8ff   :  { %9541 = vmatprep.subr.bf16.mxu1 %v16169_v4  ;;  %8971 = vmatprep.mubr.msk.f32.mxu0 %vm10700_vm6, %v16168_v61  ;;  %v9500_v30 = vpack.c.bf16 %v10056_v56, %v10055_v57  ;;  %v10437_v56 = vld [vmem:[#allocation5 + $0x1c8] sm:$0xff]  ;;  %v10467_v53 = vld [vmem:[#allocation5 + $0x2b8] sm:$0xff] }
 0x900   :  { %9047 = vmatprep.mubr.msk.f32.mxu1 %vm10700_vm6, %v16168_v61 }
 0x901   :  { %9495 = vmatpush3.bf16.msra.mxu0 %v9494_v32  ;;  %v10434_v32 = vld [vmem:[#allocation5 + $0x1b0] sm:$0xff] }
 0x902   :  { %9543 = vmatpush3.bf16.msra.mxu1 %v16196_v59  ;;  %9496 = vmatprep.subr.bf16.mxu0 %v16169_v4  ;;  %v9584_v40 = vpack.c.bf16 %v10435_v22, %v10434_v32  ;;  %v16225_v59 = vld [vmem:[#allocation156_spill] sm:$0xff] }
 0x903   :  { %9544 = vmatprep.subr.bf16.mxu1 %v16169_v4  ;;  %v10472_v32 = vld [vmem:[#allocation5 + $0x2e0] sm:$0xff]  ;;  %v10473_v22 = vld [vmem:[#allocation5 + $0x2e8] sm:$0xff] }
 0x905   :  { %9498 = vmatpush3.bf16.msra.mxu0 %v9497_v7  ;;  %v10436_v7 = vld [vmem:[#allocation5 + $0x1c0] sm:$0xff] }
 0x906   :  { %9546 = vmatpush3.bf16.msra.mxu1 %v16199_v1  ;;  %9499 = vmatprep.subr.bf16.mxu0 %v16169_v4  ;;  %v9587_v57 = vpack.c.bf16 %v10437_v56, %v10436_v7  ;;  %v10441_v1 = vld [vmem:[#allocation5 + $0x1e8] sm:$0xff]  ;;  %v10474_v7 = vld [vmem:[#allocation5 + $0x2f0] sm:$0xff]  ;;  %v10475_v56 = vld [vmem:[#allocation5 + $0x2f8] sm:$0xff] }
 0x907   :  { %9547 = vmatprep.subr.bf16.mxu1 %v16169_v4  ;;  %v9593_v47 = vpack.c.bf16 %v10441_v1, %v10440_v31  ;;  %v10478_v31 = vld [vmem:[#allocation5 + $0x310] sm:$0xff]  ;;  %v10479_v1 = vld [vmem:[#allocation5 + $0x318] sm:$0xff] }
 0x909   :  { %9501 = vmatpush3.bf16.msra.mxu0 %v9500_v30  ;;  %v10438_v30 = vld [vmem:[#allocation5 + $0x1d0] sm:$0xff] }
 0x90a   :  { %9549 = vmatpush3.bf16.msra.mxu1 %v9548_v51  ;;  %9682 = vmatprep.subr.bf16.mxu0 %v16169_v4  ;;  %v10439_v51 = vld [vmem:[#allocation5 + $0x1d8] sm:$0xff] }
 0x90b   :  { %9550 = vmatprep.subr.bf16.mxu1 %v16169_v4  ;;  %v9590_v26 = vpack.c.bf16 %v10439_v51, %v10438_v30  ;;  %v10477_v30 = vld [vmem:[#allocation5 + $0x308] sm:$0xff] }
 0x90c   :  { %8972 = vmatmul.mubr.msk.f32.vlgmr.msra.gmra.mrb[140].mxu0 %vm16204_vm15, %v6510_v50  ;;  %vm16242_vm15 = vcmask 1041409  }
 0x90d   :  { %9048 = vmatmul.mubr.msk.f32.vlgmr.msra.gmra.mrb[26].mxu1 %vm16208_vm12, %v16207_v13  ;;  %9684 = vmatpush3.bf16.msra.mxu0 %v9683_v9  ;;  %v10443_v9 = vld [vmem:[#allocation5 + $0x1f8] sm:$0xff]  ;;  %vm16243_vm12 = vcmask 1042434  }
 0x90e   :  { %9552 = vmatpush3.bf16.msra.mxu1 %v9551_v41  ;;  %9685 = vmatprep.subr.bf16.mxu0 %v16169_v4  ;;  %v9596_v39 = vpack.c.bf16 %v10443_v9, %v10442_v34  ;;  %v10445_v41 = vld [vmem:[#allocation5 + $0x208] sm:$0xff] }
 0x90f   :  { %9553 = vmatprep.subr.bf16.mxu1 %v16169_v4  ;;  %9066 = vmatprep.mubr.msk.f32.mxu1 %vm10700_vm6, %v16168_v61  ;;  %v9599_v50 = vpack.c.bf16 %v10445_v41, %v10444_v44  ;;  %v10481_v44 = vld [vmem:[#allocation5 + $0x328] sm:$0xff] }
 0x910   :  { %9275 = vmatprep.mubr.msk.f32.mxu0 %vm10700_vm6, %v16168_v61 }
 0x911   :  { %9687 = vmatpush3.bf16.msra.mxu0 %v9686_v29  ;;  %v10447_v29 = vld [vmem:[#allocation5 + $0x218] sm:$0xff] }
 0x912   :  { %9555 = vmatpush3.bf16.msra.mxu1 %v9554_v48  ;;  %9688 = vmatprep.subr.bf16.mxu0 %v16169_v4  ;;  %v9602_v13 = vpack.c.bf16 %v10447_v29, %v10446_v36  ;;  %v9605_v48 = vpack.c.bf16 %v10449_v3, %v10448_v5  ;;  %v10484_v29 = vld [vmem:[#allocation5 + $0x340] sm:$0xff]  ;;  %v16236_v3 = vld [vmem:[#allocation74_spill] sm:$0xff] }
 0x913   :  { %9556 = vmatprep.subr.bf16.mxu1 %v16169_v4 }
 0x915   :  { %9690 = vmatpush3.bf16.msra.mxu0 %v9689_v33  ;;  %v9608_v33 = vpack.c.bf16 %v10451_v17, %v10450_v27  ;;  %v10487_v27 = vld [vmem:[#allocation5 + $0x358] sm:$0xff] }
 0x916   :  { %9558 = vmatpush3.bf16.msra.mxu1 %v9557_v37  ;;  %9691 = vmatprep.subr.bf16.mxu0 %v16169_v4  ;;  %v9611_v37 = vpack.c.bf16 %v10453_v24, %v10452_v23  ;;  %v10488_v24 = vld [vmem:[#allocation5 + $0x360] sm:$0xff] }
 0x917   :  { %9559 = vmatprep.subr.bf16.mxu1 %v16169_v4 }
 0x919   :  { %9693 = vmatpush3.bf16.msra.mxu0 %v9692_v52  ;;  %v10455_v52 = vld [vmem:[#allocation5 + $0x258] sm:$0xff] }
 0x91a   :  { %9561 = vmatpush3.bf16.msra.mxu1 %v9560_v19  ;;  %v9614_v25 = vpack.c.bf16 %v10455_v52, %v10454_v49  ;;  %v10457_v19 = vld [vmem:[#allocation5 + $0x268] sm:$0xff]  ;;  %v10490_v49 = vld [vmem:[#allocation5 + $0x370] sm:$0xff]  ;;  %v10491_v52 = vld [vmem:[#allocation5 + $0x378] sm:$0xff] }
 0x91b   :  { %9562 = vmatprep.subr.bf16.mxu1 %v16169_v4  ;;  %v9617_v54 = vpack.c.bf16 %v10457_v19, %v10456_v2  ;;  %v10492_v2 = vld [vmem:[#allocation5 + $0x380] sm:$0xff]  ;;  %v10493_v19 = vld [vmem:[#allocation5 + $0x388] sm:$0xff] }
 0x91c   :  { %9276 = vmatmul.mubr.msk.f32.vlgmr.msra.gmra.mrb[140].mxu0 %vm16220_vm3, %v16219_v8  ;;  %vm16244_vm3 = vcmask 1043459  }
 0x91d   :  { %9067 = vmatmul.mubr.msk.f32.vlgmr.msra.gmra.mrb[28].mxu1 %vm16222_vm2, %v16221_v20  ;;  %v10460_v20 = vld [vmem:[#allocation5 + $0x280] sm:$0xff]  ;;  %vm16245_vm2 = vcmask 1046534  }
 0x91e   :  { %9564 = vmatpush3.bf16.msra.mxu1 %v9563_v42  ;;  %9085 = vmatprep.mubr.msk.f32.mxu1 %vm10700_vm6, %v16168_v61  ;;  %v10459_v42 = vld [vmem:[#allocation5 + $0x278] sm:$0xff]  ;;  %v9623_v11 = vpack.c.bf16 %v10461_v15, %v10460_v20 }
 0x91f   :  { %9565 = vmatprep.subr.bf16.mxu1 %v16169_v4  ;;  %v9620_v8 = vpack.c.bf16 %v10459_v42, %v10458_v28  ;;  %v16238_v28 = vld [vmem:[#allocation137_spill] sm:$0xff] }
 0x920   :  { %v10494_v42 = vld [vmem:[#allocation5 + $0x390] sm:$0xff] }
 0x922   :  { %9567 = vmatpush3.bf16.msra.mxu1 %v9566_v60  ;;  %v16231_v60 = vld [vmem:[#allocation97_spill] sm:$0xff] }
 0x923   :  { %9568 = vmatprep.subr.bf16.mxu1 %v16169_v4 }
 0x926   :  { %9570 = vmatpush3.bf16.msra.mxu1 %v9569_v6  ;;  %v9626_v6 = vpack.c.bf16 %v10463_v38, %v10462_v43 }
 0x927   :  { %9571 = vmatprep.subr.bf16.mxu1 %v16169_v4 }
 0x92a   :  { %9573 = vmatpush3.bf16.msra.mxu1 %v9572_v45  ;;  %v9629_v45 = vpack.c.bf16 %v10465_v35, %v10464_v46  ;;  %v10497_v46 = vld [vmem:[#allocation5 + $0x3a8] sm:$0xff] }
 0x92b   :  { %9574 = vmatprep.subr.bf16.mxu1 %v16169_v4 }
 0x92d   :  { %9086 = vmatmul.mubr.msk.f32.vlgmr.msra.gmra.mrb[0].mxu1 %vm16224_vm14, %v16223_v63  ;;  %v10468_v63 = vld [vmem:[#allocation5 + $0x2c0] sm:$0xff] }
 0x92e   :  { %9576 = vmatpush3.bf16.msra.mxu1 %v9575_v0  ;;  %9104 = vmatprep.mubr.msk.f32.mxu1 %vm10700_vm6, %v16168_v61  ;;  %v9632_v0 = vpack.c.bf16 %v10467_v53, %v10466_v62  ;;  %v9635_v55 = vpack.c.bf16 %v10469_v10, %v10468_v63  ;;  %v10499_v62 = vld [vmem:[#allocation5 + $0x3b8] sm:$0xff] }
 0x92f   :  { %9577 = vmatprep.subr.bf16.mxu1 %v16169_v4 }
 0x932   :  { %9579 = vmatpush3.bf16.msra.mxu1 %v9578_v14  ;;  %v16233_v14 = vld [vmem:[#allocation159_spill] sm:$0xff] }
 0x933   :  { %9580 = vmatprep.subr.bf16.mxu1 %v16169_v4 }
 0x936   :  { %9582 = vmatpush3.bf16.msra.mxu1 %v9581_v21  ;;  %v9638_v21 = vpack.c.bf16 %v10471_v12, %v10470_v58 }
 0x937   :  { %9583 = vmatprep.subr.bf16.mxu1 %v16169_v4 }
 0x93a   :  { %9585 = vmatpush3.bf16.msra.mxu1 %v9584_v40  ;;  %v9641_v40 = vpack.c.bf16 %v10473_v22, %v10472_v32 }
 0x93b   :  { %9586 = vmatprep.subr.bf16.mxu1 %v16169_v4 }
 0x93d   :  { %9105 = vmatmul.mubr.msk.f32.vlgmr.msra.gmra.mrb[2].mxu1 %vm16226_vm11, %v16225_v59  ;;  %v10476_v59 = vld [vmem:[#allocation5 + $0x300] sm:$0xff] }
 0x93e   :  { %9588 = vmatpush3.bf16.msra.mxu1 %v9587_v57  ;;  %9123 = vmatprep.mubr.msk.f32.mxu1 %vm10700_vm6, %v16168_v61  ;;  %v9644_v57 = vpack.c.bf16 %v10475_v56, %v10474_v7  ;;  %v9647_v51 = vpack.c.bf16 %v10477_v30, %v10476_v59 }
 0x93f   :  { %9589 = vmatprep.subr.bf16.mxu1 %v16169_v4 }
 0x942   :  { %9591 = vmatpush3.bf16.msra.mxu1 %v9590_v26  ;;  %v16235_v26 = vld [vmem:[#allocation78_spill] sm:$0xff] }
 0x943   :  { %9592 = vmatprep.subr.bf16.mxu1 %v16169_v4 }
 0x946   :  { %9594 = vmatpush3.bf16.msra.mxu1 %v9593_v47  ;;  %v9650_v47 = vpack.c.bf16 %v10479_v1, %v10478_v31 }
 0x947   :  { %9595 = vmatprep.subr.bf16.mxu1 %v16169_v4 }
 0x94a   :  { %9597 = vmatpush3.bf16.msra.mxu1 %v9596_v39  ;;  %v10480_v39 = vld [vmem:[#allocation5 + $0x320] sm:$0xff] }
 0x94b   :  { %9598 = vmatprep.subr.bf16.mxu1 %v16169_v4  ;;  %v9653_v41 = vpack.c.bf16 %v10481_v44, %v10480_v39 }
 0x94d   :  { %9124 = vmatmul.mubr.msk.f32.vlgmr.msra.gmra.mrb[4].mxu1 %vm16228_vm5, %v16227_v18  ;;  %v10483_v18 = vld [vmem:[#allocation5 + $0x338] sm:$0xff] }
 0x94e   :  { %9600 = vmatpush3.bf16.msra.mxu1 %v9599_v50  ;;  %9142 = vmatprep.mubr.msk.f32.mxu1 %vm10700_vm6, %v16168_v61  ;;  %v10482_v50 = vld [vmem:[#allocation5 + $0x330] sm:$0xff] }
 0x94f   :  { %9601 = vmatprep.subr.bf16.mxu1 %v16169_v4  ;;  %v9656_v36 = vpack.c.bf16 %v10483_v18, %v10482_v50 }
 0x952   :  { %9603 = vmatpush3.bf16.msra.mxu1 %v9602_v13  ;;  %v10485_v13 = vld [vmem:[#allocation5 + $0x348] sm:$0xff] }
 0x953   :  { %9604 = vmatprep.subr.bf16.mxu1 %v16169_v4  ;;  %v9659_v5 = vpack.c.bf16 %v10485_v13, %v10484_v29 }
 0x956   :  { %9606 = vmatpush3.bf16.msra.mxu1 %v9605_v48  ;;  %v10486_v48 = vld [vmem:[#allocation5 + $0x350] sm:$0xff] }
 0x957   :  { %9607 = vmatprep.subr.bf16.mxu1 %v16169_v4  ;;  %v9662_v17 = vpack.c.bf16 %v10487_v27, %v10486_v48 }
 0x95a   :  { %9609 = vmatpush3.bf16.msra.mxu1 %v9608_v33 }
 0x95b   :  { %9610 = vmatprep.subr.bf16.mxu1 %v16169_v4 }
 0x95d   :  { %9143 = vmatmul.mubr.msk.f32.vlgmr.msra.gmra.mrb[6].mxu1 %vm16230_vm1, %v16229_v16 }
 0x95e   :  { %9612 = vmatpush3.bf16.msra.mxu1 %v9611_v37  ;;  %9161 = vmatprep.mubr.msk.f32.mxu1 %vm10700_vm6, %v16168_v61  ;;  %v10489_v37 = vld [vmem:[#allocation5 + $0x368] sm:$0xff] }
 0x95f   :  { %9613 = vmatprep.subr.bf16.mxu1 %v16169_v4  ;;  %v9665_v16 = vpack.c.bf16 %v10489_v37, %v10488_v24 }
 0x962   :  { %9615 = vmatpush3.bf16.msra.mxu1 %v9614_v25  ;;  %v9668_v25 = vpack.c.bf16 %v10491_v52, %v10490_v49 }
 0x963   :  { %9616 = vmatprep.subr.bf16.mxu1 %v16169_v4 }
 0x966   :  { %9618 = vmatpush3.bf16.msra.mxu1 %v9617_v54  ;;  %v9671_v54 = vpack.c.bf16 %v10493_v19, %v10492_v2 }
 0x967   :  { %9619 = vmatprep.subr.bf16.mxu1 %v16169_v4 }
 0x96a   :  { %9621 = vmatpush3.bf16.msra.mxu1 %v9620_v8  ;;  %v10495_v8 = vld [vmem:[#allocation5 + $0x398] sm:$0xff] }
 0x96b   :  { %9622 = vmatprep.subr.bf16.mxu1 %v16169_v4  ;;  %v9674_v20 = vpack.c.bf16 %v10495_v8, %v10494_v42 }
 0x96d   :  { %9162 = vmatmul.mubr.msk.f32.vlgmr.msra.gmra.mrb[8].mxu1 %vm16232_vm8, %v16231_v60 }
 0x96e   :  { %9624 = vmatpush3.bf16.msra.mxu1 %v9623_v11  ;;  %9180 = vmatprep.mubr.msk.f32.mxu1 %vm10700_vm6, %v16168_v61 }
 0x96f   :  { %9625 = vmatprep.subr.bf16.mxu1 %v16169_v4 }
 0x972   :  { %9627 = vmatpush3.bf16.msra.mxu1 %v9626_v6  ;;  %v10496_v6 = vld [vmem:[#allocation5 + $0x3a0] sm:$0xff] }
 0x973   :  { %9628 = vmatprep.subr.bf16.mxu1 %v16169_v4  ;;  %v9677_v35 = vpack.c.bf16 %v10497_v46, %v10496_v6 }
 0x976   :  { %9630 = vmatpush3.bf16.msra.mxu1 %v9629_v45  ;;  %v10498_v45 = vld [vmem:[#allocation5 + $0x3b0] sm:$0xff] }
 0x977   :  { %9631 = vmatprep.subr.bf16.mxu1 %v16169_v4  ;;  %v9680_v53 = vpack.c.bf16 %v10499_v62, %v10498_v45 }
 0x97a   :  { %9633 = vmatpush3.bf16.msra.mxu1 %v9632_v0 }
 0x97b   :  { %9634 = vmatprep.subr.bf16.mxu1 %v16169_v4 }
 0x97d   :  { %9181 = vmatmul.mubr.msk.f32.vlgmr.msra.gmra.mrb[10].mxu1 %vm16234_vm13, %v16233_v14 }
 0x97e   :  { %9636 = vmatpush3.bf16.msra.mxu1 %v9635_v55  ;;  %9199 = vmatprep.mubr.msk.f32.mxu1 %vm10700_vm6, %v16168_v61 }
 0x97f   :  { %9637 = vmatprep.subr.bf16.mxu1 %v16169_v4 }
 0x982   :  { %9639 = vmatpush3.bf16.msra.mxu1 %v9638_v21 }
 0x983   :  { %9640 = vmatprep.subr.bf16.mxu1 %v16169_v4 }
 0x986   :  { %9642 = vmatpush3.bf16.msra.mxu1 %v9641_v40 }
 0x987   :  { %9643 = vmatprep.subr.bf16.mxu1 %v16169_v4 }
 0x98a   :  { %9645 = vmatpush3.bf16.msra.mxu1 %v9644_v57 }
 0x98b   :  { %9646 = vmatprep.subr.bf16.mxu1 %v16169_v4 }
 0x98d   :  { %9200 = vmatmul.mubr.msk.f32.vlgmr.msra.gmra.mrb[12].mxu1 %vm16100_vm0, %v16235_v26 }
 0x98e   :  { %9648 = vmatpush3.bf16.msra.mxu1 %v9647_v51  ;;  %9218 = vmatprep.mubr.msk.f32.mxu1 %vm10700_vm6, %v16168_v61 }
 0x98f   :  { %v5073_v34 = vpop.f32.mrb[130].mxu0  ;;  %9649 = vmatprep.subr.bf16.mxu1 %v16169_v4 }
 0x990   :  { %v8688_v9 = vpop.f32.mrb[131].mxu0 }
 0x992   :  { %9651 = vmatpush3.bf16.msra.mxu1 %v9650_v47 }
 0x993   :  { %9652 = vmatprep.subr.bf16.mxu1 %v16169_v4 }
 0x996   :  { %9654 = vmatpush3.bf16.msra.mxu1 %v9653_v41 }
 0x997   :  { %9655 = vmatprep.subr.bf16.mxu1 %v16169_v4 }
 0x99a   :  { %9657 = vmatpush3.bf16.msra.mxu1 %v9656_v36 }
 0x99b   :  { %9658 = vmatprep.subr.bf16.mxu1 %v16169_v4 }
 0x99d   :  { %9219 = vmatmul.mubr.msk.f32.vlgmr.msra.gmra.mrb[14].mxu1 %vm16237_vm7, %v16236_v3 }
 0x99e   :  { %9660 = vmatpush3.bf16.msra.mxu1 %v9659_v5  ;;  %9237 = vmatprep.mubr.msk.f32.mxu1 %vm10700_vm6, %v16168_v61 }
 0x99f   :  { %v5175_v33 = vpop.f32.mrb[132].mxu0  ;;  %9661 = vmatprep.subr.bf16.mxu1 %v16169_v4 }
 0x9a0   :  { %v8707_v23 = vpop.f32.mrb[133].mxu0 }
 0x9a2   :  { %9663 = vmatpush3.bf16.msra.mxu1 %v9662_v17 }
 0x9a3   :  { %9664 = vmatprep.subr.bf16.mxu1 %v16169_v4 }
 0x9a6   :  { %9666 = vmatpush3.bf16.msra.mxu1 %v9665_v16 }
 0x9a7   :  { %9667 = vmatprep.subr.bf16.mxu1 %v16169_v4 }
 0x9aa   :  { %9669 = vmatpush3.bf16.msra.mxu1 %v9668_v25 }
 0x9ab   :  { %9670 = vmatprep.subr.bf16.mxu1 %v16169_v4 }
 0x9ad   :  { %9238 = vmatmul.mubr.msk.f32.vlgmr.msra.gmra.mrb[16].mxu1 %vm16239_vm10, %v16238_v28 }
 0x9ae   :  { %9672 = vmatpush3.bf16.msra.mxu1 %v9671_v54  ;;  %9256 = vmatprep.mubr.msk.f32.mxu1 %vm10700_vm6, %v16168_v61  ;;  %v16240_v61 = vld [vmem:[#allocation164_spill] sm:$0xff]  ;;  %vm16241_vm6 = vmmov %vm16100_vm0 }
 0x9af   :  { %v5277_v15 = vpop.f32.mrb[134].mxu0  ;;  %9673 = vmatprep.subr.bf16.mxu1 %v16169_v4 }
 0x9b0   :  { %v6675_v11 = vpop.f32.mrb[20].mxu1  ;;  %v8726_v60 = vpop.f32.mrb[135].mxu0 }
 0x9b1   :  { %v6676_v43 = vadd.f32 %v6675_v11, %v5073_v34  ;;  %v8992_v38 = vpop.f32.mrb[21].mxu1 }
 0x9b2   :  { %9675 = vmatpush3.bf16.msra.mxu1 %v9674_v20 }
 0x9b3   :  { %9676 = vmatprep.subr.bf16.mxu1 %v16169_v4 }
 0x9b6   :  { %9678 = vmatpush3.bf16.msra.mxu1 %v9677_v35 }
 0x9b7   :  { %9679 = vmatprep.subr.bf16.mxu1 %v16169_v4 }
 0x9ba   :  { %9681 = vmatpush3.bf16.msra.mxu1 %v9680_v53 }
 0x9bd   :  { %9257 = vmatmul.mubr.msk.f32.vlgmr.msra.gmra.mrb[18].mxu1 %vm16241_vm6, %v16240_v61 }
 0x9bf   :  { %v5379_v0 = vpop.f32.mrb[136].mxu0 }
 0x9c0   :  { %v6747_v63 = vpop.f32.mrb[22].mxu1  ;;  %v8745_v10 = vpop.f32.mrb[137].mxu0 }
 0x9c1   :  { %v6748_v55 = vadd.f32 %v6747_v63, %v5175_v33  ;;  %v9011_v14 = vpop.f32.mrb[23].mxu1 }
 0x9c3   :  { %v7775_v58 = vrot.slane %v6748_v55, 7 }
 0x9c5   :  { %v7776_v12 = vsel %vm16242_vm15, %v7775_v58, %v6676_v43 }
 0x9cf   :  { %v5481_v21 = vpop.f32.mrb[138].mxu0 }
 0x9d0   :  { %v6819_v32 = vpop.f32.mrb[24].mxu1  ;;  %v8764_v22 = vpop.f32.mrb[139].mxu0 }
 0x9d1   :  { %v6820_v40 = vadd.f32 %v6819_v32, %v5277_v15  ;;  %v9030_v7 = vpop.f32.mrb[25].mxu1 }
 0x9d3   :  { %v7777_v56 = vrot.slane %v6820_v40, 6 }
 0x9d5   :  { %v7778_v4 = vsel %vm16243_vm12, %v7777_v56, %v7776_v12 }
 0x9e0   :  { %v6891_v57 = vpop.f32.mrb[26].mxu1 }
 0x9e1   :  { %v6892_v59 = vadd.f32 %v6891_v57, %v5379_v0  ;;  %v9049_v30 = vpop.f32.mrb[27].mxu1 }
 0x9e3   :  { %v7779_v51 = vrot.slane %v6892_v59, 5 }
 0x9e5   :  { %v7780_v26 = vsel %vm16244_vm3, %v7779_v51, %v7778_v4 }
 0x9ef   :  { %v15079_v31 = vpop.f32.mrb[140].mxu0 }
 0x9f0   :  { %v6963_v1 = vpop.f32.mrb[28].mxu1  ;;  %v9277_v47 = vpop.f32.mrb[141].mxu0 }
 0x9f1   :  { %v6964_v34 = vadd.f32 %v6963_v1, %v5481_v21  ;;  %v9068_v9 = vpop.f32.mrb[29].mxu1 }
 0x9f3   :  { %v7781_v39 = vrot.slane %v6964_v34, 4 }
 0x9f5   :  { %v7782_v44 = vsel %vm4049_vm9, %v7781_v39, %v7780_v26 }
 0xa00   :  { %v7035_v41 = vpop.f32.mrb[0].mxu1 }
 0xa01   :  { %v7783_v50 = vrot.slane %v7035_v41, 3  ;;  %v9087_v18 = vpop.f32.mrb[1].mxu1 }
 0xa03   :  { %v7784_v36 = vsel %vm4051_vm4, %v7783_v50, %v7782_v44 }
 0xa10   :  { %v7107_v29 = vpop.f32.mrb[2].mxu1 }
 0xa11   :  { %v7785_v13 = vrot.slane %v7107_v29, 2  ;;  %v9106_v5 = vpop.f32.mrb[3].mxu1 }
 0xa13   :  { %v7786_v3 = vsel %vm16245_vm2, %v7785_v13, %v7784_v36 }
 0xa14   :  { %10643 = shalt.err (!%p10640_p10)
}
 0xa15   :  { %s10644_s10 = scalar_lea.hbm %s15132_s7, 256 }
 0xa16   :  { %p10645_p11 = scmp.ne.s32.totalorder %s15132_s7, %s10644_s10  ;;  %p10648_p12 = scmp.lt.u32.totalorder %s10644_s10, %s15132_s7 }
 0xa18   :  { %p10650_p13 = pnand %p10648_p12, %p10645_p11 }
 0xa1a   :  { %10653 = shalt.err (!%p10650_p13)
}
 0xa1b   :  { %7833 = dma.vmem_to_hbm [thread:$0]  %s7828_s28, 256, %s15132_s7, [#allocation15], %s10690_s13, %s10690_s13, %s10691_s14   ;;  %vm7805_vm14 = vcmask 261120   ;;  %vm16246_vm11 = vcmask 1047559   ;;  %vm16247_vm5 = vmmov %vm16242_vm15  ;;  %v7801_v0 = vrot.slane %v15079_v31, 1 }
 0xa1c   :  { %vm16248_vm1 = vmmov %vm16243_vm12  ;;  %s10703_s7 = smov [#allocation13]  }
 0xa1d   :  { %vm16249_vm8 = vmmov %vm16244_vm3  ;;  %s7815_s30 = sshll.u32 %s10703_s7, 4  ;;  %s7816_s30 = int_to_ptr.vmem [resolvable:$true] %s7815_s30 }
 0xa1e   :  { %vm16250_vm13 = vmmov %vm16245_vm2  ;;  %s10654_s27 = scalar_lea.vmem %s7816_s30, 256  ;;  %p10659_p1 = scmp.lt.s32.totalorder %s7816_s30, %s7816_s30 }
 0xa1f   :  { %vm16251_vm0 = vmmov %vm16246_vm11  ;;  %p10655_p0 = scmp.ne.s32.totalorder %s7816_s30, %s10654_s27  ;;  %p10660_p2 = scmp.lt.s32.totalorder %s10654_s27, %s10654_s27 }
 0xa20   :  { %v7179_v48 = vpop.f32.mrb[4].mxu1 }
 0xa21   :  { %v7787_v27 = vrot.slane %v7179_v48, 1  ;;  %v9125_v17 = vpop.f32.mrb[5].mxu1  ;;  %p10661_p3 = por %p10660_p2, %p10659_p1 }
 0xa23   :  { %v7788_v33 = vsel %vm16246_vm11, %v7787_v27, %v7786_v3  ;;  %p10662_p4 = pnand %p10661_p3, %p10655_p0 }
 0xa24   :  { %v7806_v23 = vsel %vm7805_vm14, %v7788_v33, 0.0 }
 0xa25   :  { %7808 = vst [vmem:[#allocation13] sm:$0xff] %v7806_v23 }
 0xa30   :  { %v7251_v24 = vpop.f32.mrb[6].mxu1 }
 0xa31   :  { %v9144_v37 = vpop.f32.mrb[7].mxu1 }
 0xa40   :  { %v7323_v16 = vpop.f32.mrb[8].mxu1 }
 0xa41   :  { %v7789_v49 = vrot.slane %v7323_v16, 7  ;;  %v9163_v52 = vpop.f32.mrb[9].mxu1 }
 0xa43   :  { %v7790_v25 = vsel %vm16247_vm5, %v7789_v49, %v7251_v24 }
 0xa50   :  { %v7395_v2 = vpop.f32.mrb[10].mxu1 }
 0xa51   :  { %v7791_v19 = vrot.slane %v7395_v2, 6  ;;  %v9182_v54 = vpop.f32.mrb[11].mxu1 }
 0xa53   :  { %v7792_v28 = vsel %vm16248_vm1, %v7791_v19, %v7790_v25 }
 0xa60   :  { %v7467_v42 = vpop.f32.mrb[12].mxu1 }
 0xa61   :  { %v7793_v8 = vrot.slane %v7467_v42, 5  ;;  %v9201_v20 = vpop.f32.mrb[13].mxu1 }
 0xa63   :  { %v7794_v15 = vsel %vm16249_vm8, %v7793_v8, %v7792_v28 }
 0xa70   :  { %v7539_v11 = vpop.f32.mrb[14].mxu1 }
 0xa71   :  { %v7795_v60 = vrot.slane %v7539_v11, 4  ;;  %v9220_v43 = vpop.f32.mrb[15].mxu1 }
 0xa73   :  { %v7796_v38 = vsel %vm4049_vm9, %v7795_v60, %v7794_v15 }
 0xa80   :  { %v7611_v6 = vpop.f32.mrb[16].mxu1 }
 0xa81   :  { %v7797_v46 = vrot.slane %v7611_v6, 3  ;;  %v9239_v35 = vpop.f32.mrb[17].mxu1 }
 0xa83   :  { %v7798_v45 = vsel %vm4051_vm4, %v7797_v46, %v7796_v38 }
 0xa90   :  { %v7683_v62 = vpop.f32.mrb[18].mxu1 }
 0xa91   :  { %v7799_v53 = vrot.slane %v7683_v62, 2  ;;  %v9258_v61 = vpop.f32.mrb[19].mxu1 }
 0xa93   :  { %v7800_v63 = vsel %vm16250_vm13, %v7799_v53, %v7798_v45 }
 0xa94   :  { %v7802_v10 = vsel %vm16251_vm0, %v7801_v0, %v7800_v63 }
 0xa95   :  { %v7807_v55 = vsel %vm7805_vm14, %v7802_v10, 0.0 }
 0xa96   :  { %7809 = vst [vmem:[#allocation13 + $0x8] sm:$0xff] %v7807_v55 }
 0xa97   :  { %10665 = shalt.err (!%p10662_p4)
}
 0xa98   :  { %s10666_s19 = scalar_lea.hbm %s15131_s6, 256 }
 0xa99   :  { %p10667_p5 = scmp.ne.s32.totalorder %s15131_s6, %s10666_s19  ;;  %p10670_p6 = scmp.lt.u32.totalorder %s10666_s19, %s15131_s6 }
 0xa9b   :  { %p10672_p7 = pnand %p10670_p6, %p10667_p5 }
 0xa9d   :  { %10675 = shalt.err (!%p10672_p7)
}
 0xa9e   :  { %7821 = dma.vmem_to_hbm [thread:$0]  %s7816_s30, 256, %s15131_s6, [#allocation4], %s10690_s13, %s10690_s13, %s10691_s14  }
 0xa9f   :  { %10684 = dma.done.wait [#allocation4], 256  }
 0xaa0   :  { %10685 = vsyncadd [#allocation4], 4294967040 }
 0xaa1   :  { %10686 = dma.done.wait [#allocation15], 256  }
 0xaa2   :  { %10687 = vsyncadd [#allocation15], 4294967040 }
 0xaa3   :  { %7840 = vsyncpa [#allocation3], 1 }
 0xaa4   :  { %7841 = vsyncpa [#allocation6], 1 }
 0xaa5   :  { %7842 = vsyncpa [#allocation9], 1 }
 0xaa6   :  { %7843 = vsyncpa [#allocation12], 1 }
 0xaa7   :  { %7844 = vsyncpa [#allocation4], 1 }
 0xaa8   :  { %7845 = vsyncpa [#allocation15], 1 }

</bundles_post_ra>
